<compile_context>
chip_gen: v6e
topology: v6e:2x2x1
jax: 0.10.0
libtpu: 0.0.40
codegen_flags: <defaults>
</compile_context>

<pallas_src>
import functools
import math

import numpy as np
import jax
import jax.numpy as jnp
from jax.experimental import pallas as pl
from jax.experimental.pallas import tpu as pltpu

BN_EPS = 1e-5


def _cp():
    return pltpu.CompilerParams(dimension_semantics=("parallel",),
                                vmem_limit_bytes=32 * 1024 * 1024)


# ---------------------------------------------------------------------------
# Host-side constant builders (trace-time numpy; shapes are static)
# ---------------------------------------------------------------------------

def _lin_coeffs(n):
    """2-tap coefficients of bilinear x2 upsample, align_corners=True."""
    out = []
    for o in range(2 * n):
        if n == 1:
            out.append((0, 0, 0.0))
            continue
        src = o * (n - 1) / (2 * n - 1)
        i0 = min(int(math.floor(src)), n - 2)
        out.append((i0, i0 + 1, src - i0))
    return out


def _upsample_matrix(h, w):
    """(2h*2w, h*w) bilinear-x2 spatial map (row-major output), f32."""
    rh, rw = _lin_coeffs(h), _lin_coeffs(w)
    U = np.zeros((2 * h * 2 * w, h * w), np.float32)
    for o, (i0, i1, f) in enumerate(rh):
        for q, (j0, j1, g) in enumerate(rw):
            r = o * (2 * w) + q
            U[r, i0 * w + j0] += (1.0 - f) * (1.0 - g)
            U[r, i0 * w + j1] += (1.0 - f) * g
            U[r, i1 * w + j0] += f * (1.0 - g)
            U[r, i1 * w + j1] += f * g
    return U


def _upsample_pad_matrix(h, w, P, Wp, s_ext):
    """Upsample map folded with the zero-pad ring + zero tail of the flat
    conv layout: (s_ext, h*w).  Rows for pad/tail positions are all-zero."""
    base = _upsample_matrix(h, w)
    M = np.zeros((s_ext, h * w), np.float32)
    for o in range(2 * h):
        for q in range(2 * w):
            M[(o + P) * Wp + (q + P)] = base[o * (2 * w) + q]
    return M


def _geom(Ho, Wo, K, P):
    Hp, Wp = Ho + 2 * P, Wo + 2 * P
    shift = P * Wp + P
    Simg = Hp * Wp
    return Hp, Wp, Simg, shift, Simg + 2 * shift


def _valid_mask(Ho, Wo, Hp, Wp):
    m = np.zeros((Hp, Wp), np.float32)
    m[:Ho, :Wo] = 1.0
    return jnp.asarray(m.reshape(Hp * Wp, 1))


# ---------------------------------------------------------------------------
# In-kernel helpers (traced inside Pallas kernels)
# ---------------------------------------------------------------------------

def _conv_taps(x_ext_bf16, w_ref, *, K, Wp, Simg):
    """KxK conv on a zero-padded flat image as K*K accumulated MXU matmuls.

    x_ext_bf16 : (Simg + (K-1)*(Wp+1), Cin) bf16 value (cast exactly once).
    w_ref      : (K*K, Cin, Cout) bf16 ref.
    No im2col patch is materialized; per-tap f32 results are row-shift-sliced
    and accumulated in f32.
    """
    acc = None
    t = 0
    for dh in range(K):
        for dw in range(K):
            off = dh * Wp + dw
            part = jnp.dot(x_ext_bf16, w_ref[t],
                           preferred_element_type=jnp.float32)
            part = part[off:off + Simg, :]
            acc = part if acc is None else acc + part
            t += 1
    return acc


def _partial_stats(y, mask):
    """Per-tile masked (sum, sum-of-squares) partials, padded to 8 sublanes."""
    sm = jnp.sum(y * mask, axis=0, keepdims=True)
    sq = jnp.sum(y * y * mask, axis=0, keepdims=True)
    pad = jnp.zeros((6, y.shape[-1]), jnp.float32)
    return jnp.concatenate([sm, sq, pad], axis=0)


# ---------------------------------------------------------------------------
# Pallas kernels (grid = (N,), one image per step, "parallel")
# ---------------------------------------------------------------------------

def _conv_a_kernel(x_ref, mask_ref, w_ref, y_ref, st_ref, *, K, Wp, Simg):
    """First conv of a Down DoubleConv.  x: (1, Simg+2*shift, Cin) flat padded
    (zero tail pre-baked in the HBM layout -> no in-kernel concat)."""
    xb = x_ref[0].astype(jnp.bfloat16)
    y = _conv_taps(xb, w_ref, K=K, Wp=Wp, Simg=Simg)
    y_ref[0] = y
    st_ref[0] = _partial_stats(y, mask_ref[...])


def _up_conv_a_kernel(x1_ref, x2_ref, u_ref, mask_ref, w_ref, y_ref, st_ref,
                      *, K, Wp, Simg):
    """First conv of an Up DoubleConv, fused with the Up front-end:
    bilinear x2 of x1 & x2 + cat([x2, x1]) + zero-pad + flatten are one
    spatial-map matmul (no HBM round trip for the upsampled activation)."""
    xcat = jnp.concatenate([x2_ref[0], x1_ref[0]], axis=-1)  # torch.cat([x2,x1],1)
    xup = jnp.dot(u_ref[...], xcat, preferred_element_type=jnp.float32)
    xb = xup.astype(jnp.bfloat16)
    y = _conv_taps(xb, w_ref, K=K, Wp=Wp, Simg=Simg)
    y_ref[0] = y
    st_ref[0] = _partial_stats(y, mask_ref[...])


def _conv_b_kernel(y1_ref, sc_ref, bi_ref, mask_ref, w_ref, y_ref, st_ref,
                   scr_ref, *, K, Wp, Simg, shift):
    """Second conv of a DoubleConv: apply BN1 (precomputed scale/bias) + ReLU
    + validity mask (the mask is what makes the flat-shift pad trick valid),
    stage into a zero-guarded VMEM scratch (no concatenates), then conv2."""
    t = jnp.maximum(y1_ref[0] * sc_ref[...] + bi_ref[...], 0.0) * mask_ref[...]
    cmid = t.shape[-1]
    scr_ref[0:shift, :] = jnp.zeros((shift, cmid), jnp.float32)
    scr_ref[shift + Simg:shift + Simg + shift, :] = jnp.zeros((shift, cmid),
                                                              jnp.float32)
    scr_ref[shift:shift + Simg, :] = t
    xb = scr_ref[...].astype(jnp.bfloat16)          # single f32 -> bf16 cast
    y = _conv_taps(xb, w_ref, K=K, Wp=Wp, Simg=Simg)
    y_ref[0] = y
    st_ref[0] = _partial_stats(y, mask_ref[...])


def _bn_relu_kernel(y_ref, sc_ref, bi_ref, o_ref):
    """Finalize: BN2 apply + ReLU (elementwise, per-image block)."""
    o_ref[0] = jnp.maximum(y_ref[0] * sc_ref[...] + bi_ref[...], 0.0)


def _outconv_kernel(x_ref, w_ref, b_ref, u_ref, o_ref):
    """OutConv: 1x1 conv (one matmul, commuted before the linear weight-sum-1
    upsample) -> x2 bilinear upsample matmul -> sigmoid."""
    z = jnp.dot(x_ref[0], w_ref[...], preferred_element_type=jnp.float32)
    z = z + b_ref[...]
    y = jnp.dot(u_ref[...], z, preferred_element_type=jnp.float32)
    o_ref[0] = 1.0 / (1.0 + jnp.exp(-y))


# ---------------------------------------------------------------------------
# pallas_call wrappers
# ---------------------------------------------------------------------------

def _conv_stats_call(x_flat_ext, mask, w, K, Wp, Simg):
    N, Sext, Cin = x_flat_ext.shape
    Cout = w.shape[-1]
    kern = functools.partial(_conv_a_kernel, K=K, Wp=Wp, Simg=Simg)
    return pl.pallas_call(
        kern, grid=(N,),
        out_shape=(jax.ShapeDtypeStruct((N, Simg, Cout), jnp.float32),
                   jax.ShapeDtypeStruct((N, 8, Cout), jnp.float32)),
        in_specs=[pl.BlockSpec((1, Sext, Cin), lambda n: (n, 0, 0)),
                  pl.BlockSpec((Simg, 1), lambda n: (0, 0)),
                  pl.BlockSpec(w.shape, lambda n: (0, 0, 0))],
        out_specs=(pl.BlockSpec((1, Simg, Cout), lambda n: (n, 0, 0)),
                   pl.BlockSpec((1, 8, Cout), lambda n: (n, 0, 0))),
        compiler_params=_cp(),
    )(x_flat_ext, mask, w)


def _up_conv_stats_call(x1f, x2f, U, mask, w, K, Wp, Simg):
    N, hw, C1 = x1f.shape
    C2 = x2f.shape[-1]
    Cout = w.shape[-1]
    Sext = U.shape[0]
    kern = functools.partial(_up_conv_a_kernel, K=K, Wp=Wp, Simg=Simg)
    return pl.pallas_call(
        kern, grid=(N,),
        out_shape=(jax.ShapeDtypeStruct((N, Simg, Cout), jnp.float32),
                   jax.ShapeDtypeStruct((N, 8, Cout), jnp.float32)),
        in_specs=[pl.BlockSpec((1, hw, C1), lambda n: (n, 0, 0)),
                  pl.BlockSpec((1, hw, C2), lambda n: (n, 0, 0)),
                  pl.BlockSpec((Sext, hw), lambda n: (0, 0)),
                  pl.BlockSpec((Simg, 1), lambda n: (0, 0)),
                  pl.BlockSpec(w.shape, lambda n: (0, 0, 0))],
        out_specs=(pl.BlockSpec((1, Simg, Cout), lambda n: (n, 0, 0)),
                   pl.BlockSpec((1, 8, Cout), lambda n: (n, 0, 0))),
        compiler_params=_cp(),
    )(x1f, x2f, U, mask, w)


def _conv2_stats_call(y1, scale, bias, mask, w, K, Wp, Simg, shift):
    N, _, Cmid = y1.shape
    Cout = w.shape[-1]
    kern = functools.partial(_conv_b_kernel, K=K, Wp=Wp, Simg=Simg, shift=shift)
    return pl.pallas_call(
        kern, grid=(N,),
        out_shape=(jax.ShapeDtypeStruct((N, Simg, Cout), jnp.float32),
                   jax.ShapeDtypeStruct((N, 8, Cout), jnp.float32)),
        in_specs=[pl.BlockSpec((1, Simg, Cmid), lambda n: (n, 0, 0)),
                  pl.BlockSpec((1, Cmid), lambda n: (0, 0)),
                  pl.BlockSpec((1, Cmid), lambda n: (0, 0)),
                  pl.BlockSpec((Simg, 1), lambda n: (0, 0)),
                  pl.BlockSpec(w.shape, lambda n: (0, 0, 0))],
        out_specs=(pl.BlockSpec((1, Simg, Cout), lambda n: (n, 0, 0)),
                   pl.BlockSpec((1, 8, Cout), lambda n: (n, 0, 0))),
        scratch_shapes=[pltpu.VMEM((Simg + 2 * shift, Cmid), jnp.float32)],
        compiler_params=_cp(),
    )(y1, scale, bias, mask, w)


def _bn_relu_call(y, scale, bias):
    N, Simg, C = y.shape
    return pl.pallas_call(
        _bn_relu_kernel, grid=(N,),
        out_shape=jax.ShapeDtypeStruct((N, Simg, C), jnp.float32),
        in_specs=[pl.BlockSpec((1, Simg, C), lambda n: (n, 0, 0)),
                  pl.BlockSpec((1, C), lambda n: (0, 0)),
                  pl.BlockSpec((1, C), lambda n: (0, 0))],
        out_specs=pl.BlockSpec((1, Simg, C), lambda n: (n, 0, 0)),
        compiler_params=_cp(),
    )(y, scale, bias)


# ---------------------------------------------------------------------------
# BatchNorm stats glue (tiny XLA reductions on (8, C) partials)
# ---------------------------------------------------------------------------

def _bn_scale_bias(stats, gamma, beta, count):
    tot = jnp.sum(stats, axis=0)                    # (8, C)
    mean = tot[0] / count
    var = jnp.maximum(tot[1] / count - mean * mean, 0.0)   # biased (training BN)
    scale = gamma[0] * jax.lax.rsqrt(var + BN_EPS)
    bias = beta[0] - mean * scale
    return scale[None, :], bias[None, :]


def _double_conv(first_conv_fn, p, K, Wp, Simg, shift, mask, count):
    y1, st1 = first_conv_fn()
    s1, b1 = _bn_scale_bias(st1, p["bn1"]["g"], p["bn1"]["beta"], count)
    y2, st2 = _conv2_stats_call(y1, s1, b1, mask, p["c2"]["w"], K, Wp, Simg, shift)
    s2, b2 = _bn_scale_bias(st2, p["bn2"]["g"], p["bn2"]["beta"], count)
    return _bn_relu_call(y2, s2, b2)


# ---------------------------------------------------------------------------
# Blocks
# ---------------------------------------------------------------------------

def down_block(x, p, K, P):
    """Down = MaxPool2d(2) + DoubleConv.  x: (N, H, W, Cin) NHWC."""
    N, H, W, Cin = x.shape
    Ho, Wo = H // 2, W // 2
    Hp, Wp, Simg, shift, Sext = _geom(Ho, Wo, K, P)
    # MaxPool2d(2): one fused XLA max of four strided views (input read once).
    x = x[:, :2 * Ho, :2 * Wo, :]
    pooled = jnp.maximum(jnp.maximum(x[:, 0::2, 0::2], x[:, 0::2, 1::2]),
                         jnp.maximum(x[:, 1::2, 0::2], x[:, 1::2, 1::2]))
    # Embed into the zero-padded flat layout with a zero tail baked in so the
    # conv kernel never needs an in-kernel tail concat.
    xp = jnp.pad(pooled, ((0, 0), (P, P), (P, P), (0, 0)))
    xf = jnp.pad(xp.reshape(N, Simg, Cin), ((0, 0), (0, 2 * shift), (0, 0)))
    mask = _valid_mask(Ho, Wo, Hp, Wp)
    count = float(N * Ho * Wo)
    out = _double_conv(
        lambda: _conv_stats_call(xf, mask, p["c1"]["w"], K, Wp, Simg),
        p, K, Wp, Simg, shift, mask, count)
    Cout = p["c1"]["w"].shape[-1]
    return out.reshape(N, Hp, Wp, Cout)[:, :Ho, :Wo, :]


def up_block(x1, x2, p, K, P):
    """Up = (upsample x1, upsample x2, cat([x2, x1]), pad) fused into conv1,
    then the rest of the DoubleConv."""
    N, h, w, C1 = x1.shape
    C2 = x2.shape[-1]
    Ho, Wo = 2 * h, 2 * w
    Hp, Wp, Simg, shift, Sext = _geom(Ho, Wo, K, P)
    U = jnp.asarray(_upsample_pad_matrix(h, w, P, Wp, Sext))
    x1f = x1.reshape(N, h * w, C1)
    x2f = x2.reshape(N, h * w, C2)
    mask = _valid_mask(Ho, Wo, Hp, Wp)
    count = float(N * Ho * Wo)
    out = _double_conv(
        lambda: _up_conv_stats_call(x1f, x2f, U, mask, p["c1"]["w"], K, Wp, Simg),
        p, K, Wp, Simg, shift, mask, count)
    Cout = p["c1"]["w"].shape[-1]
    return out.reshape(N, Hp, Wp, Cout)[:, :Ho, :Wo, :]


def out_conv(x, w1x1, b):
    """OutConv: bilinear x2 upsample -> 1x1 conv -> sigmoid (conv commuted
    before the linear, weight-sum-1 upsample; fused in one kernel)."""
    N, H, W, C = x.shape
    Cout = w1x1.shape[-1]
    Uo = jnp.asarray(_upsample_matrix(H, W))        # (4*H*W, H*W)
    xf = x.reshape(N, H * W, C)
    y = pl.pallas_call(
        _outconv_kernel, grid=(N,),
        out_shape=jax.ShapeDtypeStruct((N, 4 * H * W, Cout), jnp.float32),
        in_specs=[pl.BlockSpec((1, H * W, C), lambda n: (n, 0, 0)),
                  pl.BlockSpec((C, Cout), lambda n: (0, 0)),
                  pl.BlockSpec((1, Cout), lambda n: (0, 0)),
                  pl.BlockSpec((4 * H * W, H * W), lambda n: (0, 0))],
        out_specs=pl.BlockSpec((1, 4 * H * W, Cout), lambda n: (n, 0, 0)),
        compiler_params=_cp(),
    )(xf, w1x1, b, Uo)
    return y.reshape(N, 2 * H, 2 * W, Cout)


# ---------------------------------------------------------------------------
# Parameters (PyTorch-like default init; conv weights stored per-tap, bf16)
# ---------------------------------------------------------------------------

def _conv_params(key, cin, cout, k):
    bound = 1.0 / math.sqrt(cin * k * k)
    w = jax.random.uniform(key, (k * k, cin, cout), jnp.float32, -bound, bound)
    # Conv bias dropped: a per-channel constant before training-mode BN is
    # exactly cancelled by the mean subtraction.
    return {"w": w.astype(jnp.bfloat16)}


def _bn_params(cout):
    return {"g": jnp.ones((1, cout), jnp.float32),
            "beta": jnp.zeros((1, cout), jnp.float32)}


def _double_conv_params(key, cin, cout, k):
    k1, k2 = jax.random.split(key)
    return {"c1": _conv_params(k1, cin, cout, k), "bn1": _bn_params(cout),
            "c2": _conv_params(k2, cout, cout, k), "bn2": _bn_params(cout)}


def init_params(key, args):
    cf, depth, k = args["channel_factor"], args["depth"], args["krnl_size"]
    down_dims = [(args["in_no"], cf)]
    up_dims = []
    for z in range(depth):
        down_dims.append((2 ** z * cf, 2 ** (z + 1) * cf))
        up_dims.insert(0, (2 * 2 ** (z + 1) * cf, 2 ** z * cf))
    params = {"downs": [], "ups": []}
    for i, (ci, co) in enumerate(down_dims):
        params["downs"].append(
            _double_conv_params(jax.random.fold_in(key, i), ci, co, k))
    for i, (ci, co) in enumerate(up_dims):
        params["ups"].append(
            _double_conv_params(jax.random.fold_in(key, 100 + i), ci, co, k))
    kout = jax.random.fold_in(key, 999)
    cw, cb = jax.random.split(kout)
    bound = 1.0 / math.sqrt(cf)
    params["outw"] = jax.random.uniform(cw, (cf, args["out_no"]),
                                        jnp.float32, -bound, bound)
    params["outb"] = jax.random.uniform(cb, (1, args["out_no"]),
                                        jnp.float32, -bound, bound)
    return params


# ---------------------------------------------------------------------------
# Forward pass (mirrors FCUpDown2D.forward: returns (x, probe_ret), NCHW)
# ---------------------------------------------------------------------------

def fc_updown2d_forward(x_nchw, params, args):
    K, P = args["krnl_size"], args["padding"]
    assert 2 * P == K - 1, "UNet residue shapes require padding == (K-1)//2"
    x = jnp.transpose(x_nchw, (0, 2, 3, 1))          # NCHW -> NHWC
    probe = []

    for p in params["downs"]:                        # Down = MaxPool + DoubleConv
        x = down_block(x, p, K, P)
        probe.append(x)

    residues = list(reversed(probe[1:]))             # newest-first, layers[1:half]

    for i, p in enumerate(params["ups"]):            # Up = up, up, cat, DoubleConv
        x = up_block(x, residues[i], p, K, P)
        probe.append(x)

    x = out_conv(x, params["outw"], params["outb"])  # OutConv (greyscale/sigmoid)
    probe.append(x)

    out = jnp.transpose(x, (0, 3, 1, 2))             # NHWC -> NCHW
    probe = [jnp.transpose(t, (0, 3, 1, 2)) for t in probe]
    return out, probe


# ---------------------------------------------------------------------------

if __name__ == "__main__":
    args = dict(in_no=4, out_no=2, channel_factor=8, depth=1,
                krnl_size=3, padding=1, img_type="greyscale")

    key = jax.random.PRNGKey(0)
    params = init_params(key, args)

    x = jax.random.normal(jax.random.fold_in(key, 12345),
                          (2, args["in_no"], 16, 16), jnp.float32)

    fwd = jax.jit(lambda xx: fc_updown2d_forward(xx, params, args))
    out, probe_ret = fwd(x)
    jax.block_until_ready((out, probe_ret))

    assert out.shape == (2, args["out_no"], 16, 16), out.shape
    assert len(probe_ret) == 4, len(probe_ret)
    assert probe_ret[0].shape == (2, 8, 8, 8)        # Down(4->8)   @ 8x8
    assert probe_ret[1].shape == (2, 16, 4, 4)       # Down(8->16)  @ 4x4
    assert probe_ret[2].shape == (2, 8, 8, 8)        # Up(32->8)    @ 8x8
    assert probe_ret[3].shape == (2, 2, 16, 16)      # OutConv      @ 16x16
    assert bool(jnp.all(jnp.isfinite(out)))
    assert bool(jnp.all((out >= 0.0) & (out <= 1.0)))  # sigmoid output

    print("KERNEL_OK")
</pallas_src>

<mosaic_0001>
module attributes {stable_mosaic.version = 11 : i64} {
  func.func @_conv_a_kernel(%arg0: i32, %arg1: memref<1x122x4xf32, #tpu.memory_space<vmem>>, %arg2: memref<100x1xf32, #tpu.memory_space<vmem>>, %arg3: memref<9x4x8xbf16, #tpu.memory_space<vmem>>, %arg4: memref<1x100x8xf32, #tpu.memory_space<vmem>>, %arg5: memref<1x8x8xf32, #tpu.memory_space<vmem>>) attributes {dimension_semantics = [#tpu.dimension_semantics<parallel>], iteration_bounds = array<i64: 2>, scalar_prefetch = 0 : i64, scratch_operands = 0 : i64, tpu.core_type = #tpu.core_type<tc>, window_params = [{transform_indices = @transform_0, window_bounds = array<i64: 1, 122, 4>}, {pipeline_mode = #tpu.pipeline_mode<synchronous>, transform_indices = @transform_1, window_bounds = array<i64: 100, 1>}, {pipeline_mode = #tpu.pipeline_mode<synchronous>, transform_indices = @transform_2, window_bounds = array<i64: 9, 4, 8>}, {transform_indices = @transform_3, window_bounds = array<i64: 1, 100, 8>}, {transform_indices = @transform_4, window_bounds = array<i64: 1, 8, 8>}]} {
    %c0 = arith.constant 0 : index
    %c0_0 = arith.constant 0 : index
    %c0_1 = arith.constant 0 : index
    %0 = vector.load %arg1[%c0, %c0_0, %c0_1] : memref<1x122x4xf32, #tpu.memory_space<vmem>>, vector<1x122x4xf32>
    %1 = vector.shape_cast %0 : vector<1x122x4xf32> to vector<122x4xf32>
    %2 = arith.truncf %1 : vector<122x4xf32> to vector<122x4xbf16>
    %c0_2 = arith.constant 0 : index
    %c0_3 = arith.constant 0 : index
    %c0_4 = arith.constant 0 : index
    %3 = vector.load %arg3[%c0_2, %c0_3, %c0_4] : memref<9x4x8xbf16, #tpu.memory_space<vmem>>, vector<1x4x8xbf16>
    %4 = vector.shape_cast %3 : vector<1x4x8xbf16> to vector<4x8xbf16>
    %cst = arith.constant dense<0.000000e+00> : vector<122x8xf32>
    %5 = tpu.matmul %2, %4, %cst {dimension_numbers = #tpu.dot_dimension_numbers<[1], [0], [0], [1], [0, 0, 1, 1], [], []>} : vector<122x4xbf16>, vector<4x8xbf16>, vector<122x8xf32> -> vector<122x8xf32>
    %6 = vector.extract_strided_slice %5 {offsets = [0, 0], sizes = [100, 8], strides = [1, 1]} : vector<122x8xf32> to vector<100x8xf32>
    %c1 = arith.constant 1 : index
    %c0_5 = arith.constant 0 : index
    %c0_6 = arith.constant 0 : index
    %7 = vector.load %arg3[%c1, %c0_5, %c0_6] : memref<9x4x8xbf16, #tpu.memory_space<vmem>>, vector<1x4x8xbf16>
    %8 = vector.shape_cast %7 : vector<1x4x8xbf16> to vector<4x8xbf16>
    %cst_7 = arith.constant dense<0.000000e+00> : vector<122x8xf32>
    %9 = tpu.matmul %2, %8, %cst_7 {dimension_numbers = #tpu.dot_dimension_numbers<[1], [0], [0], [1], [0, 0, 1, 1], [], []>} : vector<122x4xbf16>, vector<4x8xbf16>, vector<122x8xf32> -> vector<122x8xf32>
    %10 = vector.extract_strided_slice %9 {offsets = [1, 0], sizes = [100, 8], strides = [1, 1]} : vector<122x8xf32> to vector<100x8xf32>
    %11 = arith.addf %6, %10 : vector<100x8xf32>
    %c2 = arith.constant 2 : index
    %c0_8 = arith.constant 0 : index
    %c0_9 = arith.constant 0 : index
    %12 = vector.load %arg3[%c2, %c0_8, %c0_9] : memref<9x4x8xbf16, #tpu.memory_space<vmem>>, vector<1x4x8xbf16>
    %13 = vector.shape_cast %12 : vector<1x4x8xbf16> to vector<4x8xbf16>
    %cst_10 = arith.constant dense<0.000000e+00> : vector<122x8xf32>
    %14 = tpu.matmul %2, %13, %cst_10 {dimension_numbers = #tpu.dot_dimension_numbers<[1], [0], [0], [1], [0, 0, 1, 1], [], []>} : vector<122x4xbf16>, vector<4x8xbf16>, vector<122x8xf32> -> vector<122x8xf32>
    %15 = vector.extract_strided_slice %14 {offsets = [2, 0], sizes = [100, 8], strides = [1, 1]} : vector<122x8xf32> to vector<100x8xf32>
    %16 = arith.addf %11, %15 : vector<100x8xf32>
    %c3 = arith.constant 3 : index
    %c0_11 = arith.constant 0 : index
    %c0_12 = arith.constant 0 : index
    %17 = vector.load %arg3[%c3, %c0_11, %c0_12] : memref<9x4x8xbf16, #tpu.memory_space<vmem>>, vector<1x4x8xbf16>
    %18 = vector.shape_cast %17 : vector<1x4x8xbf16> to vector<4x8xbf16>
    %cst_13 = arith.constant dense<0.000000e+00> : vector<122x8xf32>
    %19 = tpu.matmul %2, %18, %cst_13 {dimension_numbers = #tpu.dot_dimension_numbers<[1], [0], [0], [1], [0, 0, 1, 1], [], []>} : vector<122x4xbf16>, vector<4x8xbf16>, vector<122x8xf32> -> vector<122x8xf32>
    %20 = vector.extract_strided_slice %19 {offsets = [10, 0], sizes = [100, 8], strides = [1, 1]} : vector<122x8xf32> to vector<100x8xf32>
    %21 = arith.addf %16, %20 : vector<100x8xf32>
    %c4 = arith.constant 4 : index
    %c0_14 = arith.constant 0 : index
    %c0_15 = arith.constant 0 : index
    %22 = vector.load %arg3[%c4, %c0_14, %c0_15] : memref<9x4x8xbf16, #tpu.memory_space<vmem>>, vector<1x4x8xbf16>
    %23 = vector.shape_cast %22 : vector<1x4x8xbf16> to vector<4x8xbf16>
    %cst_16 = arith.constant dense<0.000000e+00> : vector<122x8xf32>
    %24 = tpu.matmul %2, %23, %cst_16 {dimension_numbers = #tpu.dot_dimension_numbers<[1], [0], [0], [1], [0, 0, 1, 1], [], []>} : vector<122x4xbf16>, vector<4x8xbf16>, vector<122x8xf32> -> vector<122x8xf32>
    %25 = vector.extract_strided_slice %24 {offsets = [11, 0], sizes = [100, 8], strides = [1, 1]} : vector<122x8xf32> to vector<100x8xf32>
    %26 = arith.addf %21, %25 : vector<100x8xf32>
    %c5 = arith.constant 5 : index
    %c0_17 = arith.constant 0 : index
    %c0_18 = arith.constant 0 : index
    %27 = vector.load %arg3[%c5, %c0_17, %c0_18] : memref<9x4x8xbf16, #tpu.memory_space<vmem>>, vector<1x4x8xbf16>
    %28 = vector.shape_cast %27 : vector<1x4x8xbf16> to vector<4x8xbf16>
    %cst_19 = arith.constant dense<0.000000e+00> : vector<122x8xf32>
    %29 = tpu.matmul %2, %28, %cst_19 {dimension_numbers = #tpu.dot_dimension_numbers<[1], [0], [0], [1], [0, 0, 1, 1], [], []>} : vector<122x4xbf16>, vector<4x8xbf16>, vector<122x8xf32> -> vector<122x8xf32>
    %30 = vector.extract_strided_slice %29 {offsets = [12, 0], sizes = [100, 8], strides = [1, 1]} : vector<122x8xf32> to vector<100x8xf32>
    %31 = arith.addf %26, %30 : vector<100x8xf32>
    %c6 = arith.constant 6 : index
    %c0_20 = arith.constant 0 : index
    %c0_21 = arith.constant 0 : index
    %32 = vector.load %arg3[%c6, %c0_20, %c0_21] : memref<9x4x8xbf16, #tpu.memory_space<vmem>>, vector<1x4x8xbf16>
    %33 = vector.shape_cast %32 : vector<1x4x8xbf16> to vector<4x8xbf16>
    %cst_22 = arith.constant dense<0.000000e+00> : vector<122x8xf32>
    %34 = tpu.matmul %2, %33, %cst_22 {dimension_numbers = #tpu.dot_dimension_numbers<[1], [0], [0], [1], [0, 0, 1, 1], [], []>} : vector<122x4xbf16>, vector<4x8xbf16>, vector<122x8xf32> -> vector<122x8xf32>
    %35 = vector.extract_strided_slice %34 {offsets = [20, 0], sizes = [100, 8], strides = [1, 1]} : vector<122x8xf32> to vector<100x8xf32>
    %36 = arith.addf %31, %35 : vector<100x8xf32>
    %c7 = arith.constant 7 : index
    %c0_23 = arith.constant 0 : index
    %c0_24 = arith.constant 0 : index
    %37 = vector.load %arg3[%c7, %c0_23, %c0_24] : memref<9x4x8xbf16, #tpu.memory_space<vmem>>, vector<1x4x8xbf16>
    %38 = vector.shape_cast %37 : vector<1x4x8xbf16> to vector<4x8xbf16>
    %cst_25 = arith.constant dense<0.000000e+00> : vector<122x8xf32>
    %39 = tpu.matmul %2, %38, %cst_25 {dimension_numbers = #tpu.dot_dimension_numbers<[1], [0], [0], [1], [0, 0, 1, 1], [], []>} : vector<122x4xbf16>, vector<4x8xbf16>, vector<122x8xf32> -> vector<122x8xf32>
    %40 = vector.extract_strided_slice %39 {offsets = [21, 0], sizes = [100, 8], strides = [1, 1]} : vector<122x8xf32> to vector<100x8xf32>
    %41 = arith.addf %36, %40 : vector<100x8xf32>
    %c8 = arith.constant 8 : index
    %c0_26 = arith.constant 0 : index
    %c0_27 = arith.constant 0 : index
    %42 = vector.load %arg3[%c8, %c0_26, %c0_27] : memref<9x4x8xbf16, #tpu.memory_space<vmem>>, vector<1x4x8xbf16>
    %43 = vector.shape_cast %42 : vector<1x4x8xbf16> to vector<4x8xbf16>
    %cst_28 = arith.constant dense<0.000000e+00> : vector<122x8xf32>
    %44 = tpu.matmul %2, %43, %cst_28 {dimension_numbers = #tpu.dot_dimension_numbers<[1], [0], [0], [1], [0, 0, 1, 1], [], []>} : vector<122x4xbf16>, vector<4x8xbf16>, vector<122x8xf32> -> vector<122x8xf32>
    %45 = vector.extract_strided_slice %44 {offsets = [22, 0], sizes = [100, 8], strides = [1, 1]} : vector<122x8xf32> to vector<100x8xf32>
    %46 = arith.addf %41, %45 : vector<100x8xf32>
    %c0_29 = arith.constant 0 : index
    %c0_30 = arith.constant 0 : index
    %c0_31 = arith.constant 0 : index
    %47 = vector.load %arg4[%c0_29, %c0_30, %c0_31] : memref<1x100x8xf32, #tpu.memory_space<vmem>>, vector<1x100x8xf32>
    %48 = vector.shape_cast %47 : vector<1x100x8xf32> to vector<100x8xf32>
    %49 = vector.shape_cast %46 : vector<100x8xf32> to vector<1x100x8xf32>
    tpu.vector_store %arg4[%c0_29, %c0_30, %c0_31], %49 {strides = array<i32>} : memref<1x100x8xf32, #tpu.memory_space<vmem>>, vector<1x100x8xf32>,
    %c0_32 = arith.constant 0 : index
    %c0_33 = arith.constant 0 : index
    %50 = vector.load %arg2[%c0_32, %c0_33] : memref<100x1xf32, #tpu.memory_space<vmem>>, vector<100x1xf32>
    %51 = vector.broadcast %50 : vector<100x1xf32> to vector<100x8xf32>
    %52 = arith.mulf %46, %51 : vector<100x8xf32>
    %cst_34 = arith.constant dense<0.000000e+00> : vector<8xf32>
    %53 = vector.multi_reduction <add>, %52, %cst_34 [0] : vector<100x8xf32> to vector<8xf32>
    %54 = vector.shape_cast %53 : vector<8xf32> to vector<1x8xf32>
    %55 = arith.mulf %46, %46 : vector<100x8xf32>
    %56 = vector.broadcast %50 : vector<100x1xf32> to vector<100x8xf32>
    %57 = arith.mulf %55, %56 : vector<100x8xf32>
    %cst_35 = arith.constant dense<0.000000e+00> : vector<8xf32>
    %58 = vector.multi_reduction <add>, %57, %cst_35 [0] : vector<100x8xf32> to vector<8xf32>
    %59 = vector.shape_cast %58 : vector<8xf32> to vector<1x8xf32>
    %cst_36 = arith.constant 0.000000e+00 : f32
    %60 = vector.broadcast %cst_36 : f32 to vector<6x8xf32>
    %61 = tpu.concatenate %54, %59, %60 in 0 : vector<1x8xf32>, vector<1x8xf32>, vector<6x8xf32> -> vector<8x8xf32>
    %c0_37 = arith.constant 0 : index
    %c0_38 = arith.constant 0 : index
    %c0_39 = arith.constant 0 : index
    %62 = vector.load %arg5[%c0_37, %c0_38, %c0_39] : memref<1x8x8xf32, #tpu.memory_space<vmem>>, vector<1x8x8xf32>
    %63 = vector.shape_cast %62 : vector<1x8x8xf32> to vector<8x8xf32>
    %64 = vector.shape_cast %61 : vector<8x8xf32> to vector<1x8x8xf32>
    tpu.vector_store %arg5[%c0_37, %c0_38, %c0_39], %64 {strides = array<i32>} : memref<1x8x8xf32, #tpu.memory_space<vmem>>, vector<1x8x8xf32>,
    return
  }
  func.func @transform_0(%arg0: i32) -> (i32, i32, i32) {
    %c0_i32 = arith.constant 0 : i32
    %c0_i32_0 = arith.constant 0 : i32
    %c0_i32_1 = arith.constant 0 : i32
    return %arg0, %c0_i32, %c0_i32_0 : i32, i32, i32
  }
  func.func @transform_1(%arg0: i32) -> (i32, i32) {
    %c0_i32 = arith.constant 0 : i32
    %c0_i32_0 = arith.constant 0 : i32
    %c0_i32_1 = arith.constant 0 : i32
    return %c0_i32, %c0_i32_0 : i32, i32
  }
  func.func @transform_2(%arg0: i32) -> (i32, i32, i32) {
    %c0_i32 = arith.constant 0 : i32
    %c0_i32_0 = arith.constant 0 : i32
    %c0_i32_1 = arith.constant 0 : i32
    %c0_i32_2 = arith.constant 0 : i32
    return %c0_i32, %c0_i32_0, %c0_i32_1 : i32, i32, i32
  }
  func.func @transform_3(%arg0: i32) -> (i32, i32, i32) {
    %c0_i32 = arith.constant 0 : i32
    %c0_i32_0 = arith.constant 0 : i32
    %c0_i32_1 = arith.constant 0 : i32
    return %arg0, %c0_i32, %c0_i32_0 : i32, i32, i32
  }
  func.func @transform_4(%arg0: i32) -> (i32, i32, i32) {
    %c0_i32 = arith.constant 0 : i32
    %c0_i32_0 = arith.constant 0 : i32
    %c0_i32_1 = arith.constant 0 : i32
    return %arg0, %c0_i32, %c0_i32_0 : i32, i32, i32
  }
}

module attributes {stable_mosaic.version = 11 : i64} {
  func.func @_bn_relu_kernel(%arg0: i32, %arg1: memref<1x100x8xf32, #tpu.memory_space<vmem>>, %arg2: memref<1x8xf32, #tpu.memory_space<vmem>>, %arg3: memref<1x8xf32, #tpu.memory_space<vmem>>, %arg4: memref<1x100x8xf32, #tpu.memory_space<vmem>>) attributes {dimension_semantics = [#tpu.dimension_semantics<parallel>], iteration_bounds = array<i64: 2>, scalar_prefetch = 0 : i64, scratch_operands = 0 : i64, tpu.core_type = #tpu.core_type<tc>, window_params = [{transform_indices = @transform_0, window_bounds = array<i64: 1, 100, 8>}, {pipeline_mode = #tpu.pipeline_mode<synchronous>, transform_indices = @transform_1, window_bounds = array<i64: 1, 8>}, {pipeline_mode = #tpu.pipeline_mode<synchronous>, transform_indices = @transform_2, window_bounds = array<i64: 1, 8>}, {transform_indices = @transform_3, window_bounds = array<i64: 1, 100, 8>}]} {
    %c0 = arith.constant 0 : index
    %c0_0 = arith.constant 0 : index
    %c0_1 = arith.constant 0 : index
    %0 = vector.load %arg1[%c0, %c0_0, %c0_1] : memref<1x100x8xf32, #tpu.memory_space<vmem>>, vector<1x100x8xf32>
    %1 = vector.shape_cast %0 : vector<1x100x8xf32> to vector<100x8xf32>
    %c0_2 = arith.constant 0 : index
    %c0_3 = arith.constant 0 : index
    %2 = vector.load %arg2[%c0_2, %c0_3] : memref<1x8xf32, #tpu.memory_space<vmem>>, vector<1x8xf32>
    %3 = vector.broadcast %2 : vector<1x8xf32> to vector<100x8xf32>
    %4 = arith.mulf %1, %3 : vector<100x8xf32>
    %c0_4 = arith.constant 0 : index
    %c0_5 = arith.constant 0 : index
    %5 = vector.load %arg3[%c0_4, %c0_5] : memref<1x8xf32, #tpu.memory_space<vmem>>, vector<1x8xf32>
    %6 = vector.broadcast %5 : vector<1x8xf32> to vector<100x8xf32>
    %7 = arith.addf %4, %6 : vector<100x8xf32>
    %cst = arith.constant 0.000000e+00 : f32
    %8 = vector.broadcast %cst : f32 to vector<100x8xf32>
    %9 = arith.maximumf %7, %8 : vector<100x8xf32>
    %c0_6 = arith.constant 0 : index
    %c0_7 = arith.constant 0 : index
    %c0_8 = arith.constant 0 : index
    %10 = vector.load %arg4[%c0_6, %c0_7, %c0_8] : memref<1x100x8xf32, #tpu.memory_space<vmem>>, vector<1x100x8xf32>
    %11 = vector.shape_cast %10 : vector<1x100x8xf32> to vector<100x8xf32>
    %12 = vector.shape_cast %9 : vector<100x8xf32> to vector<1x100x8xf32>
    tpu.vector_store %arg4[%c0_6, %c0_7, %c0_8], %12 {strides = array<i32>} : memref<1x100x8xf32, #tpu.memory_space<vmem>>, vector<1x100x8xf32>,
    return
  }
  func.func @transform_0(%arg0: i32) -> (i32, i32, i32) {
    %c0_i32 = arith.constant 0 : i32
    %c0_i32_0 = arith.constant 0 : i32
    %c0_i32_1 = arith.constant 0 : i32
    return %arg0, %c0_i32, %c0_i32_0 : i32, i32, i32
  }
  func.func @transform_1(%arg0: i32) -> (i32, i32) {
    %c0_i32 = arith.constant 0 : i32
    %c0_i32_0 = arith.constant 0 : i32
    %c0_i32_1 = arith.constant 0 : i32
    return %c0_i32, %c0_i32_0 : i32, i32
  }
  func.func @transform_2(%arg0: i32) -> (i32, i32) {
    %c0_i32 = arith.constant 0 : i32
    %c0_i32_0 = arith.constant 0 : i32
    %c0_i32_1 = arith.constant 0 : i32
    return %c0_i32, %c0_i32_0 : i32, i32
  }
  func.func @transform_3(%arg0: i32) -> (i32, i32, i32) {
    %c0_i32 = arith.constant 0 : i32
    %c0_i32_0 = arith.constant 0 : i32
    %c0_i32_1 = arith.constant 0 : i32
    return %arg0, %c0_i32, %c0_i32_0 : i32, i32, i32
  }
}

module attributes {stable_mosaic.version = 11 : i64} {
  func.func @_conv_b_kernel(%arg0: i32, %arg1: memref<1x100x8xf32, #tpu.memory_space<vmem>>, %arg2: memref<1x8xf32, #tpu.memory_space<vmem>>, %arg3: memref<1x8xf32, #tpu.memory_space<vmem>>, %arg4: memref<100x1xf32, #tpu.memory_space<vmem>>, %arg5: memref<9x8x8xbf16, #tpu.memory_space<vmem>>, %arg6: memref<1x100x8xf32, #tpu.memory_space<vmem>>, %arg7: memref<1x8x8xf32, #tpu.memory_space<vmem>>, %arg8: memref<122x8xf32, #tpu.memory_space<vmem>>) attributes {dimension_semantics = [#tpu.dimension_semantics<parallel>], iteration_bounds = array<i64: 2>, scalar_prefetch = 0 : i64, scratch_operands = 1 : i64, tpu.core_type = #tpu.core_type<tc>, window_params = [{transform_indices = @transform_0, window_bounds = array<i64: 1, 100, 8>}, {pipeline_mode = #tpu.pipeline_mode<synchronous>, transform_indices = @transform_1, window_bounds = array<i64: 1, 8>}, {pipeline_mode = #tpu.pipeline_mode<synchronous>, transform_indices = @transform_2, window_bounds = array<i64: 1, 8>}, {pipeline_mode = #tpu.pipeline_mode<synchronous>, transform_indices = @transform_3, window_bounds = array<i64: 100, 1>}, {pipeline_mode = #tpu.pipeline_mode<synchronous>, transform_indices = @transform_4, window_bounds = array<i64: 9, 8, 8>}, {transform_indices = @transform_5, window_bounds = array<i64: 1, 100, 8>}, {transform_indices = @transform_6, window_bounds = array<i64: 1, 8, 8>}]} {
    %c0 = arith.constant 0 : index
    %c0_0 = arith.constant 0 : index
    %c0_1 = arith.constant 0 : index
    %0 = vector.load %arg1[%c0, %c0_0, %c0_1] : memref<1x100x8xf32, #tpu.memory_space<vmem>>, vector<1x100x8xf32>
    %1 = vector.shape_cast %0 : vector<1x100x8xf32> to vector<100x8xf32>
    %c0_2 = arith.constant 0 : index
    %c0_3 = arith.constant 0 : index
    %2 = vector.load %arg2[%c0_2, %c0_3] : memref<1x8xf32, #tpu.memory_space<vmem>>, vector<1x8xf32>
    %3 = vector.broadcast %2 : vector<1x8xf32> to vector<100x8xf32>
    %4 = arith.mulf %1, %3 : vector<100x8xf32>
    %c0_4 = arith.constant 0 : index
    %c0_5 = arith.constant 0 : index
    %5 = vector.load %arg3[%c0_4, %c0_5] : memref<1x8xf32, #tpu.memory_space<vmem>>, vector<1x8xf32>
    %6 = vector.broadcast %5 : vector<1x8xf32> to vector<100x8xf32>
    %7 = arith.addf %4, %6 : vector<100x8xf32>
    %cst = arith.constant 0.000000e+00 : f32
    %8 = vector.broadcast %cst : f32 to vector<100x8xf32>
    %9 = arith.maximumf %7, %8 : vector<100x8xf32>
    %c0_6 = arith.constant 0 : index
    %c0_7 = arith.constant 0 : index
    %10 = vector.load %arg4[%c0_6, %c0_7] : memref<100x1xf32, #tpu.memory_space<vmem>>, vector<100x1xf32>
    %11 = vector.broadcast %10 : vector<100x1xf32> to vector<100x8xf32>
    %12 = arith.mulf %9, %11 : vector<100x8xf32>
    %cst_8 = arith.constant 0.000000e+00 : f32
    %13 = vector.broadcast %cst_8 : f32 to vector<11x8xf32>
    %c0_9 = arith.constant 0 : index
    %c0_10 = arith.constant 0 : index
    %14 = vector.load %arg8[%c0_9, %c0_10] : memref<122x8xf32, #tpu.memory_space<vmem>>, vector<11x8xf32>
    tpu.vector_store %arg8[%c0_9, %c0_10], %13 {strides = array<i32>} : memref<122x8xf32, #tpu.memory_space<vmem>>, vector<11x8xf32>,
    %cst_11 = arith.constant 0.000000e+00 : f32
    %15 = vector.broadcast %cst_11 : f32 to vector<11x8xf32>
    %c111 = arith.constant 111 : index
    %c0_12 = arith.constant 0 : index
    %16 = vector.load %arg8[%c111, %c0_12] : memref<122x8xf32, #tpu.memory_space<vmem>>, vector<11x8xf32>
    tpu.vector_store %arg8[%c111, %c0_12], %15 {strides = array<i32>} : memref<122x8xf32, #tpu.memory_space<vmem>>, vector<11x8xf32>,
    %c11 = arith.constant 11 : index
    %c0_13 = arith.constant 0 : index
    %17 = vector.load %arg8[%c11, %c0_13] : memref<122x8xf32, #tpu.memory_space<vmem>>, vector<100x8xf32>
    tpu.vector_store %arg8[%c11, %c0_13], %12 {strides = array<i32>} : memref<122x8xf32, #tpu.memory_space<vmem>>, vector<100x8xf32>,
    %c0_14 = arith.constant 0 : index
    %c0_15 = arith.constant 0 : index
    %18 = vector.load %arg8[%c0_14, %c0_15] : memref<122x8xf32, #tpu.memory_space<vmem>>, vector<122x8xf32>
    %19 = arith.truncf %18 : vector<122x8xf32> to vector<122x8xbf16>
    %c0_16 = arith.constant 0 : index
    %c0_17 = arith.constant 0 : index
    %c0_18 = arith.constant 0 : index
    %20 = vector.load %arg5[%c0_16, %c0_17, %c0_18] : memref<9x8x8xbf16, #tpu.memory_space<vmem>>, vector<1x8x8xbf16>
    %21 = vector.shape_cast %20 : vector<1x8x8xbf16> to vector<8x8xbf16>
    %cst_19 = arith.constant dense<0.000000e+00> : vector<122x8xf32>
    %22 = tpu.matmul %19, %21, %cst_19 {dimension_numbers = #tpu.dot_dimension_numbers<[1], [0], [0], [1], [0, 0, 1, 1], [], []>} : vector<122x8xbf16>, vector<8x8xbf16>, vector<122x8xf32> -> vector<122x8xf32>
    %23 = vector.extract_strided_slice %22 {offsets = [0, 0], sizes = [100, 8], strides = [1, 1]} : vector<122x8xf32> to vector<100x8xf32>
    %c1 = arith.constant 1 : index
    %c0_20 = arith.constant 0 : index
    %c0_21 = arith.constant 0 : index
    %24 = vector.load %arg5[%c1, %c0_20, %c0_21] : memref<9x8x8xbf16, #tpu.memory_space<vmem>>, vector<1x8x8xbf16>
    %25 = vector.shape_cast %24 : vector<1x8x8xbf16> to vector<8x8xbf16>
    %cst_22 = arith.constant dense<0.000000e+00> : vector<122x8xf32>
    %26 = tpu.matmul %19, %25, %cst_22 {dimension_numbers = #tpu.dot_dimension_numbers<[1], [0], [0], [1], [0, 0, 1, 1], [], []>} : vector<122x8xbf16>, vector<8x8xbf16>, vector<122x8xf32> -> vector<122x8xf32>
    %27 = vector.extract_strided_slice %26 {offsets = [1, 0], sizes = [100, 8], strides = [1, 1]} : vector<122x8xf32> to vector<100x8xf32>
    %28 = arith.addf %23, %27 : vector<100x8xf32>
    %c2 = arith.constant 2 : index
    %c0_23 = arith.constant 0 : index
    %c0_24 = arith.constant 0 : index
    %29 = vector.load %arg5[%c2, %c0_23, %c0_24] : memref<9x8x8xbf16, #tpu.memory_space<vmem>>, vector<1x8x8xbf16>
    %30 = vector.shape_cast %29 : vector<1x8x8xbf16> to vector<8x8xbf16>
    %cst_25 = arith.constant dense<0.000000e+00> : vector<122x8xf32>
    %31 = tpu.matmul %19, %30, %cst_25 {dimension_numbers = #tpu.dot_dimension_numbers<[1], [0], [0], [1], [0, 0, 1, 1], [], []>} : vector<122x8xbf16>, vector<8x8xbf16>, vector<122x8xf32> -> vector<122x8xf32>
    %32 = vector.extract_strided_slice %31 {offsets = [2, 0], sizes = [100, 8], strides = [1, 1]} : vector<122x8xf32> to vector<100x8xf32>
    %33 = arith.addf %28, %32 : vector<100x8xf32>
    %c3 = arith.constant 3 : index
    %c0_26 = arith.constant 0 : index
    %c0_27 = arith.constant 0 : index
    %34 = vector.load %arg5[%c3, %c0_26, %c0_27] : memref<9x8x8xbf16, #tpu.memory_space<vmem>>, vector<1x8x8xbf16>
    %35 = vector.shape_cast %34 : vector<1x8x8xbf16> to vector<8x8xbf16>
    %cst_28 = arith.constant dense<0.000000e+00> : vector<122x8xf32>
    %36 = tpu.matmul %19, %35, %cst_28 {dimension_numbers = #tpu.dot_dimension_numbers<[1], [0], [0], [1], [0, 0, 1, 1], [], []>} : vector<122x8xbf16>, vector<8x8xbf16>, vector<122x8xf32> -> vector<122x8xf32>
    %37 = vector.extract_strided_slice %36 {offsets = [10, 0], sizes = [100, 8], strides = [1, 1]} : vector<122x8xf32> to vector<100x8xf32>
    %38 = arith.addf %33, %37 : vector<100x8xf32>
    %c4 = arith.constant 4 : index
    %c0_29 = arith.constant 0 : index
    %c0_30 = arith.constant 0 : index
    %39 = vector.load %arg5[%c4, %c0_29, %c0_30] : memref<9x8x8xbf16, #tpu.memory_space<vmem>>, vector<1x8x8xbf16>
    %40 = vector.shape_cast %39 : vector<1x8x8xbf16> to vector<8x8xbf16>
    %cst_31 = arith.constant dense<0.000000e+00> : vector<122x8xf32>
    %41 = tpu.matmul %19, %40, %cst_31 {dimension_numbers = #tpu.dot_dimension_numbers<[1], [0], [0], [1], [0, 0, 1, 1], [], []>} : vector<122x8xbf16>, vector<8x8xbf16>, vector<122x8xf32> -> vector<122x8xf32>
    %42 = vector.extract_strided_slice %41 {offsets = [11, 0], sizes = [100, 8], strides = [1, 1]} : vector<122x8xf32> to vector<100x8xf32>
    %43 = arith.addf %38, %42 : vector<100x8xf32>
    %c5 = arith.constant 5 : index
    %c0_32 = arith.constant 0 : index
    %c0_33 = arith.constant 0 : index
    %44 = vector.load %arg5[%c5, %c0_32, %c0_33] : memref<9x8x8xbf16, #tpu.memory_space<vmem>>, vector<1x8x8xbf16>
    %45 = vector.shape_cast %44 : vector<1x8x8xbf16> to vector<8x8xbf16>
    %cst_34 = arith.constant dense<0.000000e+00> : vector<122x8xf32>
    %46 = tpu.matmul %19, %45, %cst_34 {dimension_numbers = #tpu.dot_dimension_numbers<[1], [0], [0], [1], [0, 0, 1, 1], [], []>} : vector<122x8xbf16>, vector<8x8xbf16>, vector<122x8xf32> -> vector<122x8xf32>
    %47 = vector.extract_strided_slice %46 {offsets = [12, 0], sizes = [100, 8], strides = [1, 1]} : vector<122x8xf32> to vector<100x8xf32>
    %48 = arith.addf %43, %47 : vector<100x8xf32>
    %c6 = arith.constant 6 : index
    %c0_35 = arith.constant 0 : index
    %c0_36 = arith.constant 0 : index
    %49 = vector.load %arg5[%c6, %c0_35, %c0_36] : memref<9x8x8xbf16, #tpu.memory_space<vmem>>, vector<1x8x8xbf16>
    %50 = vector.shape_cast %49 : vector<1x8x8xbf16> to vector<8x8xbf16>
    %cst_37 = arith.constant dense<0.000000e+00> : vector<122x8xf32>
    %51 = tpu.matmul %19, %50, %cst_37 {dimension_numbers = #tpu.dot_dimension_numbers<[1], [0], [0], [1], [0, 0, 1, 1], [], []>} : vector<122x8xbf16>, vector<8x8xbf16>, vector<122x8xf32> -> vector<122x8xf32>
    %52 = vector.extract_strided_slice %51 {offsets = [20, 0], sizes = [100, 8], strides = [1, 1]} : vector<122x8xf32> to vector<100x8xf32>
    %53 = arith.addf %48, %52 : vector<100x8xf32>
    %c7 = arith.constant 7 : index
    %c0_38 = arith.constant 0 : index
    %c0_39 = arith.constant 0 : index
    %54 = vector.load %arg5[%c7, %c0_38, %c0_39] : memref<9x8x8xbf16, #tpu.memory_space<vmem>>, vector<1x8x8xbf16>
    %55 = vector.shape_cast %54 : vector<1x8x8xbf16> to vector<8x8xbf16>
    %cst_40 = arith.constant dense<0.000000e+00> : vector<122x8xf32>
    %56 = tpu.matmul %19, %55, %cst_40 {dimension_numbers = #tpu.dot_dimension_numbers<[1], [0], [0], [1], [0, 0, 1, 1], [], []>} : vector<122x8xbf16>, vector<8x8xbf16>, vector<122x8xf32> -> vector<122x8xf32>
    %57 = vector.extract_strided_slice %56 {offsets = [21, 0], sizes = [100, 8], strides = [1, 1]} : vector<122x8xf32> to vector<100x8xf32>
    %58 = arith.addf %53, %57 : vector<100x8xf32>
    %c8 = arith.constant 8 : index
    %c0_41 = arith.constant 0 : index
    %c0_42 = arith.constant 0 : index
    %59 = vector.load %arg5[%c8, %c0_41, %c0_42] : memref<9x8x8xbf16, #tpu.memory_space<vmem>>, vector<1x8x8xbf16>
    %60 = vector.shape_cast %59 : vector<1x8x8xbf16> to vector<8x8xbf16>
    %cst_43 = arith.constant dense<0.000000e+00> : vector<122x8xf32>
    %61 = tpu.matmul %19, %60, %cst_43 {dimension_numbers = #tpu.dot_dimension_numbers<[1], [0], [0], [1], [0, 0, 1, 1], [], []>} : vector<122x8xbf16>, vector<8x8xbf16>, vector<122x8xf32> -> vector<122x8xf32>
    %62 = vector.extract_strided_slice %61 {offsets = [22, 0], sizes = [100, 8], strides = [1, 1]} : vector<122x8xf32> to vector<100x8xf32>
    %63 = arith.addf %58, %62 : vector<100x8xf32>
    %c0_44 = arith.constant 0 : index
    %c0_45 = arith.constant 0 : index
    %c0_46 = arith.constant 0 : index
    %64 = vector.load %arg6[%c0_44, %c0_45, %c0_46] : memref<1x100x8xf32, #tpu.memory_space<vmem>>, vector<1x100x8xf32>
    %65 = vector.shape_cast %64 : vector<1x100x8xf32> to vector<100x8xf32>
    %66 = vector.shape_cast %63 : vector<100x8xf32> to vector<1x100x8xf32>
    tpu.vector_store %arg6[%c0_44, %c0_45, %c0_46], %66 {strides = array<i32>} : memref<1x100x8xf32, #tpu.memory_space<vmem>>, vector<1x100x8xf32>,
    %c0_47 = arith.constant 0 : index
    %c0_48 = arith.constant 0 : index
    %67 = vector.load %arg4[%c0_47, %c0_48] : memref<100x1xf32, #tpu.memory_space<vmem>>, vector<100x1xf32>
    %68 = vector.broadcast %67 : vector<100x1xf32> to vector<100x8xf32>
    %69 = arith.mulf %63, %68 : vector<100x8xf32>
    %cst_49 = arith.constant dense<0.000000e+00> : vector<8xf32>
    %70 = vector.multi_reduction <add>, %69, %cst_49 [0] : vector<100x8xf32> to vector<8xf32>
    %71 = vector.shape_cast %70 : vector<8xf32> to vector<1x8xf32>
    %72 = arith.mulf %63, %63 : vector<100x8xf32>
    %73 = vector.broadcast %67 : vector<100x1xf32> to vector<100x8xf32>
    %74 = arith.mulf %72, %73 : vector<100x8xf32>
    %cst_50 = arith.constant dense<0.000000e+00> : vector<8xf32>
    %75 = vector.multi_reduction <add>, %74, %cst_50 [0] : vector<100x8xf32> to vector<8xf32>
    %76 = vector.shape_cast %75 : vector<8xf32> to vector<1x8xf32>
    %cst_51 = arith.constant 0.000000e+00 : f32
    %77 = vector.broadcast %cst_51 : f32 to vector<6x8xf32>
    %78 = tpu.concatenate %71, %76, %77 in 0 : vector<1x8xf32>, vector<1x8xf32>, vector<6x8xf32> -> vector<8x8xf32>
    %c0_52 = arith.constant 0 : index
    %c0_53 = arith.constant 0 : index
    %c0_54 = arith.constant 0 : index
    %79 = vector.load %arg7[%c0_52, %c0_53, %c0_54] : memref<1x8x8xf32, #tpu.memory_space<vmem>>, vector<1x8x8xf32>
    %80 = vector.shape_cast %79 : vector<1x8x8xf32> to vector<8x8xf32>
    %81 = vector.shape_cast %78 : vector<8x8xf32> to vector<1x8x8xf32>
    tpu.vector_store %arg7[%c0_52, %c0_53, %c0_54], %81 {strides = array<i32>} : memref<1x8x8xf32, #tpu.memory_space<vmem>>, vector<1x8x8xf32>,
    return
  }
  func.func @transform_0(%arg0: i32) -> (i32, i32, i32) {
    %c0_i32 = arith.constant 0 : i32
    %c0_i32_0 = arith.constant 0 : i32
    %c0_i32_1 = arith.constant 0 : i32
    return %arg0, %c0_i32, %c0_i32_0 : i32, i32, i32
  }
  func.func @transform_1(%arg0: i32) -> (i32, i32) {
    %c0_i32 = arith.constant 0 : i32
    %c0_i32_0 = arith.constant 0 : i32
    %c0_i32_1 = arith.constant 0 : i32
    return %c0_i32, %c0_i32_0 : i32, i32
  }
  func.func @transform_2(%arg0: i32) -> (i32, i32) {
    %c0_i32 = arith.constant 0 : i32
    %c0_i32_0 = arith.constant 0 : i32
    %c0_i32_1 = arith.constant 0 : i32
    return %c0_i32, %c0_i32_0 : i32, i32
  }
  func.func @transform_3(%arg0: i32) -> (i32, i32) {
    %c0_i32 = arith.constant 0 : i32
    %c0_i32_0 = arith.constant 0 : i32
    %c0_i32_1 = arith.constant 0 : i32
    return %c0_i32, %c0_i32_0 : i32, i32
  }
  func.func @transform_4(%arg0: i32) -> (i32, i32, i32) {
    %c0_i32 = arith.constant 0 : i32
    %c0_i32_0 = arith.constant 0 : i32
    %c0_i32_1 = arith.constant 0 : i32
    %c0_i32_2 = arith.constant 0 : i32
    return %c0_i32, %c0_i32_0, %c0_i32_1 : i32, i32, i32
  }
  func.func @transform_5(%arg0: i32) -> (i32, i32, i32) {
    %c0_i32 = arith.constant 0 : i32
    %c0_i32_0 = arith.constant 0 : i32
    %c0_i32_1 = arith.constant 0 : i32
    return %arg0, %c0_i32, %c0_i32_0 : i32, i32, i32
  }
  func.func @transform_6(%arg0: i32) -> (i32, i32, i32) {
    %c0_i32 = arith.constant 0 : i32
    %c0_i32_0 = arith.constant 0 : i32
    %c0_i32_1 = arith.constant 0 : i32
    return %arg0, %c0_i32, %c0_i32_0 : i32, i32, i32
  }
}

module attributes {stable_mosaic.version = 11 : i64} {
  func.func @_bn_relu_kernel(%arg0: i32, %arg1: memref<1x36x16xf32, #tpu.memory_space<vmem>>, %arg2: memref<1x16xf32, #tpu.memory_space<vmem>>, %arg3: memref<1x16xf32, #tpu.memory_space<vmem>>, %arg4: memref<1x36x16xf32, #tpu.memory_space<vmem>>) attributes {dimension_semantics = [#tpu.dimension_semantics<parallel>], iteration_bounds = array<i64: 2>, scalar_prefetch = 0 : i64, scratch_operands = 0 : i64, tpu.core_type = #tpu.core_type<tc>, window_params = [{transform_indices = @transform_0, window_bounds = array<i64: 1, 36, 16>}, {pipeline_mode = #tpu.pipeline_mode<synchronous>, transform_indices = @transform_1, window_bounds = array<i64: 1, 16>}, {pipeline_mode = #tpu.pipeline_mode<synchronous>, transform_indices = @transform_2, window_bounds = array<i64: 1, 16>}, {transform_indices = @transform_3, window_bounds = array<i64: 1, 36, 16>}]} {
    %c0 = arith.constant 0 : index
    %c0_0 = arith.constant 0 : index
    %c0_1 = arith.constant 0 : index
    %0 = vector.load %arg1[%c0, %c0_0, %c0_1] : memref<1x36x16xf32, #tpu.memory_space<vmem>>, vector<1x36x16xf32>
    %1 = vector.shape_cast %0 : vector<1x36x16xf32> to vector<36x16xf32>
    %c0_2 = arith.constant 0 : index
    %c0_3 = arith.constant 0 : index
    %2 = vector.load %arg2[%c0_2, %c0_3] : memref<1x16xf32, #tpu.memory_space<vmem>>, vector<1x16xf32>
    %3 = vector.broadcast %2 : vector<1x16xf32> to vector<36x16xf32>
    %4 = arith.mulf %1, %3 : vector<36x16xf32>
    %c0_4 = arith.constant 0 : index
    %c0_5 = arith.constant 0 : index
    %5 = vector.load %arg3[%c0_4, %c0_5] : memref<1x16xf32, #tpu.memory_space<vmem>>, vector<1x16xf32>
    %6 = vector.broadcast %5 : vector<1x16xf32> to vector<36x16xf32>
    %7 = arith.addf %4, %6 : vector<36x16xf32>
    %cst = arith.constant 0.000000e+00 : f32
    %8 = vector.broadcast %cst : f32 to vector<36x16xf32>
    %9 = arith.maximumf %7, %8 : vector<36x16xf32>
    %c0_6 = arith.constant 0 : index
    %c0_7 = arith.constant 0 : index
    %c0_8 = arith.constant 0 : index
    %10 = vector.load %arg4[%c0_6, %c0_7, %c0_8] : memref<1x36x16xf32, #tpu.memory_space<vmem>>, vector<1x36x16xf32>
    %11 = vector.shape_cast %10 : vector<1x36x16xf32> to vector<36x16xf32>
    %12 = vector.shape_cast %9 : vector<36x16xf32> to vector<1x36x16xf32>
    tpu.vector_store %arg4[%c0_6, %c0_7, %c0_8], %12 {strides = array<i32>} : memref<1x36x16xf32, #tpu.memory_space<vmem>>, vector<1x36x16xf32>,
    return
  }
  func.func @transform_0(%arg0: i32) -> (i32, i32, i32) {
    %c0_i32 = arith.constant 0 : i32
    %c0_i32_0 = arith.constant 0 : i32
    %c0_i32_1 = arith.constant 0 : i32
    return %arg0, %c0_i32, %c0_i32_0 : i32, i32, i32
  }
  func.func @transform_1(%arg0: i32) -> (i32, i32) {
    %c0_i32 = arith.constant 0 : i32
    %c0_i32_0 = arith.constant 0 : i32
    %c0_i32_1 = arith.constant 0 : i32
    return %c0_i32, %c0_i32_0 : i32, i32
  }
  func.func @transform_2(%arg0: i32) -> (i32, i32) {
    %c0_i32 = arith.constant 0 : i32
    %c0_i32_0 = arith.constant 0 : i32
    %c0_i32_1 = arith.constant 0 : i32
    return %c0_i32, %c0_i32_0 : i32, i32
  }
  func.func @transform_3(%arg0: i32) -> (i32, i32, i32) {
    %c0_i32 = arith.constant 0 : i32
    %c0_i32_0 = arith.constant 0 : i32
    %c0_i32_1 = arith.constant 0 : i32
    return %arg0, %c0_i32, %c0_i32_0 : i32, i32, i32
  }
}

module attributes {stable_mosaic.version = 11 : i64} {
  func.func @_conv_a_kernel(%arg0: i32, %arg1: memref<1x50x8xf32, #tpu.memory_space<vmem>>, %arg2: memref<36x1xf32, #tpu.memory_space<vmem>>, %arg3: memref<9x8x16xbf16, #tpu.memory_space<vmem>>, %arg4: memref<1x36x16xf32, #tpu.memory_space<vmem>>, %arg5: memref<1x8x16xf32, #tpu.memory_space<vmem>>) attributes {dimension_semantics = [#tpu.dimension_semantics<parallel>], iteration_bounds = array<i64: 2>, scalar_prefetch = 0 : i64, scratch_operands = 0 : i64, tpu.core_type = #tpu.core_type<tc>, window_params = [{transform_indices = @transform_0, window_bounds = array<i64: 1, 50, 8>}, {pipeline_mode = #tpu.pipeline_mode<synchronous>, transform_indices = @transform_1, window_bounds = array<i64: 36, 1>}, {pipeline_mode = #tpu.pipeline_mode<synchronous>, transform_indices = @transform_2, window_bounds = array<i64: 9, 8, 16>}, {transform_indices = @transform_3, window_bounds = array<i64: 1, 36, 16>}, {transform_indices = @transform_4, window_bounds = array<i64: 1, 8, 16>}]} {
    %c0 = arith.constant 0 : index
    %c0_0 = arith.constant 0 : index
    %c0_1 = arith.constant 0 : index
    %0 = vector.load %arg1[%c0, %c0_0, %c0_1] : memref<1x50x8xf32, #tpu.memory_space<vmem>>, vector<1x50x8xf32>
    %1 = vector.shape_cast %0 : vector<1x50x8xf32> to vector<50x8xf32>
    %2 = arith.truncf %1 : vector<50x8xf32> to vector<50x8xbf16>
    %c0_2 = arith.constant 0 : index
    %c0_3 = arith.constant 0 : index
    %c0_4 = arith.constant 0 : index
    %3 = vector.load %arg3[%c0_2, %c0_3, %c0_4] : memref<9x8x16xbf16, #tpu.memory_space<vmem>>, vector<1x8x16xbf16>
    %4 = vector.shape_cast %3 : vector<1x8x16xbf16> to vector<8x16xbf16>
    %cst = arith.constant dense<0.000000e+00> : vector<50x16xf32>
    %5 = tpu.matmul %2, %4, %cst {dimension_numbers = #tpu.dot_dimension_numbers<[1], [0], [0], [1], [0, 0, 1, 1], [], []>} : vector<50x8xbf16>, vector<8x16xbf16>, vector<50x16xf32> -> vector<50x16xf32>
    %6 = vector.extract_strided_slice %5 {offsets = [0, 0], sizes = [36, 16], strides = [1, 1]} : vector<50x16xf32> to vector<36x16xf32>
    %c1 = arith.constant 1 : index
    %c0_5 = arith.constant 0 : index
    %c0_6 = arith.constant 0 : index
    %7 = vector.load %arg3[%c1, %c0_5, %c0_6] : memref<9x8x16xbf16, #tpu.memory_space<vmem>>, vector<1x8x16xbf16>
    %8 = vector.shape_cast %7 : vector<1x8x16xbf16> to vector<8x16xbf16>
    %cst_7 = arith.constant dense<0.000000e+00> : vector<50x16xf32>
    %9 = tpu.matmul %2, %8, %cst_7 {dimension_numbers = #tpu.dot_dimension_numbers<[1], [0], [0], [1], [0, 0, 1, 1], [], []>} : vector<50x8xbf16>, vector<8x16xbf16>, vector<50x16xf32> -> vector<50x16xf32>
    %10 = vector.extract_strided_slice %9 {offsets = [1, 0], sizes = [36, 16], strides = [1, 1]} : vector<50x16xf32> to vector<36x16xf32>
    %11 = arith.addf %6, %10 : vector<36x16xf32>
    %c2 = arith.constant 2 : index
    %c0_8 = arith.constant 0 : index
    %c0_9 = arith.constant 0 : index
    %12 = vector.load %arg3[%c2, %c0_8, %c0_9] : memref<9x8x16xbf16, #tpu.memory_space<vmem>>, vector<1x8x16xbf16>
    %13 = vector.shape_cast %12 : vector<1x8x16xbf16> to vector<8x16xbf16>
    %cst_10 = arith.constant dense<0.000000e+00> : vector<50x16xf32>
    %14 = tpu.matmul %2, %13, %cst_10 {dimension_numbers = #tpu.dot_dimension_numbers<[1], [0], [0], [1], [0, 0, 1, 1], [], []>} : vector<50x8xbf16>, vector<8x16xbf16>, vector<50x16xf32> -> vector<50x16xf32>
    %15 = vector.extract_strided_slice %14 {offsets = [2, 0], sizes = [36, 16], strides = [1, 1]} : vector<50x16xf32> to vector<36x16xf32>
    %16 = arith.addf %11, %15 : vector<36x16xf32>
    %c3 = arith.constant 3 : index
    %c0_11 = arith.constant 0 : index
    %c0_12 = arith.constant 0 : index
    %17 = vector.load %arg3[%c3, %c0_11, %c0_12] : memref<9x8x16xbf16, #tpu.memory_space<vmem>>, vector<1x8x16xbf16>
    %18 = vector.shape_cast %17 : vector<1x8x16xbf16> to vector<8x16xbf16>
    %cst_13 = arith.constant dense<0.000000e+00> : vector<50x16xf32>
    %19 = tpu.matmul %2, %18, %cst_13 {dimension_numbers = #tpu.dot_dimension_numbers<[1], [0], [0], [1], [0, 0, 1, 1], [], []>} : vector<50x8xbf16>, vector<8x16xbf16>, vector<50x16xf32> -> vector<50x16xf32>
    %20 = vector.extract_strided_slice %19 {offsets = [6, 0], sizes = [36, 16], strides = [1, 1]} : vector<50x16xf32> to vector<36x16xf32>
    %21 = arith.addf %16, %20 : vector<36x16xf32>
    %c4 = arith.constant 4 : index
    %c0_14 = arith.constant 0 : index
    %c0_15 = arith.constant 0 : index
    %22 = vector.load %arg3[%c4, %c0_14, %c0_15] : memref<9x8x16xbf16, #tpu.memory_space<vmem>>, vector<1x8x16xbf16>
    %23 = vector.shape_cast %22 : vector<1x8x16xbf16> to vector<8x16xbf16>
    %cst_16 = arith.constant dense<0.000000e+00> : vector<50x16xf32>
    %24 = tpu.matmul %2, %23, %cst_16 {dimension_numbers = #tpu.dot_dimension_numbers<[1], [0], [0], [1], [0, 0, 1, 1], [], []>} : vector<50x8xbf16>, vector<8x16xbf16>, vector<50x16xf32> -> vector<50x16xf32>
    %25 = vector.extract_strided_slice %24 {offsets = [7, 0], sizes = [36, 16], strides = [1, 1]} : vector<50x16xf32> to vector<36x16xf32>
    %26 = arith.addf %21, %25 : vector<36x16xf32>
    %c5 = arith.constant 5 : index
    %c0_17 = arith.constant 0 : index
    %c0_18 = arith.constant 0 : index
    %27 = vector.load %arg3[%c5, %c0_17, %c0_18] : memref<9x8x16xbf16, #tpu.memory_space<vmem>>, vector<1x8x16xbf16>
    %28 = vector.shape_cast %27 : vector<1x8x16xbf16> to vector<8x16xbf16>
    %cst_19 = arith.constant dense<0.000000e+00> : vector<50x16xf32>
    %29 = tpu.matmul %2, %28, %cst_19 {dimension_numbers = #tpu.dot_dimension_numbers<[1], [0], [0], [1], [0, 0, 1, 1], [], []>} : vector<50x8xbf16>, vector<8x16xbf16>, vector<50x16xf32> -> vector<50x16xf32>
    %30 = vector.extract_strided_slice %29 {offsets = [8, 0], sizes = [36, 16], strides = [1, 1]} : vector<50x16xf32> to vector<36x16xf32>
    %31 = arith.addf %26, %30 : vector<36x16xf32>
    %c6 = arith.constant 6 : index
    %c0_20 = arith.constant 0 : index
    %c0_21 = arith.constant 0 : index
    %32 = vector.load %arg3[%c6, %c0_20, %c0_21] : memref<9x8x16xbf16, #tpu.memory_space<vmem>>, vector<1x8x16xbf16>
    %33 = vector.shape_cast %32 : vector<1x8x16xbf16> to vector<8x16xbf16>
    %cst_22 = arith.constant dense<0.000000e+00> : vector<50x16xf32>
    %34 = tpu.matmul %2, %33, %cst_22 {dimension_numbers = #tpu.dot_dimension_numbers<[1], [0], [0], [1], [0, 0, 1, 1], [], []>} : vector<50x8xbf16>, vector<8x16xbf16>, vector<50x16xf32> -> vector<50x16xf32>
    %35 = vector.extract_strided_slice %34 {offsets = [12, 0], sizes = [36, 16], strides = [1, 1]} : vector<50x16xf32> to vector<36x16xf32>
    %36 = arith.addf %31, %35 : vector<36x16xf32>
    %c7 = arith.constant 7 : index
    %c0_23 = arith.constant 0 : index
    %c0_24 = arith.constant 0 : index
    %37 = vector.load %arg3[%c7, %c0_23, %c0_24] : memref<9x8x16xbf16, #tpu.memory_space<vmem>>, vector<1x8x16xbf16>
    %38 = vector.shape_cast %37 : vector<1x8x16xbf16> to vector<8x16xbf16>
    %cst_25 = arith.constant dense<0.000000e+00> : vector<50x16xf32>
    %39 = tpu.matmul %2, %38, %cst_25 {dimension_numbers = #tpu.dot_dimension_numbers<[1], [0], [0], [1], [0, 0, 1, 1], [], []>} : vector<50x8xbf16>, vector<8x16xbf16>, vector<50x16xf32> -> vector<50x16xf32>
    %40 = vector.extract_strided_slice %39 {offsets = [13, 0], sizes = [36, 16], strides = [1, 1]} : vector<50x16xf32> to vector<36x16xf32>
    %41 = arith.addf %36, %40 : vector<36x16xf32>
    %c8 = arith.constant 8 : index
    %c0_26 = arith.constant 0 : index
    %c0_27 = arith.constant 0 : index
    %42 = vector.load %arg3[%c8, %c0_26, %c0_27] : memref<9x8x16xbf16, #tpu.memory_space<vmem>>, vector<1x8x16xbf16>
    %43 = vector.shape_cast %42 : vector<1x8x16xbf16> to vector<8x16xbf16>
    %cst_28 = arith.constant dense<0.000000e+00> : vector<50x16xf32>
    %44 = tpu.matmul %2, %43, %cst_28 {dimension_numbers = #tpu.dot_dimension_numbers<[1], [0], [0], [1], [0, 0, 1, 1], [], []>} : vector<50x8xbf16>, vector<8x16xbf16>, vector<50x16xf32> -> vector<50x16xf32>
    %45 = vector.extract_strided_slice %44 {offsets = [14, 0], sizes = [36, 16], strides = [1, 1]} : vector<50x16xf32> to vector<36x16xf32>
    %46 = arith.addf %41, %45 : vector<36x16xf32>
    %c0_29 = arith.constant 0 : index
    %c0_30 = arith.constant 0 : index
    %c0_31 = arith.constant 0 : index
    %47 = vector.load %arg4[%c0_29, %c0_30, %c0_31] : memref<1x36x16xf32, #tpu.memory_space<vmem>>, vector<1x36x16xf32>
    %48 = vector.shape_cast %47 : vector<1x36x16xf32> to vector<36x16xf32>
    %49 = vector.shape_cast %46 : vector<36x16xf32> to vector<1x36x16xf32>
    tpu.vector_store %arg4[%c0_29, %c0_30, %c0_31], %49 {strides = array<i32>} : memref<1x36x16xf32, #tpu.memory_space<vmem>>, vector<1x36x16xf32>,
    %c0_32 = arith.constant 0 : index
    %c0_33 = arith.constant 0 : index
    %50 = vector.load %arg2[%c0_32, %c0_33] : memref<36x1xf32, #tpu.memory_space<vmem>>, vector<36x1xf32>
    %51 = vector.broadcast %50 : vector<36x1xf32> to vector<36x16xf32>
    %52 = arith.mulf %46, %51 : vector<36x16xf32>
    %cst_34 = arith.constant dense<0.000000e+00> : vector<16xf32>
    %53 = vector.multi_reduction <add>, %52, %cst_34 [0] : vector<36x16xf32> to vector<16xf32>
    %54 = vector.shape_cast %53 : vector<16xf32> to vector<1x16xf32>
    %55 = arith.mulf %46, %46 : vector<36x16xf32>
    %56 = vector.broadcast %50 : vector<36x1xf32> to vector<36x16xf32>
    %57 = arith.mulf %55, %56 : vector<36x16xf32>
    %cst_35 = arith.constant dense<0.000000e+00> : vector<16xf32>
    %58 = vector.multi_reduction <add>, %57, %cst_35 [0] : vector<36x16xf32> to vector<16xf32>
    %59 = vector.shape_cast %58 : vector<16xf32> to vector<1x16xf32>
    %cst_36 = arith.constant 0.000000e+00 : f32
    %60 = vector.broadcast %cst_36 : f32 to vector<6x16xf32>
    %61 = tpu.concatenate %54, %59, %60 in 0 : vector<1x16xf32>, vector<1x16xf32>, vector<6x16xf32> -> vector<8x16xf32>
    %c0_37 = arith.constant 0 : index
    %c0_38 = arith.constant 0 : index
    %c0_39 = arith.constant 0 : index
    %62 = vector.load %arg5[%c0_37, %c0_38, %c0_39] : memref<1x8x16xf32, #tpu.memory_space<vmem>>, vector<1x8x16xf32>
    %63 = vector.shape_cast %62 : vector<1x8x16xf32> to vector<8x16xf32>
    %64 = vector.shape_cast %61 : vector<8x16xf32> to vector<1x8x16xf32>
    tpu.vector_store %arg5[%c0_37, %c0_38, %c0_39], %64 {strides = array<i32>} : memref<1x8x16xf32, #tpu.memory_space<vmem>>, vector<1x8x16xf32>,
    return
  }
  func.func @transform_0(%arg0: i32) -> (i32, i32, i32) {
    %c0_i32 = arith.constant 0 : i32
    %c0_i32_0 = arith.constant 0 : i32
    %c0_i32_1 = arith.constant 0 : i32
    return %arg0, %c0_i32, %c0_i32_0 : i32, i32, i32
  }
  func.func @transform_1(%arg0: i32) -> (i32, i32) {
    %c0_i32 = arith.constant 0 : i32
    %c0_i32_0 = arith.constant 0 : i32
    %c0_i32_1 = arith.constant 0 : i32
    return %c0_i32, %c0_i32_0 : i32, i32
  }
  func.func @transform_2(%arg0: i32) -> (i32, i32, i32) {
    %c0_i32 = arith.constant 0 : i32
    %c0_i32_0 = arith.constant 0 : i32
    %c0_i32_1 = arith.constant 0 : i32
    %c0_i32_2 = arith.constant 0 : i32
    return %c0_i32, %c0_i32_0, %c0_i32_1 : i32, i32, i32
  }
  func.func @transform_3(%arg0: i32) -> (i32, i32, i32) {
    %c0_i32 = arith.constant 0 : i32
    %c0_i32_0 = arith.constant 0 : i32
    %c0_i32_1 = arith.constant 0 : i32
    return %arg0, %c0_i32, %c0_i32_0 : i32, i32, i32
  }
  func.func @transform_4(%arg0: i32) -> (i32, i32, i32) {
    %c0_i32 = arith.constant 0 : i32
    %c0_i32_0 = arith.constant 0 : i32
    %c0_i32_1 = arith.constant 0 : i32
    return %arg0, %c0_i32, %c0_i32_0 : i32, i32, i32
  }
}

module attributes {stable_mosaic.version = 11 : i64} {
  func.func @_conv_b_kernel(%arg0: i32, %arg1: memref<1x36x16xf32, #tpu.memory_space<vmem>>, %arg2: memref<1x16xf32, #tpu.memory_space<vmem>>, %arg3: memref<1x16xf32, #tpu.memory_space<vmem>>, %arg4: memref<36x1xf32, #tpu.memory_space<vmem>>, %arg5: memref<9x16x16xbf16, #tpu.memory_space<vmem>>, %arg6: memref<1x36x16xf32, #tpu.memory_space<vmem>>, %arg7: memref<1x8x16xf32, #tpu.memory_space<vmem>>, %arg8: memref<50x16xf32, #tpu.memory_space<vmem>>) attributes {dimension_semantics = [#tpu.dimension_semantics<parallel>], iteration_bounds = array<i64: 2>, scalar_prefetch = 0 : i64, scratch_operands = 1 : i64, tpu.core_type = #tpu.core_type<tc>, window_params = [{transform_indices = @transform_0, window_bounds = array<i64: 1, 36, 16>}, {pipeline_mode = #tpu.pipeline_mode<synchronous>, transform_indices = @transform_1, window_bounds = array<i64: 1, 16>}, {pipeline_mode = #tpu.pipeline_mode<synchronous>, transform_indices = @transform_2, window_bounds = array<i64: 1, 16>}, {pipeline_mode = #tpu.pipeline_mode<synchronous>, transform_indices = @transform_3, window_bounds = array<i64: 36, 1>}, {pipeline_mode = #tpu.pipeline_mode<synchronous>, transform_indices = @transform_4, window_bounds = array<i64: 9, 16, 16>}, {transform_indices = @transform_5, window_bounds = array<i64: 1, 36, 16>}, {transform_indices = @transform_6, window_bounds = array<i64: 1, 8, 16>}]} {
    %c0 = arith.constant 0 : index
    %c0_0 = arith.constant 0 : index
    %c0_1 = arith.constant 0 : index
    %0 = vector.load %arg1[%c0, %c0_0, %c0_1] : memref<1x36x16xf32, #tpu.memory_space<vmem>>, vector<1x36x16xf32>
    %1 = vector.shape_cast %0 : vector<1x36x16xf32> to vector<36x16xf32>
    %c0_2 = arith.constant 0 : index
    %c0_3 = arith.constant 0 : index
    %2 = vector.load %arg2[%c0_2, %c0_3] : memref<1x16xf32, #tpu.memory_space<vmem>>, vector<1x16xf32>
    %3 = vector.broadcast %2 : vector<1x16xf32> to vector<36x16xf32>
    %4 = arith.mulf %1, %3 : vector<36x16xf32>
    %c0_4 = arith.constant 0 : index
    %c0_5 = arith.constant 0 : index
    %5 = vector.load %arg3[%c0_4, %c0_5] : memref<1x16xf32, #tpu.memory_space<vmem>>, vector<1x16xf32>
    %6 = vector.broadcast %5 : vector<1x16xf32> to vector<36x16xf32>
    %7 = arith.addf %4, %6 : vector<36x16xf32>
    %cst = arith.constant 0.000000e+00 : f32
    %8 = vector.broadcast %cst : f32 to vector<36x16xf32>
    %9 = arith.maximumf %7, %8 : vector<36x16xf32>
    %c0_6 = arith.constant 0 : index
    %c0_7 = arith.constant 0 : index
    %10 = vector.load %arg4[%c0_6, %c0_7] : memref<36x1xf32, #tpu.memory_space<vmem>>, vector<36x1xf32>
    %11 = vector.broadcast %10 : vector<36x1xf32> to vector<36x16xf32>
    %12 = arith.mulf %9, %11 : vector<36x16xf32>
    %cst_8 = arith.constant 0.000000e+00 : f32
    %13 = vector.broadcast %cst_8 : f32 to vector<7x16xf32>
    %c0_9 = arith.constant 0 : index
    %c0_10 = arith.constant 0 : index
    %14 = vector.load %arg8[%c0_9, %c0_10] : memref<50x16xf32, #tpu.memory_space<vmem>>, vector<7x16xf32>
    tpu.vector_store %arg8[%c0_9, %c0_10], %13 {strides = array<i32>} : memref<50x16xf32, #tpu.memory_space<vmem>>, vector<7x16xf32>,
    %cst_11 = arith.constant 0.000000e+00 : f32
    %15 = vector.broadcast %cst_11 : f32 to vector<7x16xf32>
    %c43 = arith.constant 43 : index
    %c0_12 = arith.constant 0 : index
    %16 = vector.load %arg8[%c43, %c0_12] : memref<50x16xf32, #tpu.memory_space<vmem>>, vector<7x16xf32>
    tpu.vector_store %arg8[%c43, %c0_12], %15 {strides = array<i32>} : memref<50x16xf32, #tpu.memory_space<vmem>>, vector<7x16xf32>,
    %c7 = arith.constant 7 : index
    %c0_13 = arith.constant 0 : index
    %17 = vector.load %arg8[%c7, %c0_13] : memref<50x16xf32, #tpu.memory_space<vmem>>, vector<36x16xf32>
    tpu.vector_store %arg8[%c7, %c0_13], %12 {strides = array<i32>} : memref<50x16xf32, #tpu.memory_space<vmem>>, vector<36x16xf32>,
    %c0_14 = arith.constant 0 : index
    %c0_15 = arith.constant 0 : index
    %18 = vector.load %arg8[%c0_14, %c0_15] : memref<50x16xf32, #tpu.memory_space<vmem>>, vector<50x16xf32>
    %19 = arith.truncf %18 : vector<50x16xf32> to vector<50x16xbf16>
    %c0_16 = arith.constant 0 : index
    %c0_17 = arith.constant 0 : index
    %c0_18 = arith.constant 0 : index
    %20 = vector.load %arg5[%c0_16, %c0_17, %c0_18] : memref<9x16x16xbf16, #tpu.memory_space<vmem>>, vector<1x16x16xbf16>
    %21 = vector.shape_cast %20 : vector<1x16x16xbf16> to vector<16x16xbf16>
    %cst_19 = arith.constant dense<0.000000e+00> : vector<50x16xf32>
    %22 = tpu.matmul %19, %21, %cst_19 {dimension_numbers = #tpu.dot_dimension_numbers<[1], [0], [0], [1], [0, 0, 1, 1], [], []>} : vector<50x16xbf16>, vector<16x16xbf16>, vector<50x16xf32> -> vector<50x16xf32>
    %23 = vector.extract_strided_slice %22 {offsets = [0, 0], sizes = [36, 16], strides = [1, 1]} : vector<50x16xf32> to vector<36x16xf32>
    %c1 = arith.constant 1 : index
    %c0_20 = arith.constant 0 : index
    %c0_21 = arith.constant 0 : index
    %24 = vector.load %arg5[%c1, %c0_20, %c0_21] : memref<9x16x16xbf16, #tpu.memory_space<vmem>>, vector<1x16x16xbf16>
    %25 = vector.shape_cast %24 : vector<1x16x16xbf16> to vector<16x16xbf16>
    %cst_22 = arith.constant dense<0.000000e+00> : vector<50x16xf32>
    %26 = tpu.matmul %19, %25, %cst_22 {dimension_numbers = #tpu.dot_dimension_numbers<[1], [0], [0], [1], [0, 0, 1, 1], [], []>} : vector<50x16xbf16>, vector<16x16xbf16>, vector<50x16xf32> -> vector<50x16xf32>
    %27 = vector.extract_strided_slice %26 {offsets = [1, 0], sizes = [36, 16], strides = [1, 1]} : vector<50x16xf32> to vector<36x16xf32>
    %28 = arith.addf %23, %27 : vector<36x16xf32>
    %c2 = arith.constant 2 : index
    %c0_23 = arith.constant 0 : index
    %c0_24 = arith.constant 0 : index
    %29 = vector.load %arg5[%c2, %c0_23, %c0_24] : memref<9x16x16xbf16, #tpu.memory_space<vmem>>, vector<1x16x16xbf16>
    %30 = vector.shape_cast %29 : vector<1x16x16xbf16> to vector<16x16xbf16>
    %cst_25 = arith.constant dense<0.000000e+00> : vector<50x16xf32>
    %31 = tpu.matmul %19, %30, %cst_25 {dimension_numbers = #tpu.dot_dimension_numbers<[1], [0], [0], [1], [0, 0, 1, 1], [], []>} : vector<50x16xbf16>, vector<16x16xbf16>, vector<50x16xf32> -> vector<50x16xf32>
    %32 = vector.extract_strided_slice %31 {offsets = [2, 0], sizes = [36, 16], strides = [1, 1]} : vector<50x16xf32> to vector<36x16xf32>
    %33 = arith.addf %28, %32 : vector<36x16xf32>
    %c3 = arith.constant 3 : index
    %c0_26 = arith.constant 0 : index
    %c0_27 = arith.constant 0 : index
    %34 = vector.load %arg5[%c3, %c0_26, %c0_27] : memref<9x16x16xbf16, #tpu.memory_space<vmem>>, vector<1x16x16xbf16>
    %35 = vector.shape_cast %34 : vector<1x16x16xbf16> to vector<16x16xbf16>
    %cst_28 = arith.constant dense<0.000000e+00> : vector<50x16xf32>
    %36 = tpu.matmul %19, %35, %cst_28 {dimension_numbers = #tpu.dot_dimension_numbers<[1], [0], [0], [1], [0, 0, 1, 1], [], []>} : vector<50x16xbf16>, vector<16x16xbf16>, vector<50x16xf32> -> vector<50x16xf32>
    %37 = vector.extract_strided_slice %36 {offsets = [6, 0], sizes = [36, 16], strides = [1, 1]} : vector<50x16xf32> to vector<36x16xf32>
    %38 = arith.addf %33, %37 : vector<36x16xf32>
    %c4 = arith.constant 4 : index
    %c0_29 = arith.constant 0 : index
    %c0_30 = arith.constant 0 : index
    %39 = vector.load %arg5[%c4, %c0_29, %c0_30] : memref<9x16x16xbf16, #tpu.memory_space<vmem>>, vector<1x16x16xbf16>
    %40 = vector.shape_cast %39 : vector<1x16x16xbf16> to vector<16x16xbf16>
    %cst_31 = arith.constant dense<0.000000e+00> : vector<50x16xf32>
    %41 = tpu.matmul %19, %40, %cst_31 {dimension_numbers = #tpu.dot_dimension_numbers<[1], [0], [0], [1], [0, 0, 1, 1], [], []>} : vector<50x16xbf16>, vector<16x16xbf16>, vector<50x16xf32> -> vector<50x16xf32>
    %42 = vector.extract_strided_slice %41 {offsets = [7, 0], sizes = [36, 16], strides = [1, 1]} : vector<50x16xf32> to vector<36x16xf32>
    %43 = arith.addf %38, %42 : vector<36x16xf32>
    %c5 = arith.constant 5 : index
    %c0_32 = arith.constant 0 : index
    %c0_33 = arith.constant 0 : index
    %44 = vector.load %arg5[%c5, %c0_32, %c0_33] : memref<9x16x16xbf16, #tpu.memory_space<vmem>>, vector<1x16x16xbf16>
    %45 = vector.shape_cast %44 : vector<1x16x16xbf16> to vector<16x16xbf16>
    %cst_34 = arith.constant dense<0.000000e+00> : vector<50x16xf32>
    %46 = tpu.matmul %19, %45, %cst_34 {dimension_numbers = #tpu.dot_dimension_numbers<[1], [0], [0], [1], [0, 0, 1, 1], [], []>} : vector<50x16xbf16>, vector<16x16xbf16>, vector<50x16xf32> -> vector<50x16xf32>
    %47 = vector.extract_strided_slice %46 {offsets = [8, 0], sizes = [36, 16], strides = [1, 1]} : vector<50x16xf32> to vector<36x16xf32>
    %48 = arith.addf %43, %47 : vector<36x16xf32>
    %c6 = arith.constant 6 : index
    %c0_35 = arith.constant 0 : index
    %c0_36 = arith.constant 0 : index
    %49 = vector.load %arg5[%c6, %c0_35, %c0_36] : memref<9x16x16xbf16, #tpu.memory_space<vmem>>, vector<1x16x16xbf16>
    %50 = vector.shape_cast %49 : vector<1x16x16xbf16> to vector<16x16xbf16>
    %cst_37 = arith.constant dense<0.000000e+00> : vector<50x16xf32>
    %51 = tpu.matmul %19, %50, %cst_37 {dimension_numbers = #tpu.dot_dimension_numbers<[1], [0], [0], [1], [0, 0, 1, 1], [], []>} : vector<50x16xbf16>, vector<16x16xbf16>, vector<50x16xf32> -> vector<50x16xf32>
    %52 = vector.extract_strided_slice %51 {offsets = [12, 0], sizes = [36, 16], strides = [1, 1]} : vector<50x16xf32> to vector<36x16xf32>
    %53 = arith.addf %48, %52 : vector<36x16xf32>
    %c7_38 = arith.constant 7 : index
    %c0_39 = arith.constant 0 : index
    %c0_40 = arith.constant 0 : index
    %54 = vector.load %arg5[%c7_38, %c0_39, %c0_40] : memref<9x16x16xbf16, #tpu.memory_space<vmem>>, vector<1x16x16xbf16>
    %55 = vector.shape_cast %54 : vector<1x16x16xbf16> to vector<16x16xbf16>
    %cst_41 = arith.constant dense<0.000000e+00> : vector<50x16xf32>
    %56 = tpu.matmul %19, %55, %cst_41 {dimension_numbers = #tpu.dot_dimension_numbers<[1], [0], [0], [1], [0, 0, 1, 1], [], []>} : vector<50x16xbf16>, vector<16x16xbf16>, vector<50x16xf32> -> vector<50x16xf32>
    %57 = vector.extract_strided_slice %56 {offsets = [13, 0], sizes = [36, 16], strides = [1, 1]} : vector<50x16xf32> to vector<36x16xf32>
    %58 = arith.addf %53, %57 : vector<36x16xf32>
    %c8 = arith.constant 8 : index
    %c0_42 = arith.constant 0 : index
    %c0_43 = arith.constant 0 : index
    %59 = vector.load %arg5[%c8, %c0_42, %c0_43] : memref<9x16x16xbf16, #tpu.memory_space<vmem>>, vector<1x16x16xbf16>
    %60 = vector.shape_cast %59 : vector<1x16x16xbf16> to vector<16x16xbf16>
    %cst_44 = arith.constant dense<0.000000e+00> : vector<50x16xf32>
    %61 = tpu.matmul %19, %60, %cst_44 {dimension_numbers = #tpu.dot_dimension_numbers<[1], [0], [0], [1], [0, 0, 1, 1], [], []>} : vector<50x16xbf16>, vector<16x16xbf16>, vector<50x16xf32> -> vector<50x16xf32>
    %62 = vector.extract_strided_slice %61 {offsets = [14, 0], sizes = [36, 16], strides = [1, 1]} : vector<50x16xf32> to vector<36x16xf32>
    %63 = arith.addf %58, %62 : vector<36x16xf32>
    %c0_45 = arith.constant 0 : index
    %c0_46 = arith.constant 0 : index
    %c0_47 = arith.constant 0 : index
    %64 = vector.load %arg6[%c0_45, %c0_46, %c0_47] : memref<1x36x16xf32, #tpu.memory_space<vmem>>, vector<1x36x16xf32>
    %65 = vector.shape_cast %64 : vector<1x36x16xf32> to vector<36x16xf32>
    %66 = vector.shape_cast %63 : vector<36x16xf32> to vector<1x36x16xf32>
    tpu.vector_store %arg6[%c0_45, %c0_46, %c0_47], %66 {strides = array<i32>} : memref<1x36x16xf32, #tpu.memory_space<vmem>>, vector<1x36x16xf32>,
    %c0_48 = arith.constant 0 : index
    %c0_49 = arith.constant 0 : index
    %67 = vector.load %arg4[%c0_48, %c0_49] : memref<36x1xf32, #tpu.memory_space<vmem>>, vector<36x1xf32>
    %68 = vector.broadcast %67 : vector<36x1xf32> to vector<36x16xf32>
    %69 = arith.mulf %63, %68 : vector<36x16xf32>
    %cst_50 = arith.constant dense<0.000000e+00> : vector<16xf32>
    %70 = vector.multi_reduction <add>, %69, %cst_50 [0] : vector<36x16xf32> to vector<16xf32>
    %71 = vector.shape_cast %70 : vector<16xf32> to vector<1x16xf32>
    %72 = arith.mulf %63, %63 : vector<36x16xf32>
    %73 = vector.broadcast %67 : vector<36x1xf32> to vector<36x16xf32>
    %74 = arith.mulf %72, %73 : vector<36x16xf32>
    %cst_51 = arith.constant dense<0.000000e+00> : vector<16xf32>
    %75 = vector.multi_reduction <add>, %74, %cst_51 [0] : vector<36x16xf32> to vector<16xf32>
    %76 = vector.shape_cast %75 : vector<16xf32> to vector<1x16xf32>
    %cst_52 = arith.constant 0.000000e+00 : f32
    %77 = vector.broadcast %cst_52 : f32 to vector<6x16xf32>
    %78 = tpu.concatenate %71, %76, %77 in 0 : vector<1x16xf32>, vector<1x16xf32>, vector<6x16xf32> -> vector<8x16xf32>
    %c0_53 = arith.constant 0 : index
    %c0_54 = arith.constant 0 : index
    %c0_55 = arith.constant 0 : index
    %79 = vector.load %arg7[%c0_53, %c0_54, %c0_55] : memref<1x8x16xf32, #tpu.memory_space<vmem>>, vector<1x8x16xf32>
    %80 = vector.shape_cast %79 : vector<1x8x16xf32> to vector<8x16xf32>
    %81 = vector.shape_cast %78 : vector<8x16xf32> to vector<1x8x16xf32>
    tpu.vector_store %arg7[%c0_53, %c0_54, %c0_55], %81 {strides = array<i32>} : memref<1x8x16xf32, #tpu.memory_space<vmem>>, vector<1x8x16xf32>,
    return
  }
  func.func @transform_0(%arg0: i32) -> (i32, i32, i32) {
    %c0_i32 = arith.constant 0 : i32
    %c0_i32_0 = arith.constant 0 : i32
    %c0_i32_1 = arith.constant 0 : i32
    return %arg0, %c0_i32, %c0_i32_0 : i32, i32, i32
  }
  func.func @transform_1(%arg0: i32) -> (i32, i32) {
    %c0_i32 = arith.constant 0 : i32
    %c0_i32_0 = arith.constant 0 : i32
    %c0_i32_1 = arith.constant 0 : i32
    return %c0_i32, %c0_i32_0 : i32, i32
  }
  func.func @transform_2(%arg0: i32) -> (i32, i32) {
    %c0_i32 = arith.constant 0 : i32
    %c0_i32_0 = arith.constant 0 : i32
    %c0_i32_1 = arith.constant 0 : i32
    return %c0_i32, %c0_i32_0 : i32, i32
  }
  func.func @transform_3(%arg0: i32) -> (i32, i32) {
    %c0_i32 = arith.constant 0 : i32
    %c0_i32_0 = arith.constant 0 : i32
    %c0_i32_1 = arith.constant 0 : i32
    return %c0_i32, %c0_i32_0 : i32, i32
  }
  func.func @transform_4(%arg0: i32) -> (i32, i32, i32) {
    %c0_i32 = arith.constant 0 : i32
    %c0_i32_0 = arith.constant 0 : i32
    %c0_i32_1 = arith.constant 0 : i32
    %c0_i32_2 = arith.constant 0 : i32
    return %c0_i32, %c0_i32_0, %c0_i32_1 : i32, i32, i32
  }
  func.func @transform_5(%arg0: i32) -> (i32, i32, i32) {
    %c0_i32 = arith.constant 0 : i32
    %c0_i32_0 = arith.constant 0 : i32
    %c0_i32_1 = arith.constant 0 : i32
    return %arg0, %c0_i32, %c0_i32_0 : i32, i32, i32
  }
  func.func @transform_6(%arg0: i32) -> (i32, i32, i32) {
    %c0_i32 = arith.constant 0 : i32
    %c0_i32_0 = arith.constant 0 : i32
    %c0_i32_1 = arith.constant 0 : i32
    return %arg0, %c0_i32, %c0_i32_0 : i32, i32, i32
  }
}

module attributes {stable_mosaic.version = 11 : i64} {
  func.func @_up_conv_a_kernel(%arg0: i32, %arg1: memref<1x16x16xf32, #tpu.memory_space<vmem>>, %arg2: memref<1x16x16xf32, #tpu.memory_space<vmem>>, %arg3: memref<122x16xf32, #tpu.memory_space<vmem>>, %arg4: memref<100x1xf32, #tpu.memory_space<vmem>>, %arg5: memref<9x32x8xbf16, #tpu.memory_space<vmem>>, %arg6: memref<1x100x8xf32, #tpu.memory_space<vmem>>, %arg7: memref<1x8x8xf32, #tpu.memory_space<vmem>>) attributes {dimension_semantics = [#tpu.dimension_semantics<parallel>], iteration_bounds = array<i64: 2>, scalar_prefetch = 0 : i64, scratch_operands = 0 : i64, tpu.core_type = #tpu.core_type<tc>, window_params = [{transform_indices = @transform_0, window_bounds = array<i64: 1, 16, 16>}, {transform_indices = @transform_1, window_bounds = array<i64: 1, 16, 16>}, {pipeline_mode = #tpu.pipeline_mode<synchronous>, transform_indices = @transform_2, window_bounds = array<i64: 122, 16>}, {pipeline_mode = #tpu.pipeline_mode<synchronous>, transform_indices = @transform_3, window_bounds = array<i64: 100, 1>}, {pipeline_mode = #tpu.pipeline_mode<synchronous>, transform_indices = @transform_4, window_bounds = array<i64: 9, 32, 8>}, {transform_indices = @transform_5, window_bounds = array<i64: 1, 100, 8>}, {transform_indices = @transform_6, window_bounds = array<i64: 1, 8, 8>}]} {
    %c0 = arith.constant 0 : index
    %c0_0 = arith.constant 0 : index
    %c0_1 = arith.constant 0 : index
    %0 = vector.load %arg2[%c0, %c0_0, %c0_1] : memref<1x16x16xf32, #tpu.memory_space<vmem>>, vector<1x16x16xf32>
    %1 = vector.shape_cast %0 : vector<1x16x16xf32> to vector<16x16xf32>
    %c0_2 = arith.constant 0 : index
    %c0_3 = arith.constant 0 : index
    %c0_4 = arith.constant 0 : index
    %2 = vector.load %arg1[%c0_2, %c0_3, %c0_4] : memref<1x16x16xf32, #tpu.memory_space<vmem>>, vector<1x16x16xf32>
    %3 = vector.shape_cast %2 : vector<1x16x16xf32> to vector<16x16xf32>
    %4 = tpu.concatenate %1, %3 in 1 : vector<16x16xf32>, vector<16x16xf32> -> vector<16x32xf32>
    %c0_5 = arith.constant 0 : index
    %c0_6 = arith.constant 0 : index
    %5 = vector.load %arg3[%c0_5, %c0_6] : memref<122x16xf32, #tpu.memory_space<vmem>>, vector<122x16xf32>
    %cst = arith.constant dense<0.000000e+00> : vector<122x32xf32>
    %6 = tpu.matmul %5, %4, %cst {dimension_numbers = #tpu.dot_dimension_numbers<[1], [0], [0], [1], [0, 0, 1, 1], [], []>} : vector<122x16xf32>, vector<16x32xf32>, vector<122x32xf32> -> vector<122x32xf32>
    %7 = arith.truncf %6 : vector<122x32xf32> to vector<122x32xbf16>
    %c0_7 = arith.constant 0 : index
    %c0_8 = arith.constant 0 : index
    %c0_9 = arith.constant 0 : index
    %8 = vector.load %arg5[%c0_7, %c0_8, %c0_9] : memref<9x32x8xbf16, #tpu.memory_space<vmem>>, vector<1x32x8xbf16>
    %9 = vector.shape_cast %8 : vector<1x32x8xbf16> to vector<32x8xbf16>
    %cst_10 = arith.constant dense<0.000000e+00> : vector<122x8xf32>
    %10 = tpu.matmul %7, %9, %cst_10 {dimension_numbers = #tpu.dot_dimension_numbers<[1], [0], [0], [1], [0, 0, 1, 1], [], []>} : vector<122x32xbf16>, vector<32x8xbf16>, vector<122x8xf32> -> vector<122x8xf32>
    %11 = vector.extract_strided_slice %10 {offsets = [0, 0], sizes = [100, 8], strides = [1, 1]} : vector<122x8xf32> to vector<100x8xf32>
    %c1 = arith.constant 1 : index
    %c0_11 = arith.constant 0 : index
    %c0_12 = arith.constant 0 : index
    %12 = vector.load %arg5[%c1, %c0_11, %c0_12] : memref<9x32x8xbf16, #tpu.memory_space<vmem>>, vector<1x32x8xbf16>
    %13 = vector.shape_cast %12 : vector<1x32x8xbf16> to vector<32x8xbf16>
    %cst_13 = arith.constant dense<0.000000e+00> : vector<122x8xf32>
    %14 = tpu.matmul %7, %13, %cst_13 {dimension_numbers = #tpu.dot_dimension_numbers<[1], [0], [0], [1], [0, 0, 1, 1], [], []>} : vector<122x32xbf16>, vector<32x8xbf16>, vector<122x8xf32> -> vector<122x8xf32>
    %15 = vector.extract_strided_slice %14 {offsets = [1, 0], sizes = [100, 8], strides = [1, 1]} : vector<122x8xf32> to vector<100x8xf32>
    %16 = arith.addf %11, %15 : vector<100x8xf32>
    %c2 = arith.constant 2 : index
    %c0_14 = arith.constant 0 : index
    %c0_15 = arith.constant 0 : index
    %17 = vector.load %arg5[%c2, %c0_14, %c0_15] : memref<9x32x8xbf16, #tpu.memory_space<vmem>>, vector<1x32x8xbf16>
    %18 = vector.shape_cast %17 : vector<1x32x8xbf16> to vector<32x8xbf16>
    %cst_16 = arith.constant dense<0.000000e+00> : vector<122x8xf32>
    %19 = tpu.matmul %7, %18, %cst_16 {dimension_numbers = #tpu.dot_dimension_numbers<[1], [0], [0], [1], [0, 0, 1, 1], [], []>} : vector<122x32xbf16>, vector<32x8xbf16>, vector<122x8xf32> -> vector<122x8xf32>
    %20 = vector.extract_strided_slice %19 {offsets = [2, 0], sizes = [100, 8], strides = [1, 1]} : vector<122x8xf32> to vector<100x8xf32>
    %21 = arith.addf %16, %20 : vector<100x8xf32>
    %c3 = arith.constant 3 : index
    %c0_17 = arith.constant 0 : index
    %c0_18 = arith.constant 0 : index
    %22 = vector.load %arg5[%c3, %c0_17, %c0_18] : memref<9x32x8xbf16, #tpu.memory_space<vmem>>, vector<1x32x8xbf16>
    %23 = vector.shape_cast %22 : vector<1x32x8xbf16> to vector<32x8xbf16>
    %cst_19 = arith.constant dense<0.000000e+00> : vector<122x8xf32>
    %24 = tpu.matmul %7, %23, %cst_19 {dimension_numbers = #tpu.dot_dimension_numbers<[1], [0], [0], [1], [0, 0, 1, 1], [], []>} : vector<122x32xbf16>, vector<32x8xbf16>, vector<122x8xf32> -> vector<122x8xf32>
    %25 = vector.extract_strided_slice %24 {offsets = [10, 0], sizes = [100, 8], strides = [1, 1]} : vector<122x8xf32> to vector<100x8xf32>
    %26 = arith.addf %21, %25 : vector<100x8xf32>
    %c4 = arith.constant 4 : index
    %c0_20 = arith.constant 0 : index
    %c0_21 = arith.constant 0 : index
    %27 = vector.load %arg5[%c4, %c0_20, %c0_21] : memref<9x32x8xbf16, #tpu.memory_space<vmem>>, vector<1x32x8xbf16>
    %28 = vector.shape_cast %27 : vector<1x32x8xbf16> to vector<32x8xbf16>
    %cst_22 = arith.constant dense<0.000000e+00> : vector<122x8xf32>
    %29 = tpu.matmul %7, %28, %cst_22 {dimension_numbers = #tpu.dot_dimension_numbers<[1], [0], [0], [1], [0, 0, 1, 1], [], []>} : vector<122x32xbf16>, vector<32x8xbf16>, vector<122x8xf32> -> vector<122x8xf32>
    %30 = vector.extract_strided_slice %29 {offsets = [11, 0], sizes = [100, 8], strides = [1, 1]} : vector<122x8xf32> to vector<100x8xf32>
    %31 = arith.addf %26, %30 : vector<100x8xf32>
    %c5 = arith.constant 5 : index
    %c0_23 = arith.constant 0 : index
    %c0_24 = arith.constant 0 : index
    %32 = vector.load %arg5[%c5, %c0_23, %c0_24] : memref<9x32x8xbf16, #tpu.memory_space<vmem>>, vector<1x32x8xbf16>
    %33 = vector.shape_cast %32 : vector<1x32x8xbf16> to vector<32x8xbf16>
    %cst_25 = arith.constant dense<0.000000e+00> : vector<122x8xf32>
    %34 = tpu.matmul %7, %33, %cst_25 {dimension_numbers = #tpu.dot_dimension_numbers<[1], [0], [0], [1], [0, 0, 1, 1], [], []>} : vector<122x32xbf16>, vector<32x8xbf16>, vector<122x8xf32> -> vector<122x8xf32>
    %35 = vector.extract_strided_slice %34 {offsets = [12, 0], sizes = [100, 8], strides = [1, 1]} : vector<122x8xf32> to vector<100x8xf32>
    %36 = arith.addf %31, %35 : vector<100x8xf32>
    %c6 = arith.constant 6 : index
    %c0_26 = arith.constant 0 : index
    %c0_27 = arith.constant 0 : index
    %37 = vector.load %arg5[%c6, %c0_26, %c0_27] : memref<9x32x8xbf16, #tpu.memory_space<vmem>>, vector<1x32x8xbf16>
    %38 = vector.shape_cast %37 : vector<1x32x8xbf16> to vector<32x8xbf16>
    %cst_28 = arith.constant dense<0.000000e+00> : vector<122x8xf32>
    %39 = tpu.matmul %7, %38, %cst_28 {dimension_numbers = #tpu.dot_dimension_numbers<[1], [0], [0], [1], [0, 0, 1, 1], [], []>} : vector<122x32xbf16>, vector<32x8xbf16>, vector<122x8xf32> -> vector<122x8xf32>
    %40 = vector.extract_strided_slice %39 {offsets = [20, 0], sizes = [100, 8], strides = [1, 1]} : vector<122x8xf32> to vector<100x8xf32>
    %41 = arith.addf %36, %40 : vector<100x8xf32>
    %c7 = arith.constant 7 : index
    %c0_29 = arith.constant 0 : index
    %c0_30 = arith.constant 0 : index
    %42 = vector.load %arg5[%c7, %c0_29, %c0_30] : memref<9x32x8xbf16, #tpu.memory_space<vmem>>, vector<1x32x8xbf16>
    %43 = vector.shape_cast %42 : vector<1x32x8xbf16> to vector<32x8xbf16>
    %cst_31 = arith.constant dense<0.000000e+00> : vector<122x8xf32>
    %44 = tpu.matmul %7, %43, %cst_31 {dimension_numbers = #tpu.dot_dimension_numbers<[1], [0], [0], [1], [0, 0, 1, 1], [], []>} : vector<122x32xbf16>, vector<32x8xbf16>, vector<122x8xf32> -> vector<122x8xf32>
    %45 = vector.extract_strided_slice %44 {offsets = [21, 0], sizes = [100, 8], strides = [1, 1]} : vector<122x8xf32> to vector<100x8xf32>
    %46 = arith.addf %41, %45 : vector<100x8xf32>
    %c8 = arith.constant 8 : index
    %c0_32 = arith.constant 0 : index
    %c0_33 = arith.constant 0 : index
    %47 = vector.load %arg5[%c8, %c0_32, %c0_33] : memref<9x32x8xbf16, #tpu.memory_space<vmem>>, vector<1x32x8xbf16>
    %48 = vector.shape_cast %47 : vector<1x32x8xbf16> to vector<32x8xbf16>
    %cst_34 = arith.constant dense<0.000000e+00> : vector<122x8xf32>
    %49 = tpu.matmul %7, %48, %cst_34 {dimension_numbers = #tpu.dot_dimension_numbers<[1], [0], [0], [1], [0, 0, 1, 1], [], []>} : vector<122x32xbf16>, vector<32x8xbf16>, vector<122x8xf32> -> vector<122x8xf32>
    %50 = vector.extract_strided_slice %49 {offsets = [22, 0], sizes = [100, 8], strides = [1, 1]} : vector<122x8xf32> to vector<100x8xf32>
    %51 = arith.addf %46, %50 : vector<100x8xf32>
    %c0_35 = arith.constant 0 : index
    %c0_36 = arith.constant 0 : index
    %c0_37 = arith.constant 0 : index
    %52 = vector.load %arg6[%c0_35, %c0_36, %c0_37] : memref<1x100x8xf32, #tpu.memory_space<vmem>>, vector<1x100x8xf32>
    %53 = vector.shape_cast %52 : vector<1x100x8xf32> to vector<100x8xf32>
    %54 = vector.shape_cast %51 : vector<100x8xf32> to vector<1x100x8xf32>
    tpu.vector_store %arg6[%c0_35, %c0_36, %c0_37], %54 {strides = array<i32>} : memref<1x100x8xf32, #tpu.memory_space<vmem>>, vector<1x100x8xf32>,
    %c0_38 = arith.constant 0 : index
    %c0_39 = arith.constant 0 : index
    %55 = vector.load %arg4[%c0_38, %c0_39] : memref<100x1xf32, #tpu.memory_space<vmem>>, vector<100x1xf32>
    %56 = vector.broadcast %55 : vector<100x1xf32> to vector<100x8xf32>
    %57 = arith.mulf %51, %56 : vector<100x8xf32>
    %cst_40 = arith.constant dense<0.000000e+00> : vector<8xf32>
    %58 = vector.multi_reduction <add>, %57, %cst_40 [0] : vector<100x8xf32> to vector<8xf32>
    %59 = vector.shape_cast %58 : vector<8xf32> to vector<1x8xf32>
    %60 = arith.mulf %51, %51 : vector<100x8xf32>
    %61 = vector.broadcast %55 : vector<100x1xf32> to vector<100x8xf32>
    %62 = arith.mulf %60, %61 : vector<100x8xf32>
    %cst_41 = arith.constant dense<0.000000e+00> : vector<8xf32>
    %63 = vector.multi_reduction <add>, %62, %cst_41 [0] : vector<100x8xf32> to vector<8xf32>
    %64 = vector.shape_cast %63 : vector<8xf32> to vector<1x8xf32>
    %cst_42 = arith.constant 0.000000e+00 : f32
    %65 = vector.broadcast %cst_42 : f32 to vector<6x8xf32>
    %66 = tpu.concatenate %59, %64, %65 in 0 : vector<1x8xf32>, vector<1x8xf32>, vector<6x8xf32> -> vector<8x8xf32>
    %c0_43 = arith.constant 0 : index
    %c0_44 = arith.constant 0 : index
    %c0_45 = arith.constant 0 : index
    %67 = vector.load %arg7[%c0_43, %c0_44, %c0_45] : memref<1x8x8xf32, #tpu.memory_space<vmem>>, vector<1x8x8xf32>
    %68 = vector.shape_cast %67 : vector<1x8x8xf32> to vector<8x8xf32>
    %69 = vector.shape_cast %66 : vector<8x8xf32> to vector<1x8x8xf32>
    tpu.vector_store %arg7[%c0_43, %c0_44, %c0_45], %69 {strides = array<i32>} : memref<1x8x8xf32, #tpu.memory_space<vmem>>, vector<1x8x8xf32>,
    return
  }
  func.func @transform_0(%arg0: i32) -> (i32, i32, i32) {
    %c0_i32 = arith.constant 0 : i32
    %c0_i32_0 = arith.constant 0 : i32
    %c0_i32_1 = arith.constant 0 : i32
    return %arg0, %c0_i32, %c0_i32_0 : i32, i32, i32
  }
  func.func @transform_1(%arg0: i32) -> (i32, i32, i32) {
    %c0_i32 = arith.constant 0 : i32
    %c0_i32_0 = arith.constant 0 : i32
    %c0_i32_1 = arith.constant 0 : i32
    return %arg0, %c0_i32, %c0_i32_0 : i32, i32, i32
  }
  func.func @transform_2(%arg0: i32) -> (i32, i32) {
    %c0_i32 = arith.constant 0 : i32
    %c0_i32_0 = arith.constant 0 : i32
    %c0_i32_1 = arith.constant 0 : i32
    return %c0_i32, %c0_i32_0 : i32, i32
  }
  func.func @transform_3(%arg0: i32) -> (i32, i32) {
    %c0_i32 = arith.constant 0 : i32
    %c0_i32_0 = arith.constant 0 : i32
    %c0_i32_1 = arith.constant 0 : i32
    return %c0_i32, %c0_i32_0 : i32, i32
  }
  func.func @transform_4(%arg0: i32) -> (i32, i32, i32) {
    %c0_i32 = arith.constant 0 : i32
    %c0_i32_0 = arith.constant 0 : i32
    %c0_i32_1 = arith.constant 0 : i32
    %c0_i32_2 = arith.constant 0 : i32
    return %c0_i32, %c0_i32_0, %c0_i32_1 : i32, i32, i32
  }
  func.func @transform_5(%arg0: i32) -> (i32, i32, i32) {
    %c0_i32 = arith.constant 0 : i32
    %c0_i32_0 = arith.constant 0 : i32
    %c0_i32_1 = arith.constant 0 : i32
    return %arg0, %c0_i32, %c0_i32_0 : i32, i32, i32
  }
  func.func @transform_6(%arg0: i32) -> (i32, i32, i32) {
    %c0_i32 = arith.constant 0 : i32
    %c0_i32_0 = arith.constant 0 : i32
    %c0_i32_1 = arith.constant 0 : i32
    return %arg0, %c0_i32, %c0_i32_0 : i32, i32, i32
  }
}

module attributes {stable_mosaic.version = 11 : i64} {
  func.func @_outconv_kernel(%arg0: i32, %arg1: memref<1x64x8xf32, #tpu.memory_space<vmem>>, %arg2: memref<8x2xf32, #tpu.memory_space<vmem>>, %arg3: memref<1x2xf32, #tpu.memory_space<vmem>>, %arg4: memref<256x64xf32, #tpu.memory_space<vmem>>, %arg5: memref<1x256x2xf32, #tpu.memory_space<vmem>>) attributes {dimension_semantics = [#tpu.dimension_semantics<parallel>], iteration_bounds = array<i64: 2>, scalar_prefetch = 0 : i64, scratch_operands = 0 : i64, tpu.core_type = #tpu.core_type<tc>, window_params = [{transform_indices = @transform_0, window_bounds = array<i64: 1, 64, 8>}, {pipeline_mode = #tpu.pipeline_mode<synchronous>, transform_indices = @transform_1, window_bounds = array<i64: 8, 2>}, {pipeline_mode = #tpu.pipeline_mode<synchronous>, transform_indices = @transform_2, window_bounds = array<i64: 1, 2>}, {pipeline_mode = #tpu.pipeline_mode<synchronous>, transform_indices = @transform_3, window_bounds = array<i64: 256, 64>}, {transform_indices = @transform_4, window_bounds = array<i64: 1, 256, 2>}]} {
    %c0 = arith.constant 0 : index
    %c0_0 = arith.constant 0 : index
    %c0_1 = arith.constant 0 : index
    %0 = vector.load %arg1[%c0, %c0_0, %c0_1] : memref<1x64x8xf32, #tpu.memory_space<vmem>>, vector<1x64x8xf32>
    %1 = vector.shape_cast %0 : vector<1x64x8xf32> to vector<64x8xf32>
    %c0_2 = arith.constant 0 : index
    %c0_3 = arith.constant 0 : index
    %2 = vector.load %arg2[%c0_2, %c0_3] : memref<8x2xf32, #tpu.memory_space<vmem>>, vector<8x2xf32>
    %cst = arith.constant dense<0.000000e+00> : vector<64x2xf32>
    %3 = tpu.matmul %1, %2, %cst {dimension_numbers = #tpu.dot_dimension_numbers<[1], [0], [0], [1], [0, 0, 1, 1], [], []>} : vector<64x8xf32>, vector<8x2xf32>, vector<64x2xf32> -> vector<64x2xf32>
    %c0_4 = arith.constant 0 : index
    %c0_5 = arith.constant 0 : index
    %4 = vector.load %arg3[%c0_4, %c0_5] : memref<1x2xf32, #tpu.memory_space<vmem>>, vector<1x2xf32>
    %5 = vector.broadcast %4 : vector<1x2xf32> to vector<64x2xf32>
    %6 = arith.addf %3, %5 : vector<64x2xf32>
    %c0_6 = arith.constant 0 : index
    %c0_7 = arith.constant 0 : index
    %7 = vector.load %arg4[%c0_6, %c0_7] : memref<256x64xf32, #tpu.memory_space<vmem>>, vector<256x64xf32>
    %cst_8 = arith.constant dense<0.000000e+00> : vector<256x2xf32>
    %8 = tpu.matmul %7, %6, %cst_8 {dimension_numbers = #tpu.dot_dimension_numbers<[1], [0], [0], [1], [0, 0, 1, 1], [], []>} : vector<256x64xf32>, vector<64x2xf32>, vector<256x2xf32> -> vector<256x2xf32>
    %cst_9 = arith.constant 0.000000e+00 : f32
    %9 = vector.broadcast %cst_9 : f32 to vector<256x2xf32>
    %10 = arith.subf %9, %8 : vector<256x2xf32>
    %11 = math.exp %10 : vector<256x2xf32>
    %cst_10 = arith.constant 1.000000e+00 : f32
    %12 = vector.broadcast %cst_10 : f32 to vector<256x2xf32>
    %13 = arith.addf %12, %11 : vector<256x2xf32>
    %cst_11 = arith.constant 1.000000e+00 : f32
    %14 = vector.broadcast %cst_11 : f32 to vector<256x2xf32>
    %15 = arith.divf %14, %13 : vector<256x2xf32>
    %c0_12 = arith.constant 0 : index
    %c0_13 = arith.constant 0 : index
    %c0_14 = arith.constant 0 : index
    %16 = vector.load %arg5[%c0_12, %c0_13, %c0_14] : memref<1x256x2xf32, #tpu.memory_space<vmem>>, vector<1x256x2xf32>
    %17 = vector.shape_cast %16 : vector<1x256x2xf32> to vector<256x2xf32>
    %18 = vector.shape_cast %15 : vector<256x2xf32> to vector<1x256x2xf32>
    tpu.vector_store %arg5[%c0_12, %c0_13, %c0_14], %18 {strides = array<i32>} : memref<1x256x2xf32, #tpu.memory_space<vmem>>, vector<1x256x2xf32>,
    return
  }
  func.func @transform_0(%arg0: i32) -> (i32, i32, i32) {
    %c0_i32 = arith.constant 0 : i32
    %c0_i32_0 = arith.constant 0 : i32
    %c0_i32_1 = arith.constant 0 : i32
    return %arg0, %c0_i32, %c0_i32_0 : i32, i32, i32
  }
  func.func @transform_1(%arg0: i32) -> (i32, i32) {
    %c0_i32 = arith.constant 0 : i32
    %c0_i32_0 = arith.constant 0 : i32
    %c0_i32_1 = arith.constant 0 : i32
    return %c0_i32, %c0_i32_0 : i32, i32
  }
  func.func @transform_2(%arg0: i32) -> (i32, i32) {
    %c0_i32 = arith.constant 0 : i32
    %c0_i32_0 = arith.constant 0 : i32
    %c0_i32_1 = arith.constant 0 : i32
    return %c0_i32, %c0_i32_0 : i32, i32
  }
  func.func @transform_3(%arg0: i32) -> (i32, i32) {
    %c0_i32 = arith.constant 0 : i32
    %c0_i32_0 = arith.constant 0 : i32
    %c0_i32_1 = arith.constant 0 : i32
    return %c0_i32, %c0_i32_0 : i32, i32
  }
  func.func @transform_4(%arg0: i32) -> (i32, i32, i32) {
    %c0_i32 = arith.constant 0 : i32
    %c0_i32_0 = arith.constant 0 : i32
    %c0_i32_1 = arith.constant 0 : i32
    return %arg0, %c0_i32, %c0_i32_0 : i32, i32, i32
  }
}

</mosaic_0001>

<bundles_post_ra>
// kernel: _lambda_.12
= control target key start
LH: loop header
LB: loop body
LE: loop exit
PB: predicated region body
PF: predicated region fallthrough
CT: control target
= control target key end

     0   :  { %s355_s12 = smov 0   ;;  %s420_s0 = inlined_call_operand.vmem [shape: f32[2,100,8], index: 0, kind: input, shape index: {}]   ;;  %s421_s1 = inlined_call_operand.vmem [shape: f32[1,8], index: 1, kind: input, shape index: {}]   ;;  %s422_s2 = inlined_call_operand.vmem [shape: f32[1,8], index: 2, kind: input, shape index: {}]   ;;  %s423_s3 = inlined_call_operand.vmem [shape: f32[2,100,8], index: 3, kind: output, shape index: {}]  }
   0x1 LB: > { %s307_s13 = sadd.s32 4294967295, %s333_s12   ;;  %p311_p0 = scmp.ge.s32.totalorder %s333_s12, 1  ;;  %s333_s12 = sphi %s355_s12, %s13_s12  }
   0x2   : > { %p137_p1 = scmp.lt.s32.totalorder %s333_s12, 3 }
   0x4   : > { %p138_p2 = pnand %p311_p0, %p137_p1 }
   0x5   : > { %p161_p3 = scmp.lt.s32.totalorder (!%p138_p2), %s307_s13, 1 }
   0x6   : > { %141 = sbr.rel (%p138_p2) target bundleno = 31 (0x1f), region = 32 }
   0xb   : > { %s425_s13 = smov (!%p161_p3, %s307_s13), 1  ;;  %v314_v0 = vld [vmem:[%s421_s1] ss:$0 sm:$0xff]  ;;  %vm237_vm0 = vcmask 64512   ;;  %vm250_vm1 = vcmask 60416  }
   0xc   : > { %s318_s14 = smul.u32 104, %s425_s13  ;;  %v315_v1 = vld [vmem:[%s422_s2] ss:$0 sm:$0xff] }
   0xe   : > { %s369_s19 = scalar_lea.vmem %s420_s0, %s318_s14  ;;  %s385_s24 = scalar_lea.vmem %s423_s3, %s318_s14 }
   0xf   : > { %v171_v2 = vld [vmem:[%s369_s19] sm:$0xff]  ;;  %v172_v3 = vld [vmem:[%s369_s19 + $0x8] sm:$0xff]  ;;  %v173_v4 = vld [vmem:[%s369_s19 + $0x10] sm:$0xff] }
  0x10   : > { %v191_v5 = vmul.f32 %v314_v0, %v171_v2  ;;  %v192_v6 = vmul.f32 %v314_v0, %v172_v3  ;;  %v193_v7 = vmul.f32 %v314_v0, %v173_v4  ;;  %v174_v8 = vld [vmem:[%s369_s19 + $0x18] sm:$0xff]  ;;  %v175_v9 = vld [vmem:[%s369_s19 + $0x20] sm:$0xff]  ;;  %v176_v10 = vld [vmem:[%s369_s19 + $0x28] sm:$0xff] }
  0x11   : > { %v194_v11 = vmul.f32 %v314_v0, %v174_v8  ;;  %v195_v12 = vmul.f32 %v314_v0, %v175_v9  ;;  %v196_v13 = vmul.f32 %v314_v0, %v176_v10  ;;  %v177_v14 = vld [vmem:[%s369_s19 + $0x30] sm:$0xff]  ;;  %v178_v15 = vld [vmem:[%s369_s19 + $0x38] sm:$0xff]  ;;  %v179_v24 = vld [vmem:[%s369_s19 + $0x40] sm:$0xff] }
  0x12   : > { %v211_v16 = vadd.f32 %v315_v1, %v191_v5  ;;  %v212_v17 = vadd.f32 %v315_v1, %v192_v6  ;;  %v213_v18 = vadd.f32 %v315_v1, %v193_v7  ;;  %v197_v19 = vmul.f32 %v314_v0, %v177_v14  ;;  %v180_v25 = vld [vmem:[%s369_s19 + $0x48] sm:$0xff]  ;;  %v181_v26 = vld [vmem:[%s369_s19 + $0x50] sm:$0xff]  ;;  %v182_v31 = vld [vmem:[%s369_s19 + $0x58] sm:$0xff] }
  0x13   : > { %v214_v20 = vadd.f32 %v315_v1, %v194_v11  ;;  %v215_v21 = vadd.f32 %v315_v1, %v195_v12  ;;  %v216_v22 = vadd.f32 %v315_v1, %v196_v13  ;;  %v198_v23 = vmul.f32 %v314_v0, %v178_v15  ;;  %v183_v32 = vld [vmem:[%s369_s19 + $0x60] sm:$0xf] }
  0x14   : > { %v224_v27 = vmax.f32 %v211_v16, 0.0  ;;  %v225_v28 = vmax.f32 %v212_v17, 0.0  ;;  %v226_v29 = vmax.f32 %v213_v18, 0.0  ;;  %v217_v30 = vadd.f32 %v315_v1, %v197_v19 }
  0x15   : > { %v227_v33 = vmax.f32 %v214_v20, 0.0  ;;  %v228_v34 = vmax.f32 %v215_v21, 0.0  ;;  %v229_v35 = vmax.f32 %v216_v22, 0.0  ;;  %v218_v36 = vadd.f32 %v315_v1, %v198_v23 }
  0x16   : > { %238 = vst.msk [vmem:[%s385_s24] sm:$0xff] %vm237_vm0, %v224_v27  ;;  %239 = vst.msk [vmem:[%s385_s24 + $0x8] sm:$0xff] %vm237_vm0, %v225_v28  ;;  %v230_v37 = vmax.f32 %v217_v30, 0.0  ;;  %v199_v38 = vmul.f32 %v314_v0, %v179_v24  ;;  %v200_v39 = vmul.f32 %v314_v0, %v180_v25  ;;  %v201_v40 = vmul.f32 %v314_v0, %v181_v26 }
  0x17   : > { %240 = vst.msk [vmem:[%s385_s24 + $0x10] sm:$0xff] %vm237_vm0, %v226_v29  ;;  %241 = vst.msk [vmem:[%s385_s24 + $0x18] sm:$0xff] %vm237_vm0, %v227_v33  ;;  %v231_v41 = vmax.f32 %v218_v36, 0.0  ;;  %v202_v42 = vmul.f32 %v314_v0, %v182_v31  ;;  %v203_v43 = vmul.f32 %v314_v0, %v183_v32 }
  0x18   : > { %242 = vst.msk [vmem:[%s385_s24 + $0x20] sm:$0xff] %vm237_vm0, %v228_v34  ;;  %243 = vst.msk [vmem:[%s385_s24 + $0x28] sm:$0xff] %vm237_vm0, %v229_v35  ;;  %v219_v44 = vadd.f32 %v315_v1, %v199_v38  ;;  %v220_v45 = vadd.f32 %v315_v1, %v200_v39  ;;  %v221_v46 = vadd.f32 %v315_v1, %v201_v40 }
  0x19   : > { %244 = vst.msk [vmem:[%s385_s24 + $0x30] sm:$0xff] %vm237_vm0, %v230_v37  ;;  %245 = vst.msk [vmem:[%s385_s24 + $0x38] sm:$0xff] %vm237_vm0, %v231_v41  ;;  %v222_v47 = vadd.f32 %v315_v1, %v202_v42  ;;  %v223_v48 = vadd.f32 %v315_v1, %v203_v43 }
  0x1a   : > { %v232_v49 = vmax.f32 %v219_v44, 0.0  ;;  %v233_v50 = vmax.f32 %v220_v45, 0.0  ;;  %v234_v51 = vmax.f32 %v221_v46, 0.0 }
  0x1b   : > { %v235_v52 = vmax.f32 %v222_v47, 0.0  ;;  %v236_v53 = vmax.f32 %v223_v48, 0.0 }
  0x1c   : > { %246 = vst.msk [vmem:[%s385_s24 + $0x40] sm:$0xff] %vm237_vm0, %v232_v49  ;;  %247 = vst.msk [vmem:[%s385_s24 + $0x48] sm:$0xff] %vm237_vm0, %v233_v50 }
  0x1d   : > { %248 = vst.msk [vmem:[%s385_s24 + $0x50] sm:$0xff] %vm237_vm0, %v234_v51  ;;  %249 = vst.msk [vmem:[%s385_s24 + $0x58] sm:$0xff] %vm237_vm0, %v235_v52 }
  0x1e   : > { %251 = vst.msk [vmem:[%s385_s24 + $0x60] sm:$0xf] %vm250_vm1, %v236_v53 }
  0x1f PF: > { %s13_s12 = sadd.s32 1, %s333_s12  }
  0x20   : > { %p10_p4 = scmp.ge.s32.totalorder %s13_s12, 4  }
  0x22   :  { %12 = sbr.rel (!%p10_p4) target bundleno = 1 (0x1), region = 62 }

// kernel: _lambda_.10
= control target key start
LH: loop header
LB: loop body
LE: loop exit
PB: predicated region body
PF: predicated region fallthrough
CT: control target
= control target key end

     0   :  { %s2352_s15 = smov 0   ;;  %s3101_s0 = inlined_call_operand.vmem [shape: f32[2,122,4], index: 0, kind: input, shape index: {}]   ;;  %s3102_s1 = inlined_call_operand.vmem [shape: f32[100,1], index: 1, kind: input, shape index: {}]   ;;  %s3103_s2 = inlined_call_operand.vmem [shape: bf16[9,4,8], index: 2, kind: input, shape index: {}]   ;;  %s3104_s3 = inlined_call_operand.vmem [shape: f32[2,100,8], index: 3, kind: output, shape index: {0}]   ;;  %s3105_s4 = inlined_call_operand.vmem [shape: f32[2,8,8], index: 4, kind: output, shape index: {1}]  }
   0x1 LB: > { %s1959_s16 = sadd.s32 4294967295, %s2324_s15   ;;  %p1963_p0 = scmp.ge.s32.totalorder %s2324_s15, 1  ;;  %s2324_s15 = sphi %s2352_s15, %s15_s15  }
   0x2   : > { %p165_p1 = scmp.lt.s32.totalorder %s2324_s15, 3 }
   0x4   : > { %p166_p2 = pnand %p1963_p0, %p165_p1 }
   0x5   : > { %p195_p3 = scmp.lt.s32.totalorder (!%p166_p2), %s1959_s16, 1 }
   0x6   : > { %169 = sbr.rel (%p166_p2) target bundleno = 398 (0x18e), region = 32 }
   0xb   : > { %v234_v0 = vld [vmem:[%s3103_s2] sm:$0x3]  ;;  %vm260_vm0 = vcmask 1041408   ;;  %v1976_v2 = vld [vmem:[%s3103_s2 + $0x2] sm:$0x3]  ;;  %s3107_s16 = smov (!%p195_p3, %s1959_s16), 1 }
   0xc   : > { %2297 = vmatprep.subr.msk.bf16.mxu1 %vm260_vm0, %v234_v0  ;;  %2296 = vmatprep.subr.msk.bf16.mxu0 %vm260_vm0, %v234_v0  ;;  %v262_v1 = vsel %vm260_vm0, %v234_v0, 0  ;;  %v1985_v3 = vld [vmem:[%s3103_s2 + $0x4] sm:$0x3]  ;;  %s2050_s23 = sshll.u32 %s3107_s16, 7  ;;  %vm235_vm1 = vcmask 31744   ;;  %v361_v18 = vsel %vm260_vm0, %v1976_v2, 0 }
   0xd   : > { %2295 = vmatpush3.bf16.msra.mxu1 %v262_v1  ;;  %2133 = vmatpush3.bf16.msra.mxu0 %v262_v1  ;;  %s2380_s26 = scalar_lea.vmem %s3101_s0, %s2050_s23  ;;  %v525_v15 = vsel %vm260_vm0, %v1985_v3, 0  ;;  %v1994_v24 = vld [vmem:[%s3103_s2 + $0x6] sm:$0x3]  ;;  %v2003_v27 = vld [vmem:[%s3103_s2 + $0x8] sm:$0x3]  ;;  %v1692_v33 = vld [vmem:[%s3102_s1 + $0x10] sm:$0xff] }
   0xe   : > { %2298 = vmatprep.subr.msk.bf16.mxu1 %vm260_vm0, %v1976_v2  ;;  %2299 = vmatprep.subr.msk.bf16.mxu0 %vm260_vm0, %v1985_v3  ;;  %v210_v4 = vld [vmem:[%s2380_s26] sm:$0xff]  ;;  %v211_v5 = vld [vmem:[%s2380_s26 + $0x8] sm:$0xff]  ;;  %v212_v9 = vld [vmem:[%s2380_s26 + $0x10] sm:$0xff]  ;;  %v2326_v34 = vmov 0   ;;  %v852_v37 = vsel %vm260_vm0, %v2003_v27, 0  ;;  %v689_v38 = vsel %vm260_vm0, %v1994_v24, 0 }
   0xf   : > { %v218_v6 = vld [vmem:[%s2380_s26 + $0x40] sm:$0xff]  ;;  %v2385_v7 = vpack.c.bf16 %v211_v5, %v210_v4  ;;  %v219_v8 = vld [vmem:[%s2380_s26 + $0x48] sm:$0xff]  ;;  %v213_v10 = vld [vmem:[%s2380_s26 + $0x18] sm:$0xff]  ;;  %2316 = vset.pattern.permute.xlu0 %v2326_v34  ;;  %2317 = vset.pattern.permute.xlu1 %v2326_v34  ;;  %vm634_vm2 = vcmask 1045504   ;;  %vm470_vm3 = vcmask 1046528   ;;  %vm961_vm4 = vcmask 1044480  }
  0x10   : > { %v2390_v11 = vpack.c.bf16 %v219_v8, %v218_v6  ;;  %v2392_v12 = vpack.c.bf16 %v213_v10, %v212_v9  ;;  %v220_v13 = vld [vmem:[%s2380_s26 + $0x50] sm:$0xff]  ;;  %v221_v14 = vld [vmem:[%s2380_s26 + $0x58] sm:$0xff]  ;;  %v214_v16 = vld [vmem:[%s2380_s26 + $0x20] sm:$0xff]  ;;  %1715 = vperm.xlu1 %2317, %v1692_v33   ;;  %vm1125_vm5 = vcmask 1043456   ;;  %vm1454_vm6 = vcmask 1042432   ;;  %s2306_s17 = smul.u32 104, %s3107_s16 }
  0x11   : > { %2134 = vmatprep.mubr.msk.bf16.mxu0 %vm235_vm1, %v2385_v7  ;;  %v2400_v17 = vpack.c.bf16 %v221_v14, %v220_v13  ;;  %v215_v19 = vld [vmem:[%s2380_s26 + $0x28] sm:$0xff]  ;;  %v222_v20 = vld [vmem:[%s2380_s26 + $0x60] sm:$0xff]  ;;  %v216_v25 = vld [vmem:[%s2380_s26 + $0x30] sm:$0xff]  ;;  %vm1675_vm7 = vcmask 64512   ;;  %vm1688_vm8 = vcmask 60416   ;;  %s1967_s21 = sshll.u32 %s3107_s16, 3 }
  0x12   : > { %v223_v21 = vld [vmem:[%s2380_s26 + $0x68] sm:$0xff]  ;;  %2142 = vmatprep.mubr.msk.bf16.mxu1 %vm235_vm1, %v2390_v11  ;;  %2135 = vmatmul.mubr.msk.bf16.vlgmr.msra.gmra.mxu0 %vm235_vm1, %v2392_v12  ;;  %v2410_v22 = vpack.c.bf16 %v215_v19, %v214_v16  ;;  %v217_v26 = vld [vmem:[%s2380_s26 + $0x38] sm:$0xff]  ;;  %v224_v28 = vld [vmem:[%s2380_s26 + $0x70] sm:$0xff]  ;;  %s2916_s20 = scalar_lea.vmem %s3104_s3, %s2306_s17  ;;  %vm1869_vm9 = vcmask 1040384   ;;  %s208_s24 = scalar_lea.vmem %s3105_s4, %s1967_s21 }
  0x13   : > { %v2412_v23 = vpack.c.bf16 %v223_v21, %v222_v20  ;;  %2143 = vmatmul.mubr.msk.bf16.vlgmr.msra.gmra.mxu1 %vm235_vm1, %v2400_v17  ;;  %2169 = vmatpush3.bf16.msra.mxu0 %v525_v15  ;;  %v225_v29 = vld [vmem:[%s2380_s26 + $0x78] sm:$0x3]  ;;  %v2431_v30 = vpack.c.bf16 %v217_v26, %v216_v25  ;;  %v1690_v32 = vld [vmem:[%s3102_s1] sm:$0xff]  ;;  %v1691_v35 = vld [vmem:[%s3102_s1 + $0x8] sm:$0xff] }
  0x14   : > { %2151 = vmatpush3.bf16.msra.mxu1 %v361_v18  ;;  %2138 = vmatprep.mubr.msk.bf16.mxu0 %vm235_vm1, %v2410_v22  ;;  %v2434_v31 = vpack.c.bf16 %v225_v29, %v224_v28  ;;  %v1693_v36 = vld [vmem:[%s3102_s1 + $0x18] sm:$0xff]  ;;  %v2012_v39 = vld [vmem:[%s3103_s2 + $0xa] sm:$0x3]  ;;  %v2021_v40 = vld [vmem:[%s3103_s2 + $0xc] sm:$0x3] }
  0x15   : > { %2146 = vmatprep.mubr.msk.bf16.mxu1 %vm235_vm1, %v2412_v23  ;;  %2300 = vmatprep.subr.msk.bf16.mxu1 %vm260_vm0, %v1994_v24  ;;  %v1694_v41 = vld [vmem:[%s3102_s1 + $0x20] sm:$0xff]  ;;  %v1695_v42 = vld [vmem:[%s3102_s1 + $0x28] sm:$0xff]  ;;  %v1696_v43 = vld [vmem:[%s3102_s1 + $0x30] sm:$0xff]  ;;  %v1180_v45 = vsel %vm260_vm0, %v2021_v40, 0  ;;  %v1016_v46 = vsel %vm260_vm0, %v2012_v39, 0 }
  0x16   : > { %2301 = vmatprep.subr.msk.bf16.mxu0 %vm260_vm0, %v2003_v27  ;;  %1705 = vperm.xlu0 %2316, %v1690_v32   ;;  %v1698_v44 = vld [vmem:[%s3102_s1 + $0x40] sm:$0xff]  ;;  %v2030_v47 = vld [vmem:[%s3103_s2 + $0xe] sm:$0x3]  ;;  %v2039_v48 = vld [vmem:[%s3103_s2 + $0x10] sm:$0x3] }
  0x17   : > { %1720 = vperm.xlu1 %2317, %v1693_v36   ;;  %v1697_v49 = vld [vmem:[%s3102_s1 + $0x38] sm:$0xff]  ;;  %v1700_v50 = vld [vmem:[%s3102_s1 + $0x50] sm:$0xff]  ;;  %v1699_v51 = vld [vmem:[%s3102_s1 + $0x48] sm:$0xff]  ;;  %v1511_v54 = vsel %vm260_vm0, %v2039_v48, 0  ;;  %v1343_v55 = vsel %vm260_vm0, %v2030_v47, 0 }
  0x18   : > { %v1702_v52 = vld [vmem:[%s3102_s1 + $0x60] sm:$0xf]  ;;  %v1701_v53 = vld [vmem:[%s3102_s1 + $0x58] sm:$0xff] }
  0x1a   : > { %2139 = vmatmul.mubr.msk.bf16.gmra.mxu0 %vm235_vm1, %v2431_v30  ;;  %1710 = vperm.xlu0 %2316, %v1691_v35  }
  0x1b   : > { %2147 = vmatmul.mubr.msk.bf16.gmra.mxu1 %vm235_vm1, %v2434_v31  ;;  %2170 = vmatprep.mubr.msk.bf16.mxu0 %vm235_vm1, %v2385_v7 }
  0x1c   : > { %2152 = vmatprep.mubr.msk.bf16.mxu1 %vm235_vm1, %v2385_v7  ;;  %1730 = vperm.xlu1 %2317, %v1695_v42  }
  0x1e   : > { %1725 = vperm.xlu0 %2316, %v1694_v41  }
  0x20   : > { %1740 = vperm.xlu1 %2317, %v1697_v49  }
  0x22   : > { %2171 = vmatmul.mubr.msk.bf16.vlgmr.msra.gmra.mxu0 %vm235_vm1, %v2392_v12  ;;  %1735 = vperm.xlu0 %2316, %v1696_v43  }
  0x23   : > { %2153 = vmatmul.mubr.msk.bf16.vlgmr.msra.gmra.mxu1 %vm235_vm1, %v2392_v12  ;;  %2205 = vmatpush3.bf16.msra.mxu0 %v852_v37 }
  0x24   : > { %2187 = vmatpush3.bf16.msra.mxu1 %v689_v38  ;;  %2156 = vmatprep.mubr.msk.bf16.mxu1 %vm235_vm1, %v2410_v22 }
  0x25   : > { %2174 = vmatprep.mubr.msk.bf16.mxu0 %vm235_vm1, %v2410_v22  ;;  %2302 = vmatprep.subr.msk.bf16.mxu1 %vm260_vm0, %v2012_v39 }
  0x26   : > { %2303 = vmatprep.subr.msk.bf16.mxu0 %vm260_vm0, %v2021_v40  ;;  %1745 = vperm.xlu0 %2316, %v1698_v44  }
  0x27   : > { %1750 = vperm.xlu1 %2317, %v1699_v51  }
  0x2a   : > { %2175 = vmatmul.mubr.msk.bf16.gmra.mxu0 %vm235_vm1, %v2431_v30  ;;  %1755 = vperm.xlu0 %2316, %v1700_v50  }
  0x2b   : > { %2157 = vmatmul.mubr.msk.bf16.gmra.mxu1 %vm235_vm1, %v2431_v30  ;;  %2178 = vmatprep.mubr.msk.bf16.mxu0 %vm235_vm1, %v2390_v11 }
  0x2c   : > { %2160 = vmatprep.mubr.msk.bf16.mxu1 %vm235_vm1, %v2390_v11  ;;  %1760 = vperm.xlu1 %2317, %v1701_v53  }
  0x2e   : > { %1765 = vperm.xlu0 %2316, %v1702_v52  }
  0x32   : > { %2179 = vmatmul.mubr.msk.bf16.gmra.mxu0 %vm235_vm1, %v2400_v17 }
  0x33   : > { %2161 = vmatmul.mubr.msk.bf16.gmra.mxu1 %vm235_vm1, %v2400_v17  ;;  %2182 = vmatprep.mubr.msk.bf16.mxu0 %vm235_vm1, %v2412_v23 }
  0x34   : > { %2164 = vmatprep.mubr.msk.bf16.mxu1 %vm235_vm1, %v2412_v23 }
  0x3a   : > { %2183 = vmatmul.mubr.msk.bf16.gmra.mxu0 %vm235_vm1, %v2434_v31 }
  0x3b   : > { %2165 = vmatmul.mubr.msk.bf16.gmra.mxu1 %vm235_vm1, %v2434_v31  ;;  %2206 = vmatprep.mubr.msk.bf16.mxu0 %vm235_vm1, %v2385_v7 }
  0x3c   : > { %2188 = vmatprep.mubr.msk.bf16.mxu1 %vm235_vm1, %v2385_v7 }
  0x42   : > { %2207 = vmatmul.mubr.msk.bf16.vlgmr.msra.gmra.mxu0 %vm235_vm1, %v2392_v12 }
  0x43   : > { %2189 = vmatmul.mubr.msk.bf16.vlgmr.msra.gmra.mxu1 %vm235_vm1, %v2392_v12  ;;  %2241 = vmatpush3.bf16.msra.mxu0 %v1180_v45 }
  0x44   : > { %2223 = vmatpush3.bf16.msra.mxu1 %v1016_v46  ;;  %2192 = vmatprep.mubr.msk.bf16.mxu1 %vm235_vm1, %v2410_v22 }
  0x45   : > { %2210 = vmatprep.mubr.msk.bf16.mxu0 %vm235_vm1, %v2410_v22  ;;  %2304 = vmatprep.subr.msk.bf16.mxu1 %vm260_vm0, %v2030_v47 }
  0x46   : > { %2305 = vmatprep.subr.msk.bf16.mxu0 %vm260_vm0, %v2039_v48 }
  0x4a   : > { %2211 = vmatmul.mubr.msk.bf16.gmra.mxu0 %vm235_vm1, %v2431_v30 }
  0x4b   : > { %2193 = vmatmul.mubr.msk.bf16.gmra.mxu1 %vm235_vm1, %v2431_v30  ;;  %2214 = vmatprep.mubr.msk.bf16.mxu0 %vm235_vm1, %v2390_v11 }
  0x4c   : > { %2196 = vmatprep.mubr.msk.bf16.mxu1 %vm235_vm1, %v2390_v11 }
  0x52   : > { %2215 = vmatmul.mubr.msk.bf16.gmra.mxu0 %vm235_vm1, %v2400_v17 }
  0x53   : > { %2197 = vmatmul.mubr.msk.bf16.gmra.mxu1 %vm235_vm1, %v2400_v17  ;;  %2218 = vmatprep.mubr.msk.bf16.mxu0 %vm235_vm1, %v2412_v23 }
  0x54   : > { %2200 = vmatprep.mubr.msk.bf16.mxu1 %vm235_vm1, %v2412_v23 }
  0x5a   : > { %2219 = vmatmul.mubr.msk.bf16.gmra.mxu0 %vm235_vm1, %v2434_v31 }
  0x5b   : > { %2201 = vmatmul.mubr.msk.bf16.gmra.mxu1 %vm235_vm1, %v2434_v31  ;;  %2242 = vmatprep.mubr.msk.bf16.mxu0 %vm235_vm1, %v2385_v7 }
  0x5c   : > { %2224 = vmatprep.mubr.msk.bf16.mxu1 %vm235_vm1, %v2385_v7 }
  0x62   : > { %2243 = vmatmul.mubr.msk.bf16.vlgmr.msra.gmra.mxu0 %vm235_vm1, %v2392_v12 }
  0x63   : > { %2225 = vmatmul.mubr.msk.bf16.vlgmr.msra.gmra.mxu1 %vm235_vm1, %v2392_v12  ;;  %2277 = vmatpush3.bf16.msra.mxu0 %v1511_v54 }
  0x64   : > { %2259 = vmatpush3.bf16.msra.mxu1 %v1343_v55  ;;  %2228 = vmatprep.mubr.msk.bf16.mxu1 %vm235_vm1, %v2410_v22 }
  0x65   : > { %2246 = vmatprep.mubr.msk.bf16.mxu0 %vm235_vm1, %v2410_v22 }
  0x6a   : > { %2247 = vmatmul.mubr.msk.bf16.gmra.mxu0 %vm235_vm1, %v2431_v30 }
  0x6b   : > { %2229 = vmatmul.mubr.msk.bf16.gmra.mxu1 %vm235_vm1, %v2431_v30  ;;  %2250 = vmatprep.mubr.msk.bf16.mxu0 %vm235_vm1, %v2390_v11 }
  0x6c   : > { %2232 = vmatprep.mubr.msk.bf16.mxu1 %vm235_vm1, %v2390_v11 }
  0x72   : > { %2251 = vmatmul.mubr.msk.bf16.gmra.mxu0 %vm235_vm1, %v2400_v17 }
  0x73   : > { %2233 = vmatmul.mubr.msk.bf16.gmra.mxu1 %vm235_vm1, %v2400_v17  ;;  %2254 = vmatprep.mubr.msk.bf16.mxu0 %vm235_vm1, %v2412_v23 }
  0x74   : > { %2236 = vmatprep.mubr.msk.bf16.mxu1 %vm235_vm1, %v2412_v23 }
  0x7a   : > { %2255 = vmatmul.mubr.msk.bf16.gmra.mxu0 %vm235_vm1, %v2434_v31 }
  0x7b   : > { %2237 = vmatmul.mubr.msk.bf16.gmra.mxu1 %vm235_vm1, %v2434_v31  ;;  %2278 = vmatprep.mubr.msk.bf16.mxu0 %vm235_vm1, %v2385_v7 }
  0x7c   : > { %2260 = vmatprep.mubr.msk.bf16.mxu1 %vm235_vm1, %v2385_v7 }
  0x82   : > { %2279 = vmatmul.mubr.msk.bf16.vlgmr.msra.gmra.mxu0 %vm235_vm1, %v2392_v12 }
  0x83   : > { %2261 = vmatmul.mubr.msk.bf16.vlgmr.msra.gmra.mxu1 %vm235_vm1, %v2392_v12  ;;  %2282 = vmatprep.mubr.msk.bf16.mxu0 %vm235_vm1, %v2410_v22 }
  0x84   : > { %2264 = vmatprep.mubr.msk.bf16.mxu1 %vm235_vm1, %v2410_v22 }
  0x8a   : > { %2283 = vmatmul.mubr.msk.bf16.gmra.mxu0 %vm235_vm1, %v2431_v30 }
  0x8b   : > { %2265 = vmatmul.mubr.msk.bf16.gmra.mxu1 %vm235_vm1, %v2431_v30  ;;  %2286 = vmatprep.mubr.msk.bf16.mxu0 %vm235_vm1, %v2390_v11 }
  0x8c   : > { %2268 = vmatprep.mubr.msk.bf16.mxu1 %vm235_vm1, %v2390_v11 }
  0x92   : > { %2287 = vmatmul.mubr.msk.bf16.gmra.mxu0 %vm235_vm1, %v2400_v17 }
  0x93   : > { %2269 = vmatmul.mubr.msk.bf16.gmra.mxu1 %vm235_vm1, %v2400_v17  ;;  %2290 = vmatprep.mubr.msk.bf16.mxu0 %vm235_vm1, %v2412_v23 }
  0x94   : > { %2272 = vmatprep.mubr.msk.bf16.mxu1 %vm235_vm1, %v2412_v23 }
  0x9a   : > { %2291 = vmatmul.mubr.msk.bf16.gmra.mxu0 %vm235_vm1, %v2434_v31 }
  0x9b   : > { %2273 = vmatmul.mubr.msk.bf16.gmra.mxu1 %vm235_vm1, %v2434_v31 }
  0xd2   : > { %v2136_v56 = vpop.f32.mrf.mxu0 }
  0xd3   : > { %v2629_v57 = vpop.f32.mrf.mxu1 }
  0xd4   : > { %v298_v58 = vpop.f32.mrf.mxu0 }
  0xd5   : > { %v2631_v59 = vpop.f32.mrf.mxu1 }
  0xd6   : > { %v2137_v60 = vpop.f32.mrf.mxu0 }
  0xd7   : > { %v2633_v61 = vpop.f32.mrf.mxu1 }
  0xd8   : > { %v301_v62 = vpop.f32.mrf.mxu0 }
  0xd9   : > { %v2635_v63 = vpop.f32.mrf.mxu1 }
  0xda   : > { %v2140_v0 = vpop.f32.mrf.mxu0 }
  0xdb   : > { %v2148_v1 = vpop.f32.mrf.mxu1 }
  0xdc   : > { %v2637_v2 = vpop.f32.mrf.mxu0 }
  0xdd   : > { %v2639_v3 = vpop.f32.mrf.mxu1 }
  0xde   : > { %v2641_v4 = vpop.f32.mrf.mxu0 }
  0xdf   : > { %v2149_v5 = vpop.f32.mrf.mxu1 }
  0xe0   : > { %v2643_v6 = vpop.f32.mrf.mxu0 }
  0xe1   : > { %v349_v7 = vpop.f32.mrf.mxu1 }
  0xe2   : > { %v2172_v8 = vpop.f32.mrf.mxu0 }
  0xe3   : > { %v2154_v9 = vpop.f32.mrf.mxu1  ;;  %v638_v13 = vrot.slane %v2172_v8, 2 }
  0xe4   : > { %v561_v10 = vpop.f32.mrf.mxu0  ;;  %v474_v16 = vrot.slane %v2154_v9, 1 }
  0xe5   : > { %v397_v11 = vpop.f32.mrf.mxu1  ;;  %v635_v19 = vrot.slane %v561_v10, 2 }
  0xe6   : > { %v2173_v12 = vpop.f32.mrf.mxu0  ;;  %v471_v23 = vrot.slane %v397_v11, 1 }
  0xe7   : > { %v2155_v14 = vpop.f32.mrf.mxu1  ;;  %v640_v15 = vrot.slane %v2173_v12, 2 }
  0xe8   : > { %v476_v17 = vrot.slane %v2155_v14, 1  ;;  %v564_v18 = vpop.f32.mrf.mxu0 }
  0xe9   : > { %v641_v20 = vsel %vm634_vm2, %v638_v13, %v640_v15  ;;  %v400_v21 = vpop.f32.mrf.mxu1  ;;  %v636_v22 = vrot.slane %v564_v18, 2 }
  0xea   : > { %v477_v24 = vsel %vm470_vm3, %v474_v16, %v476_v17  ;;  %v472_v25 = vrot.slane %v400_v21, 1  ;;  %v2176_v26 = vpop.f32.mrf.mxu0 }
  0xeb   : > { %v511_v27 = vadd.f32 %v2136_v56, %v477_v24  ;;  %v637_v28 = vsel %vm634_vm2, %v635_v19, %v636_v22  ;;  %v639_v29 = vsel %vm634_vm2, %v636_v22, %v638_v13  ;;  %v2158_v30 = vpop.f32.mrf.mxu1  ;;  %v646_v39 = vrot.slane %v2176_v26, 2 }
  0xec   : > { %v473_v31 = vsel %vm470_vm3, %v471_v23, %v472_v25  ;;  %v475_v32 = vsel %vm470_vm3, %v472_v25, %v474_v16  ;;  %v577_v33 = vpop.f32.mrf.mxu0  ;;  %v482_v47 = vrot.slane %v2158_v30, 1 }
  0xed   : > { %v2651_v34 = vadd.f32 %v641_v20, %v511_v27  ;;  %v509_v35 = vadd.f32 %v473_v31, %v298_v58  ;;  %v510_v36 = vadd.f32 %v475_v32, %v301_v62  ;;  %v413_v37 = vpop.f32.mrf.mxu1  ;;  %v642_v38 = vrot.slane %v577_v33, 2 }
  0xee   : > { %v478_v40 = vrot.slane %v413_v37, 1  ;;  %v2177_v41 = vpop.f32.mrf.mxu0 }
  0xef   : > { %v2653_v42 = vadd.f32 %v637_v28, %v509_v35  ;;  %v2655_v43 = vadd.f32 %v639_v29, %v510_v36  ;;  %v643_v44 = vsel %vm634_vm2, %v640_v15, %v642_v38  ;;  %v2159_v45 = vpop.f32.mrf.mxu1  ;;  %v648_v46 = vrot.slane %v2177_v41, 2 }
  0xf0   : > { %v479_v48 = vsel %vm470_vm3, %v476_v17, %v478_v40  ;;  %v484_v49 = vrot.slane %v2159_v45, 1  ;;  %v580_v50 = vpop.f32.mrf.mxu0 }
  0xf1   : > { %v512_v51 = vadd.f32 %v2137_v60, %v479_v48  ;;  %v649_v52 = vsel %vm634_vm2, %v646_v39, %v648_v46  ;;  %v416_v53 = vpop.f32.mrf.mxu1  ;;  %v644_v54 = vrot.slane %v580_v50, 2 }
  0xf2   : > { %v485_v55 = vsel %vm470_vm3, %v482_v47, %v484_v49  ;;  %v480_v56 = vrot.slane %v416_v53, 1  ;;  %v2180_v58 = vpop.f32.mrf.mxu0 }
  0xf3   : > { %v2661_v62 = vadd.f32 %v643_v44, %v512_v51  ;;  %v515_v1 = vadd.f32 %v2140_v0, %v485_v55  ;;  %v645_v5 = vsel %vm634_vm2, %v642_v38, %v644_v54  ;;  %v647_v7 = vsel %vm634_vm2, %v644_v54, %v646_v39  ;;  %v2162_v8 = vpop.f32.mrf.mxu1 }
  0xf4   : > { %v481_v9 = vsel %vm470_vm3, %v478_v40, %v480_v56  ;;  %v483_v60 = vsel %vm470_vm3, %v480_v56, %v482_v47  ;;  %v593_v10 = vpop.f32.mrf.mxu0  ;;  %v654_v16 = vrot.slane %v2180_v58, 2  ;;  %v490_v23 = vrot.slane %v2162_v8, 1 }
  0xf5   : > { %v2667_v11 = vadd.f32 %v649_v52, %v515_v1  ;;  %v513_v12 = vadd.f32 %v481_v9, %v2637_v2  ;;  %v514_v13 = vadd.f32 %v483_v60, %v2643_v6  ;;  %v429_v14 = vpop.f32.mrf.mxu1  ;;  %v650_v15 = vrot.slane %v593_v10, 2 }
  0xf6   : > { %v486_v0 = vrot.slane %v429_v14, 1  ;;  %v2181_v17 = vpop.f32.mrf.mxu0 }
  0xf7   : > { %v2671_v18 = vadd.f32 %v645_v5, %v513_v12  ;;  %v2673_v19 = vadd.f32 %v647_v7, %v514_v13  ;;  %v651_v20 = vsel %vm634_vm2, %v648_v46, %v650_v15  ;;  %v2163_v21 = vpop.f32.mrf.mxu1  ;;  %v656_v22 = vrot.slane %v2181_v17, 2 }
  0xf8   : > { %v487_v24 = vsel %vm470_vm3, %v484_v49, %v486_v0  ;;  %v492_v25 = vrot.slane %v2163_v21, 1  ;;  %v596_v2 = vpop.f32.mrf.mxu0 }
  0xf9   : > { %v516_v6 = vadd.f32 %v2641_v4, %v487_v24  ;;  %v657_v26 = vsel %vm634_vm2, %v654_v16, %v656_v22  ;;  %v432_v27 = vpop.f32.mrf.mxu1  ;;  %v652_v28 = vrot.slane %v596_v2, 2 }
  0xfa   : > { %v493_v29 = vsel %vm470_vm3, %v490_v23, %v492_v25  ;;  %v488_v30 = vrot.slane %v432_v27, 1  ;;  %v2184_v31 = vpop.f32.mrf.mxu0 }
  0xfb   : > { %v2680_v32 = vadd.f32 %v651_v20, %v516_v6  ;;  %v519_v33 = vadd.f32 %v2629_v57, %v493_v29  ;;  %v653_v35 = vsel %vm634_vm2, %v650_v15, %v652_v28  ;;  %v655_v36 = vsel %vm634_vm2, %v652_v28, %v654_v16  ;;  %v2166_v37 = vpop.f32.mrf.mxu1 }
  0xfc   : > { %v489_v38 = vsel %vm470_vm3, %v486_v0, %v488_v30  ;;  %v491_v4 = vsel %vm470_vm3, %v488_v30, %v490_v23  ;;  %v609_v39 = vpop.f32.mrf.mxu0 }
  0xfd   : > { %v2687_v40 = vadd.f32 %v657_v26, %v519_v33  ;;  %v517_v41 = vadd.f32 %v489_v38, %v2631_v59  ;;  %v518_v44 = vadd.f32 %v491_v4, %v2635_v63  ;;  %v445_v45 = vpop.f32.mrf.mxu1  ;;  %v658_v46 = vrot.slane %v609_v39, 2 }
  0xfe   : > { %v494_v47 = vrot.slane %v445_v45, 1  ;;  %v2185_v57 = vpop.f32.mrf.mxu0 }
  0xff   : > { %v2691_v48 = vadd.f32 %v653_v35, %v517_v41  ;;  %v2693_v49 = vadd.f32 %v655_v36, %v518_v44  ;;  %v659_v50 = vsel %vm634_vm2, %v656_v22, %v658_v46  ;;  %v2167_v51 = vpop.f32.mrf.mxu1 }
 0x100   : > { %v495_v52 = vsel %vm470_vm3, %v492_v25, %v494_v47  ;;  %v521_v53 = vadd.f32 %v494_v47, %v2639_v3  ;;  %v612_v54 = vpop.f32.mrf.mxu0 }
 0x101   : > { %v520_v59 = vadd.f32 %v2633_v61, %v495_v52  ;;  %v448_v55 = vpop.f32.mrf.mxu1 }
 0x102   : > { %v2699_v63 = vadd.f32 %v658_v46, %v521_v53  ;;  %v2701_v56 = vpop.f32.mrf.mxu0 }
 0x103   : > { %v2703_v58 = vadd.f32 %v659_v50, %v520_v59  ;;  %v2705_v1 = vpop.f32.mrf.mxu1  ;;  %v963_v13 = vrot.slane %v2701_v56, 3 }
 0x104   : > { %v888_v5 = vpop.f32.mrf.mxu0  ;;  %v799_v60 = vrot.slane %v2705_v1, 2 }
 0x105   : > { %v725_v7 = vpop.f32.mrf.mxu1 }
 0x106   : > { %v2209_v8 = vpop.f32.mrf.mxu0 }
 0x107   : > { %v2191_v9 = vpop.f32.mrf.mxu1  ;;  %v965_v3 = vrot.slane %v2209_v8, 3 }
 0x108   : > { %v801_v10 = vrot.slane %v2191_v9, 2  ;;  %v2708_v12 = vpop.f32.mrf.mxu0 }
 0x109   : > { %v2710_v61 = vpop.f32.mrf.mxu1  ;;  %v966_v17 = vsel %vm961_vm4, %v963_v13, %v965_v3 }
 0x10a   : > { %v802_v14 = vsel %vm634_vm2, %v799_v60, %v801_v10  ;;  %v2716_v15 = vpop.f32.mrf.mxu0 }
 0x10b   : > { %v837_v16 = vadd.f32 %v802_v14, %v2655_v43  ;;  %v2719_v0 = vpop.f32.mrf.mxu1  ;;  %v971_v33 = vrot.slane %v2716_v15, 3 }
 0x10c   : > { %v903_v20 = vpop.f32.mrf.mxu0  ;;  %v807_v26 = vrot.slane %v2719_v0, 2 }
 0x10d   : > { %v2724_v21 = vadd.f32 %v966_v17, %v837_v16  ;;  %v740_v22 = vpop.f32.mrf.mxu1  ;;  %v967_v23 = vrot.slane %v903_v20, 3 }
 0x10e   : > { %v803_v24 = vrot.slane %v740_v22, 2  ;;  %v2213_v25 = vpop.f32.mrf.mxu0 }
 0x10f   : > { %v968_v2 = vsel %vm961_vm4, %v965_v3, %v967_v23  ;;  %v2195_v6 = vpop.f32.mrf.mxu1  ;;  %v973_v28 = vrot.slane %v2213_v25, 3 }
 0x110   : > { %v804_v43 = vsel %vm634_vm2, %v801_v10, %v803_v24  ;;  %v809_v27 = vrot.slane %v2195_v6, 2  ;;  %v2729_v29 = vpop.f32.mrf.mxu0 }
 0x111   : > { %v838_v30 = vadd.f32 %v804_v43, %v2651_v34  ;;  %v2732_v31 = vpop.f32.mrf.mxu1  ;;  %v969_v37 = vrot.slane %v2729_v29, 3  ;;  %v974_v34 = vsel %vm961_vm4, %v971_v33, %v973_v28 }
 0x112   : > { %v810_v35 = vsel %vm634_vm2, %v807_v26, %v809_v27  ;;  %v805_v36 = vrot.slane %v2732_v31, 2  ;;  %v2216_v38 = vpop.f32.mrf.mxu0 }
 0x113   : > { %v2740_v4 = vadd.f32 %v968_v2, %v838_v30  ;;  %v841_v39 = vadd.f32 %v810_v35, %v2673_v19  ;;  %v2198_v41 = vpop.f32.mrf.mxu1  ;;  %v970_v19 = vsel %vm961_vm4, %v967_v23, %v969_v37  ;;  %v979_v54 = vrot.slane %v2216_v38, 3 }
 0x114   : > { %v806_v44 = vsel %vm634_vm2, %v803_v24, %v805_v36  ;;  %v919_v45 = vpop.f32.mrf.mxu0  ;;  %v815_v7 = vrot.slane %v2198_v41, 2 }
 0x115   : > { %v2749_v46 = vadd.f32 %v974_v34, %v841_v39  ;;  %v839_v47 = vadd.f32 %v806_v44, %v2661_v62  ;;  %v756_v57 = vpop.f32.mrf.mxu1  ;;  %v975_v50 = vrot.slane %v919_v45, 3 }
 0x116   : > { %v811_v51 = vrot.slane %v756_v57, 2  ;;  %v2217_v52 = vpop.f32.mrf.mxu0 }
 0x117   : > { %v2755_v53 = vadd.f32 %v970_v19, %v839_v47  ;;  %v976_v59 = vsel %vm961_vm4, %v973_v28, %v975_v50  ;;  %v2199_v55 = vpop.f32.mrf.mxu1  ;;  %v981_v5 = vrot.slane %v2217_v52, 3 }
 0x118   : > { %v812_v8 = vsel %vm634_vm2, %v809_v27, %v811_v51  ;;  %v817_v9 = vrot.slane %v2199_v55, 2  ;;  %v922_v62 = vpop.f32.mrf.mxu0 }
 0x119   : > { %v842_v10 = vadd.f32 %v812_v8, %v2667_v11  ;;  %v982_v3 = vsel %vm961_vm4, %v979_v54, %v981_v5  ;;  %v759_v14 = vpop.f32.mrf.mxu1  ;;  %v977_v20 = vrot.slane %v922_v62, 3 }
 0x11a   : > { %v818_v16 = vsel %vm634_vm2, %v815_v7, %v817_v9  ;;  %v813_v17 = vrot.slane %v759_v14, 2  ;;  %v2220_v22 = vpop.f32.mrf.mxu0 }
 0x11b   : > { %v2762_v23 = vadd.f32 %v976_v59, %v842_v10  ;;  %v845_v24 = vadd.f32 %v818_v16, %v2693_v49  ;;  %v2202_v25 = vpop.f32.mrf.mxu1  ;;  %v978_v38 = vsel %vm961_vm4, %v975_v50, %v977_v20  ;;  %v980_v39 = vsel %vm961_vm4, %v977_v20, %v979_v54 }
 0x11c   : > { %v814_v2 = vsel %vm634_vm2, %v811_v51, %v813_v17  ;;  %v816_v6 = vsel %vm634_vm2, %v813_v17, %v815_v7  ;;  %v935_v43 = vpop.f32.mrf.mxu0 }
 0x11d   : > { %v2767_v27 = vadd.f32 %v982_v3, %v845_v24  ;;  %v843_v11 = vadd.f32 %v814_v2, %v2680_v32  ;;  %v844_v28 = vadd.f32 %v816_v6, %v2691_v48  ;;  %v772_v30 = vpop.f32.mrf.mxu1  ;;  %v983_v35 = vrot.slane %v935_v43, 3 }
 0x11e   : > { %v819_v41 = vrot.slane %v772_v30, 2  ;;  %v2221_v49 = vpop.f32.mrf.mxu0 }
 0x11f   : > { %v2773_v34 = vadd.f32 %v978_v38, %v843_v11  ;;  %v2775_v44 = vadd.f32 %v980_v39, %v844_v28  ;;  %v984_v45 = vsel %vm961_vm4, %v981_v5, %v983_v35  ;;  %v2203_v47 = vpop.f32.mrf.mxu1  ;;  %v962_v39 = vrot.slane %v2708_v12, 3 }
 0x120   : > { %v820_v57 = vsel %vm634_vm2, %v817_v9, %v819_v41  ;;  %v938_v32 = vpop.f32.mrf.mxu0 }
 0x121   : > { %v846_v48 = vadd.f32 %v820_v57, %v2687_v40  ;;  %v775_v19 = vpop.f32.mrf.mxu1  ;;  %v985_v51 = vrot.slane %v938_v32, 3 }
 0x122   : > { %v821_v52 = vrot.slane %v775_v19, 2  ;;  %v2780_v50 = vpop.f32.mrf.mxu0 }
 0x123   : > { %v2782_v54 = vadd.f32 %v984_v45, %v846_v48  ;;  %v986_v59 = vsel %vm961_vm4, %v983_v35, %v985_v51  ;;  %v2226_v55 = vpop.f32.mrf.mxu1 }
 0x124   : > { %v822_v7 = vsel %vm634_vm2, %v819_v41, %v821_v52  ;;  %v848_v5 = vadd.f32 %v821_v52, %v2699_v63  ;;  %v1216_v8 = vpop.f32.mrf.mxu0 }
 0x125   : > { %v847_v9 = vadd.f32 %v822_v7, %v2703_v58  ;;  %v1052_v62 = vpop.f32.mrf.mxu1  ;;  %v798_v58 = vrot.slane %v2710_v61, 2  ;;  %v808_v61 = vsel %vm634_vm2, %v805_v36, %v807_v26  ;;  %v964_v26 = vsel %vm961_vm4, %v962_v39, %v963_v13 }
 0x126   : > { %v2788_v10 = vadd.f32 %v985_v51, %v848_v5  ;;  %v2245_v40 = vpop.f32.mrf.mxu0  ;;  %v840_v32 = vadd.f32 %v808_v61, %v2671_v18  ;;  %v972_v18 = vsel %vm961_vm4, %v969_v37, %v971_v33  ;;  %v1289_v5 = vrot.slane %v2780_v50, 4 }
 0x127   : > { %v2790_v3 = vadd.f32 %v986_v59, %v847_v9  ;;  %v2227_v14 = vpop.f32.mrf.mxu1  ;;  %v800_v30 = vsel %vm634_vm2, %v798_v58, %v799_v60  ;;  %v1127_v60 = vrot.slane %v2226_v55, 4  ;;  %v1290_v19 = vrot.slane %v2245_v40, 4 }
 0x128   : > { %v1218_v16 = vpop.f32.mrf.mxu0  ;;  %v836_v45 = vadd.f32 %v800_v30, %v2653_v42  ;;  %v1129_v47 = vrot.slane %v2227_v14, 4  ;;  %v1004_v7 = vadd.f32 %v972_v18, %v840_v32 }
 0x129   : > { %v1054_v17 = vpop.f32.mrf.mxu1  ;;  %v1291_v16 = vsel %vm1125_vm5, %v1289_v5, %v1290_v19 }
 0x12a   : > { %v2792_v20 = vpop.f32.mrf.mxu0  ;;  %v1126_v41 = vrot.slane %v1054_v17, 4  ;;  %v1000_v48 = vadd.f32 %v964_v26, %v836_v45  ;;  %v1130_v59 = vsel %vm1125_vm5, %v1127_v60, %v1129_v47 }
 0x12b   : > { %v2230_v22 = vpop.f32.mrf.mxu1  ;;  %v1165_v14 = vadd.f32 %v1130_v59, %v2724_v21 }
 0x12c   : > { %v2794_v24 = vpop.f32.mrf.mxu0  ;;  %v1128_v31 = vsel %vm1125_vm5, %v1126_v41, %v1127_v60  ;;  %v1135_v56 = vrot.slane %v2230_v22, 4 }
 0x12d   : > { %v1067_v25 = vpop.f32.mrf.mxu1  ;;  %v1292_v12 = vrot.slane %v2794_v24, 4  ;;  %v1164_v8 = vadd.f32 %v1128_v31, %v1000_v48  ;;  %v1296_v24 = vrot.slane %v2792_v20, 4 }
 0x12e   : > { %v2796_v2 = vpop.f32.mrf.mxu0  ;;  %v1131_v51 = vrot.slane %v1067_v25, 4 }
 0x12f   : > { %v2798_v63 = vpop.f32.mrf.mxu1  ;;  %v1293_v9 = vsel %vm1125_vm5, %v1290_v19, %v1292_v12  ;;  %v1298_v15 = vrot.slane %v2796_v2, 4  ;;  %v1327_v39 = vadd.f32 %v1291_v16, %v1164_v8 }
 0x130   : > { %v2801_v6 = vpop.f32.mrf.mxu0  ;;  %v1137_v13 = vrot.slane %v2798_v63, 4  ;;  %v1132_v50 = vsel %vm1125_vm5, %v1129_v47, %v1131_v51 }
 0x131   : > { %v1070_v43 = vpop.f32.mrf.mxu1  ;;  %v1294_v37 = vrot.slane %v2801_v6, 4  ;;  %v2864_v6 = vadd.f32 %v1293_v9, %v1165_v14  ;;  %v1299_v61 = vsel %vm1125_vm5, %v1296_v24, %v1298_v15 }
 0x132   : > { %v2803_v11 = vpop.f32.mrf.mxu0  ;;  %v1133_v42 = vrot.slane %v1070_v43, 4  ;;  %v1138_v25 = vsel %vm1125_vm5, %v1135_v56, %v1137_v13 }
 0x133   : > { %v2805_v28 = vpop.f32.mrf.mxu1  ;;  %v1295_v20 = vsel %vm1125_vm5, %v1292_v12, %v1294_v37  ;;  %v1169_v45 = vadd.f32 %v1138_v25, %v2749_v46  ;;  %v1297_v60 = vsel %vm1125_vm5, %v1294_v37, %v1296_v24 }
 0x134   : > { %v2810_v35 = vpop.f32.mrf.mxu0  ;;  %v1134_v29 = vsel %vm1125_vm5, %v1131_v51, %v1133_v42  ;;  %v1136_v33 = vsel %vm1125_vm5, %v1133_v42, %v1135_v56 }
 0x135   : > { %v2812_v38 = vpop.f32.mrf.mxu1  ;;  %v1300_v17 = vrot.slane %v2810_v35, 4  ;;  %v1167_v21 = vadd.f32 %v1134_v29, %v2755_v53  ;;  %v1168_v43 = vadd.f32 %v1136_v33, %v1004_v7  ;;  %v1166_v35 = vadd.f32 %v1132_v50, %v2740_v4 }
 0x136   : > { %v2820_v49 = vpop.f32.mrf.mxu0  ;;  %v1139_v2 = vrot.slane %v2812_v38, 4  ;;  %v1304_v4 = vrot.slane %v2803_v11, 4 }
 0x137   : > { %v2823_v1 = vpop.f32.mrf.mxu1  ;;  %v1301_v47 = vsel %vm1125_vm5, %v1298_v15, %v1300_v17  ;;  %v2881_v46 = vadd.f32 %v1297_v60, %v1167_v21  ;;  %v1306_v42 = vrot.slane %v2820_v49, 4 }
 0x138   : > { %v2825_v57 = vpop.f32.mrf.mxu0  ;;  %v1145_v41 = vrot.slane %v2823_v1, 4  ;;  %v1140_v26 = vsel %vm1125_vm5, %v1137_v13, %v1139_v2  ;;  %v2879_v1 = vadd.f32 %v1295_v20, %v1166_v35  ;;  %v2886_v19 = vadd.f32 %v1301_v47, %v1169_v45 }
 0x139   : > { %v2829_v0 = vpop.f32.mrf.mxu1  ;;  %v1302_v53 = vrot.slane %v2825_v57, 4  ;;  %v2884_v57 = vadd.f32 %v1299_v61, %v1168_v43  ;;  %v1170_v18 = vadd.f32 %v1140_v26, %v2762_v23 }
 0x13a   : > { %v2835_v36 = vpop.f32.mrf.mxu0  ;;  %v1141_v63 = vrot.slane %v2829_v0, 4  ;;  %v1143_v0 = vrot.slane %v2805_v28, 4 }
 0x13b   : > { %v2238_v52 = vpop.f32.mrf.mxu1  ;;  %v1303_v56 = vsel %vm1125_vm5, %v1300_v17, %v1302_v53  ;;  %v1305_v23 = vsel %vm1125_vm5, %v1302_v53, %v1304_v4 }
 0x13c   : > { %v2844_v55 = vpop.f32.mrf.mxu0  ;;  %v1142_v12 = vsel %vm1125_vm5, %v1139_v2, %v1141_v63  ;;  %v1146_v11 = vsel %vm1125_vm5, %v1143_v0, %v1145_v41  ;;  %v1144_v28 = vsel %vm1125_vm5, %v1141_v63, %v1143_v0  ;;  %v2905_v17 = vadd.f32 %v1303_v56, %v1170_v18 }
 0x13d   : > { %v2848_v62 = vpop.f32.mrf.mxu1  ;;  %v1308_v51 = vrot.slane %v2844_v55, 4  ;;  %v1171_v59 = vadd.f32 %v1142_v12, %v2773_v34  ;;  %v1173_v29 = vadd.f32 %v1146_v11, %v2767_v27  ;;  %v1307_v55 = vsel %vm1125_vm5, %v1304_v4, %v1306_v42  ;;  %v1706_v34 = vpop.permute.xlu0 %1705 }
 0x13e   : > { %v2257_v40 = vpop.f32.mrf.mxu0  ;;  %v1147_v49 = vrot.slane %v2848_v62, 4  ;;  %v1172_v33 = vadd.f32 %v1144_v28, %v2775_v44  ;;  %v1312_v27 = vrot.slane %v2835_v36, 4 }
 0x13f   : > { %v2239_v22 = vpop.f32.mrf.mxu1  ;;  %v1309_v40 = vsel %vm1125_vm5, %v1306_v42, %v1308_v51  ;;  %v2909_v25 = vadd.f32 %v1305_v23, %v1171_v59  ;;  %v2943_v42 = vpop.permute.xlu1 %1715 }
 0x140   : > { %v2862_v58 = vpop.f32.mrf.mxu0  ;;  %v1148_v22 = vsel %vm1125_vm5, %v1145_v41, %v1147_v49  ;;  %v2919_v36 = vadd.f32 %v1309_v40, %v1173_v29  ;;  %v2921_v35 = vadd.f32 %v1307_v55, %v1172_v33 }
 0x141   : > { %v1102_v30 = vpop.f32.mrf.mxu1  ;;  %v1310_v62 = vrot.slane %v2862_v58, 4  ;;  %v2924_v61 = vadd.f32 %v1148_v22, %v2782_v54  ;;  %v1711_v45 = vpop.permute.xlu0 %1710 }
 0x142   : > { %v2280_v38 = vpop.f32.mrf.mxu0  ;;  %v1149_v7 = vrot.slane %v1102_v30, 4 }
 0x143   : > { %v2262_v32 = vpop.f32.mrf.mxu1  ;;  %v1622_v14 = vrot.slane %v2280_v38, 6  ;;  %v2930_v20 = vsel %vm1125_vm5, %v1310_v62, %v1312_v27 }
 0x144   : > { %v1547_v31 = vpop.f32.mrf.mxu0  ;;  %v1455_v5 = vrot.slane %v2262_v32, 5  ;;  %v1150_v2 = vsel %vm1125_vm5, %v1147_v49, %v1149_v7  ;;  %v1176_v63 = vadd.f32 %v1149_v7, %v2788_v10  ;;  %v2927_v10 = vsel %vm1125_vm5, %v1308_v51, %v1310_v62 }
 0x145   : > { %v1379_v48 = vpop.f32.mrf.mxu1  ;;  %v2935_v60 = vadd.f32 %v1150_v2, %v2790_v3  ;;  %v1726_v23 = vpop.permute.xlu0 %1725 }
 0x146   : > { %v2281_v52 = vpop.f32.mrf.mxu0  ;;  %v2940_v0 = vadd.f32 %v1312_v27, %v1176_v63 }
 0x147   : > { %v2263_v13 = vpop.f32.mrf.mxu1  ;;  %v1623_v9 = vrot.slane %v2281_v52, 6 }
 0x148   : > { %v1456_v8 = vrot.slane %v2263_v13, 5  ;;  %v1549_v15 = vpop.f32.mrf.mxu0 }
 0x149   : > { %v1381_v37 = vpop.f32.mrf.mxu1  ;;  %v1624_v58 = vsel %vm260_vm0, %v1622_v14, %v1623_v9 }
 0x14a   : > { %v1457_v16 = vsel %vm1454_vm6, %v1455_v5, %v1456_v8  ;;  %v2903_v50 = vpop.f32.mrf.mxu0 }
 0x14b   : > { %v1495_v44 = vadd.f32 %v1457_v16, %v1327_v39  ;;  %v2266_v24 = vpop.f32.mrf.mxu1  ;;  %v1629_v3 = vrot.slane %v2903_v50, 6 }
 0x14c   : > { %v1561_v21 = vpop.f32.mrf.mxu0  ;;  %v1462_v4 = vrot.slane %v2266_v24, 5 }
 0x14d   : > { %v1662_v43 = vadd.f32 %v1624_v58, %v1495_v44  ;;  %v1393_v30 = vpop.f32.mrf.mxu1  ;;  %v1625_v39 = vrot.slane %v1561_v21, 6  ;;  %v1721_v44 = vpop.permute.xlu1 %1720 }
 0x14e   : > { %v1458_v41 = vrot.slane %v1393_v30, 5  ;;  %v2932_v38 = vpop.f32.mrf.mxu0 }
 0x14f   : > { %1676 = vst.msk [vmem:[%s2916_s20] sm:$0xff] %vm1675_vm7, %v1662_v43  ;;  %v1768_v47 = vmul.f32 %v1706_v34, %v1662_v43  ;;  %v1812_v53 = vmul.f32 %v1662_v43, %v1662_v43  ;;  %v2267_v32 = vpop.f32.mrf.mxu1  ;;  %v1631_v54 = vrot.slane %v2932_v38, 6  ;;  %v1626_v28 = vsel %vm260_vm0, %v1623_v9, %v1625_v39 }
 0x150   : > { %v1459_v26 = vsel %vm1454_vm6, %v1456_v8, %v1458_v41  ;;  %v1464_v12 = vrot.slane %v2267_v32, 5  ;;  %v1564_v31 = vpop.f32.mrf.mxu0 }
 0x151   : > { %v1825_v48 = vmul.f32 %v1812_v53, %v1706_v34  ;;  %v1496_v11 = vadd.f32 %v1459_v26, %v2864_v6  ;;  %v1396_v51 = vpop.f32.mrf.mxu1  ;;  %v1781_v52 = vsel %vm1675_vm7, %v1768_v47, 0.0  ;;  %v1627_v56 = vrot.slane %v1564_v31, 6 }
 0x152   : > { %v1465_v18 = vsel %vm1454_vm6, %v1462_v4, %v1464_v12  ;;  %v1460_v59 = vrot.slane %v1396_v51, 5  ;;  %v2950_v49 = vpop.f32.mrf.mxu0  ;;  %v1632_v6 = vsel %vm260_vm0, %v1629_v3, %v1631_v54 }
 0x153   : > { %v1838_v13 = vsel %vm1675_vm7, %v1825_v48, 0.0  ;;  %v1663_v7 = vadd.f32 %v1626_v28, %v1496_v11  ;;  %v1499_v5 = vadd.f32 %v1465_v18, %v2884_v57  ;;  %v2957_v8 = vpop.f32.mrf.mxu1  ;;  %v1628_v29 = vsel %vm260_vm0, %v1625_v39, %v1627_v56  ;;  %v2995_v48 = vpop.permute.xlu0 %1735 }
 0x154   : > { %v1461_v9 = vsel %vm1454_vm6, %v1458_v41, %v1460_v59  ;;  %v1463_v15 = vsel %vm1454_vm6, %v1460_v59, %v1462_v4  ;;  %v1637_v55 = vrot.slane %v2950_v49, 6  ;;  %v2963_v33 = vpop.f32.mrf.mxu0  ;;  %v1630_v16 = vsel %vm260_vm0, %v1627_v56, %v1629_v3 }
 0x155   : > { %1677 = vst.msk [vmem:[%s2916_s20 + $0x8] sm:$0xff] %vm1675_vm7, %v1663_v7  ;;  %v1769_v57 = vmul.f32 %v1711_v45, %v1663_v7  ;;  %v1813_v34 = vmul.f32 %v1663_v7, %v1663_v7  ;;  %v1666_v37 = vadd.f32 %v1632_v6, %v1499_v5  ;;  %v1497_v40 = vadd.f32 %v1461_v9, %v2879_v1  ;;  %v2968_v62 = vpop.f32.mrf.mxu1  ;;  %v1731_v7 = vpop.permute.xlu1 %1730 }
 0x156   : > { %v1498_v14 = vadd.f32 %v1463_v15, %v2881_v46  ;;  %v1466_v50 = vrot.slane %v2968_v62, 5  ;;  %v1633_v27 = vrot.slane %v2963_v33, 6  ;;  %v2974_v22 = vpop.f32.mrf.mxu0  ;;  %v1470_v47 = vrot.slane %v2957_v8, 5 }
 0x157   : > { %v1782_v24 = vsel %vm1675_vm7, %v1769_v57, 0.0  ;;  %v1826_v2 = vmul.f32 %v1813_v34, %v1711_v45  ;;  %1680 = vst.msk [vmem:[%s2916_s20 + $0x20] sm:$0xff] %vm1675_vm7, %v1666_v37  ;;  %v1772_v1 = vmul.f32 %v1726_v23, %v1666_v37  ;;  %v1816_v63 = vmul.f32 %v1666_v37, %v1666_v37  ;;  %v2979_v58 = vpop.f32.mrf.mxu1 }
 0x158   : > { %v1783_v46 = vadd.f32 %v1782_v24, %v1781_v52  ;;  %v1664_v21 = vadd.f32 %v1628_v29, %v1497_v40  ;;  %v1665_v43 = vadd.f32 %v1630_v16, %v1498_v14  ;;  %v1467_v30 = vsel %vm1454_vm6, %v1464_v12, %v1466_v50  ;;  %v2984_v39 = vpop.f32.mrf.mxu0  ;;  %v1746_v24 = vpop.permute.xlu0 %1745 }
 0x159   : > { %v1839_v41 = vsel %vm1675_vm7, %v1826_v2, 0.0  ;;  %v1788_v45 = vsel %vm1675_vm7, %v1772_v1, 0.0  ;;  %v1500_v53 = vadd.f32 %v1467_v30, %v2886_v19  ;;  %v1412_v32 = vpop.f32.mrf.mxu1  ;;  %v1829_v3 = vmul.f32 %v1816_v63, %v1726_v23 }
 0x15a   : > { %v1840_v4 = vadd.f32 %v1839_v41, %v1838_v13  ;;  %1678 = vst.msk [vmem:[%s2916_s20 + $0x10] sm:$0xff] %vm1675_vm7, %v1664_v21  ;;  %1679 = vst.msk [vmem:[%s2916_s20 + $0x18] sm:$0xff] %vm1675_vm7, %v1665_v43  ;;  %v1770_v26 = vmul.f32 %v2943_v42, %v1664_v21  ;;  %v1771_v31 = vmul.f32 %v1721_v44, %v1665_v43  ;;  %v1472_v28 = vrot.slane %v2979_v58, 5  ;;  %v3008_v13 = vpop.f32.mrf.mxu0 }
 0x15b   : > { %v1814_v12 = vmul.f32 %v1664_v21, %v1664_v21  ;;  %v1815_v11 = vmul.f32 %v1665_v43, %v1665_v43  ;;  %v1634_v19 = vsel %vm260_vm0, %v1631_v54, %v1633_v27  ;;  %v3006_v56 = vpop.f32.mrf.mxu1  ;;  %v1639_v54 = vrot.slane %v2974_v22, 6 }
 0x15c   : > { %v1784_v51 = vsel %vm1675_vm7, %v1770_v26, 0.0  ;;  %v1786_v52 = vsel %vm1675_vm7, %v1771_v31, 0.0  ;;  %v1667_v59 = vadd.f32 %v1634_v19, %v1500_v53  ;;  %v1473_v38 = vsel %vm1454_vm6, %v1470_v47, %v1472_v28 }
 0x15d   : > { %v1827_v18 = vmul.f32 %v1814_v12, %v2943_v42  ;;  %v1785_v5 = vadd.f32 %v1784_v51, %v1783_v46  ;;  %v1828_v6 = vmul.f32 %v1815_v11, %v1721_v44  ;;  %v1503_v15 = vadd.f32 %v1473_v38, %v2921_v35  ;;  %v3023_v22 = vpop.f32.mrf.mxu1  ;;  %v3025_v44 = vpop.f32.mrf.mxu0 }
 0x15e   : > { %1681 = vst.msk [vmem:[%s2916_s20 + $0x28] sm:$0xff] %vm1675_vm7, %v1667_v59  ;;  %v1773_v9 = vmul.f32 %v1731_v7, %v1667_v59  ;;  %v1817_v42 = vmul.f32 %v1667_v59, %v1667_v59  ;;  %v1845_v29 = vsel %vm1675_vm7, %v1829_v3, 0.0  ;;  %v1640_v34 = vsel %vm260_vm0, %v1637_v55, %v1639_v54  ;;  %v1741_v11 = vpop.permute.xlu1 %1740 }
 0x15f   : > { %v1841_v8 = vsel %vm1675_vm7, %v1827_v18, 0.0  ;;  %v1787_v23 = vadd.f32 %v1786_v52, %v1785_v5  ;;  %v1843_v37 = vsel %vm1675_vm7, %v1828_v6, 0.0  ;;  %v1670_v14 = vadd.f32 %v1640_v34, %v1503_v15  ;;  %v2293_v31 = vpop.f32.mrf.mxu0 }
 0x160   : > { %v1842_v57 = vadd.f32 %v1841_v8, %v1840_v4  ;;  %v1830_v40 = vmul.f32 %v1817_v42, %v1731_v7  ;;  %v1468_v16 = vrot.slane %v1412_v32, 5  ;;  %v1790_v1 = vsel %vm1675_vm7, %v1773_v9, 0.0 }
 0x161   : > { %v1789_v2 = vadd.f32 %v1788_v45, %v1787_v23  ;;  %v1635_v63 = vrot.slane %v2984_v39, 6  ;;  %1684 = vst.msk [vmem:[%s2916_s20 + $0x40] sm:$0xff] %vm1675_vm7, %v1670_v14  ;;  %v1776_v46 = vmul.f32 %v1746_v24, %v1670_v14  ;;  %v1820_v21 = vmul.f32 %v1670_v14, %v1670_v14 }
 0x162   : > { %v1844_v35 = vadd.f32 %v1843_v37, %v1842_v57  ;;  %v1469_v43 = vsel %vm1454_vm6, %v1466_v50, %v1468_v16  ;;  %v1478_v30 = vrot.slane %v3006_v56, 5  ;;  %v1471_v32 = vsel %vm1454_vm6, %v1468_v16, %v1470_v47  ;;  %v2275_v50 = vpop.f32.mrf.mxu1  ;;  %v1751_v57 = vpop.permute.xlu1 %1750 }
 0x163   : > { %v1791_v41 = vadd.f32 %v1790_v1, %v1789_v2  ;;  %v1501_v45 = vadd.f32 %v1469_v43, %v2905_v17  ;;  %v1847_v39 = vsel %vm1675_vm7, %v1830_v40, 0.0  ;;  %v1796_v4 = vsel %vm1675_vm7, %v1776_v46, 0.0  ;;  %v1596_v2 = vpop.f32.mrf.mxu0 }
 0x164   : > { %v1846_v53 = vadd.f32 %v1845_v29, %v1844_v35  ;;  %v1502_v26 = vadd.f32 %v1471_v32, %v2909_v25  ;;  %v1636_v62 = vsel %vm260_vm0, %v1633_v27, %v1635_v63  ;;  %v1833_v3 = vmul.f32 %v1820_v21, %v1746_v24  ;;  %v1428_v7 = vpop.f32.mrf.mxu1 }
 0x165   : > { %v1638_v17 = vsel %vm260_vm0, %v1635_v63, %v1637_v55  ;;  %v1668_v47 = vadd.f32 %v1636_v62, %v1501_v45  ;;  %v1645_v51 = vrot.slane %v3008_v13, 6  ;;  %v1474_v25 = vrot.slane %v3023_v22, 5 }
 0x166   : > { %v1848_v12 = vadd.f32 %v1847_v39, %v1846_v53  ;;  %v1669_v19 = vadd.f32 %v1638_v17, %v1502_v26  ;;  %v1641_v33 = vrot.slane %v3025_v44, 6  ;;  %v1480_v18 = vrot.slane %v2275_v50, 5 }
 0x167   : > { %1682 = vst.msk [vmem:[%s2916_s20 + $0x30] sm:$0xff] %vm1675_vm7, %v1668_v47  ;;  %v1774_v27 = vmul.f32 %v2995_v48, %v1668_v47  ;;  %v1818_v52 = vmul.f32 %v1668_v47, %v1668_v47  ;;  %v1647_v59 = vrot.slane %v2293_v31, 6  ;;  %v1475_v56 = vsel %vm1454_vm6, %v1472_v28, %v1474_v25 }
 0x168   : > { %1683 = vst.msk [vmem:[%s2916_s20 + $0x38] sm:$0xff] %vm1675_vm7, %v1669_v19  ;;  %v1775_v49 = vmul.f32 %v1741_v11, %v1669_v19  ;;  %v1819_v55 = vmul.f32 %v1669_v19, %v1669_v19  ;;  %v1642_v13 = vsel %vm260_vm0, %v1639_v54, %v1641_v33  ;;  %v1504_v38 = vadd.f32 %v1475_v56, %v2919_v36 }
 0x169   : > { %v1792_v5 = vsel %vm1675_vm7, %v1774_v27, 0.0  ;;  %v1831_v6 = vmul.f32 %v1818_v52, %v2995_v48  ;;  %v1481_v8 = vsel %vm1454_vm6, %v1478_v30, %v1480_v18  ;;  %v1648_v54 = vsel %vm260_vm0, %v1645_v51, %v1647_v59 }
 0x16a   : > { %v1793_v9 = vadd.f32 %v1792_v5, %v1791_v41  ;;  %v1794_v42 = vsel %vm1675_vm7, %v1775_v49, 0.0  ;;  %v1832_v15 = vmul.f32 %v1819_v55, %v1741_v11  ;;  %v1507_v58 = vadd.f32 %v1481_v8, %v2940_v0 }
 0x16b   : > { %v1849_v28 = vsel %vm1675_vm7, %v1831_v6, 0.0  ;;  %v1671_v29 = vadd.f32 %v1642_v13, %v1504_v38  ;;  %v1476_v23 = vrot.slane %v1428_v7, 5  ;;  %v1337_v22 = vadd.f32 %v2927_v10, %v2924_v61  ;;  %v1756_v61 = vpop.permute.xlu0 %1755 }
 0x16c   : > { %v1795_v48 = vadd.f32 %v1794_v42, %v1793_v9  ;;  %v1850_v34 = vadd.f32 %v1849_v28, %v1848_v12  ;;  %v1851_v36 = vsel %vm1675_vm7, %v1832_v15, 0.0  ;;  %v1674_v37 = vadd.f32 %v1648_v54, %v1507_v58 }
 0x16d   : > { %1685 = vst.msk [vmem:[%s2916_s20 + $0x48] sm:$0xff] %vm1675_vm7, %v1671_v29  ;;  %v1777_v40 = vmul.f32 %v1751_v57, %v1671_v29  ;;  %v1821_v14 = vmul.f32 %v1671_v29, %v1671_v29  ;;  %v1477_v16 = vsel %vm1454_vm6, %v1474_v25, %v1476_v23  ;;  %v1479_v0 = vsel %vm1454_vm6, %v1476_v23, %v1478_v30 }
 0x16e   : > { %v1338_v44 = vadd.f32 %v2930_v20, %v2935_v60  ;;  %v1852_v24 = vadd.f32 %v1851_v36, %v1850_v34  ;;  %v1797_v35 = vadd.f32 %v1796_v4, %v1795_v48  ;;  %1689 = vst.msk [vmem:[%s2916_s20 + $0x60] sm:$0xf] %vm1688_vm8, %v1674_v37  ;;  %v1853_v1 = vsel %vm1675_vm7, %v1833_v3, 0.0  ;;  %v1761_v4 = vpop.permute.xlu1 %1760 }
 0x16f   : > { %v1798_v63 = vsel %vm1675_vm7, %v1777_v40, 0.0  ;;  %v1834_v46 = vmul.f32 %v1821_v14, %v1751_v57  ;;  %v1505_v30 = vadd.f32 %v1477_v16, %v1337_v22  ;;  %v1643_v20 = vrot.slane %v1596_v2, 6  ;;  %v1766_v3 = vpop.permute.xlu0 %1765 }
 0x170   : > { %v1799_v21 = vadd.f32 %v1798_v63, %v1797_v35  ;;  %v1854_v43 = vadd.f32 %v1853_v1, %v1852_v24  ;;  %v1506_v41 = vadd.f32 %v1479_v0, %v1338_v44  ;;  %v1824_v26 = vmul.f32 %v1674_v37, %v1674_v37 }
 0x171   : > { %v1855_v10 = vsel %vm1675_vm7, %v1834_v46, 0.0  ;;  %v1644_v53 = vsel %vm260_vm0, %v1641_v33, %v1643_v20  ;;  %v1646_v32 = vsel %vm260_vm0, %v1643_v20, %v1645_v51  ;;  %v1780_v17 = vmul.f32 %v1766_v3, %v1674_v37 }
 0x172   : > { %v1856_v60 = vadd.f32 %v1855_v10, %v1854_v43  ;;  %v1672_v45 = vadd.f32 %v1644_v53, %v1505_v30  ;;  %v1673_v39 = vadd.f32 %v1646_v32, %v1506_v41  ;;  %v1837_v51 = vmul.f32 %v1824_v26, %v1766_v3 }
 0x173   : > { %v1804_v59 = vsel %vm1688_vm8, %v1780_v17, 0.0 }
 0x174   : > { %1686 = vst.msk [vmem:[%s2916_s20 + $0x50] sm:$0xff] %vm1675_vm7, %v1672_v45  ;;  %1687 = vst.msk [vmem:[%s2916_s20 + $0x58] sm:$0xff] %vm1675_vm7, %v1673_v39  ;;  %v1778_v62 = vmul.f32 %v1756_v61, %v1672_v45  ;;  %v1779_v50 = vmul.f32 %v1761_v4, %v1673_v39  ;;  %v1822_v31 = vmul.f32 %v1672_v45, %v1672_v45  ;;  %v1861_v13 = vsel %vm1688_vm8, %v1837_v51, 0.0 }
 0x175   : > { %v1823_v12 = vmul.f32 %v1673_v39, %v1673_v39 }
 0x176   : > { %v1800_v47 = vsel %vm1675_vm7, %v1778_v62, 0.0  ;;  %v1835_v11 = vmul.f32 %v1822_v31, %v1756_v61  ;;  %v1802_v33 = vsel %vm1675_vm7, %v1779_v50, 0.0 }
 0x177   : > { %v1836_v19 = vmul.f32 %v1823_v12, %v1761_v4  ;;  %v1801_v25 = vadd.f32 %v1800_v47, %v1799_v21 }
 0x178   : > { %v1857_v27 = vsel %vm1675_vm7, %v1835_v11, 0.0 }
 0x179   : > { %v1803_v52 = vadd.f32 %v1802_v33, %v1801_v25  ;;  %v1858_v18 = vadd.f32 %v1857_v27, %v1856_v60  ;;  %v1859_v49 = vsel %vm1675_vm7, %v1836_v19, 0.0 }
 0x17b   : > { %v1805_v55 = vadd.f32 %v1804_v59, %v1803_v52  ;;  %v1860_v56 = vadd.f32 %v1859_v49, %v1858_v18 }
 0x17d   : > { %v1806_v7 = vrot.slane %v1805_v55, 4  ;;  %v1862_v5 = vadd.f32 %v1861_v13, %v1860_v56 }
 0x17f   : > { %v1807_v6 = vadd.f32 %v1806_v7, %v1805_v55  ;;  %v1863_v38 = vrot.slane %v1862_v5, 4 }
 0x181   : > { %v1808_v8 = vrot.slane %v1807_v6, 2  ;;  %v1864_v9 = vadd.f32 %v1863_v38, %v1862_v5 }
 0x183   : > { %v1809_v42 = vadd.f32 %v1808_v8, %v1807_v6  ;;  %v1865_v15 = vrot.slane %v1864_v9, 2 }
 0x185   : > { %v1810_v58 = vrot.slane %v1809_v42, 1  ;;  %v1866_v28 = vadd.f32 %v1865_v15, %v1864_v9 }
 0x187   : > { %v1867_v29 = vrot.slane %v1866_v28, 1  ;;  %v1811_v54 = vadd.f32 %v1810_v58, %v1809_v42 }
 0x189   : > { %v1868_v23 = vadd.f32 %v1867_v29, %v1866_v28 }
 0x18b   : > { %v1870_v57 = vsel %vm1869_vm9, %v1811_v54, %v1868_v23 }
 0x18c   : > { %v1871_v48 = vsel %vm260_vm0, %v1870_v57, 0.0 }
 0x18d   : > { %1872 = vst.msk [vmem:[%s208_s24] sm:$0xff] %vm1675_vm7, %v1871_v48 }
 0x18e PF: > { %s15_s15 = sadd.s32 1, %s2324_s15  }
 0x18f   : > { %p12_p4 = scmp.ge.s32.totalorder %s15_s15, 4  }
 0x191   :  { %14 = sbr.rel (!%p12_p4) target bundleno = 1 (0x1), region = 82 }

// kernel: _lambda_.11
= control target key start
LH: loop header
LB: loop body
LE: loop exit
PB: predicated region body
PF: predicated region fallthrough
CT: control target
= control target key end

     0   :  { %s2592_s21 = smov 0   ;;  %s3355_s0 = inlined_call_operand.vmem [shape: f32[2,100,8], index: 0, kind: input, shape index: {}]   ;;  %s3356_s1 = inlined_call_operand.vmem [shape: f32[1,8], index: 1, kind: input, shape index: {}]   ;;  %s3357_s2 = inlined_call_operand.vmem [shape: f32[1,8], index: 2, kind: input, shape index: {}]   ;;  %s3358_s3 = inlined_call_operand.vmem [shape: f32[100,1], index: 3, kind: input, shape index: {}]   ;;  %s3359_s4 = inlined_call_operand.vmem [shape: bf16[9,8,8], index: 4, kind: input, shape index: {}]   ;;  %s3360_s5 = inlined_call_operand.vmem [shape: f32[2,100,8], index: 5, kind: output, shape index: {0}]   ;;  %s3361_s6 = inlined_call_operand.vmem [shape: f32[2,8,8], index: 6, kind: output, shape index: {1}]  }
   0x1 LB: > { %s2187_s22 = sadd.s32 4294967295, %s2553_s21   ;;  %p2191_p0 = scmp.ge.s32.totalorder %s2553_s21, 1  ;;  %s2553_s21 = sphi %s2592_s21, %s17_s21  }
   0x2   : > { %p215_p1 = scmp.lt.s32.totalorder %s2553_s21, 3 }
   0x4   : > { %p216_p2 = pnand %p2191_p0, %p215_p1 }
   0x5   : > { %p249_p3 = scmp.lt.s32.totalorder (!%p216_p2), %s2187_s22, 1 }
   0x6   : > { %219 = sbr.rel (%p216_p2) target bundleno = 540 (0x21c), region = 40 }
   0xb   : > { %v338_v0 = vld [vmem:[%s3358_s3 + $0x40] sm:$0xff]  ;;  %v336_v1 = vld [vmem:[%s3358_s3 + $0x30] sm:$0xff]  ;;  %v2555_v2 = vmov 0   ;;  %v339_v3 = vld [vmem:[%s3358_s3 + $0x48] sm:$0xff]  ;;  %vm421_vm0 = vcmask 64512   ;;  %vm423_vm1 = vcmask 59392  }
   0xc   : > { %2546 = vset.pattern.permute.xlu1 %v2555_v2  ;;  %2545 = vset.pattern.permute.xlu0 %v2555_v2  ;;  %v337_v4 = vld [vmem:[%s3358_s3 + $0x38] sm:$0xff]  ;;  %v340_v5 = vld [vmem:[%s3358_s3 + $0x50] sm:$0xff]  ;;  %v330_v6 = vld [vmem:[%s3358_s3] sm:$0xff]  ;;  %v2556_v7 = vmov 0.0   ;;  %vm490_vm2 = vcmask 1043456   ;;  %s3363_s22 = smov (!%p249_p3, %s2187_s22), 1 }
   0xd   : > { %385 = vperm.xlu1 %2546, %v338_v0   ;;  %375 = vperm.xlu0 %2545, %v336_v1   ;;  %422 = vst.msk [vmem:[#allocation2] sm:$0xff] %vm421_vm0, %v2556_v7  ;;  %425 = vst.msk [vmem:[#allocation2 + $0x6f] sm:$0xff] %vm421_vm0, %v2556_v7  ;;  %v331_v8 = vld [vmem:[%s3358_s3 + $0x8] sm:$0xff]  ;;  %v332_v9 = vld [vmem:[%s3358_s3 + $0x10] sm:$0xff]  ;;  %s2534_s11 = smul.u32 104, %s3363_s22  ;;  %vm439_vm3 = vcmask 60416  }
   0xe   : > { %424 = vst.msk [vmem:[#allocation2 + $0x8] sm:$0x7] %vm423_vm1, %v2556_v7  ;;  %426 = vst.msk [vmem:[#allocation2 + $0x77] sm:$0x7] %vm423_vm1, %v2556_v7  ;;  %v465_v10 = vld [vmem:[%s3359_s4] sm:$0xf] }
   0xf   : > { %v341_v11 = vld [vmem:[%s3358_s3 + $0x58] sm:$0xff]  ;;  %v342_v12 = vld [vmem:[%s3358_s3 + $0x60] sm:$0xf]  ;;  %2525 = vmatprep.subr.msk.bf16.mxu1 %vm490_vm2, %v465_v10  ;;  %v492_v13 = vsel %vm490_vm2, %v465_v10, 0  ;;  %2524 = vmatprep.subr.msk.bf16.mxu0 %vm490_vm2, %v465_v10  ;;  %v335_v16 = vld [vmem:[%s3358_s3 + $0x28] sm:$0xff]  ;;  %s2676_s14 = scalar_lea.vmem %s3355_s0, %s2534_s11  ;;  %vm700_vm4 = vcmask 1046528   ;;  %s3186_s12 = scalar_lea.vmem %s3360_s5, %s2534_s11 }
  0x10   : > { %2523 = vmatpush3.bf16.msra.mxu1 %v492_v13  ;;  %2361 = vmatpush3.bf16.msra.mxu0 %v492_v13  ;;  %v333_v14 = vld [vmem:[%s3358_s3 + $0x18] sm:$0xff]  ;;  %v334_v15 = vld [vmem:[%s3358_s3 + $0x20] sm:$0xff]  ;;  %v2657_v18 = vld [vmem:[%s3359_s4 + $0x8] sm:$0xf]  ;;  %vm864_vm5 = vcmask 1045504   ;;  %vm1191_vm6 = vcmask 1044480  }
  0x11   : > { %390 = vperm.xlu1 %2546, %v339_v3   ;;  %380 = vperm.xlu0 %2545, %v337_v4   ;;  %v2650_v17 = vld [vmem:[%s3359_s4 + $0x4] sm:$0xf]  ;;  %v1930_v19 = vld [vmem:[%s3358_s3 + $0x60] sm:$0xf]  ;;  %v270_v22 = vld [vmem:[%s2676_s14 + $0x30] sm:$0xff]  ;;  %vm1683_vm7 = vcmask 1042432  }
  0x12   : > { %2526 = vmatprep.subr.msk.bf16.mxu1 %vm490_vm2, %v2650_v17  ;;  %2527 = vmatprep.subr.msk.bf16.mxu0 %vm490_vm2, %v2657_v18  ;;  %v272_v20 = vld [vmem:[%s2676_s14 + $0x40] sm:$0xff]  ;;  %v273_v26 = vld [vmem:[%s2676_s14 + $0x48] sm:$0xff]  ;;  %v271_v27 = vld [vmem:[%s2676_s14 + $0x38] sm:$0xff]  ;;  %vm1851_vm8 = vcmask 1041408   ;;  %s2194_s11 = sshll.u32 %s3363_s22, 3  ;;  %vm2097_vm9 = vcmask 1040384  }
  0x13   : > { %v2682_v21 = vld [vmem:[%s3356_s1] ss:$0 sm:$0xff]  ;;  %v274_v32 = vld [vmem:[%s2676_s14 + $0x50] sm:$0xff]  ;;  %v265_v40 = vld [vmem:[%s2676_s14 + $0x8] sm:$0xff]  ;;  %s262_s15 = scalar_lea.vmem %s3361_s6, %s2194_s11 }
  0x14   : > { %v292_v23 = vmul.f32 %v2682_v21, %v272_v20  ;;  %v290_v24 = vmul.f32 %v2682_v21, %v270_v22  ;;  %v2690_v25 = vld [vmem:[%s3357_s2] ss:$0 sm:$0xff]  ;;  %v293_v30 = vmul.f32 %v2682_v21, %v273_v26  ;;  %v291_v31 = vmul.f32 %v2682_v21, %v271_v27  ;;  %v266_v41 = vld [vmem:[%s2676_s14 + $0x10] sm:$0xff]  ;;  %v275_v52 = vld [vmem:[%s2676_s14 + $0x58] sm:$0xff] }
  0x15   : > { %395 = vperm.xlu0 %2545, %v340_v5   ;;  %345 = vperm.xlu1 %2546, %v330_v6   ;;  %v264_v33 = vld [vmem:[%s2676_s14] sm:$0xff]  ;;  %v294_v34 = vmul.f32 %v2682_v21, %v274_v32  ;;  %v285_v46 = vmul.f32 %v2682_v21, %v265_v40  ;;  %v286_v47 = vmul.f32 %v2682_v21, %v266_v41  ;;  %v591_v41 = vsel %vm490_vm2, %v2650_v17, 0 }
  0x16   : > { %v312_v28 = vadd.f32 %v2690_v25, %v292_v23  ;;  %v310_v29 = vadd.f32 %v2690_v25, %v290_v24  ;;  %v284_v35 = vmul.f32 %v2682_v21, %v264_v33  ;;  %v313_v38 = vadd.f32 %v2690_v25, %v293_v30  ;;  %v276_v53 = vld [vmem:[%s2676_s14 + $0x60] sm:$0xf] }
  0x17   : > { %v311_v39 = vadd.f32 %v2690_v25, %v291_v31  ;;  %v314_v44 = vadd.f32 %v2690_v25, %v294_v34  ;;  %v305_v57 = vadd.f32 %v2690_v25, %v285_v46  ;;  %v306_v58 = vadd.f32 %v2690_v25, %v286_v47 }
  0x18   : > { %v325_v36 = vmax.f32 %v312_v28, 0.0  ;;  %v323_v37 = vmax.f32 %v310_v29, 0.0  ;;  %v304_v45 = vadd.f32 %v2690_v25, %v284_v35  ;;  %v326_v50 = vmax.f32 %v313_v38, 0.0  ;;  %v441_v29 = vld [vmem:[#allocation2] sm:$0xff] }
  0x19   : > { %350 = vperm.xlu0 %2545, %v331_v8   ;;  %355 = vperm.xlu1 %2546, %v332_v9   ;;  %v324_v51 = vmax.f32 %v311_v39, 0.0  ;;  %v327_v56 = vmax.f32 %v314_v44, 0.0  ;;  %v295_v59 = vmul.f32 %v2682_v21, %v275_v52  ;;  %v296_v63 = vmul.f32 %v2682_v21, %v276_v53  ;;  %v2232_v53 = vld [vmem:[%s3359_s4 + $0x10] sm:$0xf] }
  0x1a   : > { %v317_v62 = vmax.f32 %v304_v45, 0.0  ;;  %v755_v17 = vsel %vm490_vm2, %v2657_v18, 0 }
  0x1b   : > { %v316_v10 = vadd.f32 %v2690_v25, %v296_v63 }
  0x1d   : > { %400 = vperm.xlu0 %2545, %v341_v11   ;;  %405 = vperm.xlu1 %2546, %v342_v12   ;;  %v269_v12 = vld [vmem:[%s2676_s14 + $0x28] sm:$0xff]  ;;  %v329_v23 = vmax.f32 %v316_v10, 0.0 }
  0x21   : > { %360 = vperm.xlu0 %2545, %v333_v14   ;;  %365 = vperm.xlu1 %2546, %v334_v15  }
  0x25   : > { %370 = vperm.xlu0 %2545, %v335_v16   ;;  %1933 = vperm.xlu1 %2546, %v330_v6   ;;  %v315_v6 = vadd.f32 %v2690_v25, %v295_v59 }
  0x29   : > { %1938 = vperm.xlu0 %2545, %v331_v8   ;;  %1943 = vperm.xlu1 %2546, %v332_v9  }
  0x2d   : > { %1948 = vperm.xlu0 %2545, %v333_v14   ;;  %1953 = vperm.xlu1 %2546, %v334_v15   ;;  %v328_v15 = vmax.f32 %v315_v6, 0.0 }
  0x31   : > { %1958 = vperm.xlu0 %2545, %v335_v16   ;;  %1963 = vperm.xlu1 %2546, %v336_v1   ;;  %v268_v1 = vld [vmem:[%s2676_s14 + $0x20] sm:$0xff] }
  0x35   : > { %1968 = vperm.xlu0 %2545, %v337_v4   ;;  %1973 = vperm.xlu1 %2546, %v338_v0   ;;  %v267_v0 = vld [vmem:[%s2676_s14 + $0x18] sm:$0xff]  ;;  %v318_v4 = vmax.f32 %v305_v57, 0.0 }
  0x36   : > { %v287_v7 = vmul.f32 %v2682_v21, %v267_v0 }
  0x38   : > { %v307_v16 = vadd.f32 %v2690_v25, %v287_v7  ;;  %v2268_v7 = vld [vmem:[%s3359_s4 + $0x20] sm:$0xf] }
  0x39   : > { %1978 = vperm.xlu0 %2545, %v339_v3   ;;  %1983 = vperm.xlu1 %2546, %v340_v5   ;;  %v319_v5 = vmax.f32 %v306_v58, 0.0 }
  0x3a   : > { %v320_v32 = vmax.f32 %v307_v16, 0.0 }
  0x3d   : > { %1988 = vperm.xlu0 %2545, %v341_v11   ;;  %1993 = vperm.xlu1 %2546, %v1930_v19   ;;  %v288_v11 = vmul.f32 %v2682_v21, %v268_v1  ;;  %v289_v19 = vmul.f32 %v2682_v21, %v269_v12  ;;  %v2241_v1 = vld [vmem:[%s3359_s4 + $0x14] sm:$0xf] }
  0x3f   : > { %v308_v24 = vadd.f32 %v2690_v25, %v288_v11  ;;  %v309_v35 = vadd.f32 %v2690_v25, %v289_v19  ;;  %v2223_v25 = vld [vmem:[%s3359_s4 + $0xc] sm:$0xf] }
  0x40   : > { %v919_v0 = vsel %vm490_vm2, %v2223_v25, 0 }
  0x41   : > { %v321_v34 = vmax.f32 %v308_v24, 0.0  ;;  %v322_v46 = vmax.f32 %v309_v35, 0.0 }
  0x88   : > { %v386_v42 = vpop.permute.xlu1 %385  ;;  %v376_v43 = vpop.permute.xlu0 %375 }
  0x89   : > { %v416_v48 = vmul.f32 %v386_v42, %v325_v36  ;;  %v414_v49 = vmul.f32 %v376_v43, %v323_v37 }
  0x8b   : > { %435 = vst.msk [vmem:[#allocation2 + $0x4b] sm:$0xff] %vm421_vm0, %v416_v48  ;;  %433 = vst.msk [vmem:[#allocation2 + $0x3b] sm:$0xff] %vm421_vm0, %v414_v49 }
  0x8c   : > { %v391_v54 = vpop.permute.xlu1 %390  ;;  %v381_v55 = vpop.permute.xlu0 %380 }
  0x8d   : > { %v417_v60 = vmul.f32 %v391_v54, %v326_v50  ;;  %v415_v61 = vmul.f32 %v381_v55, %v324_v51  ;;  %v455_v50 = vld [vmem:[#allocation2 + $0x70] sm:$0xff]  ;;  %v456_v51 = vld [vmem:[#allocation2 + $0x78] sm:$0x3] }
  0x8e   : > { %v2766_v57 = vpack.c.bf16 %v456_v51, %v455_v50 }
  0x8f   : > { %436 = vst.msk [vmem:[#allocation2 + $0x53] sm:$0xff] %vm421_vm0, %v417_v60  ;;  %434 = vst.msk [vmem:[#allocation2 + $0x43] sm:$0xff] %vm421_vm0, %v415_v61 }
  0x90   : > { %v396_v2 = vpop.permute.xlu0 %395  ;;  %v346_v3 = vpop.permute.xlu1 %345 }
  0x91   : > { %v418_v8 = vmul.f32 %v396_v2, %v327_v56  ;;  %v408_v9 = vmul.f32 %v346_v3, %v317_v62  ;;  %v1082_v2 = vsel %vm490_vm2, %v2232_v53, 0  ;;  %v2250_v3 = vld [vmem:[%s3359_s4 + $0x18] sm:$0xf] }
  0x92   : > { %v1409_v6 = vsel %vm490_vm2, %v2250_v3, 0 }
  0x93   : > { %437 = vst.msk [vmem:[#allocation2 + $0x5b] sm:$0xff] %vm421_vm0, %v418_v8  ;;  %427 = vst.msk [vmem:[#allocation2 + $0xb] sm:$0xff] %vm421_vm0, %v408_v9  ;;  %v1740_v9 = vsel %vm490_vm2, %v2268_v7, 0 }
  0x94   : > { %v351_v13 = vpop.permute.xlu0 %350  ;;  %v356_v14 = vpop.permute.xlu1 %355 }
  0x95   : > { %v409_v20 = vmul.f32 %v351_v13, %v318_v4  ;;  %v410_v22 = vmul.f32 %v356_v14, %v319_v5  ;;  %v1246_v4 = vsel %vm490_vm2, %v2241_v1, 0  ;;  %v2259_v5 = vld [vmem:[%s3359_s4 + $0x1c] sm:$0xf] }
  0x96   : > { %v449_v26 = vld [vmem:[#allocation2 + $0x40] sm:$0xff]  ;;  %v450_v27 = vld [vmem:[#allocation2 + $0x48] sm:$0xff]  ;;  %v451_v36 = vld [vmem:[#allocation2 + $0x50] sm:$0xff]  ;;  %v1572_v8 = vsel %vm490_vm2, %v2259_v5, 0 }
  0x97   : > { %v2732_v28 = vpack.c.bf16 %v450_v27, %v449_v26  ;;  %428 = vst.msk [vmem:[#allocation2 + $0x13] sm:$0xff] %vm421_vm0, %v409_v20  ;;  %429 = vst.msk [vmem:[#allocation2 + $0x1b] sm:$0xff] %vm421_vm0, %v410_v22 }
  0x98   : > { %v401_v30 = vpop.permute.xlu0 %400  ;;  %v406_v31 = vpop.permute.xlu1 %405 }
  0x99   : > { %v419_v33 = vmul.f32 %v401_v30, %v328_v15  ;;  %v420_v21 = vmul.f32 %v406_v31, %v329_v23  ;;  %2370 = vmatprep.mubr.msk.bf16.mxu1 %vm421_vm0, %v2732_v28 }
  0x9a   : > { %v452_v37 = vld [vmem:[#allocation2 + $0x58] sm:$0xff]  ;;  %v442_v38 = vld [vmem:[#allocation2 + $0x8] sm:$0xff] }
  0x9b   : > { %v2739_v39 = vpack.c.bf16 %v452_v37, %v451_v36  ;;  %v2741_v40 = vpack.c.bf16 %v442_v38, %v441_v29  ;;  %438 = vst.msk [vmem:[#allocation2 + $0x63] sm:$0xff] %vm421_vm0, %v419_v33 }
  0x9c   : > { %440 = vst.msk [vmem:[#allocation2 + $0x6b] sm:$0xf] %vm439_vm3, %v420_v21  ;;  %v361_v42 = vpop.permute.xlu0 %360  ;;  %v366_v43 = vpop.permute.xlu1 %365 }
  0x9d   : > { %v411_v44 = vmul.f32 %v361_v42, %v320_v32  ;;  %v412_v45 = vmul.f32 %v366_v43, %v321_v34  ;;  %2362 = vmatprep.mubr.msk.bf16.mxu0 %vm421_vm0, %v2741_v40  ;;  %2371 = vmatmul.mubr.msk.bf16.vlgmr.msra.gmra.mxu1 %vm421_vm0, %v2739_v39 }
  0x9e   : > { %v443_v47 = vld [vmem:[#allocation2 + $0x10] sm:$0xff]  ;;  %v444_v48 = vld [vmem:[#allocation2 + $0x18] sm:$0xff]  ;;  %2379 = vmatpush3.bf16.msra.mxu1 %v591_v41 }
  0x9f   : > { %v2754_v49 = vpack.c.bf16 %v444_v48, %v443_v47  ;;  %430 = vst.msk [vmem:[#allocation2 + $0x23] sm:$0xff] %vm421_vm0, %v411_v44  ;;  %431 = vst.msk [vmem:[#allocation2 + $0x2b] sm:$0xff] %vm421_vm0, %v412_v45  ;;  %2528 = vmatprep.subr.msk.bf16.mxu1 %vm490_vm2, %v2223_v25 }
  0xa0   : > { %v371_v52 = vpop.permute.xlu0 %370 }
  0xa1   : > { %v413_v54 = vmul.f32 %v371_v52, %v322_v46  ;;  %2363 = vmatmul.mubr.msk.bf16.vlgmr.msra.gmra.mxu0 %vm421_vm0, %v2754_v49 }
  0xa2   : > { %v453_v55 = vld [vmem:[#allocation2 + $0x60] sm:$0xff]  ;;  %2397 = vmatpush3.bf16.msra.mxu0 %v755_v17 }
  0xa3   : > { %v454_v56 = vld [vmem:[#allocation2 + $0x68] sm:$0xff]  ;;  %432 = vst.msk [vmem:[#allocation2 + $0x33] sm:$0xff] %vm421_vm0, %v413_v54  ;;  %2529 = vmatprep.subr.msk.bf16.mxu0 %vm490_vm2, %v2232_v53 }
  0xa4   : > { %v2768_v58 = vpack.c.bf16 %v454_v56, %v453_v55 }
  0xa6   : > { %2374 = vmatprep.mubr.msk.bf16.mxu1 %vm421_vm0, %v2768_v58  ;;  %v445_v18 = vld [vmem:[#allocation2 + $0x20] sm:$0xff]  ;;  %v446_v59 = vld [vmem:[#allocation2 + $0x28] sm:$0xff] }
  0xa7   : > { %2375 = vmatmul.mubr.msk.bf16.gmra.mxu1 %vm421_vm0, %v2766_v57  ;;  %v2776_v60 = vpack.c.bf16 %v446_v59, %v445_v18 }
  0xa8   : > { %2380 = vmatprep.mubr.msk.bf16.mxu1 %vm421_vm0, %v2741_v40 }
  0xa9   : > { %2366 = vmatprep.mubr.msk.bf16.mxu0 %vm421_vm0, %v2776_v60 }
  0xaa   : > { %v447_v61 = vld [vmem:[#allocation2 + $0x30] sm:$0xff]  ;;  %v448_v62 = vld [vmem:[#allocation2 + $0x38] sm:$0xff] }
  0xab   : > { %v2782_v63 = vpack.c.bf16 %v448_v62, %v447_v61 }
  0xad   : > { %2367 = vmatmul.mubr.msk.bf16.gmra.mxu0 %vm421_vm0, %v2782_v63 }
  0xae   : > { %2398 = vmatprep.mubr.msk.bf16.mxu0 %vm421_vm0, %v2741_v40 }
  0xaf   : > { %2381 = vmatmul.mubr.msk.bf16.vlgmr.msra.gmra.mxu1 %vm421_vm0, %v2754_v49 }
  0xb0   : > { %2384 = vmatprep.mubr.msk.bf16.mxu1 %vm421_vm0, %v2776_v60  ;;  %2415 = vmatpush3.bf16.msra.mxu1 %v919_v0 }
  0xb1   : > { %2530 = vmatprep.subr.msk.bf16.mxu1 %vm490_vm2, %v2241_v1 }
  0xb5   : > { %2399 = vmatmul.mubr.msk.bf16.vlgmr.msra.gmra.mxu0 %vm421_vm0, %v2754_v49 }
  0xb6   : > { %2433 = vmatpush3.bf16.msra.mxu0 %v1082_v2  ;;  %2402 = vmatprep.mubr.msk.bf16.mxu0 %vm421_vm0, %v2776_v60 }
  0xb7   : > { %2385 = vmatmul.mubr.msk.bf16.gmra.mxu1 %vm421_vm0, %v2782_v63  ;;  %2531 = vmatprep.subr.msk.bf16.mxu0 %vm490_vm2, %v2250_v3 }
  0xb8   : > { %2388 = vmatprep.mubr.msk.bf16.mxu1 %vm421_vm0, %v2732_v28 }
  0xbd   : > { %2403 = vmatmul.mubr.msk.bf16.gmra.mxu0 %vm421_vm0, %v2782_v63 }
  0xbe   : > { %2406 = vmatprep.mubr.msk.bf16.mxu0 %vm421_vm0, %v2732_v28 }
  0xbf   : > { %2389 = vmatmul.mubr.msk.bf16.gmra.mxu1 %vm421_vm0, %v2739_v39 }
  0xc0   : > { %2392 = vmatprep.mubr.msk.bf16.mxu1 %vm421_vm0, %v2768_v58 }
  0xc5   : > { %2407 = vmatmul.mubr.msk.bf16.gmra.mxu0 %vm421_vm0, %v2739_v39 }
  0xc6   : > { %2410 = vmatprep.mubr.msk.bf16.mxu0 %vm421_vm0, %v2768_v58 }
  0xc7   : > { %2393 = vmatmul.mubr.msk.bf16.gmra.mxu1 %vm421_vm0, %v2766_v57 }
  0xc8   : > { %2416 = vmatprep.mubr.msk.bf16.mxu1 %vm421_vm0, %v2741_v40 }
  0xcd   : > { %2411 = vmatmul.mubr.msk.bf16.gmra.mxu0 %vm421_vm0, %v2766_v57 }
  0xce   : > { %2434 = vmatprep.mubr.msk.bf16.mxu0 %vm421_vm0, %v2741_v40 }
  0xcf   : > { %2417 = vmatmul.mubr.msk.bf16.vlgmr.msra.gmra.mxu1 %vm421_vm0, %v2754_v49 }
  0xd0   : > { %2420 = vmatprep.mubr.msk.bf16.mxu1 %vm421_vm0, %v2776_v60  ;;  %2451 = vmatpush3.bf16.msra.mxu1 %v1246_v4 }
  0xd1   : > { %2532 = vmatprep.subr.msk.bf16.mxu1 %vm490_vm2, %v2259_v5 }
  0xd5   : > { %2435 = vmatmul.mubr.msk.bf16.vlgmr.msra.gmra.mxu0 %vm421_vm0, %v2754_v49 }
  0xd6   : > { %2469 = vmatpush3.bf16.msra.mxu0 %v1409_v6  ;;  %2438 = vmatprep.mubr.msk.bf16.mxu0 %vm421_vm0, %v2776_v60 }
  0xd7   : > { %2421 = vmatmul.mubr.msk.bf16.gmra.mxu1 %vm421_vm0, %v2782_v63  ;;  %2533 = vmatprep.subr.msk.bf16.mxu0 %vm490_vm2, %v2268_v7 }
  0xd8   : > { %2424 = vmatprep.mubr.msk.bf16.mxu1 %vm421_vm0, %v2732_v28 }
  0xdd   : > { %2439 = vmatmul.mubr.msk.bf16.gmra.mxu0 %vm421_vm0, %v2782_v63 }
  0xde   : > { %2442 = vmatprep.mubr.msk.bf16.mxu0 %vm421_vm0, %v2732_v28 }
  0xdf   : > { %2425 = vmatmul.mubr.msk.bf16.gmra.mxu1 %vm421_vm0, %v2739_v39 }
  0xe0   : > { %2428 = vmatprep.mubr.msk.bf16.mxu1 %vm421_vm0, %v2768_v58 }
  0xe5   : > { %2443 = vmatmul.mubr.msk.bf16.gmra.mxu0 %vm421_vm0, %v2739_v39 }
  0xe6   : > { %2446 = vmatprep.mubr.msk.bf16.mxu0 %vm421_vm0, %v2768_v58 }
  0xe7   : > { %2429 = vmatmul.mubr.msk.bf16.gmra.mxu1 %vm421_vm0, %v2766_v57 }
  0xe8   : > { %2452 = vmatprep.mubr.msk.bf16.mxu1 %vm421_vm0, %v2741_v40 }
  0xed   : > { %2447 = vmatmul.mubr.msk.bf16.gmra.mxu0 %vm421_vm0, %v2766_v57 }
  0xee   : > { %2470 = vmatprep.mubr.msk.bf16.mxu0 %vm421_vm0, %v2741_v40 }
  0xef   : > { %2453 = vmatmul.mubr.msk.bf16.vlgmr.msra.gmra.mxu1 %vm421_vm0, %v2754_v49 }
  0xf0   : > { %2456 = vmatprep.mubr.msk.bf16.mxu1 %vm421_vm0, %v2776_v60  ;;  %2487 = vmatpush3.bf16.msra.mxu1 %v1572_v8 }
  0xf5   : > { %2471 = vmatmul.mubr.msk.bf16.vlgmr.msra.gmra.mxu0 %vm421_vm0, %v2754_v49 }
  0xf6   : > { %2505 = vmatpush3.bf16.msra.mxu0 %v1740_v9  ;;  %2474 = vmatprep.mubr.msk.bf16.mxu0 %vm421_vm0, %v2776_v60 }
  0xf7   : > { %2457 = vmatmul.mubr.msk.bf16.gmra.mxu1 %vm421_vm0, %v2782_v63 }
  0xf8   : > { %2460 = vmatprep.mubr.msk.bf16.mxu1 %vm421_vm0, %v2732_v28 }
  0xfd   : > { %2475 = vmatmul.mubr.msk.bf16.gmra.mxu0 %vm421_vm0, %v2782_v63 }
  0xfe   : > { %2478 = vmatprep.mubr.msk.bf16.mxu0 %vm421_vm0, %v2732_v28 }
  0xff   : > { %2461 = vmatmul.mubr.msk.bf16.gmra.mxu1 %vm421_vm0, %v2739_v39 }
 0x100   : > { %2464 = vmatprep.mubr.msk.bf16.mxu1 %vm421_vm0, %v2768_v58 }
 0x105   : > { %2479 = vmatmul.mubr.msk.bf16.gmra.mxu0 %vm421_vm0, %v2739_v39 }
 0x106   : > { %2482 = vmatprep.mubr.msk.bf16.mxu0 %vm421_vm0, %v2768_v58 }
 0x107   : > { %2465 = vmatmul.mubr.msk.bf16.gmra.mxu1 %vm421_vm0, %v2766_v57 }
 0x108   : > { %2488 = vmatprep.mubr.msk.bf16.mxu1 %vm421_vm0, %v2741_v40 }
 0x10d   : > { %2483 = vmatmul.mubr.msk.bf16.gmra.mxu0 %vm421_vm0, %v2766_v57 }
 0x10e   : > { %2506 = vmatprep.mubr.msk.bf16.mxu0 %vm421_vm0, %v2741_v40 }
 0x10f   : > { %2489 = vmatmul.mubr.msk.bf16.vlgmr.msra.gmra.mxu1 %vm421_vm0, %v2754_v49 }
 0x110   : > { %2492 = vmatprep.mubr.msk.bf16.mxu1 %vm421_vm0, %v2776_v60 }
 0x115   : > { %2507 = vmatmul.mubr.msk.bf16.vlgmr.msra.gmra.mxu0 %vm421_vm0, %v2754_v49 }
 0x116   : > { %2510 = vmatprep.mubr.msk.bf16.mxu0 %vm421_vm0, %v2776_v60 }
 0x117   : > { %2493 = vmatmul.mubr.msk.bf16.gmra.mxu1 %vm421_vm0, %v2782_v63 }
 0x118   : > { %2496 = vmatprep.mubr.msk.bf16.mxu1 %vm421_vm0, %v2732_v28 }
 0x11d   : > { %2511 = vmatmul.mubr.msk.bf16.gmra.mxu0 %vm421_vm0, %v2782_v63 }
 0x11e   : > { %2514 = vmatprep.mubr.msk.bf16.mxu0 %vm421_vm0, %v2732_v28 }
 0x11f   : > { %2497 = vmatmul.mubr.msk.bf16.gmra.mxu1 %vm421_vm0, %v2739_v39 }
 0x120   : > { %2500 = vmatprep.mubr.msk.bf16.mxu1 %vm421_vm0, %v2768_v58 }
 0x125   : > { %2515 = vmatmul.mubr.msk.bf16.gmra.mxu0 %vm421_vm0, %v2739_v39 }
 0x126   : > { %2518 = vmatprep.mubr.msk.bf16.mxu0 %vm421_vm0, %v2768_v58 }
 0x127   : > { %2501 = vmatmul.mubr.msk.bf16.gmra.mxu1 %vm421_vm0, %v2766_v57 }
 0x12d   : > { %2519 = vmatmul.mubr.msk.bf16.gmra.mxu0 %vm421_vm0, %v2766_v57 }
 0x15d   : > { %v2934_v10 = vpop.f32.mrf.mxu1 }
 0x15f   : > { %v2936_v11 = vpop.f32.mrf.mxu1 }
 0x161   : > { %v2364_v12 = vpop.f32.mrf.mxu0  ;;  %v2938_v13 = vpop.f32.mrf.mxu1 }
 0x163   : > { %v528_v14 = vpop.f32.mrf.mxu0  ;;  %v2940_v15 = vpop.f32.mrf.mxu1 }
 0x165   : > { %v2365_v19 = vpop.f32.mrf.mxu0 }
 0x167   : > { %v2376_v16 = vpop.f32.mrf.mxu1  ;;  %v531_v23 = vpop.f32.mrf.mxu0 }
 0x169   : > { %v2942_v20 = vpop.f32.mrf.mxu1 }
 0x16b   : > { %v2377_v22 = vpop.f32.mrf.mxu1 }
 0x16d   : > { %v579_v24 = vpop.f32.mrf.mxu1  ;;  %v2368_v26 = vpop.f32.mrf.mxu0 }
 0x16f   : > { %v2382_v27 = vpop.f32.mrf.mxu1  ;;  %v544_v28 = vpop.f32.mrf.mxu0 }
 0x170   : > { %v704_v32 = vrot.slane %v2382_v27, 1 }
 0x171   : > { %v627_v29 = vpop.f32.mrf.mxu1  ;;  %v2369_v30 = vpop.f32.mrf.mxu0 }
 0x172   : > { %v701_v35 = vrot.slane %v627_v29, 1 }
 0x173   : > { %v2383_v31 = vpop.f32.mrf.mxu1  ;;  %v547_v21 = vpop.f32.mrf.mxu0 }
 0x174   : > { %v706_v33 = vrot.slane %v2383_v31, 1 }
 0x175   : > { %v630_v34 = vpop.f32.mrf.mxu1  ;;  %v2400_v38 = vpop.f32.mrf.mxu0 }
 0x176   : > { %v707_v36 = vsel %vm700_vm4, %v704_v32, %v706_v33  ;;  %v702_v37 = vrot.slane %v630_v34, 1  ;;  %v868_v48 = vrot.slane %v2400_v38, 2 }
 0x177   : > { %v741_v39 = vadd.f32 %v2364_v12, %v707_v36  ;;  %v2386_v40 = vpop.f32.mrf.mxu1  ;;  %v791_v43 = vpop.f32.mrf.mxu0 }
 0x178   : > { %v703_v41 = vsel %vm700_vm4, %v701_v35, %v702_v37  ;;  %v705_v42 = vsel %vm700_vm4, %v702_v37, %v704_v32  ;;  %v712_v50 = vrot.slane %v2386_v40, 1  ;;  %v865_v54 = vrot.slane %v791_v43, 2 }
 0x179   : > { %v739_v25 = vadd.f32 %v703_v41, %v528_v14  ;;  %v740_v44 = vadd.f32 %v705_v42, %v531_v23  ;;  %v643_v45 = vpop.f32.mrf.mxu1  ;;  %v2401_v47 = vpop.f32.mrf.mxu0 }
 0x17a   : > { %v708_v46 = vrot.slane %v643_v45, 1  ;;  %v870_v49 = vrot.slane %v2401_v47, 2 }
 0x17b   : > { %v2387_v17 = vpop.f32.mrf.mxu1  ;;  %v794_v53 = vpop.f32.mrf.mxu0 }
 0x17c   : > { %v709_v51 = vsel %vm700_vm4, %v706_v33, %v708_v46  ;;  %v714_v52 = vrot.slane %v2387_v17, 1  ;;  %v871_v56 = vsel %vm864_vm5, %v868_v48, %v870_v49  ;;  %v866_v57 = vrot.slane %v794_v53, 2 }
 0x17d   : > { %v742_v55 = vadd.f32 %v2365_v19, %v709_v51  ;;  %v646_v58 = vpop.f32.mrf.mxu1  ;;  %v2949_v18 = vadd.f32 %v871_v56, %v741_v39  ;;  %v2404_v61 = vpop.f32.mrf.mxu0 }
 0x17e   : > { %v715_v59 = vsel %vm700_vm4, %v712_v50, %v714_v52  ;;  %v710_v60 = vrot.slane %v646_v58, 1  ;;  %v867_v63 = vsel %vm864_vm5, %v865_v54, %v866_v57  ;;  %v869_v0 = vsel %vm864_vm5, %v866_v57, %v868_v48 }
 0x17f   : > { %v745_v62 = vadd.f32 %v2368_v26, %v715_v59  ;;  %v2390_v1 = vpop.f32.mrf.mxu1  ;;  %v2954_v2 = vadd.f32 %v867_v63, %v739_v25  ;;  %v2956_v3 = vadd.f32 %v869_v0, %v740_v44  ;;  %v807_v6 = vpop.f32.mrf.mxu0  ;;  %v876_v19 = vrot.slane %v2404_v61, 2 }
 0x180   : > { %v711_v4 = vsel %vm700_vm4, %v708_v46, %v710_v60  ;;  %v713_v5 = vsel %vm700_vm4, %v710_v60, %v712_v50  ;;  %v872_v9 = vrot.slane %v807_v6, 2  ;;  %v720_v26 = vrot.slane %v2390_v1, 1 }
 0x181   : > { %v743_v7 = vadd.f32 %v711_v4, %v544_v28  ;;  %v744_v8 = vadd.f32 %v713_v5, %v547_v21  ;;  %v659_v12 = vpop.f32.mrf.mxu1  ;;  %v2405_v16 = vpop.f32.mrf.mxu0 }
 0x182   : > { %v716_v14 = vrot.slane %v659_v12, 1  ;;  %v873_v22 = vsel %vm864_vm5, %v870_v49, %v872_v9  ;;  %v878_v23 = vrot.slane %v2405_v16, 2 }
 0x183   : > { %v2391_v24 = vpop.f32.mrf.mxu1  ;;  %v2961_v27 = vadd.f32 %v873_v22, %v742_v55  ;;  %v810_v32 = vpop.f32.mrf.mxu0 }
 0x184   : > { %v717_v29 = vsel %vm700_vm4, %v714_v52, %v716_v14  ;;  %v722_v31 = vrot.slane %v2391_v24, 1  ;;  %v879_v28 = vsel %vm864_vm5, %v876_v19, %v878_v23  ;;  %v874_v21 = vrot.slane %v810_v32, 2 }
 0x185   : > { %v746_v33 = vadd.f32 %v2369_v30, %v717_v29  ;;  %v662_v34 = vpop.f32.mrf.mxu1  ;;  %v2965_v35 = vadd.f32 %v879_v28, %v745_v62  ;;  %v2408_v38 = vpop.f32.mrf.mxu0 }
 0x186   : > { %v723_v36 = vsel %vm700_vm4, %v720_v26, %v722_v31  ;;  %v718_v37 = vrot.slane %v662_v34, 1  ;;  %v875_v40 = vsel %vm864_vm5, %v872_v9, %v874_v21  ;;  %v877_v41 = vsel %vm864_vm5, %v874_v21, %v876_v19 }
 0x187   : > { %v749_v39 = vadd.f32 %v2934_v10, %v723_v36  ;;  %v2394_v42 = vpop.f32.mrf.mxu1  ;;  %v2971_v43 = vadd.f32 %v875_v40, %v743_v7  ;;  %v908_v30 = vadd.f32 %v877_v41, %v744_v8  ;;  %v823_v45 = vpop.f32.mrf.mxu0  ;;  %v884_v50 = vrot.slane %v2408_v38, 2 }
 0x188   : > { %v719_v25 = vsel %vm700_vm4, %v716_v14, %v718_v37  ;;  %v721_v44 = vsel %vm700_vm4, %v718_v37, %v720_v26  ;;  %v880_v48 = vrot.slane %v823_v45, 2 }
 0x189   : > { %v747_v46 = vadd.f32 %v719_v25, %v2936_v11  ;;  %v748_v47 = vadd.f32 %v721_v44, %v2940_v15  ;;  %v675_v49 = vpop.f32.mrf.mxu1  ;;  %v2409_v17 = vpop.f32.mrf.mxu0 }
 0x18a   : > { %v724_v10 = vrot.slane %v675_v49, 1  ;;  %v881_v51 = vsel %vm864_vm5, %v878_v23, %v880_v48  ;;  %v886_v52 = vrot.slane %v2409_v17, 2 }
 0x18b   : > { %v2395_v53 = vpop.f32.mrf.mxu1  ;;  %v2978_v54 = vadd.f32 %v881_v51, %v746_v33  ;;  %v826_v57 = vpop.f32.mrf.mxu0 }
 0x18c   : > { %v725_v55 = vsel %vm700_vm4, %v722_v31, %v724_v10  ;;  %v751_v56 = vadd.f32 %v724_v10, %v2942_v20  ;;  %v887_v15 = vsel %vm864_vm5, %v884_v50, %v886_v52  ;;  %v882_v58 = vrot.slane %v826_v57, 2 }
 0x18d   : > { %v750_v11 = vadd.f32 %v2938_v13, %v725_v55  ;;  %v678_v59 = vpop.f32.mrf.mxu1  ;;  %v2984_v60 = vadd.f32 %v887_v15, %v749_v39  ;;  %v2412_v61 = vpop.f32.mrf.mxu0 }
 0x18e   : > { %v883_v62 = vsel %vm864_vm5, %v880_v48, %v882_v58  ;;  %v885_v63 = vsel %vm864_vm5, %v882_v58, %v884_v50 }
 0x18f   : > { %v2418_v0 = vpop.f32.mrf.mxu1  ;;  %v2988_v1 = vadd.f32 %v883_v62, %v747_v46  ;;  %v912_v4 = vadd.f32 %v885_v63, %v748_v47  ;;  %v839_v5 = vpop.f32.mrf.mxu0 }
 0x190   : > { %v888_v20 = vrot.slane %v839_v5, 2  ;;  %v1029_v12 = vrot.slane %v2418_v0, 2 }
 0x191   : > { %v955_v6 = vpop.f32.mrf.mxu1  ;;  %v2413_v7 = vpop.f32.mrf.mxu0 }
 0x192   : > { %v889_v13 = vsel %vm864_vm5, %v886_v52, %v888_v20  ;;  %v2991_v8 = vadd.f32 %v888_v20, %v751_v56 }
 0x193   : > { %v2419_v9 = vpop.f32.mrf.mxu1  ;;  %v2993_v14 = vadd.f32 %v889_v13, %v750_v11  ;;  %v842_v19 = vpop.f32.mrf.mxu0 }
 0x194   : > { %v1031_v16 = vrot.slane %v2419_v9, 2 }
 0x195   : > { %v957_v22 = vpop.f32.mrf.mxu1  ;;  %v2996_v26 = vpop.f32.mrf.mxu0 }
 0x196   : > { %v1032_v23 = vsel %vm864_vm5, %v1029_v12, %v1031_v16  ;;  %v1028_v24 = vrot.slane %v957_v22, 2 }
 0x197   : > { %v2999_v29 = vadd.f32 %v1032_v23, %v2956_v3  ;;  %v2422_v31 = vpop.f32.mrf.mxu1  ;;  %v1118_v33 = vpop.f32.mrf.mxu0 }
 0x198   : > { %v1030_v32 = vsel %vm864_vm5, %v1028_v24, %v1029_v12  ;;  %v1037_v38 = vrot.slane %v2422_v31, 2 }
 0x199   : > { %v3003_v28 = vadd.f32 %v1030_v32, %v2954_v2  ;;  %v970_v21 = vpop.f32.mrf.mxu1  ;;  %v3005_v36 = vpop.f32.mrf.mxu0 }
 0x19a   : > { %v1033_v34 = vrot.slane %v970_v21, 2 }
 0x19b   : > { %v2423_v37 = vpop.f32.mrf.mxu1  ;;  %v3008_v41 = vpop.f32.mrf.mxu0 }
 0x19c   : > { %v1034_v39 = vsel %vm864_vm5, %v1031_v16, %v1033_v34  ;;  %v1039_v40 = vrot.slane %v2423_v37, 2 }
 0x19d   : > { %v3011_v3 = vadd.f32 %v1034_v39, %v2949_v18  ;;  %v973_v42 = vpop.f32.mrf.mxu1  ;;  %v3014_v2 = vpop.f32.mrf.mxu0 }
 0x19e   : > { %v1040_v25 = vsel %vm864_vm5, %v1037_v38, %v1039_v40  ;;  %v1035_v44 = vrot.slane %v973_v42, 2  ;;  %v1201_v52 = vrot.slane %v3014_v2, 3 }
 0x19f   : > { %v1071_v45 = vadd.f32 %v1040_v25, %v908_v30  ;;  %v2426_v46 = vpop.f32.mrf.mxu1  ;;  %v3018_v49 = vpop.f32.mrf.mxu0 }
 0x1a0   : > { %v1036_v47 = vsel %vm864_vm5, %v1033_v34, %v1035_v44  ;;  %v1038_v48 = vsel %vm864_vm5, %v1035_v44, %v1037_v38  ;;  %v1045_v55 = vrot.slane %v2426_v46, 2 }
 0x1a1   : > { %v3021_v10 = vadd.f32 %v1036_v47, %v2961_v27  ;;  %v3024_v18 = vadd.f32 %v1038_v48, %v2971_v43  ;;  %v986_v17 = vpop.f32.mrf.mxu1  ;;  %v2441_v51 = vpop.f32.mrf.mxu0 }
 0x1a2   : > { %v1041_v50 = vrot.slane %v986_v17, 2  ;;  %v1203_v53 = vrot.slane %v2441_v51, 3 }
 0x1a3   : > { %v2427_v30 = vpop.f32.mrf.mxu1  ;;  %v3028_v11 = vpop.f32.mrf.mxu0 }
 0x1a4   : > { %v1042_v56 = vsel %vm864_vm5, %v1039_v40, %v1041_v50  ;;  %v1047_v57 = vrot.slane %v2427_v30, 2  ;;  %v1204_v43 = vsel %vm1191_vm6, %v1201_v52, %v1203_v53 }
 0x1a5   : > { %v1072_v27 = vadd.f32 %v1042_v56, %v2965_v35  ;;  %v989_v15 = vpop.f32.mrf.mxu1  ;;  %v3034_v58 = vadd.f32 %v1204_v43, %v1071_v45  ;;  %v2444_v62 = vpop.f32.mrf.mxu0 }
 0x1a6   : > { %v1048_v59 = vsel %vm864_vm5, %v1045_v55, %v1047_v57  ;;  %v1043_v61 = vrot.slane %v989_v15, 2  ;;  %v1209_v19 = vrot.slane %v2444_v62, 3 }
 0x1a7   : > { %v1075_v63 = vadd.f32 %v1048_v59, %v912_v4  ;;  %v2430_v0 = vpop.f32.mrf.mxu1  ;;  %v1149_v6 = vpop.f32.mrf.mxu0 }
 0x1a8   : > { %v1044_v5 = vsel %vm864_vm5, %v1041_v50, %v1043_v61  ;;  %v1046_v20 = vsel %vm864_vm5, %v1043_v61, %v1045_v55  ;;  %v1205_v13 = vrot.slane %v1149_v6, 3 }
 0x1a9   : > { %v1073_v35 = vadd.f32 %v1044_v5, %v2978_v54  ;;  %v1074_v7 = vadd.f32 %v1046_v20, %v2988_v1  ;;  %v1002_v9 = vpop.f32.mrf.mxu1  ;;  %v2445_v16 = vpop.f32.mrf.mxu0 }
 0x1aa   : > { %v1049_v12 = vrot.slane %v1002_v9, 2  ;;  %v1206_v22 = vsel %vm1191_vm6, %v1203_v53, %v1205_v13  ;;  %v1211_v23 = vrot.slane %v2445_v16, 3  ;;  %v1193_v16 = vrot.slane %v2996_v26, 3 }
 0x1ab   : > { %v2431_v24 = vpop.f32.mrf.mxu1  ;;  %v3042_v4 = vadd.f32 %v1206_v22, %v1072_v27  ;;  %v1152_v32 = vpop.f32.mrf.mxu0  ;;  %v1192_v22 = vrot.slane %v3008_v41, 3 }
 0x1ac   : > { %v1050_v31 = vsel %vm864_vm5, %v1047_v57, %v1049_v12  ;;  %v1212_v54 = vsel %vm1191_vm6, %v1209_v19, %v1211_v23  ;;  %v1207_v21 = vrot.slane %v1152_v32, 3  ;;  %v1199_v32 = vrot.slane %v3028_v11, 3 }
 0x1ad   : > { %v1076_v33 = vadd.f32 %v1050_v31, %v2984_v60  ;;  %v1005_v1 = vpop.f32.mrf.mxu1  ;;  %v3047_v34 = vadd.f32 %v1212_v54, %v1075_v63  ;;  %v2448_v38 = vpop.f32.mrf.mxu0  ;;  %v1194_v41 = vsel %vm1191_vm6, %v1192_v22, %v1193_v16 }
 0x1ae   : > { %v1051_v37 = vrot.slane %v1005_v1, 2  ;;  %v1208_v39 = vsel %vm1191_vm6, %v1205_v13, %v1207_v21  ;;  %v1210_v40 = vsel %vm1191_vm6, %v1207_v21, %v1209_v19  ;;  %v1195_v13 = vrot.slane %v3005_v36, 3 }
 0x1af   : > { %v2454_v42 = vpop.f32.mrf.mxu1  ;;  %v3051_v25 = vadd.f32 %v1208_v39, %v1073_v35  ;;  %v3053_v44 = vadd.f32 %v1210_v40, %v1074_v7  ;;  %v1165_v46 = vpop.f32.mrf.mxu0  ;;  %v1202_v11 = vsel %vm1191_vm6, %v1199_v32, %v1201_v52 }
 0x1b0   : > { %v1052_v45 = vsel %vm864_vm5, %v1049_v12, %v1051_v37  ;;  %v1078_v60 = vadd.f32 %v1051_v37, %v2991_v8  ;;  %v1213_v48 = vrot.slane %v1165_v46, 3  ;;  %v1196_v31 = vsel %vm1191_vm6, %v1193_v16, %v1195_v13 }
 0x1b1   : > { %v1077_v47 = vadd.f32 %v1052_v45, %v2993_v14  ;;  %v1282_v17 = vpop.f32.mrf.mxu1  ;;  %v2449_v50 = vpop.f32.mrf.mxu0  ;;  %v1356_v37 = vrot.slane %v2454_v42, 4  ;;  %v1231_v38 = vadd.f32 %v1196_v31, %v2999_v29 }
 0x1b2   : > { %v1214_v51 = vsel %vm1191_vm6, %v1211_v23, %v1213_v48  ;;  %v1197_v23 = vrot.slane %v3018_v49, 3  ;;  %v1230_v50 = vadd.f32 %v1194_v41, %v3003_v28 }
 0x1b3   : > { %v2455_v53 = vpop.f32.mrf.mxu1  ;;  %v3059_v30 = vadd.f32 %v1214_v51, %v1076_v33  ;;  %v1168_v55 = vpop.f32.mrf.mxu0 }
 0x1b4   : > { %v1215_v56 = vrot.slane %v1168_v55, 3  ;;  %v1358_v33 = vrot.slane %v2455_v53, 4  ;;  %v1198_v49 = vsel %vm1191_vm6, %v1195_v13, %v1197_v23  ;;  %v1200_v40 = vsel %vm1191_vm6, %v1197_v23, %v1199_v32 }
 0x1b5   : > { %v1284_v57 = vpop.f32.mrf.mxu1  ;;  %v2472_v27 = vpop.f32.mrf.mxu0  ;;  %v1232_v2 = vadd.f32 %v1198_v49, %v3011_v3  ;;  %v1233_v55 = vadd.f32 %v1200_v40, %v3021_v10 }
 0x1b6   : > { %v1216_v43 = vsel %vm1191_vm6, %v1213_v48, %v1215_v56  ;;  %v3062_v15 = vadd.f32 %v1215_v56, %v1078_v60  ;;  %v1355_v54 = vrot.slane %v1284_v57, 4  ;;  %v1359_v45 = vsel %vm490_vm2, %v1356_v37, %v1358_v33 }
 0x1b7   : > { %v3064_v8 = vpop.f32.mrf.mxu1  ;;  %v3066_v59 = vadd.f32 %v1216_v43, %v1077_v47  ;;  %v1445_v14 = vpop.f32.mrf.mxu0  ;;  %v1518_v51 = vrot.slane %v2472_v27, 4  ;;  %v1234_v56 = vadd.f32 %v1202_v11, %v3024_v18 }
 0x1b8   : > { %v1357_v29 = vsel %vm490_vm2, %v1355_v54, %v1356_v37  ;;  %v1364_v57 = vrot.slane %v3064_v8, 4 }
 0x1b9   : > { %v1297_v61 = vpop.f32.mrf.mxu1  ;;  %v3068_v62 = vpop.f32.mrf.mxu0 }
 0x1ba   : > { %v1360_v21 = vrot.slane %v1297_v61, 4  ;;  %v1519_v42 = vrot.slane %v3068_v62, 4  ;;  %v1394_v61 = vadd.f32 %v1359_v45, %v1231_v38  ;;  %v1393_v62 = vadd.f32 %v1357_v29, %v1230_v50 }
 0x1bb   : > { %v3070_v63 = vpop.f32.mrf.mxu1  ;;  %v1447_v0 = vpop.f32.mrf.mxu0 }
 0x1bc   : > { %v1361_v46 = vsel %vm490_vm2, %v1358_v33, %v1360_v21  ;;  %v1366_v47 = vrot.slane %v3070_v63, 4  ;;  %v1520_v3 = vsel %vm490_vm2, %v1518_v51, %v1519_v42 }
 0x1bd   : > { %v1300_v5 = vpop.f32.mrf.mxu1  ;;  %v3072_v20 = vpop.f32.mrf.mxu0  ;;  %v1395_v28 = vadd.f32 %v1361_v46, %v1232_v2  ;;  %v1556_v32 = vadd.f32 %v1520_v3, %v1393_v62 }
 0x1be   : > { %v1362_v48 = vrot.slane %v1300_v5, 4  ;;  %v1367_v63 = vsel %vm490_vm2, %v1364_v57, %v1366_v47  ;;  %v1525_v22 = vrot.slane %v3072_v20, 4 }
 0x1bf   : > { %v3074_v6 = vpop.f32.mrf.mxu1  ;;  %v3076_v35 = vpop.f32.mrf.mxu0  ;;  %v1398_v33 = vadd.f32 %v1367_v63, %v3034_v58 }
 0x1c0   : > { %v1521_v52 = vrot.slane %v3076_v35, 4  ;;  %v1363_v10 = vsel %vm490_vm2, %v1360_v21, %v1362_v48  ;;  %v1365_v5 = vsel %vm490_vm2, %v1362_v48, %v1364_v57  ;;  %v1372_v23 = vrot.slane %v3074_v6, 4  ;;  %v1934_v63 = vpop.permute.xlu1 %1933 }
 0x1c1   : > { %v3078_v7 = vpop.f32.mrf.mxu1  ;;  %v3081_v9 = vpop.f32.mrf.mxu0  ;;  %v1396_v54 = vadd.f32 %v1363_v10, %v1233_v55 }
 0x1c2   : > { %v1368_v43 = vrot.slane %v3078_v7, 4  ;;  %v1527_v18 = vrot.slane %v3081_v9, 4  ;;  %v1522_v35 = vsel %vm490_vm2, %v1519_v42, %v1521_v52 }
 0x1c3   : > { %v3083_v12 = vpop.f32.mrf.mxu1  ;;  %v3086_v19 = vpop.f32.mrf.mxu0 }
 0x1c4   : > { %v1374_v8 = vrot.slane %v3083_v12, 4  ;;  %v1523_v7 = vrot.slane %v3086_v19, 4  ;;  %v1369_v31 = vsel %vm490_vm2, %v1366_v47, %v1368_v43  ;;  %v1528_v20 = vsel %vm490_vm2, %v1525_v22, %v1527_v18 }
 0x1c5   : > { %v3090_v24 = vpop.f32.mrf.mxu1  ;;  %v3094_v36 = vpop.f32.mrf.mxu0  ;;  %v1399_v38 = vadd.f32 %v1369_v31, %v3042_v4 }
 0x1c6   : > { %v1370_v13 = vrot.slane %v3090_v24, 4  ;;  %v1397_v24 = vadd.f32 %v1365_v5, %v1234_v56  ;;  %v1375_v6 = vsel %vm490_vm2, %v1372_v23, %v1374_v8  ;;  %v1526_v41 = vsel %vm490_vm2, %v1523_v7, %v1525_v22 }
 0x1c7   : > { %v2466_v1 = vpop.f32.mrf.mxu1  ;;  %v3096_v26 = vpop.f32.mrf.mxu0  ;;  %v1402_v46 = vadd.f32 %v1375_v6, %v3047_v34  ;;  %v1533_v50 = vrot.slane %v3094_v36, 4 }
 0x1c8   : > { %v1529_v9 = vrot.slane %v3096_v26, 4  ;;  %v3144_v1 = vadd.f32 %v1522_v35, %v1394_v61  ;;  %v1524_v26 = vsel %vm490_vm2, %v1521_v52, %v1523_v7  ;;  %v1371_v58 = vsel %vm490_vm2, %v1368_v43, %v1370_v13 }
 0x1c9   : > { %v3101_v39 = vpop.f32.mrf.mxu1  ;;  %v3109_v60 = vpop.f32.mrf.mxu0  ;;  %v3155_v29 = vadd.f32 %v1528_v20, %v1397_v24  ;;  %v1400_v55 = vadd.f32 %v1371_v58, %v3051_v25 }
 0x1ca   : > { %v1376_v21 = vrot.slane %v3101_v39, 4  ;;  %v1373_v39 = vsel %vm490_vm2, %v1370_v13, %v1372_v23  ;;  %v1530_v40 = vsel %vm490_vm2, %v1527_v18, %v1529_v9  ;;  %v1535_v11 = vrot.slane %v3109_v60, 4  ;;  %v3212_v58 = vpop.permute.xlu1 %1943 }
 0x1cb   : > { %v2467_v17 = vpop.f32.mrf.mxu1  ;;  %v3117_v53 = vpop.f32.mrf.mxu0  ;;  %v3164_v60 = vadd.f32 %v1526_v41, %v1396_v54  ;;  %v1401_v56 = vadd.f32 %v1373_v39, %v3053_v44  ;;  %v3168_v34 = vadd.f32 %v1530_v40, %v1398_v33 }
 0x1cc   : > { %v1377_v4 = vsel %vm490_vm2, %v1374_v8, %v1376_v21  ;;  %v1531_v47 = vrot.slane %v3117_v53, 4  ;;  %v3160_v17 = vadd.f32 %v1524_v26, %v1395_v28  ;;  %v1536_v43 = vsel %vm490_vm2, %v1533_v50, %v1535_v11 }
 0x1cd   : > { %v3123_v14 = vpop.f32.mrf.mxu1  ;;  %v3126_v27 = vpop.f32.mrf.mxu0  ;;  %v1403_v53 = vadd.f32 %v1377_v4, %v3059_v30  ;;  %v3178_v5 = vadd.f32 %v1536_v43, %v1401_v56 }
 0x1ce   : > { %v1378_v2 = vrot.slane %v3123_v14, 4  ;;  %v1532_v62 = vsel %vm490_vm2, %v1529_v9, %v1531_v47  ;;  %v1534_v28 = vsel %vm490_vm2, %v1531_v47, %v1533_v50  ;;  %v1541_v25 = vrot.slane %v3126_v27, 4  ;;  %v1939_v56 = vpop.permute.xlu0 %1938 }
 0x1cf   : > { %v2490_v0 = vpop.f32.mrf.mxu1  ;;  %v3136_v16 = vpop.f32.mrf.mxu0  ;;  %v3188_v27 = vadd.f32 %v1532_v62, %v1399_v38  ;;  %v3192_v9 = vadd.f32 %v1534_v28, %v1400_v55 }
 0x1d0   : > { %v1684_v51 = vrot.slane %v2490_v0, 5  ;;  %v1537_v61 = vrot.slane %v3136_v16, 4  ;;  %v1405_v10 = vadd.f32 %v1378_v2, %v3062_v15  ;;  %v1379_v35 = vsel %vm490_vm2, %v1376_v21, %v1378_v2 }
 0x1d1   : > { %v1608_v12 = vpop.f32.mrf.mxu1  ;;  %v2485_v19 = vpop.f32.mrf.mxu0  ;;  %v3196_v21 = vadd.f32 %v1379_v35, %v3066_v59 }
 0x1d2   : > { %v1538_v15 = vsel %vm490_vm2, %v1535_v11, %v1537_v61  ;;  %v3198_v19 = vadd.f32 %v1541_v25, %v1405_v10 }
 0x1d3   : > { %v2491_v37 = vpop.f32.mrf.mxu1  ;;  %v1494_v49 = vpop.f32.mrf.mxu0 }
 0x1d4   : > { %v1685_v45 = vrot.slane %v2491_v37, 5  ;;  %v1539_v44 = vrot.slane %v1494_v49, 4  ;;  %v3204_v37 = vadd.f32 %v1538_v15, %v1402_v46 }
 0x1d5   : > { %v1610_v42 = vpop.f32.mrf.mxu1  ;;  %v2508_v48 = vpop.f32.mrf.mxu0 }
 0x1d6   : > { %v1686_v36 = vsel %vm1683_vm7, %v1684_v51, %v1685_v45  ;;  %v1852_v30 = vrot.slane %v2508_v48, 6  ;;  %v1540_v12 = vsel %vm490_vm2, %v1537_v61, %v1539_v44  ;;  %v3207_v38 = vsel %vm490_vm2, %v1539_v44, %v1541_v25 }
 0x1d7   : > { %v2494_v52 = vpop.f32.mrf.mxu1  ;;  %v1776_v57 = vpop.f32.mrf.mxu0  ;;  %v1724_v7 = vadd.f32 %v1686_v36, %v1556_v32  ;;  %v3214_v49 = vadd.f32 %v1540_v12, %v1403_v53 }
 0x1d8   : > { %v1691_v22 = vrot.slane %v2494_v52, 5 }
 0x1d9   : > { %v1622_v14 = vpop.f32.mrf.mxu1  ;;  %v2509_v3 = vpop.f32.mrf.mxu0 }
 0x1da   : > { %v1687_v18 = vrot.slane %v1622_v14, 5  ;;  %v1853_v8 = vrot.slane %v2509_v3, 6 }
 0x1db   : > { %v2495_v0 = vpop.f32.mrf.mxu1  ;;  %v1778_v16 = vpop.f32.mrf.mxu0 }
 0x1dc   : > { %v1693_v13 = vrot.slane %v2495_v0, 5  ;;  %v1854_v23 = vsel %vm1851_vm8, %v1852_v30, %v1853_v8  ;;  %v1688_v24 = vsel %vm1683_vm7, %v1685_v45, %v1687_v18 }
 0x1dd   : > { %v1625_v31 = vpop.f32.mrf.mxu1  ;;  %v1892_v32 = vadd.f32 %v1854_v23, %v1724_v7  ;;  %v2512_v54 = vpop.f32.mrf.mxu0  ;;  %v1725_v42 = vadd.f32 %v1688_v24, %v3144_v1 }
 0x1de   : > { %v1689_v33 = vrot.slane %v1625_v31, 5  ;;  %v1694_v20 = vsel %vm1683_vm7, %v1691_v22, %v1693_v13  ;;  %v1859_v2 = vrot.slane %v2512_v54, 6 }
 0x1df   : > { %v3202_v6 = vpop.f32.mrf.mxu1  ;;  %1905 = vst.msk [vmem:[%s3186_s12] sm:$0xff] %vm421_vm0, %v1892_v32  ;;  %v2040_v26 = vmul.f32 %v1892_v32, %v1892_v32  ;;  %v1790_v59 = vpop.f32.mrf.mxu0  ;;  %v1996_v39 = vmul.f32 %v1934_v63, %v1892_v32  ;;  %v1728_v4 = vadd.f32 %v1694_v20, %v3155_v29 }
 0x1e0   : > { %v1690_v41 = vsel %vm1683_vm7, %v1687_v18, %v1689_v33  ;;  %v1692_v40 = vsel %vm1683_vm7, %v1689_v33, %v1691_v22  ;;  %v1855_v11 = vrot.slane %v1790_v59, 6  ;;  %v1699_v1 = vrot.slane %v3202_v6, 5  ;;  %v1949_v33 = vpop.permute.xlu0 %1948 }
 0x1e1   : > { %v1638_v45 = vpop.f32.mrf.mxu1  ;;  %v2053_v46 = vmul.f32 %v2040_v26, %v1934_v63  ;;  %v3219_v48 = vpop.f32.mrf.mxu0  ;;  %v1726_v50 = vadd.f32 %v1690_v41, %v3160_v17  ;;  %v1727_v57 = vadd.f32 %v1692_v40, %v3164_v60  ;;  %v2009_v61 = vsel %vm421_vm0, %v1996_v39, 0.0 }
 0x1e2   : > { %v1695_v47 = vrot.slane %v1638_v45, 5  ;;  %v1856_v51 = vsel %vm1851_vm8, %v1853_v8, %v1855_v11  ;;  %v1861_v52 = vrot.slane %v3219_v48, 6  ;;  %v1954_v63 = vpop.permute.xlu1 %1953 }
 0x1e3   : > { %v3224_v55 = vpop.f32.mrf.mxu1  ;;  %v1893_v53 = vadd.f32 %v1856_v51, %v1725_v42  ;;  %v1793_v43 = vpop.f32.mrf.mxu0  ;;  %v2066_v17 = vsel %vm421_vm0, %v2053_v46, 0.0 }
 0x1e4   : > { %v1701_v29 = vrot.slane %v3224_v55, 5  ;;  %v1862_v36 = vsel %vm1851_vm8, %v1859_v2, %v1861_v52  ;;  %v1857_v14 = vrot.slane %v1793_v43, 6  ;;  %v1696_v25 = vsel %vm1683_vm7, %v1693_v13, %v1695_v47 }
 0x1e5   : > { %v1641_v62 = vpop.f32.mrf.mxu1  ;;  %1906 = vst.msk [vmem:[%s3186_s12 + $0x8] sm:$0xff] %vm421_vm0, %v1893_v53  ;;  %v1997_v60 = vmul.f32 %v1939_v56, %v1893_v53  ;;  %v2041_v28 = vmul.f32 %v1893_v53, %v1893_v53  ;;  %v1896_v44 = vadd.f32 %v1862_v36, %v1728_v4  ;;  %v3237_v3 = vpop.f32.mrf.mxu0  ;;  %v1729_v23 = vadd.f32 %v1696_v25, %v3168_v34 }
 0x1e6   : > { %v1702_v10 = vsel %vm1683_vm7, %v1699_v1, %v1701_v29  ;;  %v1858_v30 = vsel %vm1851_vm8, %v1855_v11, %v1857_v14  ;;  %v1860_v18 = vsel %vm1851_vm8, %v1857_v14, %v1859_v2  ;;  %v1697_v8 = vrot.slane %v1641_v62, 5  ;;  %v3267_v4 = vpop.permute.xlu1 %1963  ;;  %v1959_v62 = vpop.permute.xlu0 %1958 }
 0x1e7   : > { %v3244_v0 = vpop.f32.mrf.mxu1  ;;  %v2010_v35 = vsel %vm421_vm0, %v1997_v60, 0.0  ;;  %v2054_v7 = vmul.f32 %v2041_v28, %v1939_v56  ;;  %1909 = vst.msk [vmem:[%s3186_s12 + $0x20] sm:$0xff] %vm421_vm0, %v1896_v44  ;;  %v2000_v13 = vmul.f32 %v1954_v63, %v1896_v44  ;;  %v2044_v16 = vmul.f32 %v1896_v44, %v1896_v44  ;;  %v3249_v15 = vpop.f32.mrf.mxu0 }
 0x1e8   : > { %v2011_v22 = vadd.f32 %v2010_v35, %v2009_v61  ;;  %v1894_v31 = vadd.f32 %v1858_v30, %v1726_v50  ;;  %v1895_v12 = vadd.f32 %v1860_v18, %v1727_v57  ;;  %v1732_v20 = vadd.f32 %v1702_v10, %v3178_v5 }
 0x1e9   : > { %v3252_v32 = vpop.f32.mrf.mxu1  ;;  %v2067_v54 = vsel %vm421_vm0, %v2054_v7, 0.0  ;;  %v2057_v24 = vmul.f32 %v2044_v16, %v1954_v63  ;;  %v1698_v6 = vsel %vm1683_vm7, %v1695_v47, %v1697_v8  ;;  %v3257_v26 = vpop.f32.mrf.mxu0  ;;  %v2016_v40 = vsel %vm421_vm0, %v2000_v13, 0.0 }
 0x1ea   : > { %v2068_v41 = vadd.f32 %v2067_v54, %v2066_v17  ;;  %1907 = vst.msk [vmem:[%s3186_s12 + $0x10] sm:$0xff] %vm421_vm0, %v1894_v31  ;;  %1908 = vst.msk [vmem:[%s3186_s12 + $0x18] sm:$0xff] %vm421_vm0, %v1895_v12  ;;  %v1998_v34 = vmul.f32 %v3212_v58, %v1894_v31  ;;  %v1999_v59 = vmul.f32 %v1949_v33, %v1895_v12  ;;  %v1867_v51 = vrot.slane %v3237_v3, 6 }
 0x1eb   : > { %v2042_v39 = vmul.f32 %v1894_v31, %v1894_v31  ;;  %v2073_v11 = vsel %vm421_vm0, %v2057_v24, 0.0  ;;  %v2043_v45 = vmul.f32 %v1895_v12, %v1895_v12  ;;  %v1700_v5 = vsel %vm1683_vm7, %v1697_v8, %v1699_v1  ;;  %v2503_v42 = vpop.f32.mrf.mxu1  ;;  %v1809_v46 = vpop.f32.mrf.mxu0 }
 0x1ec   : > { %v2012_v47 = vsel %vm421_vm0, %v1998_v34, 0.0  ;;  %v2014_v50 = vsel %vm421_vm0, %v1999_v59, 0.0  ;;  %v1707_v53 = vrot.slane %v3244_v0, 5  ;;  %v1863_v43 = vrot.slane %v3249_v15, 6 }
 0x1ed   : > { %v2055_v2 = vmul.f32 %v2042_v39, %v3212_v58  ;;  %v2013_v56 = vadd.f32 %v2012_v47, %v2011_v22  ;;  %v2056_v57 = vmul.f32 %v2043_v45, %v1949_v33  ;;  %v3275_v61 = vpop.f32.mrf.mxu0  ;;  %v1703_v17 = vrot.slane %v3252_v32, 5  ;;  %v1657_v30 = vpop.f32.mrf.mxu1 }
 0x1ee   : > { %v1869_v36 = vrot.slane %v3257_v26, 6  ;;  %v1709_v14 = vrot.slane %v2503_v42, 5  ;;  %v1730_v28 = vadd.f32 %v1698_v6, %v3188_v27  ;;  %v1864_v25 = vsel %vm1851_vm8, %v1861_v52, %v1863_v43  ;;  %v1974_v52 = vpop.permute.xlu1 %1973  ;;  %v1969_v33 = vpop.permute.xlu0 %1968 }
 0x1ef   : > { %v2069_v1 = vsel %vm421_vm0, %v2055_v2, 0.0  ;;  %v2015_v58 = vadd.f32 %v2014_v50, %v2013_v56  ;;  %v2071_v44 = vsel %vm421_vm0, %v2056_v57, 0.0  ;;  %v1731_v3 = vadd.f32 %v1700_v5, %v3192_v9  ;;  %v3289_v18 = vpop.f32.mrf.mxu0 }
 0x1f0   : > { %v2070_v60 = vadd.f32 %v2069_v1, %v2068_v41  ;;  %v1897_v63 = vadd.f32 %v1864_v25, %v1729_v23  ;;  %v1870_v10 = vsel %vm1851_vm8, %v1867_v51, %v1869_v36  ;;  %v1704_v27 = vsel %vm1683_vm7, %v1701_v29, %v1703_v17 }
 0x1f1   : > { %v2017_v0 = vadd.f32 %v2016_v40, %v2015_v58  ;;  %v1900_v48 = vadd.f32 %v1870_v10, %v1732_v20  ;;  %v1710_v7 = vsel %vm1683_vm7, %v1707_v53, %v1709_v14  ;;  %v1865_v13 = vrot.slane %v1809_v46, 6  ;;  %v2521_v32 = vpop.f32.mrf.mxu0 }
 0x1f2   : > { %v2072_v8 = vadd.f32 %v2071_v44, %v2070_v60  ;;  %1910 = vst.msk [vmem:[%s3186_s12 + $0x28] sm:$0xff] %vm421_vm0, %v1897_v63  ;;  %v2001_v9 = vmul.f32 %v1959_v62, %v1897_v63  ;;  %v2045_v35 = vmul.f32 %v1897_v63, %v1897_v63  ;;  %v1705_v23 = vrot.slane %v1657_v30, 5  ;;  %v1979_v1 = vpop.permute.xlu0 %1978 }
 0x1f3   : > { %1913 = vst.msk [vmem:[%s3186_s12 + $0x40] sm:$0xff] %vm421_vm0, %v1900_v48  ;;  %v2004_v15 = vmul.f32 %v1974_v52, %v1900_v48  ;;  %v2048_v22 = vmul.f32 %v1900_v48, %v1900_v48  ;;  %v1866_v29 = vsel %vm1851_vm8, %v1863_v43, %v1865_v13  ;;  %v1868_v12 = vsel %vm1851_vm8, %v1865_v13, %v1867_v51  ;;  %v1825_v46 = vpop.f32.mrf.mxu0 }
 0x1f4   : > { %v2074_v16 = vadd.f32 %v2073_v11, %v2072_v8  ;;  %v2018_v31 = vsel %vm421_vm0, %v2001_v9, 0.0  ;;  %v2058_v55 = vmul.f32 %v2045_v35, %v1959_v62  ;;  %v1567_v54 = vadd.f32 %v3207_v38, %v3196_v21  ;;  %v1984_v62 = vpop.permute.xlu1 %1983 }
 0x1f5   : > { %v2019_v24 = vadd.f32 %v2018_v31, %v2017_v0  ;;  %v1733_v20 = vadd.f32 %v1704_v27, %v3204_v37  ;;  %v1898_v6 = vadd.f32 %v1866_v29, %v1730_v28  ;;  %v1736_v34 = vadd.f32 %v1710_v7, %v3198_v19 }
 0x1f6   : > { %v2075_v41 = vsel %vm421_vm0, %v2058_v55, 0.0  ;;  %v1899_v59 = vadd.f32 %v1868_v12, %v1731_v3  ;;  %v1706_v39 = vsel %vm1683_vm7, %v1703_v17, %v1705_v23  ;;  %v2024_v11 = vsel %vm421_vm0, %v2004_v15, 0.0  ;;  %v1989_v9 = vpop.permute.xlu0 %1988 }
 0x1f7   : > { %v2076_v40 = vadd.f32 %v2075_v41, %v2074_v16  ;;  %1911 = vst.msk [vmem:[%s3186_s12 + $0x30] sm:$0xff] %vm421_vm0, %v1898_v6  ;;  %v2002_v45 = vmul.f32 %v3267_v4, %v1898_v6  ;;  %v2046_v5 = vmul.f32 %v1898_v6, %v1898_v6  ;;  %v2061_v21 = vmul.f32 %v2048_v22, %v1974_v52 }
 0x1f8   : > { %1912 = vst.msk [vmem:[%s3186_s12 + $0x38] sm:$0xff] %vm421_vm0, %v1899_v59  ;;  %v2003_v37 = vmul.f32 %v1969_v33, %v1899_v59  ;;  %v2047_v38 = vmul.f32 %v1899_v59, %v1899_v59  ;;  %v1708_v42 = vsel %vm1683_vm7, %v1705_v23, %v1707_v53  ;;  %v1734_v50 = vadd.f32 %v1706_v39, %v3214_v49  ;;  %v1994_v16 = vpop.permute.xlu1 %1993 }
 0x1f9   : > { %v2020_v19 = vsel %vm421_vm0, %v2002_v45, 0.0  ;;  %v2059_v47 = vmul.f32 %v2046_v5, %v3267_v4  ;;  %v1871_v2 = vrot.slane %v3289_v18, 6  ;;  %v1875_v57 = vrot.slane %v3275_v61, 6 }
 0x1fa   : > { %v2021_v51 = vadd.f32 %v2020_v19, %v2019_v24  ;;  %v2060_v56 = vmul.f32 %v2047_v38, %v1969_v33  ;;  %v1877_v43 = vrot.slane %v2521_v32, 6  ;;  %v2022_v17 = vsel %vm421_vm0, %v2003_v37, 0.0 }
 0x1fb   : > { %v2077_v53 = vsel %vm421_vm0, %v2059_v47, 0.0  ;;  %v1872_v14 = vsel %vm1851_vm8, %v1869_v36, %v1871_v2  ;;  %v1873_v4 = vrot.slane %v1825_v46, 6  ;;  %v1735_v60 = vadd.f32 %v1708_v42, %v1567_v54 }
 0x1fc   : > { %v2023_v49 = vadd.f32 %v2022_v17, %v2021_v51  ;;  %v2078_v58 = vadd.f32 %v2077_v53, %v2076_v40  ;;  %v1901_v28 = vadd.f32 %v1872_v14, %v1733_v20  ;;  %v2079_v25 = vsel %vm421_vm0, %v2060_v56, 0.0 }
 0x1fd   : > { %v1878_v61 = vsel %vm1851_vm8, %v1875_v57, %v1877_v43  ;;  %v1874_v44 = vsel %vm1851_vm8, %v1871_v2, %v1873_v4  ;;  %v1876_v3 = vsel %vm1851_vm8, %v1873_v4, %v1875_v57  ;;  %v2081_v30 = vsel %vm421_vm0, %v2061_v21, 0.0 }
 0x1fe   : > { %v2080_v63 = vadd.f32 %v2079_v25, %v2078_v58  ;;  %1914 = vst.msk [vmem:[%s3186_s12 + $0x48] sm:$0xff] %vm421_vm0, %v1901_v28  ;;  %v2005_v26 = vmul.f32 %v1979_v1, %v1901_v28  ;;  %v2025_v36 = vadd.f32 %v2024_v11, %v2023_v49  ;;  %v2049_v10 = vmul.f32 %v1901_v28, %v1901_v28 }
 0x1ff   : > { %v1904_v18 = vadd.f32 %v1878_v61, %v1736_v34  ;;  %v1902_v8 = vadd.f32 %v1874_v44, %v1734_v50  ;;  %v1903_v0 = vadd.f32 %v1876_v3, %v1735_v60 }
 0x200   : > { %v2026_v27 = vsel %vm421_vm0, %v2005_v26, 0.0  ;;  %v2062_v48 = vmul.f32 %v2049_v10, %v1979_v1  ;;  %v2082_v52 = vadd.f32 %v2081_v30, %v2080_v63 }
 0x201   : > { %v2027_v35 = vadd.f32 %v2026_v27, %v2025_v36  ;;  %1917 = vst.msk [vmem:[%s3186_s12 + $0x60] sm:$0xf] %vm439_vm3, %v1904_v18  ;;  %v2052_v7 = vmul.f32 %v1904_v18, %v1904_v18  ;;  %v2006_v13 = vmul.f32 %v1984_v62, %v1902_v8  ;;  %v2007_v22 = vmul.f32 %v1989_v9, %v1903_v0 }
 0x202   : > { %1915 = vst.msk [vmem:[%s3186_s12 + $0x50] sm:$0xff] %vm421_vm0, %v1902_v8  ;;  %1916 = vst.msk [vmem:[%s3186_s12 + $0x58] sm:$0xff] %vm421_vm0, %v1903_v0  ;;  %v2083_v15 = vsel %vm421_vm0, %v2062_v48, 0.0  ;;  %v2050_v23 = vmul.f32 %v1902_v8, %v1902_v8  ;;  %v2051_v31 = vmul.f32 %v1903_v0, %v1903_v0  ;;  %v2008_v29 = vmul.f32 %v1994_v16, %v1904_v18 }
 0x203   : > { %v2084_v55 = vadd.f32 %v2083_v15, %v2082_v52  ;;  %v2028_v12 = vsel %vm421_vm0, %v2006_v13, 0.0  ;;  %v2030_v24 = vsel %vm421_vm0, %v2007_v22, 0.0  ;;  %v2065_v20 = vmul.f32 %v2052_v7, %v1994_v16 }
 0x204   : > { %v2029_v32 = vadd.f32 %v2028_v12, %v2027_v35  ;;  %v2063_v33 = vmul.f32 %v2050_v23, %v1984_v62  ;;  %v2064_v54 = vmul.f32 %v2051_v31, %v1989_v9  ;;  %v2032_v34 = vsel %vm439_vm3, %v2008_v29, 0.0 }
 0x205   : > { %v2089_v45 = vsel %vm439_vm3, %v2065_v20, 0.0 }
 0x206   : > { %v2031_v6 = vadd.f32 %v2030_v24, %v2029_v32  ;;  %v2085_v41 = vsel %vm421_vm0, %v2063_v33, 0.0  ;;  %v2087_v40 = vsel %vm421_vm0, %v2064_v54, 0.0 }
 0x207   : > { %v2086_v59 = vadd.f32 %v2085_v41, %v2084_v55 }
 0x208   : > { %v2033_v39 = vadd.f32 %v2032_v34, %v2031_v6 }
 0x209   : > { %v2088_v11 = vadd.f32 %v2087_v40, %v2086_v59 }
 0x20a   : > { %v2034_v5 = vrot.slane %v2033_v39, 4 }
 0x20b   : > { %v2090_v21 = vadd.f32 %v2089_v45, %v2088_v11 }
 0x20c   : > { %v2035_v37 = vadd.f32 %v2034_v5, %v2033_v39 }
 0x20d   : > { %v2091_v38 = vrot.slane %v2090_v21, 4 }
 0x20e   : > { %v2036_v42 = vrot.slane %v2035_v37, 2 }
 0x20f   : > { %v2092_v46 = vadd.f32 %v2091_v38, %v2090_v21 }
 0x210   : > { %v2037_v19 = vadd.f32 %v2036_v42, %v2035_v37 }
 0x211   : > { %v2093_v47 = vrot.slane %v2092_v46, 2 }
 0x212   : > { %v2038_v50 = vrot.slane %v2037_v19, 1 }
 0x213   : > { %v2094_v2 = vadd.f32 %v2093_v47, %v2092_v46 }
 0x214   : > { %v2039_v56 = vadd.f32 %v2038_v50, %v2037_v19 }
 0x215   : > { %v2095_v51 = vrot.slane %v2094_v2, 1 }
 0x217   : > { %v2096_v57 = vadd.f32 %v2095_v51, %v2094_v2 }
 0x219   : > { %v2098_v43 = vsel %vm2097_vm9, %v2039_v56, %v2096_v57 }
 0x21a   : > { %v2099_v1 = vsel %vm1851_vm8, %v2098_v43, 0.0 }
 0x21b   : > { %2100 = vst.msk [vmem:[%s262_s15] sm:$0xff] %vm421_vm0, %v2099_v1 }
 0x21c PF: > { %s17_s21 = sadd.s32 1, %s2553_s21  }
 0x21d   : > { %p14_p4 = scmp.ge.s32.totalorder %s17_s21, 4  }
 0x21f   :  { %16 = sbr.rel (!%p14_p4) target bundleno = 1 (0x1), region = 90 }

// kernel: _lambda_.15
= control target key start
LH: loop header
LB: loop body
LE: loop exit
PB: predicated region body
PF: predicated region fallthrough
CT: control target
= control target key end

     0   :  { %s315_s12 = smov 0   ;;  %s338_s0 = inlined_call_operand.vmem [shape: f32[2,36,16], index: 0, kind: input, shape index: {}]   ;;  %s339_s1 = inlined_call_operand.vmem [shape: f32[1,16], index: 1, kind: input, shape index: {}]   ;;  %s340_s2 = inlined_call_operand.vmem [shape: f32[1,16], index: 2, kind: input, shape index: {}]   ;;  %s341_s3 = inlined_call_operand.vmem [shape: f32[2,36,16], index: 3, kind: output, shape index: {}]  }
   0x1 LB: > { %s267_s13 = sadd.s32 4294967295, %s293_s12   ;;  %p271_p0 = scmp.ge.s32.totalorder %s293_s12, 1  ;;  %s293_s12 = sphi %s315_s12, %s13_s12  }
   0x2   : > { %p137_p1 = scmp.lt.s32.totalorder %s293_s12, 3 }
   0x4   : > { %p138_p2 = pnand %p271_p0, %p137_p1 }
   0x5   : > { %p161_p3 = scmp.lt.s32.totalorder (!%p138_p2), %s267_s13, 1 }
   0x6   : > { %141 = sbr.rel (%p138_p2) target bundleno = 25 (0x19), region = 32 }
   0xb   : > { %s343_s13 = smov (!%p161_p3, %s267_s13), 1  ;;  %v274_v0 = vld [vmem:[%s339_s1] ss:$0 sm:$0xff]  ;;  %vm205_vm0 = vcmask 130048   ;;  %vm210_vm1 = vcmask 125952  }
   0xc   : > { %s278_s14 = smul.u32 40, %s343_s13  ;;  %v275_v1 = vld [vmem:[%s340_s2] ss:$0 sm:$0xff] }
   0xe   : > { %s165_s19 = scalar_lea.vmem %s338_s0, %s278_s14  ;;  %s170_s24 = scalar_lea.vmem %s341_s3, %s278_s14 }
   0xf   : > { %v171_v2 = vld [vmem:[%s165_s19] sm:$0xff]  ;;  %v172_v3 = vld [vmem:[%s165_s19 + $0x8] sm:$0xff]  ;;  %v173_v4 = vld [vmem:[%s165_s19 + $0x10] sm:$0xff] }
  0x10   : > { %v183_v5 = vmul.f32 %v274_v0, %v171_v2  ;;  %v184_v6 = vmul.f32 %v274_v0, %v172_v3  ;;  %v185_v7 = vmul.f32 %v274_v0, %v173_v4  ;;  %v174_v8 = vld [vmem:[%s165_s19 + $0x18] sm:$0xff]  ;;  %v175_v9 = vld [vmem:[%s165_s19 + $0x20] sm:$0xf] }
  0x11   : > { %v186_v10 = vmul.f32 %v274_v0, %v174_v8  ;;  %v187_v11 = vmul.f32 %v274_v0, %v175_v9 }
  0x12   : > { %v195_v12 = vadd.f32 %v275_v1, %v183_v5  ;;  %v196_v13 = vadd.f32 %v275_v1, %v184_v6  ;;  %v197_v14 = vadd.f32 %v275_v1, %v185_v7 }
  0x13   : > { %v198_v15 = vadd.f32 %v275_v1, %v186_v10  ;;  %v199_v16 = vadd.f32 %v275_v1, %v187_v11 }
  0x14   : > { %v200_v17 = vmax.f32 %v195_v12, 0.0  ;;  %v201_v18 = vmax.f32 %v196_v13, 0.0  ;;  %v202_v19 = vmax.f32 %v197_v14, 0.0 }
  0x15   : > { %v203_v20 = vmax.f32 %v198_v15, 0.0  ;;  %v204_v21 = vmax.f32 %v199_v16, 0.0 }
  0x16   : > { %206 = vst.msk [vmem:[%s170_s24] sm:$0xff] %vm205_vm0, %v200_v17  ;;  %207 = vst.msk [vmem:[%s170_s24 + $0x8] sm:$0xff] %vm205_vm0, %v201_v18 }
  0x17   : > { %208 = vst.msk [vmem:[%s170_s24 + $0x10] sm:$0xff] %vm205_vm0, %v202_v19  ;;  %209 = vst.msk [vmem:[%s170_s24 + $0x18] sm:$0xff] %vm205_vm0, %v203_v20 }
  0x18   : > { %211 = vst.msk [vmem:[%s170_s24 + $0x20] sm:$0xf] %vm210_vm1, %v204_v21 }
  0x19 PF: > { %s13_s12 = sadd.s32 1, %s293_s12  }
  0x1a   : > { %p10_p4 = scmp.ge.s32.totalorder %s13_s12, 4  }
  0x1c   :  { %12 = sbr.rel (!%p10_p4) target bundleno = 1 (0x1), region = 62 }

// kernel: _lambda_.13
= control target key start
LH: loop header
LB: loop body
LE: loop exit
PB: predicated region body
PF: predicated region fallthrough
CT: control target
= control target key end

     0   :  { %s1450_s15 = smov 0   ;;  %s1766_s0 = inlined_call_operand.vmem [shape: f32[2,50,8], index: 0, kind: input, shape index: {}]   ;;  %s1767_s1 = inlined_call_operand.vmem [shape: f32[36,1], index: 1, kind: input, shape index: {}]   ;;  %s1768_s2 = inlined_call_operand.vmem [shape: bf16[9,8,16], index: 2, kind: input, shape index: {}]   ;;  %s1769_s3 = inlined_call_operand.vmem [shape: f32[2,36,16], index: 3, kind: output, shape index: {0}]   ;;  %s1770_s4 = inlined_call_operand.vmem [shape: f32[2,8,16], index: 4, kind: output, shape index: {1}]  }
   0x1 LB: > { %s1202_s16 = sadd.s32 4294967295, %s1422_s15   ;;  %p1206_p0 = scmp.ge.s32.totalorder %s1422_s15, 1  ;;  %s1422_s15 = sphi %s1450_s15, %s15_s15  }
   0x2   : > { %p165_p1 = scmp.lt.s32.totalorder %s1422_s15, 3 }
   0x4   : > { %p166_p2 = pnand %p1206_p0, %p165_p1 }
   0x5   : > { %p195_p3 = scmp.lt.s32.totalorder (!%p166_p2), %s1202_s16, 1 }
   0x6   : > { %169 = sbr.rel (%p166_p2) target bundleno = 316 (0x13c), region = 32 }
   0xb   : > { %v221_v0 = vld [vmem:[%s1768_s2] sm:$0xf]  ;;  %vm235_vm0 = vcmask 1043456   ;;  %v1214_v2 = vld [vmem:[%s1768_s2 + $0x4] sm:$0xf]  ;;  %s1772_s16 = smov (!%p195_p3, %s1202_s16), 1 }
   0xc   : > { %1394 = vmatprep.subr.msk.bf16.mxu1 %vm235_vm0, %v221_v0  ;;  %1393 = vmatprep.subr.msk.bf16.mxu0 %vm235_vm0, %v221_v0  ;;  %v237_v1 = vsel %vm235_vm0, %v221_v0, 0  ;;  %v1219_v3 = vld [vmem:[%s1768_s2 + $0x8] sm:$0xf]  ;;  %v1038_v4 = vld [vmem:[%s1767_s1] sm:$0xff]  ;;  %v1040_v5 = vld [vmem:[%s1767_s1 + $0x10] sm:$0xff]  ;;  %s1403_s27 = smul.u32 56, %s1772_s16 }
   0xd   : > { %1392 = vmatpush3.bf16.msra.mxu1 %v237_v1  ;;  %1302 = vmatpush3.bf16.msra.mxu0 %v237_v1  ;;  %v1424_v6 = vmov 0   ;;  %v1039_v7 = vld [vmem:[%s1767_s1 + $0x8] sm:$0xff]  ;;  %v1041_v8 = vld [vmem:[%s1767_s1 + $0x18] sm:$0xff]  ;;  %vm222_vm1 = vcmask 64512   ;;  %v396_v19 = vsel %vm235_vm0, %v1219_v3, 0  ;;  %v304_v21 = vsel %vm235_vm0, %v1214_v2, 0 }
   0xe   : > { %1395 = vmatprep.subr.msk.bf16.mxu1 %vm235_vm0, %v1214_v2  ;;  %1396 = vmatprep.subr.msk.bf16.mxu0 %vm235_vm0, %v1219_v3  ;;  %s199_s30 = scalar_lea.vmem %s1766_s0, %s1403_s27  ;;  %v1224_v22 = vld [vmem:[%s1768_s2 + $0xc] sm:$0xf]  ;;  %v1229_v23 = vld [vmem:[%s1768_s2 + $0x10] sm:$0xf]  ;;  %v1042_v24 = vld [vmem:[%s1767_s1 + $0x20] sm:$0xf] }
   0xf   : > { %1414 = vset.pattern.permute.xlu0 %v1424_v6  ;;  %1415 = vset.pattern.permute.xlu1 %v1424_v6  ;;  %v210_v9 = vld [vmem:[%s199_s30] sm:$0xff]  ;;  %v211_v10 = vld [vmem:[%s199_s30 + $0x8] sm:$0xff]  ;;  %v212_v14 = vld [vmem:[%s199_s30 + $0x10] sm:$0xff]  ;;  %v584_v25 = vsel %vm235_vm0, %v1229_v23, 0  ;;  %v488_v26 = vsel %vm235_vm0, %v1224_v22, 0  ;;  %vm373_vm2 = vcmask 1046528  }
  0x10   : > { %1045 = vperm.xlu0 %1414, %v1038_v4   ;;  %1055 = vperm.xlu1 %1415, %v1040_v5   ;;  %v214_v11 = vld [vmem:[%s199_s30 + $0x20] sm:$0xff]  ;;  %v1490_v12 = vpack.c.bf16 %v211_v10, %v210_v9  ;;  %v215_v13 = vld [vmem:[%s199_s30 + $0x28] sm:$0xff]  ;;  %v213_v15 = vld [vmem:[%s199_s30 + $0x18] sm:$0xff]  ;;  %vm465_vm3 = vcmask 1045504   ;;  %vm559_vm4 = vcmask 1041408   ;;  %vm655_vm5 = vcmask 1040384  }
  0x11   : > { %v1492_v16 = vpack.c.bf16 %v215_v13, %v214_v11  ;;  %v1494_v17 = vpack.c.bf16 %v213_v15, %v212_v14  ;;  %v216_v18 = vld [vmem:[%s199_s30 + $0x30] sm:$0x3]  ;;  %v1234_v27 = vld [vmem:[%s1768_s2 + $0x14] sm:$0xf]  ;;  %v1239_v28 = vld [vmem:[%s1768_s2 + $0x18] sm:$0xf] }
  0x12   : > { %1303 = vmatprep.mubr.msk.bf16.mxu0 %vm222_vm1, %v1490_v12  ;;  %v1499_v20 = vpack.c.bf16 %v216_v18, %v216_v18  ;;  %v752_v29 = vsel %vm235_vm0, %v1239_v28, 0  ;;  %v680_v30 = vsel %vm235_vm0, %v1234_v27, 0  ;;  %v1244_v31 = vld [vmem:[%s1768_s2 + $0x1c] sm:$0xf]  ;;  %v1249_v32 = vld [vmem:[%s1768_s2 + $0x20] sm:$0xf] }
  0x13   : > { %1307 = vmatprep.mubr.msk.bf16.mxu1 %vm222_vm1, %v1492_v16  ;;  %1304 = vmatmul.mubr.msk.bf16.vlgmr.msra.gmra.mxu0 %vm222_vm1, %v1494_v17  ;;  %v939_v33 = vsel %vm235_vm0, %v1249_v32, 0  ;;  %v843_v34 = vsel %vm235_vm0, %v1244_v31, 0  ;;  %vm914_vm6 = vcmask 1042432   ;;  %vm1031_vm7 = vcmask 130048   ;;  %s1404_s25 = smul.u32 40, %s1772_s16  ;;  %s1209_s29 = sshll.u32 %s1772_s16, 3 }
  0x14   : > { %1050 = vperm.xlu0 %1414, %v1039_v7   ;;  %1060 = vperm.xlu1 %1415, %v1041_v8   ;;  %vm1036_vm8 = vcmask 125952   ;;  %s208_s6 = scalar_lea.vmem %s1770_s4, %s1209_s29 }
  0x15   : > { %1308 = vmatmul.mubr.msk.bf16.vlgmr.msra.gmra.mxu1 %vm222_vm1, %v1499_v20  ;;  %1322 = vmatpush3.bf16.msra.mxu0 %v396_v19  ;;  %s1721_s28 = scalar_lea.vmem %s1769_s3, %s1404_s25 }
  0x16   : > { %1312 = vmatpush3.bf16.msra.mxu1 %v304_v21  ;;  %1313 = vmatprep.mubr.msk.bf16.mxu1 %vm222_vm1, %v1490_v12 }
  0x17   : > { %1323 = vmatprep.mubr.msk.bf16.mxu0 %vm222_vm1, %v1490_v12  ;;  %1397 = vmatprep.subr.msk.bf16.mxu1 %vm235_vm0, %v1224_v22 }
  0x18   : > { %1398 = vmatprep.subr.msk.bf16.mxu0 %vm235_vm0, %v1229_v23  ;;  %1065 = vperm.xlu0 %1414, %v1042_v24  }
  0x1b   : > { %1324 = vmatmul.mubr.msk.bf16.vlgmr.msra.gmra.mxu0 %vm222_vm1, %v1494_v17 }
  0x1c   : > { %1342 = vmatpush3.bf16.msra.mxu0 %v584_v25  ;;  %1327 = vmatprep.mubr.msk.bf16.mxu0 %vm222_vm1, %v1492_v16 }
  0x1d   : > { %1314 = vmatmul.mubr.msk.bf16.vlgmr.msra.gmra.mxu1 %vm222_vm1, %v1494_v17  ;;  %1400 = vmatprep.subr.msk.bf16.mxu0 %vm235_vm0, %v1239_v28 }
  0x1e   : > { %1332 = vmatpush3.bf16.msra.mxu1 %v488_v26  ;;  %1317 = vmatprep.mubr.msk.bf16.mxu1 %vm222_vm1, %v1492_v16 }
  0x1f   : > { %1399 = vmatprep.subr.msk.bf16.mxu1 %vm235_vm0, %v1234_v27 }
  0x23   : > { %1328 = vmatmul.mubr.msk.bf16.gmra.mxu0 %vm222_vm1, %v1499_v20 }
  0x24   : > { %1343 = vmatprep.mubr.msk.bf16.mxu0 %vm222_vm1, %v1490_v12 }
  0x25   : > { %1318 = vmatmul.mubr.msk.bf16.gmra.mxu1 %vm222_vm1, %v1499_v20 }
  0x26   : > { %1333 = vmatprep.mubr.msk.bf16.mxu1 %vm222_vm1, %v1490_v12 }
  0x2b   : > { %1344 = vmatmul.mubr.msk.bf16.vlgmr.msra.gmra.mxu0 %vm222_vm1, %v1494_v17 }
  0x2c   : > { %1362 = vmatpush3.bf16.msra.mxu0 %v752_v29  ;;  %1347 = vmatprep.mubr.msk.bf16.mxu0 %vm222_vm1, %v1492_v16 }
  0x2d   : > { %1334 = vmatmul.mubr.msk.bf16.vlgmr.msra.gmra.mxu1 %vm222_vm1, %v1494_v17  ;;  %1402 = vmatprep.subr.msk.bf16.mxu0 %vm235_vm0, %v1249_v32 }
  0x2e   : > { %1352 = vmatpush3.bf16.msra.mxu1 %v680_v30  ;;  %1337 = vmatprep.mubr.msk.bf16.mxu1 %vm222_vm1, %v1492_v16 }
  0x2f   : > { %1401 = vmatprep.subr.msk.bf16.mxu1 %vm235_vm0, %v1244_v31 }
  0x33   : > { %1348 = vmatmul.mubr.msk.bf16.gmra.mxu0 %vm222_vm1, %v1499_v20 }
  0x34   : > { %1363 = vmatprep.mubr.msk.bf16.mxu0 %vm222_vm1, %v1490_v12 }
  0x35   : > { %1338 = vmatmul.mubr.msk.bf16.gmra.mxu1 %vm222_vm1, %v1499_v20 }
  0x36   : > { %1353 = vmatprep.mubr.msk.bf16.mxu1 %vm222_vm1, %v1490_v12 }
  0x3b   : > { %1364 = vmatmul.mubr.msk.bf16.vlgmr.msra.gmra.mxu0 %vm222_vm1, %v1494_v17 }
  0x3c   : > { %1382 = vmatpush3.bf16.msra.mxu0 %v939_v33  ;;  %1367 = vmatprep.mubr.msk.bf16.mxu0 %vm222_vm1, %v1492_v16 }
  0x3d   : > { %1354 = vmatmul.mubr.msk.bf16.vlgmr.msra.gmra.mxu1 %vm222_vm1, %v1494_v17 }
  0x3e   : > { %1372 = vmatpush3.bf16.msra.mxu1 %v843_v34  ;;  %1357 = vmatprep.mubr.msk.bf16.mxu1 %vm222_vm1, %v1492_v16 }
  0x43   : > { %1368 = vmatmul.mubr.msk.bf16.gmra.mxu0 %vm222_vm1, %v1499_v20 }
  0x44   : > { %1383 = vmatprep.mubr.msk.bf16.mxu0 %vm222_vm1, %v1490_v12 }
  0x45   : > { %1358 = vmatmul.mubr.msk.bf16.gmra.mxu1 %vm222_vm1, %v1499_v20 }
  0x46   : > { %1373 = vmatprep.mubr.msk.bf16.mxu1 %vm222_vm1, %v1490_v12 }
  0x4b   : > { %1384 = vmatmul.mubr.msk.bf16.vlgmr.msra.gmra.mxu0 %vm222_vm1, %v1494_v17 }
  0x4c   : > { %1387 = vmatprep.mubr.msk.bf16.mxu0 %vm222_vm1, %v1492_v16 }
  0x4d   : > { %1374 = vmatmul.mubr.msk.bf16.vlgmr.msra.gmra.mxu1 %vm222_vm1, %v1494_v17 }
  0x4e   : > { %1377 = vmatprep.mubr.msk.bf16.mxu1 %vm222_vm1, %v1492_v16 }
  0x53   : > { %1388 = vmatmul.mubr.msk.bf16.gmra.mxu0 %vm222_vm1, %v1499_v20 }
  0x55   : > { %1378 = vmatmul.mubr.msk.bf16.gmra.mxu1 %vm222_vm1, %v1499_v20 }
  0xd3   : > { %v1605_v35 = vpop.f32.mrf.mxu0 }
  0xd5   : > { %v1309_v36 = vpop.f32.mrf.mxu1  ;;  %v273_v37 = vpop.f32.mrf.mxu0 }
  0xd7   : > { %v1607_v38 = vpop.f32.mrf.mxu1  ;;  %v1609_v39 = vpop.f32.mrf.mxu0 }
  0xd9   : > { %v1310_v40 = vpop.f32.mrf.mxu1  ;;  %v276_v41 = vpop.f32.mrf.mxu0 }
  0xdb   : > { %v292_v42 = vpop.f32.mrf.mxu1  ;;  %v1611_v43 = vpop.f32.mrf.mxu0 }
  0xdc   : > { %v469_v34 = vrot.slane %v1611_v43, 2 }
  0xdd   : > { %v1315_v44 = vpop.f32.mrf.mxu1  ;;  %v1613_v45 = vpop.f32.mrf.mxu0 }
  0xde   : > { %v377_v16 = vrot.slane %v1315_v44, 1  ;;  %v466_v30 = vrot.slane %v1613_v45, 2 }
  0xdf   : > { %v340_v46 = vpop.f32.mrf.mxu1  ;;  %v1615_v47 = vpop.f32.mrf.mxu0 }
  0xe0   : > { %v374_v17 = vrot.slane %v340_v46, 1  ;;  %v471_v36 = vrot.slane %v1615_v47, 2 }
  0xe1   : > { %v1316_v48 = vpop.f32.mrf.mxu1  ;;  %v1617_v49 = vpop.f32.mrf.mxu0 }
  0xe2   : > { %v379_v18 = vrot.slane %v1316_v48, 1  ;;  %v467_v24 = vrot.slane %v1617_v49, 2 }
  0xe3   : > { %v343_v50 = vpop.f32.mrf.mxu1  ;;  %v1329_v51 = vpop.f32.mrf.mxu0 }
  0xe4   : > { %v375_v13 = vrot.slane %v343_v50, 1  ;;  %v380_v27 = vsel %vm373_vm2, %v377_v16, %v379_v18  ;;  %v468_v48 = vsel %vm465_vm3, %v466_v30, %v467_v24 }
  0xe5   : > { %v1319_v52 = vpop.f32.mrf.mxu1  ;;  %v1619_v53 = vpop.f32.mrf.mxu0  ;;  %v390_v46 = vadd.f32 %v1605_v35, %v380_v27 }
  0xe6   : > { %v376_v21 = vsel %vm373_vm2, %v374_v17, %v375_v13  ;;  %v378_v22 = vsel %vm373_vm2, %v375_v13, %v377_v16 }
  0xe7   : > { %v1621_v54 = vpop.f32.mrf.mxu1  ;;  %v1330_v55 = vpop.f32.mrf.mxu0  ;;  %v388_v31 = vadd.f32 %v376_v21, %v273_v37  ;;  %v389_v32 = vadd.f32 %v378_v22, %v276_v41  ;;  %v470_v41 = vsel %vm465_vm3, %v467_v24, %v469_v34 }
  0xe8   : > { %v381_v25 = vrot.slane %v1621_v54, 1  ;;  %v473_v54 = vrot.slane %v1619_v53, 2 }
  0xe9   : > { %v1320_v56 = vpop.f32.mrf.mxu1  ;;  %v451_v57 = vpop.f32.mrf.mxu0  ;;  %v480_v51 = vadd.f32 %v468_v48, %v388_v31  ;;  %v481_v52 = vadd.f32 %v470_v41, %v389_v32 }
  0xea   : > { %v382_v49 = vsel %vm373_vm2, %v379_v18, %v381_v25  ;;  %v392_v35 = vadd.f32 %v381_v25, %v1607_v38  ;;  %v472_v56 = vsel %vm465_vm3, %v469_v34, %v471_v36  ;;  %v474_v13 = vsel %vm465_vm3, %v471_v36, %v473_v54 }
  0xeb   : > { %v359_v58 = vpop.f32.mrf.mxu1  ;;  %v1623_v59 = vpop.f32.mrf.mxu0  ;;  %v391_v57 = vadd.f32 %v1609_v39, %v382_v49 }
  0xec   : > { %v659_v58 = vrot.slane %v1623_v59, 7 }
  0xed   : > { %v1625_v60 = vpop.f32.mrf.mxu1  ;;  %v1627_v61 = vpop.f32.mrf.mxu0 }
  0xee   : > { %v563_v40 = vrot.slane %v1625_v60, 6 }
  0xef   : > { %v524_v62 = vpop.f32.mrf.mxu1  ;;  %v1629_v63 = vpop.f32.mrf.mxu0 }
  0xf0   : > { %v560_v42 = vrot.slane %v524_v62, 6 }
  0xf1   : > { %v1631_v0 = vpop.f32.mrf.mxu1  ;;  %v1633_v1 = vpop.f32.mrf.mxu0 }
  0xf2   : > { %v565_v43 = vrot.slane %v1631_v0, 6  ;;  %v657_v60 = vrot.slane %v1633_v1, 7  ;;  %v656_v0 = vrot.slane %v1627_v61, 7  ;;  %v482_v1 = vadd.f32 %v472_v56, %v390_v46 }
  0xf3   : > { %v527_v2 = vpop.f32.mrf.mxu1  ;;  %v1349_v3 = vpop.f32.mrf.mxu0  ;;  %v484_v61 = vadd.f32 %v473_v54, %v392_v35 }
  0xf4   : > { %v561_v28 = vrot.slane %v527_v2, 6  ;;  %v661_v2 = vrot.slane %v1629_v63, 7  ;;  %v566_v53 = vsel %vm559_vm4, %v563_v40, %v565_v43  ;;  %v660_v16 = vsel %vm655_vm5, %v657_v60, %v659_v58 }
  0xf5   : > { %v1339_v4 = vpop.f32.mrf.mxu1  ;;  %v1635_v5 = vpop.f32.mrf.mxu0 }
  0xf6   : > { %v562_v45 = vsel %vm559_vm4, %v560_v42, %v561_v28  ;;  %v564_v47 = vsel %vm559_vm4, %v561_v28, %v563_v40  ;;  %v662_v21 = vsel %vm655_vm5, %v659_v58, %v661_v2 }
  0xf7   : > { %v1637_v6 = vpop.f32.mrf.mxu1  ;;  %v1350_v7 = vpop.f32.mrf.mxu0  ;;  %v577_v3 = vadd.f32 %v564_v47, %v481_v52  ;;  %v576_v38 = vadd.f32 %v562_v45, %v480_v51 }
  0xf8   : > { %v567_v7 = vrot.slane %v1637_v6, 6  ;;  %v658_v6 = vsel %vm655_vm5, %v656_v0, %v657_v60  ;;  %v1046_v47 = vpop.permute.xlu0 %1045 }
  0xf9   : > { %v1340_v8 = vpop.f32.mrf.mxu1  ;;  %v1639_v9 = vpop.f32.mrf.mxu0  ;;  %v672_v22 = vadd.f32 %v658_v6, %v576_v38 }
  0xfa   : > { %v568_v25 = vsel %vm559_vm4, %v565_v43, %v567_v7 }
  0xfb   : > { %v1641_v10 = vpop.f32.mrf.mxu1  ;;  %v1643_v11 = vpop.f32.mrf.mxu0 }
  0xfc   : > { %v569_v39 = vrot.slane %v1641_v10, 6  ;;  %v822_v17 = vrot.slane %v1643_v11, 4  ;;  %v673_v10 = vadd.f32 %v660_v16, %v577_v3  ;;  %v1051_v16 = vpop.permute.xlu0 %1050 }
  0xfd   : > { %v1645_v12 = vpop.f32.mrf.mxu1  ;;  %v788_v14 = vpop.f32.mrf.mxu0 }
  0xfe   : > { %v570_v27 = vsel %vm559_vm4, %v567_v7, %v569_v39  ;;  %v745_v30 = vadd.f32 %v1645_v12, %v673_v10 }
  0xff   : > { %v716_v15 = vpop.f32.mrf.mxu1  ;;  %v1647_v19 = vpop.f32.mrf.mxu0  ;;  %v580_v41 = vadd.f32 %v570_v27, %v484_v61 }
 0x100   : > { %v824_v59 = vrot.slane %v1647_v19, 4  ;;  %v483_v15 = vadd.f32 %v474_v13, %v391_v57  ;;  %v578_v19 = vadd.f32 %v566_v53, %v482_v1 }
 0x101   : > { %v1649_v20 = vpop.f32.mrf.mxu1  ;;  %v1653_v23 = vpop.f32.mrf.mxu0 }
 0x102   : > { %v821_v63 = vrot.slane %v1653_v23, 4  ;;  %v663_v23 = vrot.slane %v1635_v5, 7  ;;  %v825_v28 = vsel %vm235_vm0, %v822_v17, %v824_v59  ;;  %v674_v46 = vadd.f32 %v662_v21, %v578_v19 }
 0x103   : > { %v1657_v26 = vpop.f32.mrf.mxu1  ;;  %v1369_v29 = vpop.f32.mrf.mxu0  ;;  %v836_v48 = vadd.f32 %v825_v28, %v745_v30  ;;  %v579_v49 = vadd.f32 %v568_v25, %v483_v15 }
 0x104   : > { %v665_v29 = vrot.slane %v1639_v9, 7  ;;  %v744_v31 = vadd.f32 %v1657_v26, %v672_v22  ;;  %v823_v32 = vsel %vm235_vm0, %v821_v63, %v822_v17  ;;  %v664_v51 = vsel %vm655_vm5, %v661_v2, %v663_v23  ;;  %v1056_v25 = vpop.permute.xlu1 %1055 }
 0x105   : > { %v1359_v33 = vpop.f32.mrf.mxu1  ;;  %v1664_v44 = vpop.f32.mrf.mxu0  ;;  %v746_v0 = vadd.f32 %v1649_v20, %v674_v46  ;;  %v675_v7 = vadd.f32 %v664_v51, %v579_v49 }
 0x106   : > { %v826_v34 = vrot.slane %v1664_v44, 4  ;;  %v835_v44 = vadd.f32 %v823_v32, %v744_v31  ;;  %v666_v52 = vsel %vm655_vm5, %v663_v23, %v665_v29 }
 0x107   : > { %v1669_v37 = vpop.f32.mrf.mxu1  ;;  %v1370_v50 = vpop.f32.mrf.mxu0  ;;  %v676_v2 = vadd.f32 %v666_v52, %v580_v41 }
 0x108   : > { %v747_v20 = vadd.f32 %v1669_v37, %v675_v7 }
 0x109   : > { %v1360_v55 = vpop.f32.mrf.mxu1  ;;  %v1681_v62 = vpop.f32.mrf.mxu0 }
 0x10a   : > { %v827_v55 = vsel %vm235_vm0, %v824_v59, %v826_v34  ;;  %v828_v56 = vrot.slane %v1681_v62, 4 }
 0x10b   : > { %v1685_v4 = vpop.f32.mrf.mxu1  ;;  %v1691_v8 = vpop.f32.mrf.mxu0  ;;  %v837_v1 = vadd.f32 %v827_v55, %v746_v0 }
 0x10c   : > { %v1011_v12 = vrot.slane %v1691_v8, 6  ;;  %v748_v13 = vadd.f32 %v1685_v4, %v676_v2 }
 0x10d   : > { %v1375_v14 = vpop.f32.mrf.mxu1  ;;  %v975_v18 = vpop.f32.mrf.mxu0 }
 0x10e   : > { %v916_v36 = vrot.slane %v1375_v14, 5  ;;  %v829_v14 = vsel %vm235_vm0, %v826_v34, %v828_v56  ;;  %v839_v27 = vadd.f32 %v828_v56, %v748_v13 }
 0x10f   : > { %v879_v24 = vpop.f32.mrf.mxu1  ;;  %v1703_v11 = vpop.f32.mrf.mxu0  ;;  %v838_v23 = vadd.f32 %v829_v14, %v747_v20 }
 0x110   : > { %v1013_v5 = vrot.slane %v1703_v11, 6 }
 0x111   : > { %v1376_v33 = vpop.f32.mrf.mxu1  ;;  %v977_v42 = vpop.f32.mrf.mxu0 }
 0x112   : > { %v918_v40 = vrot.slane %v1376_v33, 5  ;;  %v1010_v45 = vrot.slane %v977_v42, 6  ;;  %v1014_v57 = vsel %vm559_vm4, %v1011_v12, %v1013_v5 }
 0x113   : > { %v881_v9 = vpop.f32.mrf.mxu1  ;;  %v1389_v50 = vpop.f32.mrf.mxu0 }
 0x114   : > { %v919_v26 = vsel %vm914_vm6, %v916_v36, %v918_v40  ;;  %v915_v43 = vrot.slane %v881_v9, 5  ;;  %v1012_v62 = vsel %vm559_vm4, %v1010_v45, %v1011_v12  ;;  %v1019_v30 = vrot.slane %v1389_v50, 6  ;;  %v1061_v50 = vpop.permute.xlu1 %1060 }
 0x115   : > { %v932_v35 = vadd.f32 %v919_v26, %v836_v48  ;;  %v1379_v54 = vpop.f32.mrf.mxu1  ;;  %v990_v60 = vpop.f32.mrf.mxu0 }
 0x116   : > { %v917_v58 = vsel %vm914_vm6, %v915_v43, %v916_v36  ;;  %v1015_v59 = vrot.slane %v990_v60, 6  ;;  %v924_v21 = vrot.slane %v1379_v54, 5 }
 0x117   : > { %v1027_v3 = vadd.f32 %v1014_v57, %v932_v35  ;;  %v931_v38 = vadd.f32 %v917_v58, %v835_v44  ;;  %v894_v53 = vpop.f32.mrf.mxu1  ;;  %v1390_v8 = vpop.f32.mrf.mxu0 }
 0x118   : > { %v920_v39 = vrot.slane %v894_v53, 5  ;;  %v1016_v22 = vsel %vm559_vm4, %v1013_v5, %v1015_v59 }
 0x119   : > { %1033 = vst.msk [vmem:[%s1721_s28 + $0x8] sm:$0xff] %vm1031_vm7, %v1027_v3  ;;  %v1026_v61 = vadd.f32 %v1012_v62, %v931_v38  ;;  %v1380_v63 = vpop.f32.mrf.mxu1  ;;  %v993_v17 = vpop.f32.mrf.mxu0  ;;  %v1089_v19 = vmul.f32 %v1027_v3, %v1027_v3  ;;  %v1069_v11 = vmul.f32 %v1051_v16, %v1027_v3 }
 0x11a   : > { %v921_v15 = vsel %vm914_vm6, %v918_v40, %v920_v39  ;;  %v1017_v37 = vrot.slane %v993_v17, 6 }
 0x11b   : > { %1032 = vst.msk [vmem:[%s1721_s28] sm:$0xff] %vm1031_vm7, %v1026_v61  ;;  %v1068_v6 = vmul.f32 %v1046_v47, %v1026_v61  ;;  %v1088_v18 = vmul.f32 %v1026_v61, %v1026_v61  ;;  %v933_v10 = vadd.f32 %v921_v15, %v837_v1  ;;  %v897_v4 = vpop.f32.mrf.mxu1  ;;  %v1094_v34 = vmul.f32 %v1089_v19, %v1051_v16 }
 0x11c   : > { %v922_v24 = vrot.slane %v897_v4, 5  ;;  %v1018_v5 = vsel %vm559_vm4, %v1015_v59, %v1017_v37  ;;  %v1020_v42 = vsel %vm559_vm4, %v1017_v37, %v1019_v30  ;;  %v1074_v49 = vsel %vm1031_vm7, %v1069_v11, 0.0 }
 0x11d   : > { %v1028_v28 = vadd.f32 %v1016_v22, %v933_v10  ;;  %v1093_v29 = vmul.f32 %v1088_v18, %v1046_v47  ;;  %v1073_v33 = vsel %vm1031_vm7, %v1068_v6, 0.0  ;;  %v1066_v47 = vpop.permute.xlu0 %1065  ;;  %v1099_v35 = vsel %vm1031_vm7, %v1094_v34, 0.0 }
 0x11e   : > { %v923_v31 = vsel %vm914_vm6, %v920_v39, %v922_v24  ;;  %v925_v32 = vsel %vm914_vm6, %v922_v24, %v924_v21  ;;  %v1075_v26 = vadd.f32 %v1074_v49, %v1073_v33 }
 0x11f   : > { %1034 = vst.msk [vmem:[%s1721_s28 + $0x10] sm:$0xff] %vm1031_vm7, %v1028_v28  ;;  %v934_v36 = vadd.f32 %v923_v31, %v838_v23  ;;  %v935_v40 = vadd.f32 %v925_v32, %v839_v27  ;;  %v1070_v46 = vmul.f32 %v1056_v25, %v1028_v28  ;;  %v1090_v48 = vmul.f32 %v1028_v28, %v1028_v28 }
 0x120   : > { %v1098_v12 = vsel %vm1031_vm7, %v1093_v29, 0.0 }
 0x121   : > { %v1030_v41 = vadd.f32 %v1020_v42, %v935_v40  ;;  %v1029_v9 = vadd.f32 %v1018_v5, %v934_v36  ;;  %v1076_v43 = vsel %vm1031_vm7, %v1070_v46, 0.0  ;;  %v1095_v45 = vmul.f32 %v1090_v48, %v1056_v25 }
 0x122   : > { %v1077_v54 = vadd.f32 %v1076_v43, %v1075_v26  ;;  %v1100_v57 = vadd.f32 %v1099_v35, %v1098_v12 }
 0x123   : > { %1037 = vst.msk [vmem:[%s1721_s28 + $0x20] sm:$0xf] %vm1036_vm8, %v1030_v41  ;;  %v1072_v44 = vmul.f32 %v1066_v47, %v1030_v41  ;;  %v1092_v51 = vmul.f32 %v1030_v41, %v1030_v41  ;;  %v1071_v52 = vmul.f32 %v1061_v50, %v1029_v9  ;;  %v1101_v55 = vsel %vm1031_vm7, %v1095_v45, 0.0 }
 0x124   : > { %1035 = vst.msk [vmem:[%s1721_s28 + $0x18] sm:$0xff] %vm1031_vm7, %v1029_v9  ;;  %v1091_v56 = vmul.f32 %v1029_v9, %v1029_v9  ;;  %v1102_v3 = vadd.f32 %v1101_v55, %v1100_v57 }
 0x125   : > { %v1078_v58 = vsel %vm1031_vm7, %v1071_v52, 0.0  ;;  %v1097_v60 = vmul.f32 %v1092_v51, %v1066_v47  ;;  %v1080_v38 = vsel %vm1036_vm8, %v1072_v44, 0.0 }
 0x126   : > { %v1079_v0 = vadd.f32 %v1078_v58, %v1077_v54  ;;  %v1096_v2 = vmul.f32 %v1091_v56, %v1061_v50 }
 0x127   : > { %v1105_v39 = vsel %vm1036_vm8, %v1097_v60, 0.0 }
 0x128   : > { %v1081_v53 = vadd.f32 %v1080_v38, %v1079_v0  ;;  %v1103_v7 = vsel %vm1031_vm7, %v1096_v2, 0.0 }
 0x129   : > { %v1104_v62 = vadd.f32 %v1103_v7, %v1102_v3 }
 0x12a   : > { %v1082_v59 = vrot.slane %v1081_v53, 4 }
 0x12b   : > { %v1106_v8 = vadd.f32 %v1105_v39, %v1104_v62 }
 0x12c   : > { %v1083_v1 = vadd.f32 %v1082_v59, %v1081_v53 }
 0x12d   : > { %v1107_v13 = vrot.slane %v1106_v8, 4 }
 0x12e   : > { %v1084_v61 = vrot.slane %v1083_v1, 2 }
 0x12f   : > { %v1108_v63 = vadd.f32 %v1107_v13, %v1106_v8 }
 0x130   : > { %v1085_v20 = vadd.f32 %v1084_v61, %v1083_v1 }
 0x131   : > { %v1109_v14 = vrot.slane %v1108_v63, 2 }
 0x132   : > { %v1086_v15 = vrot.slane %v1085_v20, 1 }
 0x133   : > { %v1110_v16 = vadd.f32 %v1109_v14, %v1108_v63 }
 0x134   : > { %v1087_v6 = vadd.f32 %v1086_v15, %v1085_v20 }
 0x135   : > { %v1111_v17 = vrot.slane %v1110_v16, 1 }
 0x137   : > { %v1112_v18 = vadd.f32 %v1111_v17, %v1110_v16 }
 0x139   : > { %v1113_v10 = vsel %vm655_vm5, %v1087_v6, %v1112_v18 }
 0x13a   : > { %v1114_v19 = vsel %vm559_vm4, %v1113_v10, 0.0 }
 0x13b   : > { %1115 = vst.msk [vmem:[%s208_s6] sm:$0xff] %vm1031_vm7, %v1114_v19 }
 0x13c PF: > { %s15_s15 = sadd.s32 1, %s1422_s15  }
 0x13d   : > { %p12_p4 = scmp.ge.s32.totalorder %s15_s15, 4  }
 0x13f   :  { %14 = sbr.rel (!%p12_p4) target bundleno = 1 (0x1), region = 82 }

// kernel: _lambda_.14
= control target key start
LH: loop header
LB: loop body
LE: loop exit
PB: predicated region body
PF: predicated region fallthrough
CT: control target
= control target key end

     0   :  { %s1645_s21 = smov 0   ;;  %s1915_s0 = inlined_call_operand.vmem [shape: f32[2,36,16], index: 0, kind: input, shape index: {}]   ;;  %s1916_s1 = inlined_call_operand.vmem [shape: f32[1,16], index: 1, kind: input, shape index: {}]   ;;  %s1917_s2 = inlined_call_operand.vmem [shape: f32[1,16], index: 2, kind: input, shape index: {}]   ;;  %s1918_s3 = inlined_call_operand.vmem [shape: f32[36,1], index: 3, kind: input, shape index: {}]   ;;  %s1919_s4 = inlined_call_operand.vmem [shape: bf16[9,16,16], index: 4, kind: input, shape index: {}]   ;;  %s1920_s5 = inlined_call_operand.vmem [shape: f32[2,36,16], index: 5, kind: output, shape index: {0}]   ;;  %s1921_s6 = inlined_call_operand.vmem [shape: f32[2,8,16], index: 6, kind: output, shape index: {1}]  }
   0x1 LB: > { %s1368_s22 = sadd.s32 4294967295, %s1606_s21   ;;  %p1372_p0 = scmp.ge.s32.totalorder %s1606_s21, 1  ;;  %s1606_s21 = sphi %s1645_s21, %s17_s21  }
   0x2   : > { %p215_p1 = scmp.lt.s32.totalorder %s1606_s21, 3 }
   0x4   : > { %p216_p2 = pnand %p1372_p0, %p215_p1 }
   0x5   : > { %p249_p3 = scmp.lt.s32.totalorder (!%p216_p2), %s1368_s22, 1 }
   0x6   : > { %219 = sbr.rel (%p216_p2) target bundleno = 449 (0x1c1), region = 40 }
   0xb   : > { %v301_v0 = vld [vmem:[%s1918_s3 + $0x18] sm:$0xff]  ;;  %v298_v1 = vld [vmem:[%s1918_s3] sm:$0xff]  ;;  %v1608_v2 = vmov 0   ;;  %vm333_vm0 = vcmask 129024   ;;  %v299_v4 = vld [vmem:[%s1918_s3 + $0x8] sm:$0xff]  ;;  %v1609_v5 = vmov 0.0  }
   0xc   : > { %1590 = vset.pattern.permute.xlu1 %v1608_v2  ;;  %1589 = vset.pattern.permute.xlu0 %v1608_v2  ;;  %v302_v3 = vld [vmem:[%s1918_s3 + $0x20] sm:$0xf]  ;;  %334 = vst.msk [vmem:[#allocation2] sm:$0x7f] %vm333_vm0, %v1609_v5  ;;  %335 = vst.msk [vmem:[#allocation2 + $0x2b] sm:$0x7f] %vm333_vm0, %v1609_v5 }
   0xd   : > { %320 = vperm.xlu0 %1589, %v301_v0   ;;  %305 = vperm.xlu1 %1590, %v298_v1   ;;  %v300_v6 = vld [vmem:[%s1918_s3 + $0x10] sm:$0xff]  ;;  %v1591_v7 = vld [vmem:[%s1919_s4] sm:$0xff]   ;;  %v1677_v9 = vld [vmem:[%s1919_s4 + $0x8] sm:$0xff]   ;;  %s1923_s22 = smov (!%p249_p3, %s1368_s22), 1  ;;  %vm336_vm1 = vcmask 130048   ;;  %vm341_vm2 = vcmask 125952  }
   0xe   : > { %1576 = vmatprep.subr.bf16.mxu1 %v1591_v7  ;;  %1486 = vmatprep.subr.bf16.mxu0 %v1591_v7  ;;  %v1208_v8 = vld [vmem:[%s1918_s3 + $0x20] sm:$0xf]  ;;  %v1682_v10 = vld [vmem:[%s1919_s4 + $0x10] sm:$0xff]   ;;  %s1578_s17 = smul.u32 40, %s1923_s22  ;;  %v1594_v51 = vld [vmem:[%s1919_s4 + $0x18] sm:$0xff]   ;;  %vm512_vm3 = vcmask 1046528  }
   0xf   : > { %1577 = vmatpush3.bf16.msra.mxu1 %v1591_v7  ;;  %1487 = vmatpush3.bf16.msra.mxu0 %v1591_v7  ;;  %v1376_v12 = vld [vmem:[%s1916_s1] ss:$0 sm:$0xff]  ;;  %v1596_v56 = vld [vmem:[%s1919_s4 + $0x28] sm:$0xff]   ;;  %v1597_v57 = vld [vmem:[%s1919_s4 + $0x30] sm:$0xff]   ;;  %vm608_vm4 = vcmask 1045504   ;;  %vm706_vm5 = vcmask 1041408  }
  0x10   : > { %1496 = vmatprep.subr.bf16.mxu1 %v1677_v9  ;;  %1506 = vmatprep.subr.bf16.mxu0 %v1682_v10  ;;  %s253_s20 = scalar_lea.vmem %s1915_s0, %s1578_s17  ;;  %v1377_v16 = vld [vmem:[%s1917_s2] ss:$0 sm:$0xff]  ;;  %v1598_v58 = vld [vmem:[%s1919_s4 + $0x38] sm:$0xff]   ;;  %vm806_vm6 = vcmask 1040384   ;;  %vm980_vm7 = vcmask 1043456   ;;  %vm1078_vm8 = vcmask 1042432   ;;  %s1871_s18 = scalar_lea.vmem %s1920_s5, %s1578_s17 }
  0x11   : > { %325 = vperm.xlu0 %1589, %v302_v3   ;;  %310 = vperm.xlu1 %1590, %v299_v4   ;;  %v267_v11 = vld [vmem:[%s253_s20 + $0x18] sm:$0xff]  ;;  %v264_v13 = vld [vmem:[%s253_s20] sm:$0xff]  ;;  %v265_v18 = vld [vmem:[%s253_s20 + $0x8] sm:$0xff]  ;;  %s1375_s17 = sshll.u32 %s1923_s22, 3 }
  0x12   : > { %v279_v14 = vmul.f32 %v1376_v12, %v267_v11  ;;  %v276_v15 = vmul.f32 %v1376_v12, %v264_v13  ;;  %v268_v17 = vld [vmem:[%s253_s20 + $0x20] sm:$0xf]  ;;  %v277_v22 = vmul.f32 %v1376_v12, %v265_v18  ;;  %v266_v23 = vld [vmem:[%s253_s20 + $0x10] sm:$0xff]  ;;  %s262_s23 = scalar_lea.vmem %s1921_s6, %s1375_s17 }
  0x13   : > { %v280_v21 = vmul.f32 %v1376_v12, %v268_v17  ;;  %v278_v24 = vmul.f32 %v1376_v12, %v266_v23  ;;  %v349_v43 = vld [vmem:[#allocation2 + $0x30] sm:$0x3]  ;;  %v1595_v55 = vld [vmem:[%s1919_s4 + $0x20] sm:$0xff]  }
  0x14   : > { %v291_v19 = vadd.f32 %v1377_v16, %v279_v14  ;;  %v288_v20 = vadd.f32 %v1377_v16, %v276_v15  ;;  %v289_v28 = vadd.f32 %v1377_v16, %v277_v22  ;;  %v353_v48 = vpack.c.bf16 %v349_v43, %v349_v43  ;;  %v1599_v59 = vld [vmem:[%s1919_s4 + $0x40] sm:$0xff]  }
  0x15   : > { %315 = vperm.xlu0 %1589, %v300_v6   ;;  %1211 = vperm.xlu1 %1590, %v298_v1   ;;  %v292_v27 = vadd.f32 %v1377_v16, %v280_v21  ;;  %v290_v31 = vadd.f32 %v1377_v16, %v278_v24 }
  0x16   : > { %v296_v25 = vmax.f32 %v291_v19, 0.0  ;;  %v293_v26 = vmax.f32 %v288_v20, 0.0  ;;  %v294_v35 = vmax.f32 %v289_v28, 0.0 }
  0x17   : > { %v297_v34 = vmax.f32 %v292_v27, 0.0  ;;  %v295_v40 = vmax.f32 %v290_v31, 0.0 }
  0x19   : > { %1216 = vperm.xlu0 %1589, %v299_v4   ;;  %1221 = vperm.xlu1 %1590, %v300_v6  }
  0x1d   : > { %1226 = vperm.xlu0 %1589, %v301_v0   ;;  %1231 = vperm.xlu1 %1590, %v1208_v8  }
  0x88   : > { %v321_v29 = vpop.permute.xlu0 %320  ;;  %v306_v30 = vpop.permute.xlu1 %305 }
  0x89   : > { %v331_v32 = vmul.f32 %v321_v29, %v296_v25  ;;  %v328_v33 = vmul.f32 %v306_v30, %v293_v26 }
  0x8b   : > { %340 = vst.msk [vmem:[#allocation2 + $0x1f] sm:$0xff] %vm336_vm1, %v331_v32  ;;  %337 = vst.msk [vmem:[#allocation2 + $0x7] sm:$0xff] %vm336_vm1, %v328_v33 }
  0x8c   : > { %v326_v36 = vpop.permute.xlu0 %325  ;;  %v311_v37 = vpop.permute.xlu1 %310 }
  0x8d   : > { %v332_v38 = vmul.f32 %v326_v36, %v297_v34  ;;  %v329_v39 = vmul.f32 %v311_v37, %v294_v35 }
  0x8f   : > { %342 = vst.msk [vmem:[#allocation2 + $0x27] sm:$0xf] %vm341_vm2, %v332_v38 }
  0x90   : > { %338 = vst.msk [vmem:[#allocation2 + $0xf] sm:$0xff] %vm336_vm1, %v329_v39  ;;  %v316_v41 = vpop.permute.xlu0 %315 }
  0x91   : > { %v330_v42 = vmul.f32 %v316_v41, %v295_v40 }
  0x92   : > { %v343_v44 = vld [vmem:[#allocation2] sm:$0xff] }
  0x93   : > { %339 = vst.msk [vmem:[#allocation2 + $0x17] sm:$0xff] %vm336_vm1, %v330_v42 }
  0x96   : > { %v347_v45 = vld [vmem:[#allocation2 + $0x20] sm:$0xff]  ;;  %v348_v46 = vld [vmem:[#allocation2 + $0x28] sm:$0xff] }
  0x97   : > { %v344_v47 = vld [vmem:[#allocation2 + $0x8] sm:$0xff]  ;;  %v352_v49 = vpack.c.bf16 %v348_v46, %v347_v45 }
  0x98   : > { %v350_v50 = vpack.c.bf16 %v344_v47, %v343_v44 }
  0x99   : > { %1492 = vmatprep.mubr.msk.bf16.mxu1 %vm336_vm1, %v352_v49 }
  0x9a   : > { %1488 = vmatprep.mubr.msk.bf16.mxu0 %vm336_vm1, %v350_v50  ;;  %v345_v52 = vld [vmem:[#allocation2 + $0x10] sm:$0xff]  ;;  %v346_v53 = vld [vmem:[#allocation2 + $0x18] sm:$0xff]  ;;  %1493 = vmatmul.mubr.msk.bf16.vlgmr.msra.gmra.mxu1 %vm336_vm1, %v353_v48 }
  0x9b   : > { %v351_v54 = vpack.c.bf16 %v346_v53, %v345_v52  ;;  %1497 = vmatpush3.bf16.msra.mxu1 %v1677_v9  ;;  %1498 = vmatprep.mubr.msk.bf16.mxu1 %vm336_vm1, %v350_v50 }
  0x9c   : > { %1516 = vmatprep.subr.bf16.mxu1 %v1594_v51 }
  0x9d   : > { %1489 = vmatmul.mubr.msk.bf16.vlgmr.msra.gmra.mxu0 %vm336_vm1, %v351_v54 }
  0x9e   : > { %1507 = vmatpush3.bf16.msra.mxu0 %v1682_v10  ;;  %1508 = vmatprep.mubr.msk.bf16.mxu0 %vm336_vm1, %v350_v50 }
  0x9f   : > { %1526 = vmatprep.subr.bf16.mxu0 %v1595_v55 }
  0xa2   : > { %1499 = vmatmul.mubr.msk.bf16.vlgmr.msra.gmra.mxu1 %vm336_vm1, %v351_v54 }
  0xa3   : > { %1502 = vmatprep.mubr.msk.bf16.mxu1 %vm336_vm1, %v352_v49  ;;  %1517 = vmatpush3.bf16.msra.mxu1 %v1594_v51 }
  0xa4   : > { %1536 = vmatprep.subr.bf16.mxu1 %v1596_v56 }
  0xa5   : > { %1509 = vmatmul.mubr.msk.bf16.vlgmr.msra.gmra.mxu0 %vm336_vm1, %v351_v54 }
  0xa6   : > { %1527 = vmatpush3.bf16.msra.mxu0 %v1595_v55  ;;  %1512 = vmatprep.mubr.msk.bf16.mxu0 %vm336_vm1, %v352_v49 }
  0xa7   : > { %1546 = vmatprep.subr.bf16.mxu0 %v1597_v57 }
  0xaa   : > { %1503 = vmatmul.mubr.msk.bf16.gmra.mxu1 %vm336_vm1, %v353_v48 }
  0xab   : > { %1518 = vmatprep.mubr.msk.bf16.mxu1 %vm336_vm1, %v350_v50 }
  0xad   : > { %1513 = vmatmul.mubr.msk.bf16.gmra.mxu0 %vm336_vm1, %v353_v48 }
  0xae   : > { %1528 = vmatprep.mubr.msk.bf16.mxu0 %vm336_vm1, %v350_v50 }
  0xb2   : > { %1519 = vmatmul.mubr.msk.bf16.vlgmr.msra.gmra.mxu1 %vm336_vm1, %v351_v54 }
  0xb3   : > { %1522 = vmatprep.mubr.msk.bf16.mxu1 %vm336_vm1, %v352_v49  ;;  %1537 = vmatpush3.bf16.msra.mxu1 %v1596_v56 }
  0xb4   : > { %1556 = vmatprep.subr.bf16.mxu1 %v1598_v58 }
  0xb5   : > { %1529 = vmatmul.mubr.msk.bf16.vlgmr.msra.gmra.mxu0 %vm336_vm1, %v351_v54 }
  0xb6   : > { %1547 = vmatpush3.bf16.msra.mxu0 %v1597_v57  ;;  %1532 = vmatprep.mubr.msk.bf16.mxu0 %vm336_vm1, %v352_v49 }
  0xb7   : > { %1566 = vmatprep.subr.bf16.mxu0 %v1599_v59 }
  0xba   : > { %1523 = vmatmul.mubr.msk.bf16.gmra.mxu1 %vm336_vm1, %v353_v48 }
  0xbb   : > { %1538 = vmatprep.mubr.msk.bf16.mxu1 %vm336_vm1, %v350_v50 }
  0xbd   : > { %1533 = vmatmul.mubr.msk.bf16.gmra.mxu0 %vm336_vm1, %v353_v48 }
  0xbe   : > { %1548 = vmatprep.mubr.msk.bf16.mxu0 %vm336_vm1, %v350_v50 }
  0xc2   : > { %1539 = vmatmul.mubr.msk.bf16.vlgmr.msra.gmra.mxu1 %vm336_vm1, %v351_v54 }
  0xc3   : > { %1542 = vmatprep.mubr.msk.bf16.mxu1 %vm336_vm1, %v352_v49  ;;  %1557 = vmatpush3.bf16.msra.mxu1 %v1598_v58 }
  0xc5   : > { %1549 = vmatmul.mubr.msk.bf16.vlgmr.msra.gmra.mxu0 %vm336_vm1, %v351_v54 }
  0xc6   : > { %1567 = vmatpush3.bf16.msra.mxu0 %v1599_v59  ;;  %1552 = vmatprep.mubr.msk.bf16.mxu0 %vm336_vm1, %v352_v49 }
  0xca   : > { %1543 = vmatmul.mubr.msk.bf16.gmra.mxu1 %vm336_vm1, %v353_v48 }
  0xcb   : > { %1558 = vmatprep.mubr.msk.bf16.mxu1 %vm336_vm1, %v350_v50 }
  0xcd   : > { %1553 = vmatmul.mubr.msk.bf16.gmra.mxu0 %vm336_vm1, %v353_v48 }
  0xce   : > { %1568 = vmatprep.mubr.msk.bf16.mxu0 %vm336_vm1, %v350_v50 }
  0xd2   : > { %1559 = vmatmul.mubr.msk.bf16.vlgmr.msra.gmra.mxu1 %vm336_vm1, %v351_v54 }
  0xd3   : > { %1562 = vmatprep.mubr.msk.bf16.mxu1 %vm336_vm1, %v352_v49 }
  0xd5   : > { %1569 = vmatmul.mubr.msk.bf16.vlgmr.msra.gmra.mxu0 %vm336_vm1, %v351_v54 }
  0xd6   : > { %1572 = vmatprep.mubr.msk.bf16.mxu0 %vm336_vm1, %v352_v49 }
  0xda   : > { %1563 = vmatmul.mubr.msk.bf16.gmra.mxu1 %vm336_vm1, %v353_v48 }
  0xdd   : > { %1573 = vmatmul.mubr.msk.bf16.gmra.mxu0 %vm336_vm1, %v353_v48 }
 0x15a   : > { %v1494_v60 = vpop.f32.mrf.mxu1 }
 0x15c   : > { %v1765_v61 = vpop.f32.mrf.mxu1 }
 0x15d   : > { %v1767_v62 = vpop.f32.mrf.mxu0 }
 0x15e   : > { %v1495_v63 = vpop.f32.mrf.mxu1 }
 0x15f   : > { %v408_v0 = vpop.f32.mrf.mxu0 }
 0x160   : > { %v427_v1 = vpop.f32.mrf.mxu1 }
 0x161   : > { %v1769_v2 = vpop.f32.mrf.mxu0 }
 0x162   : > { %v1500_v3 = vpop.f32.mrf.mxu1 }
 0x163   : > { %v411_v4 = vpop.f32.mrf.mxu0  ;;  %v516_v39 = vrot.slane %v1500_v3, 1 }
 0x164   : > { %v479_v5 = vpop.f32.mrf.mxu1 }
 0x165   : > { %v1771_v6 = vpop.f32.mrf.mxu0  ;;  %v513_v40 = vrot.slane %v479_v5, 1 }
 0x166   : > { %v1501_v7 = vpop.f32.mrf.mxu1  ;;  %v612_v50 = vrot.slane %v1771_v6, 2 }
 0x167   : > { %v575_v8 = vpop.f32.mrf.mxu0  ;;  %v518_v43 = vrot.slane %v1501_v7, 1 }
 0x168   : > { %v482_v9 = vpop.f32.mrf.mxu1  ;;  %v609_v51 = vrot.slane %v575_v8, 2 }
 0x169   : > { %v1773_v10 = vpop.f32.mrf.mxu0  ;;  %v514_v36 = vrot.slane %v482_v9, 1  ;;  %v519_v58 = vsel %vm512_vm3, %v516_v39, %v518_v43 }
 0x16a   : > { %v1504_v11 = vpop.f32.mrf.mxu1  ;;  %v614_v56 = vrot.slane %v1773_v10, 2  ;;  %v529_v10 = vadd.f32 %v1767_v62, %v519_v58 }
 0x16b   : > { %v578_v12 = vpop.f32.mrf.mxu0  ;;  %v515_v44 = vsel %vm512_vm3, %v513_v40, %v514_v36  ;;  %v517_v45 = vsel %vm512_vm3, %v514_v36, %v516_v39 }
 0x16c   : > { %v1775_v13 = vpop.f32.mrf.mxu1  ;;  %v610_v46 = vrot.slane %v578_v12, 2  ;;  %v527_v54 = vadd.f32 %v515_v44, %v408_v0  ;;  %v528_v55 = vadd.f32 %v517_v45, %v411_v4  ;;  %v615_v11 = vsel %vm608_vm4, %v612_v50, %v614_v56 }
 0x16d   : > { %v1514_v14 = vpop.f32.mrf.mxu0  ;;  %v520_v48 = vrot.slane %v1775_v13, 1 }
 0x16e   : > { %v1505_v15 = vpop.f32.mrf.mxu1  ;;  %v611_v59 = vsel %vm608_vm4, %v609_v51, %v610_v46  ;;  %v613_v60 = vsel %vm608_vm4, %v610_v46, %v612_v50 }
 0x16f   : > { %v1777_v16 = vpop.f32.mrf.mxu0  ;;  %v521_v3 = vsel %vm512_vm3, %v518_v43, %v520_v48  ;;  %v623_v12 = vadd.f32 %v611_v59, %v527_v54  ;;  %v624_v13 = vadd.f32 %v613_v60, %v528_v55 }
 0x170   : > { %v498_v17 = vpop.f32.mrf.mxu1  ;;  %v616_v5 = vrot.slane %v1777_v16, 2  ;;  %v530_v15 = vadd.f32 %v1769_v2, %v521_v3  ;;  %v531_v16 = vadd.f32 %v520_v48, %v1765_v61 }
 0x171   : > { %v1515_v18 = vpop.f32.mrf.mxu0 }
 0x172   : > { %v1779_v19 = vpop.f32.mrf.mxu1 }
 0x173   : > { %v594_v20 = vpop.f32.mrf.mxu0  ;;  %v710_v63 = vrot.slane %v1779_v19, 6 }
 0x174   : > { %v1781_v21 = vpop.f32.mrf.mxu1  ;;  %v617_v20 = vsel %vm608_vm4, %v614_v56, %v616_v5 }
 0x175   : > { %v1783_v22 = vpop.f32.mrf.mxu0  ;;  %v707_v6 = vrot.slane %v1781_v21, 6 }
 0x176   : > { %v1785_v23 = vpop.f32.mrf.mxu1  ;;  %v810_v17 = vrot.slane %v1783_v22, 7 }
 0x177   : > { %v1787_v24 = vpop.f32.mrf.mxu0  ;;  %v712_v0 = vrot.slane %v1785_v23, 6 }
 0x178   : > { %v674_v25 = vpop.f32.mrf.mxu1  ;;  %v807_v62 = vrot.slane %v1787_v24, 7 }
 0x179   : > { %v1789_v26 = vpop.f32.mrf.mxu0  ;;  %v708_v52 = vrot.slane %v674_v25, 6  ;;  %v713_v21 = vsel %vm706_vm5, %v710_v63, %v712_v0 }
 0x17a   : > { %v1524_v27 = vpop.f32.mrf.mxu1 }
 0x17b   : > { %v1791_v28 = vpop.f32.mrf.mxu0  ;;  %v711_v7 = vsel %vm706_vm5, %v708_v52, %v710_v63  ;;  %v709_v18 = vsel %vm706_vm5, %v707_v6, %v708_v52  ;;  %v812_v27 = vrot.slane %v1789_v26, 7  ;;  %v626_v26 = vadd.f32 %v617_v20, %v530_v15  ;;  %v1212_v20 = vpop.permute.xlu1 %1211 }
 0x17c   : > { %v1793_v29 = vpop.f32.mrf.mxu1  ;;  %v808_v8 = vrot.slane %v1791_v28, 7  ;;  %v724_v23 = vadd.f32 %v711_v7, %v624_v13 }
 0x17d   : > { %v1534_v30 = vpop.f32.mrf.mxu0  ;;  %v714_v2 = vrot.slane %v1793_v29, 6  ;;  %v627_v29 = vadd.f32 %v616_v5, %v531_v16 }
 0x17e   : > { %v1525_v31 = vpop.f32.mrf.mxu1  ;;  %v811_v61 = vsel %vm806_vm6, %v808_v8, %v810_v17  ;;  %v625_v30 = vadd.f32 %v615_v11, %v529_v10 }
 0x17f   : > { %v1795_v32 = vpop.f32.mrf.mxu0  ;;  %v824_v43 = vadd.f32 %v811_v61, %v724_v23  ;;  %v715_v46 = vsel %vm706_vm5, %v712_v0, %v714_v2 }
 0x180   : > { %v1797_v33 = vpop.f32.mrf.mxu1  ;;  %v725_v44 = vadd.f32 %v713_v21, %v625_v30  ;;  %v814_v50 = vrot.slane %v1795_v32, 7 }
 0x181   : > { %v1535_v34 = vpop.f32.mrf.mxu0  ;;  %v716_v31 = vrot.slane %v1797_v33, 6 }
 0x182   : > { %v1799_v35 = vpop.f32.mrf.mxu1  ;;  %v723_v34 = vadd.f32 %v709_v18, %v623_v12 }
 0x183   : > { %v1801_v37 = vpop.f32.mrf.mxu0  ;;  %v717_v51 = vsel %vm706_vm5, %v714_v2, %v716_v31  ;;  %v900_v52 = vadd.f32 %v1799_v35, %v824_v43 }
 0x184   : > { %v871_v38 = vpop.f32.mrf.mxu1  ;;  %v816_v33 = vrot.slane %v1801_v37, 7  ;;  %v727_v32 = vadd.f32 %v717_v51, %v627_v29  ;;  %v1217_v29 = vpop.permute.xlu0 %1216 }
 0x185   : > { %v1803_v41 = vpop.f32.mrf.mxu0  ;;  %v809_v38 = vsel %vm806_vm6, %v807_v62, %v808_v8 }
 0x186   : > { %v1805_v42 = vpop.f32.mrf.mxu1  ;;  %v982_v24 = vrot.slane %v1803_v41, 4  ;;  %v817_v5 = vsel %vm806_vm6, %v814_v50, %v816_v33 }
 0x187   : > { %v947_v47 = vpop.f32.mrf.mxu0  ;;  %v827_v21 = vadd.f32 %v817_v5, %v727_v32 }
 0x188   : > { %v1810_v49 = vpop.f32.mrf.mxu1  ;;  %v813_v47 = vsel %vm806_vm6, %v810_v17, %v812_v27 }
 0x189   : > { %v1813_v53 = vpop.f32.mrf.mxu0  ;;  %v825_v59 = vadd.f32 %v813_v47, %v725_v44 }
 0x18a   : > { %v1544_v57 = vpop.f32.mrf.mxu1  ;;  %v984_v22 = vrot.slane %v1813_v53, 4  ;;  %v823_v53 = vadd.f32 %v809_v38, %v723_v34 }
 0x18b   : > { %v949_v1 = vpop.f32.mrf.mxu0  ;;  %v901_v12 = vadd.f32 %v1805_v42, %v825_v59 }
 0x18c   : > { %v1823_v4 = vpop.f32.mrf.mxu1  ;;  %v981_v39 = vrot.slane %v949_v1, 4  ;;  %v985_v48 = vsel %vm980_vm7, %v982_v24, %v984_v22  ;;  %v899_v60 = vadd.f32 %v1810_v49, %v823_v53  ;;  %v726_v1 = vadd.f32 %v715_v46, %v626_v26 }
 0x18d   : > { %v1554_v9 = vpop.f32.mrf.mxu0  ;;  %v996_v63 = vadd.f32 %v985_v48, %v900_v52  ;;  %v815_v49 = vsel %vm806_vm6, %v812_v27, %v814_v50  ;;  %v1222_v50 = vpop.permute.xlu1 %1221 }
 0x18e   : > { %v1545_v14 = vpop.f32.mrf.mxu1  ;;  %v983_v55 = vsel %vm980_vm7, %v981_v39, %v982_v24 }
 0x18f   : > { %v1834_v19 = vpop.f32.mrf.mxu0  ;;  %v995_v7 = vadd.f32 %v983_v55, %v899_v60 }
 0x190   : > { %v1839_v25 = vpop.f32.mrf.mxu1  ;;  %v986_v56 = vrot.slane %v1834_v19, 4 }
 0x191   : > { %v1555_v28 = vpop.f32.mrf.mxu0  ;;  %v903_v30 = vadd.f32 %v1839_v25, %v827_v21 }
 0x192   : > { %v1560_v36 = vpop.f32.mrf.mxu1  ;;  %v987_v13 = vsel %vm980_vm7, %v984_v22, %v986_v56  ;;  %v826_v28 = vadd.f32 %v815_v49, %v726_v1 }
 0x193   : > { %v1848_v40 = vpop.f32.mrf.mxu0  ;;  %v1080_v57 = vrot.slane %v1560_v36, 5  ;;  %v997_v2 = vadd.f32 %v987_v13, %v901_v12 }
 0x194   : > { %v1043_v45 = vpop.f32.mrf.mxu1  ;;  %v988_v16 = vrot.slane %v1848_v40, 4  ;;  %v902_v43 = vadd.f32 %v1823_v4, %v826_v28 }
 0x195   : > { %v1570_v41 = vpop.f32.mrf.mxu0 }
 0x196   : > { %v1561_v54 = vpop.f32.mrf.mxu1  ;;  %v1179_v8 = vrot.slane %v1570_v41, 6  ;;  %v989_v24 = vsel %vm980_vm7, %v986_v56, %v988_v16  ;;  %v999_v44 = vadd.f32 %v988_v16, %v903_v30 }
 0x197   : > { %v1082_v58 = vrot.slane %v1561_v54, 5  ;;  %v1143_v37 = vpop.f32.mrf.mxu0  ;;  %v998_v51 = vadd.f32 %v989_v24, %v902_v43 }
 0x198   : > { %v1045_v3 = vpop.f32.mrf.mxu1 }
 0x199   : > { %v1083_v35 = vsel %vm1078_vm8, %v1080_v57, %v1082_v58  ;;  %v1079_v0 = vrot.slane %v1045_v3, 5  ;;  %v1571_v6 = vpop.f32.mrf.mxu0 }
 0x19a   : > { %v1096_v9 = vadd.f32 %v1083_v35, %v996_v63  ;;  %v1181_v10 = vrot.slane %v1571_v6, 6  ;;  %v1564_v11 = vpop.f32.mrf.mxu1 }
 0x19b   : > { %v1081_v14 = vsel %vm1078_vm8, %v1079_v0, %v1080_v57  ;;  %v1145_v15 = vpop.f32.mrf.mxu0  ;;  %v1088_v47 = vrot.slane %v1564_v11, 5  ;;  %v1232_v11 = vpop.permute.xlu1 %1231 }
 0x19c   : > { %v1095_v17 = vadd.f32 %v1081_v14, %v995_v7  ;;  %v1182_v18 = vsel %vm706_vm5, %v1179_v8, %v1181_v10  ;;  %v1178_v42 = vrot.slane %v1145_v15, 6  ;;  %v1058_v19 = vpop.f32.mrf.mxu1 }
 0x19d   : > { %v1195_v62 = vadd.f32 %v1182_v18, %v1096_v9  ;;  %v1084_v23 = vrot.slane %v1058_v19, 5  ;;  %v1574_v27 = vpop.f32.mrf.mxu0 }
 0x19e   : > { %v1180_v61 = vsel %vm706_vm5, %v1178_v42, %v1179_v8  ;;  %v1565_v22 = vpop.f32.mrf.mxu1  ;;  %v1187_v53 = vrot.slane %v1574_v27, 6  ;;  %v1227_v8 = vpop.permute.xlu0 %1226 }
 0x19f   : > { %1200 = vst.msk [vmem:[%s1871_s18 + $0x8] sm:$0xff] %vm336_vm1, %v1195_v62  ;;  %v1194_v31 = vadd.f32 %v1180_v61, %v1095_v17  ;;  %v1085_v34 = vsel %vm1078_vm8, %v1082_v58, %v1084_v23  ;;  %v1158_v36 = vpop.f32.mrf.mxu0  ;;  %v1255_v38 = vmul.f32 %v1195_v62, %v1195_v62  ;;  %v1235_v33 = vmul.f32 %v1217_v29, %v1195_v62 }
 0x1a0   : > { %v1097_v39 = vadd.f32 %v1085_v34, %v997_v2  ;;  %v1183_v40 = vrot.slane %v1158_v36, 6  ;;  %v1061_v26 = vpop.f32.mrf.mxu1 }
 0x1a1   : > { %1199 = vst.msk [vmem:[%s1871_s18] sm:$0xff] %vm336_vm1, %v1194_v31  ;;  %v1234_v45 = vmul.f32 %v1212_v20, %v1194_v31  ;;  %v1254_v25 = vmul.f32 %v1194_v31, %v1194_v31  ;;  %v1575_v46 = vpop.f32.mrf.mxu0  ;;  %v1086_v41 = vrot.slane %v1061_v26, 5  ;;  %v1260_v56 = vmul.f32 %v1255_v38, %v1217_v29 }
 0x1a2   : > { %v1184_v48 = vsel %vm706_vm5, %v1181_v10, %v1183_v40  ;;  %v1240_v1 = vsel %vm336_vm1, %v1235_v33, 0.0 }
 0x1a3   : > { %v1259_v52 = vmul.f32 %v1254_v25, %v1212_v20  ;;  %v1196_v54 = vadd.f32 %v1184_v48, %v1097_v39  ;;  %v1161_v55 = vpop.f32.mrf.mxu0  ;;  %v1087_v4 = vsel %vm1078_vm8, %v1084_v23, %v1086_v41  ;;  %v1089_v57 = vsel %vm1078_vm8, %v1086_v41, %v1088_v47 }
 0x1a4   : > { %v1185_v58 = vrot.slane %v1161_v55, 6  ;;  %v1239_v37 = vsel %vm336_vm1, %v1234_v45, 0.0  ;;  %v1098_v63 = vadd.f32 %v1087_v4, %v998_v51  ;;  %v1099_v3 = vadd.f32 %v1089_v57, %v999_v44 }
 0x1a5   : > { %1201 = vst.msk [vmem:[%s1871_s18 + $0x10] sm:$0xff] %vm336_vm1, %v1196_v54  ;;  %v1236_v59 = vmul.f32 %v1222_v50, %v1196_v54  ;;  %v1256_v60 = vmul.f32 %v1196_v54, %v1196_v54  ;;  %v1264_v35 = vsel %vm336_vm1, %v1259_v52, 0.0  ;;  %v1241_v9 = vadd.f32 %v1240_v1, %v1239_v37 }
 0x1a6   : > { %v1186_v32 = vsel %vm706_vm5, %v1183_v40, %v1185_v58  ;;  %v1188_v5 = vsel %vm706_vm5, %v1185_v58, %v1187_v53  ;;  %v1265_v12 = vsel %vm336_vm1, %v1260_v56, 0.0 }
 0x1a7   : > { %v1242_v0 = vsel %vm336_vm1, %v1236_v59, 0.0  ;;  %v1261_v6 = vmul.f32 %v1256_v60, %v1222_v50  ;;  %v1197_v7 = vadd.f32 %v1186_v32, %v1098_v63  ;;  %v1198_v10 = vadd.f32 %v1188_v5, %v1099_v3 }
 0x1a8   : > { %v1266_v15 = vadd.f32 %v1265_v12, %v1264_v35  ;;  %v1243_v16 = vadd.f32 %v1242_v0, %v1241_v9 }
 0x1a9   : > { %v1267_v49 = vsel %vm336_vm1, %v1261_v6, 0.0  ;;  %1202 = vst.msk [vmem:[%s1871_s18 + $0x18] sm:$0xff] %vm336_vm1, %v1197_v7  ;;  %v1237_v13 = vmul.f32 %v1227_v8, %v1197_v7  ;;  %v1257_v14 = vmul.f32 %v1197_v7, %v1197_v7  ;;  %v1238_v17 = vmul.f32 %v1232_v11, %v1198_v10 }
 0x1aa   : > { %1203 = vst.msk [vmem:[%s1871_s18 + $0x20] sm:$0xf] %vm341_vm2, %v1198_v10  ;;  %v1258_v18 = vmul.f32 %v1198_v10, %v1198_v10  ;;  %v1268_v20 = vadd.f32 %v1267_v49, %v1266_v15 }
 0x1ab   : > { %v1244_v42 = vsel %vm336_vm1, %v1237_v13, 0.0  ;;  %v1262_v19 = vmul.f32 %v1257_v14, %v1227_v8  ;;  %v1246_v23 = vsel %vm341_vm2, %v1238_v17, 0.0 }
 0x1ac   : > { %v1245_v21 = vadd.f32 %v1244_v42, %v1243_v16  ;;  %v1263_v62 = vmul.f32 %v1258_v18, %v1232_v11 }
 0x1ad   : > { %v1269_v27 = vsel %vm336_vm1, %v1262_v19, 0.0 }
 0x1ae   : > { %v1247_v2 = vadd.f32 %v1246_v23, %v1245_v21  ;;  %v1270_v61 = vadd.f32 %v1269_v27, %v1268_v20  ;;  %v1271_v22 = vsel %vm341_vm2, %v1263_v62, 0.0 }
 0x1b0   : > { %v1248_v28 = vrot.slane %v1247_v2, 4  ;;  %v1272_v30 = vadd.f32 %v1271_v22, %v1270_v61 }
 0x1b2   : > { %v1249_v31 = vadd.f32 %v1248_v28, %v1247_v2  ;;  %v1273_v34 = vrot.slane %v1272_v30, 4 }
 0x1b4   : > { %v1250_v36 = vrot.slane %v1249_v31, 2  ;;  %v1274_v24 = vadd.f32 %v1273_v34, %v1272_v30 }
 0x1b6   : > { %v1251_v38 = vadd.f32 %v1250_v36, %v1249_v31  ;;  %v1275_v39 = vrot.slane %v1274_v24, 2 }
 0x1b8   : > { %v1252_v40 = vrot.slane %v1251_v38, 1  ;;  %v1276_v26 = vadd.f32 %v1275_v39, %v1274_v24 }
 0x1ba   : > { %v1277_v29 = vrot.slane %v1276_v26, 1  ;;  %v1253_v43 = vadd.f32 %v1252_v40, %v1251_v38 }
 0x1bc   : > { %v1278_v44 = vadd.f32 %v1277_v29, %v1276_v26 }
 0x1be   : > { %v1279_v45 = vsel %vm806_vm6, %v1253_v43, %v1278_v44 }
 0x1bf   : > { %v1280_v25 = vsel %vm706_vm5, %v1279_v45, 0.0 }
 0x1c0   : > { %1281 = vst.msk [vmem:[%s262_s23] sm:$0xff] %vm336_vm1, %v1280_v25 }
 0x1c1 PF: > { %s17_s21 = sadd.s32 1, %s1606_s21  }
 0x1c2   : > { %p14_p4 = scmp.ge.s32.totalorder %s17_s21, 4  }
 0x1c4   :  { %16 = sbr.rel (!%p14_p4) target bundleno = 1 (0x1), region = 90 }

// kernel: _lambda_.19
= control target key start
LH: loop header
LB: loop body
LE: loop exit
PB: predicated region body
PF: predicated region fallthrough
CT: control target
= control target key end

     0   :  { %s1344_s15 = smov 0   ;;  %s1597_s0 = inlined_call_operand.vmem [shape: f32[2,64,8], index: 0, kind: input, shape index: {}]   ;;  %s1598_s1 = inlined_call_operand.vmem [shape: f32[8,2], index: 1, kind: input, shape index: {}]   ;;  %s1599_s2 = inlined_call_operand.vmem [shape: f32[1,2], index: 2, kind: input, shape index: {}]   ;;  %s1600_s3 = inlined_call_operand.vmem [shape: f32[256,64], index: 3, kind: input, shape index: {}]   ;;  %s1601_s4 = inlined_call_operand.vmem [shape: f32[2,256,2], index: 4, kind: output, shape index: {}]  }
   0x1 LB: > { %s978_s16 = sadd.s32 4294967295, %s1317_s15   ;;  %p982_p0 = scmp.ge.s32.totalorder %s1317_s15, 1  ;;  %s1317_s15 = sphi %s1344_s15, %s14_s15  }
   0x2   : > { %p162_p1 = scmp.lt.s32.totalorder %s1317_s15, 3 }
   0x4   : > { %p163_p2 = pnand %p982_p0, %p162_p1 }
   0x5   : > { %p188_p3 = scmp.lt.s32.totalorder (!%p163_p2), %s978_s16, 1 }
   0x6   : > { %166 = sbr.rel (%p163_p2) target bundleno = 516 (0x204), region = 36 }
   0xb   : > { %v206_v0 = vld [vmem:[%s1598_s1] sm:$0xff]  ;;  %s1603_s16 = smov (!%p188_p3, %s978_s16), 1  ;;  %vm214_vm0 = vcmask 64512   ;;  %v358_v9 = vld [vmem:[%s1600_s3 + $0x70] sm:$0xff]  ;;  %vm376_vm1 = vcmask 523264   ;;  %v359_v28 = vld [vmem:[%s1600_s3 + $0x78] sm:$0xff] }
   0xc   : > { %1081 = vmatprep.subr.mxu0 %v206_v0  ;;  %s1030_s19 = sshll.u32 %s1603_s16, 6  ;;  %1132 = vmatprep.mubr.msk.f32.mxu1 %vm376_vm1, %v358_v9  ;;  %v344_v10 = vld [vmem:[%s1600_s3] sm:$0xff]  ;;  %v345_v29 = vld [vmem:[%s1600_s3 + $0x8] sm:$0xff]  ;;  %v346_v31 = vld [vmem:[%s1600_s3 + $0x10] sm:$0xff]  ;;  %s1031_s17 = sshll.u32 %s1603_s16, 8  ;;  %vm890_vm2 = vcmask 15360  }
   0xd   : > { %1082 = vmatpush3.msra.mxu0 %v206_v0  ;;  %s192_s22 = scalar_lea.vmem %s1597_s0, %s1030_s19  ;;  %v987_v17 = vld [vmem:[%s1599_s2] ss:$0 sm:$0xff]  ;;  %v361_v32 = vld [vmem:[%s1600_s3 + $0x88] sm:$0xff]  ;;  %v347_v33 = vld [vmem:[%s1600_s3 + $0x18] sm:$0xff]  ;;  %s1522_s16 = scalar_lea.vmem %s1601_s4, %s1031_s17 }
   0xe   : > { %v198_v1 = vld [vmem:[%s192_s22] sm:$0xff]  ;;  %v199_v2 = vld [vmem:[%s192_s22 + $0x8] sm:$0xff]  ;;  %v200_v3 = vld [vmem:[%s192_s22 + $0x10] sm:$0xff] }
   0xf   : > { %1083 = vmatprep.mubr.msk.f32.mxu0 %vm214_vm0, %v198_v1  ;;  %v201_v4 = vld [vmem:[%s192_s22 + $0x18] sm:$0xff]  ;;  %v202_v5 = vld [vmem:[%s192_s22 + $0x20] sm:$0xff]  ;;  %v203_v6 = vld [vmem:[%s192_s22 + $0x28] sm:$0xff] }
  0x10   : > { %1084 = vmatmul.mubr.msk.f32.vlgmr.msra.gmra.mxu0 %vm214_vm0, %v199_v2  ;;  %v204_v7 = vld [vmem:[%s192_s22 + $0x30] sm:$0xff]  ;;  %v205_v8 = vld [vmem:[%s192_s22 + $0x38] sm:$0xff]  ;;  %v360_v30 = vld [vmem:[%s1600_s3 + $0x80] sm:$0xff] }
  0x11   : > { %1086 = vmatprep.mubr.msk.f32.mxu0 %vm214_vm0, %v200_v3  ;;  %v362_v34 = vld [vmem:[%s1600_s3 + $0x90] sm:$0xff]  ;;  %v348_v35 = vld [vmem:[%s1600_s3 + $0x20] sm:$0xff]  ;;  %v363_v36 = vld [vmem:[%s1600_s3 + $0x98] sm:$0xff] }
  0x12   : > { %v349_v37 = vld [vmem:[%s1600_s3 + $0x28] sm:$0xff]  ;;  %v364_v38 = vld [vmem:[%s1600_s3 + $0xa0] sm:$0xff]  ;;  %v350_v39 = vld [vmem:[%s1600_s3 + $0x30] sm:$0xff] }
  0x13   : > { %v365_v40 = vld [vmem:[%s1600_s3 + $0xa8] sm:$0xff]  ;;  %v351_v41 = vld [vmem:[%s1600_s3 + $0x38] sm:$0xff]  ;;  %v366_v42 = vld [vmem:[%s1600_s3 + $0xb0] sm:$0xff] }
  0x14   : > { %1087 = vmatmul.mubr.msk.f32.gmra.mxu0 %vm214_vm0, %v201_v4  ;;  %v352_v43 = vld [vmem:[%s1600_s3 + $0x40] sm:$0xff]  ;;  %v367_v44 = vld [vmem:[%s1600_s3 + $0xb8] sm:$0xff]  ;;  %v353_v45 = vld [vmem:[%s1600_s3 + $0x48] sm:$0xff] }
  0x15   : > { %1089 = vmatprep.mubr.msk.f32.mxu0 %vm214_vm0, %v202_v5  ;;  %v368_v46 = vld [vmem:[%s1600_s3 + $0xc0] sm:$0xff]  ;;  %v354_v47 = vld [vmem:[%s1600_s3 + $0x50] sm:$0xff]  ;;  %v369_v48 = vld [vmem:[%s1600_s3 + $0xc8] sm:$0xff] }
  0x16   : > { %v355_v49 = vld [vmem:[%s1600_s3 + $0x58] sm:$0xff]  ;;  %v370_v50 = vld [vmem:[%s1600_s3 + $0xd0] sm:$0xff]  ;;  %v356_v51 = vld [vmem:[%s1600_s3 + $0x60] sm:$0xff] }
  0x17   : > { %v371_v52 = vld [vmem:[%s1600_s3 + $0xd8] sm:$0xff]  ;;  %v357_v53 = vld [vmem:[%s1600_s3 + $0x68] sm:$0xff]  ;;  %v372_v54 = vld [vmem:[%s1600_s3 + $0xe0] sm:$0xff] }
  0x18   : > { %1090 = vmatmul.mubr.msk.f32.gmra.mxu0 %vm214_vm0, %v203_v6  ;;  %v373_v55 = vld [vmem:[%s1600_s3 + $0xe8] sm:$0xff]  ;;  %v374_v56 = vld [vmem:[%s1600_s3 + $0xf0] sm:$0xff]  ;;  %v375_v57 = vld [vmem:[%s1600_s3 + $0xf8] sm:$0xff] }
  0x19   : > { %1092 = vmatprep.mubr.msk.f32.mxu0 %vm214_vm0, %v204_v7 }
  0x1c   : > { %1093 = vmatmul.mubr.msk.f32.gmra.mxu0 %vm214_vm0, %v205_v8 }
  0x1d   : > { %1111 = vmatprep.mubr.msk.f32.mxu0 %vm376_vm1, %v344_v10 }
  0xd0   : > { %v1085_v11 = vpop.f32.mrf.mxu0 }
  0xd1   : > { %v311_v26 = vadd.f32 %v1085_v11, %v987_v17 }
  0xd2   : > { %v305_v12 = vpop.f32.mrf.mxu0 }
  0xd3   : > { %v306_v27 = vadd.f32 %v987_v17, %v305_v12 }
  0xd4   : > { %v1088_v13 = vpop.f32.mrf.mxu0 }
  0xd5   : > { %v321_v24 = vadd.f32 %v1088_v13, %v987_v17 }
  0xd6   : > { %v315_v14 = vpop.f32.mrf.mxu0 }
  0xd7   : > { %v316_v25 = vadd.f32 %v987_v17, %v315_v14 }
  0xd8   : > { %v1091_v15 = vpop.f32.mrf.mxu0 }
  0xd9   : > { %v331_v22 = vadd.f32 %v1091_v15, %v987_v17 }
  0xda   : > { %v325_v16 = vpop.f32.mrf.mxu0 }
  0xdb   : > { %v326_v23 = vadd.f32 %v987_v17, %v325_v16 }
  0xdc   : > { %v1094_v18 = vpop.f32.mrf.mxu0 }
  0xdd   : > { %v341_v19 = vadd.f32 %v1094_v18, %v987_v17 }
  0xde   : > { %v335_v20 = vpop.f32.mrf.mxu0 }
  0xdf   : > { %v336_v21 = vadd.f32 %v987_v17, %v335_v20  ;;  %1095 = vmatprep.subr.mxu0 %v341_v19  ;;  %1159 = vmatprep.subr.mxu1 %v341_v19 }
  0xe0   : > { %1096 = vmatpush3.msra.mxu0 %v341_v19  ;;  %1167 = vmatpush3.msra.mxu1 %v341_v19 }
  0xe1   : > { %1097 = vmatprep.subr.mxu0 %v336_v21  ;;  %1160 = vmatprep.subr.mxu1 %v336_v21 }
  0xe2   : > { %1098 = vmatpush3.msra.mxu0 %v336_v21  ;;  %1168 = vmatpush3.msra.mxu1 %v336_v21 }
  0xe3   : > { %1099 = vmatprep.subr.mxu0 %v331_v22  ;;  %1161 = vmatprep.subr.mxu1 %v331_v22 }
  0xe4   : > { %1100 = vmatpush3.msra.mxu0 %v331_v22  ;;  %1169 = vmatpush3.msra.mxu1 %v331_v22 }
  0xe5   : > { %1101 = vmatprep.subr.mxu0 %v326_v23  ;;  %1162 = vmatprep.subr.mxu1 %v326_v23 }
  0xe6   : > { %1102 = vmatpush3.msra.mxu0 %v326_v23  ;;  %1170 = vmatpush3.msra.mxu1 %v326_v23 }
  0xe7   : > { %1103 = vmatprep.subr.mxu0 %v321_v24  ;;  %1163 = vmatprep.subr.mxu1 %v321_v24 }
  0xe8   : > { %1104 = vmatpush3.msra.mxu0 %v321_v24  ;;  %1171 = vmatpush3.msra.mxu1 %v321_v24 }
  0xe9   : > { %1105 = vmatprep.subr.mxu0 %v316_v25  ;;  %1164 = vmatprep.subr.mxu1 %v316_v25 }
  0xea   : > { %1106 = vmatpush3.msra.mxu0 %v316_v25  ;;  %1172 = vmatpush3.msra.mxu1 %v316_v25 }
  0xeb   : > { %1107 = vmatprep.subr.mxu0 %v311_v26  ;;  %1165 = vmatprep.subr.mxu1 %v311_v26 }
  0xec   : > { %1108 = vmatpush3.msra.mxu0 %v311_v26  ;;  %1173 = vmatpush3.msra.mxu1 %v311_v26 }
  0xed   : > { %1109 = vmatprep.subr.mxu0 %v306_v27  ;;  %1166 = vmatprep.subr.mxu1 %v306_v27 }
  0xee   : > { %1110 = vmatpush3.msra.mxu0 %v306_v27  ;;  %1174 = vmatpush3.msra.mxu1 %v306_v27 }
  0xef   : > { %1133 = vmatmul.mubr.msk.f32.vlgmr.msra.gmra.mxu1 %vm376_vm1, %v359_v28  ;;  %1112 = vmatmul.mubr.msk.f32.vlgmr.msra.gmra.mxu0 %vm376_vm1, %v345_v29 }
  0xf0   : > { %1135 = vmatprep.mubr.msk.f32.mxu1 %vm376_vm1, %v360_v30  ;;  %1114 = vmatprep.mubr.msk.f32.mxu0 %vm376_vm1, %v346_v31 }
  0xf3   : > { %1136 = vmatmul.mubr.msk.f32.gmra.mxu1 %vm376_vm1, %v361_v32  ;;  %1115 = vmatmul.mubr.msk.f32.gmra.mxu0 %vm376_vm1, %v347_v33 }
  0xf4   : > { %1138 = vmatprep.mubr.msk.f32.mxu1 %vm376_vm1, %v362_v34  ;;  %1117 = vmatprep.mubr.msk.f32.mxu0 %vm376_vm1, %v348_v35 }
  0xf7   : > { %1139 = vmatmul.mubr.msk.f32.gmra.mxu1 %vm376_vm1, %v363_v36  ;;  %1118 = vmatmul.mubr.msk.f32.gmra.mxu0 %vm376_vm1, %v349_v37 }
  0xf8   : > { %1141 = vmatprep.mubr.msk.f32.mxu1 %vm376_vm1, %v364_v38  ;;  %1120 = vmatprep.mubr.msk.f32.mxu0 %vm376_vm1, %v350_v39 }
  0xfb   : > { %1142 = vmatmul.mubr.msk.f32.gmra.mxu1 %vm376_vm1, %v365_v40  ;;  %1121 = vmatmul.mubr.msk.f32.gmra.mxu0 %vm376_vm1, %v351_v41 }
  0xfc   : > { %1144 = vmatprep.mubr.msk.f32.mxu1 %vm376_vm1, %v366_v42  ;;  %1123 = vmatprep.mubr.msk.f32.mxu0 %vm376_vm1, %v352_v43 }
  0xff   : > { %1145 = vmatmul.mubr.msk.f32.gmra.mxu1 %vm376_vm1, %v367_v44  ;;  %1124 = vmatmul.mubr.msk.f32.gmra.mxu0 %vm376_vm1, %v353_v45 }
 0x100   : > { %1147 = vmatprep.mubr.msk.f32.mxu1 %vm376_vm1, %v368_v46  ;;  %1126 = vmatprep.mubr.msk.f32.mxu0 %vm376_vm1, %v354_v47 }
 0x103   : > { %1148 = vmatmul.mubr.msk.f32.gmra.mxu1 %vm376_vm1, %v369_v48  ;;  %1127 = vmatmul.mubr.msk.f32.gmra.mxu0 %vm376_vm1, %v355_v49 }
 0x104   : > { %1150 = vmatprep.mubr.msk.f32.mxu1 %vm376_vm1, %v370_v50  ;;  %1129 = vmatprep.mubr.msk.f32.mxu0 %vm376_vm1, %v356_v51 }
 0x107   : > { %1151 = vmatmul.mubr.msk.f32.gmra.mxu1 %vm376_vm1, %v371_v52  ;;  %1130 = vmatmul.mubr.msk.f32.gmra.mxu0 %vm376_vm1, %v357_v53 }
 0x108   : > { %1153 = vmatprep.mubr.msk.f32.mxu1 %vm376_vm1, %v372_v54 }
 0x10b   : > { %1154 = vmatmul.mubr.msk.f32.gmra.mxu1 %vm376_vm1, %v373_v55 }
 0x10c   : > { %1156 = vmatprep.mubr.msk.f32.mxu1 %vm376_vm1, %v374_v56 }
 0x10f   : > { %1157 = vmatmul.mubr.msk.f32.gmra.mxu1 %vm376_vm1, %v375_v57 }
 0x1af   : > { %v1134_v58 = vpop.f32.mrf.mxu1  ;;  %v1113_v59 = vpop.f32.mrf.mxu0 }
 0x1b0   : > { %v713_v60 = vsub.f32 0.0, %v1134_v58  ;;  %v699_v61 = vsub.f32 0.0, %v1113_v59 }
 0x1b1   : > { %v609_v62 = vpop.f32.mrf.mxu1  ;;  %v539_v63 = vpop.f32.mrf.mxu0 }
 0x1b2   : > { %v760_v0 = vmul.f32 1.442695, %v713_v60  ;;  %v712_v1 = vsub.f32 0.0, %v609_v62  ;;  %v732_v2 = vmul.f32 1.442695, %v699_v61  ;;  %v698_v3 = vsub.f32 0.0, %v539_v63 }
 0x1b3   : > { %v1137_v4 = vpop.f32.mrf.mxu1  ;;  %v1116_v5 = vpop.f32.mrf.mxu0 }
 0x1b4   : > { %1183 = vpow2.f32 %v760_v0  ;;  %v758_v6 = vmul.f32 1.442695, %v712_v1  ;;  %v715_v7 = vsub.f32 0.0, %v1137_v4  ;;  %v730_v8 = vmul.f32 1.442695, %v698_v3 }
 0x1b5   : > { %1185 = vpow2.f32 %v732_v2  ;;  %v619_v9 = vpop.f32.mrf.mxu1  ;;  %v701_v10 = vsub.f32 0.0, %v1116_v5  ;;  %v549_v11 = vpop.f32.mrf.mxu0 }
 0x1b6   : > { %1187 = vpow2.f32 %v758_v6  ;;  %v764_v12 = vmul.f32 1.442695, %v715_v7  ;;  %v714_v13 = vsub.f32 0.0, %v619_v9  ;;  %v700_v14 = vsub.f32 0.0, %v549_v11 }
 0x1b7   : > { %1189 = vpow2.f32 %v730_v8  ;;  %v1140_v15 = vpop.f32.mrf.mxu1  ;;  %v736_v16 = vmul.f32 1.442695, %v701_v10  ;;  %v1119_v17 = vpop.f32.mrf.mxu0 }
 0x1b8   : > { %1191 = vpow2.f32 %v764_v12  ;;  %v762_v18 = vmul.f32 1.442695, %v714_v13  ;;  %v717_v19 = vsub.f32 0.0, %v1140_v15  ;;  %v734_v20 = vmul.f32 1.442695, %v700_v14 }
 0x1b9   : > { %1193 = vpow2.f32 %v736_v16  ;;  %v629_v21 = vpop.f32.mrf.mxu1  ;;  %v703_v22 = vsub.f32 0.0, %v1119_v17  ;;  %v559_v23 = vpop.f32.mrf.mxu0 }
 0x1ba   : > { %1195 = vpow2.f32 %v762_v18  ;;  %v768_v24 = vmul.f32 1.442695, %v717_v19  ;;  %v716_v25 = vsub.f32 0.0, %v629_v21  ;;  %v702_v26 = vsub.f32 0.0, %v559_v23 }
 0x1bb   : > { %1197 = vpow2.f32 %v734_v20  ;;  %v1143_v27 = vpop.f32.mrf.mxu1  ;;  %v740_v28 = vmul.f32 1.442695, %v703_v22  ;;  %v1122_v29 = vpop.f32.mrf.mxu0 }
 0x1bc   : > { %1199 = vpow2.f32 %v768_v24  ;;  %v766_v30 = vmul.f32 1.442695, %v716_v25  ;;  %v719_v31 = vsub.f32 0.0, %v1143_v27  ;;  %v738_v32 = vmul.f32 1.442695, %v702_v26 }
 0x1bd   : > { %1201 = vpow2.f32 %v740_v28  ;;  %v639_v33 = vpop.f32.mrf.mxu1  ;;  %v705_v34 = vsub.f32 0.0, %v1122_v29  ;;  %v569_v35 = vpop.f32.mrf.mxu0 }
 0x1be   : > { %1203 = vpow2.f32 %v766_v30  ;;  %v772_v36 = vmul.f32 1.442695, %v719_v31  ;;  %v718_v37 = vsub.f32 0.0, %v639_v33  ;;  %v704_v38 = vsub.f32 0.0, %v569_v35 }
 0x1bf   : > { %1205 = vpow2.f32 %v738_v32  ;;  %v1146_v39 = vpop.f32.mrf.mxu1  ;;  %v744_v40 = vmul.f32 1.442695, %v705_v34  ;;  %v1504_v50 = vpop.f32.mrf.mxu0 }
 0x1c0   : > { %1207 = vpow2.f32 %v772_v36  ;;  %v770_v41 = vmul.f32 1.442695, %v718_v37  ;;  %v742_v42 = vmul.f32 1.442695, %v704_v38  ;;  %v721_v2 = vsub.f32 0.0, %v1146_v39 }
 0x1c1   : > { %v1184_v43 = vpop.eup %1183  ;;  %1209 = vpow2.f32 %v744_v40  ;;  %v1500_v44 = vpop.f32.mrf.mxu1  ;;  %v707_v21 = vsub.f32 0.0, %v1504_v50 }
 0x1c2   : > { %v1186_v45 = vpop.eup %1185  ;;  %v809_v46 = vadd.f32 1.0, %v1184_v43  ;;  %1211 = vpow2.f32 %v770_v41  ;;  %v1508_v60 = vpop.f32.mrf.mxu0  ;;  %v720_v11 = vsub.f32 0.0, %v1500_v44  ;;  %v776_v14 = vmul.f32 1.442695, %v721_v2 }
 0x1c3   : > { %v1188_v47 = vpop.eup %1187  ;;  %v795_v48 = vadd.f32 1.0, %v1186_v45  ;;  %1213 = vpow2.f32 %v742_v42  ;;  %v1502_v49 = vpop.f32.mrf.mxu1  ;;  %v706_v29 = vsub.f32 0.0, %v1508_v60  ;;  %v748_v35 = vmul.f32 1.442695, %v707_v21 }
 0x1c4   : > { %v1190_v51 = vpop.eup %1189  ;;  %1215 = vrcp.f32 %v809_v46  ;;  %v808_v52 = vadd.f32 1.0, %v1188_v47  ;;  %v1128_v8 = vpop.f32.mrf.mxu0  ;;  %v723_v17 = vsub.f32 0.0, %v1502_v49  ;;  %v774_v25 = vmul.f32 1.442695, %v720_v11 }
 0x1c5   : > { %v1192_v53 = vpop.eup %1191  ;;  %1217 = vrcp.f32 %v795_v48  ;;  %v794_v54 = vadd.f32 1.0, %v1190_v51  ;;  %v1506_v55 = vpop.f32.mrf.mxu1  ;;  %v709_v36 = vsub.f32 0.0, %v1128_v8  ;;  %v746_v42 = vmul.f32 1.442695, %v706_v29 }
 0x1c6   : > { %v1194_v56 = vpop.eup %1193  ;;  %1219 = vrcp.f32 %v808_v52  ;;  %v811_v57 = vadd.f32 1.0, %v1192_v53  ;;  %v589_v22 = vpop.f32.mrf.mxu0  ;;  %v722_v26 = vsub.f32 0.0, %v1506_v55  ;;  %v780_v31 = vmul.f32 1.442695, %v723_v17 }
 0x1c7   : > { %v1196_v58 = vpop.eup %1195  ;;  %1221 = vrcp.f32 %v794_v54  ;;  %v797_v59 = vadd.f32 1.0, %v1194_v56  ;;  %v1510_v61 = vpop.f32.mrf.mxu1  ;;  %v708_v43 = vsub.f32 0.0, %v589_v22  ;;  %v752_v49 = vmul.f32 1.442695, %v709_v36 }
 0x1c8   : > { %v1198_v62 = vpop.eup %1197  ;;  %1223 = vrcp.f32 %v811_v57  ;;  %v810_v63 = vadd.f32 1.0, %v1196_v58  ;;  %v725_v32 = vsub.f32 0.0, %v1510_v61  ;;  %v1131_v37 = vpop.f32.mrf.mxu0  ;;  %v778_v39 = vmul.f32 1.442695, %v722_v26 }
 0x1c9   : > { %v1200_v0 = vpop.eup %1199  ;;  %1225 = vrcp.f32 %v797_v59  ;;  %v796_v1 = vadd.f32 1.0, %v1198_v62  ;;  %v1512_v5 = vpop.f32.mrf.mxu1  ;;  %v711_v50 = vsub.f32 0.0, %v1131_v37  ;;  %v750_v56 = vmul.f32 1.442695, %v708_v43 }
 0x1ca   : > { %v1202_v3 = vpop.eup %1201  ;;  %1227 = vrcp.f32 %v810_v63  ;;  %v813_v4 = vadd.f32 1.0, %v1200_v0  ;;  %v724_v40 = vsub.f32 0.0, %v1512_v5  ;;  %v784_v45 = vmul.f32 1.442695, %v725_v32  ;;  %v599_v51 = vpop.f32.mrf.mxu0 }
 0x1cb   : > { %v1204_v6 = vpop.eup %1203  ;;  %1229 = vrcp.f32 %v796_v1  ;;  %v799_v7 = vadd.f32 1.0, %v1202_v3  ;;  %v1517_v18 = vpop.f32.mrf.mxu1  ;;  %v710_v59 = vsub.f32 0.0, %v599_v51  ;;  %v756_v62 = vmul.f32 1.442695, %v711_v50 }
 0x1cc   : > { %v1206_v9 = vpop.eup %1205  ;;  %1231 = vrcp.f32 %v813_v4  ;;  %v812_v10 = vadd.f32 1.0, %v1204_v6  ;;  %v727_v46 = vsub.f32 0.0, %v1517_v18  ;;  %v782_v53 = vmul.f32 1.442695, %v724_v40 }
 0x1cd   : > { %v1208_v12 = vpop.eup %1207  ;;  %1233 = vrcp.f32 %v799_v7  ;;  %v798_v13 = vadd.f32 1.0, %v1206_v9  ;;  %v679_v33 = vpop.f32.mrf.mxu1  ;;  %v754_v5 = vmul.f32 1.442695, %v710_v59 }
 0x1ce   : > { %v1210_v15 = vpop.eup %1209  ;;  %1235 = vrcp.f32 %v812_v10  ;;  %v815_v16 = vadd.f32 1.0, %v1208_v12  ;;  %v726_v54 = vsub.f32 0.0, %v679_v33  ;;  %v788_v58 = vmul.f32 1.442695, %v727_v46 }
 0x1cf   : > { %v1212_v19 = vpop.eup %1211  ;;  %1237 = vrcp.f32 %v798_v13  ;;  %v801_v20 = vadd.f32 1.0, %v1210_v15  ;;  %v1158_v47 = vpop.f32.mrf.mxu1 }
 0x1d0   : > { %v1214_v23 = vpop.eup %1213  ;;  %1239 = vrcp.f32 %v815_v16  ;;  %v814_v24 = vadd.f32 1.0, %v1212_v19  ;;  %v729_v63 = vsub.f32 0.0, %v1158_v47  ;;  %v786_v1 = vmul.f32 1.442695, %v726_v54 }
 0x1d1   : > { %v1216_v27 = vpop.eup %1215  ;;  %1241 = vpow2.f32 %v776_v14  ;;  %v800_v28 = vadd.f32 1.0, %v1214_v23  ;;  %v689_v60 = vpop.f32.mrf.mxu1 }
 0x1d2   : > { %v1218_v30 = vpop.eup %1217  ;;  %906 = vst.msk [vmem:[%s1522_s16 + $0x78] sm:$0xff] %vm890_vm2, %v1216_v27  ;;  %1243 = vrcp.f32 %v814_v24  ;;  %v728_v3 = vsub.f32 0.0, %v689_v60  ;;  %v792_v8 = vmul.f32 1.442695, %v729_v63 }
 0x1d3   : > { %v1220_v34 = vpop.eup %1219  ;;  %892 = vst.msk [vmem:[%s1522_s16 + $0x8] sm:$0xff] %vm890_vm2, %v1218_v30  ;;  %1245 = vrcp.f32 %v801_v20 }
 0x1d4   : > { %v1222_v38 = vpop.eup %1221  ;;  %905 = vst.msk [vmem:[%s1522_s16 + $0x70] sm:$0xff] %vm890_vm2, %v1220_v34  ;;  %1247 = vpow2.f32 %v774_v25  ;;  %v790_v11 = vmul.f32 1.442695, %v728_v3 }
 0x1d5   : > { %v1224_v41 = vpop.eup %1223  ;;  %891 = vst.msk [vmem:[%s1522_s16] sm:$0xff] %vm890_vm2, %v1222_v38  ;;  %1249 = vrcp.f32 %v800_v28 }
 0x1d6   : > { %v1226_v44 = vpop.eup %1225  ;;  %908 = vst.msk [vmem:[%s1522_s16 + $0x88] sm:$0xff] %vm890_vm2, %v1224_v41  ;;  %1251 = vpow2.f32 %v780_v31 }
 0x1d7   : > { %v1228_v48 = vpop.eup %1227  ;;  %894 = vst.msk [vmem:[%s1522_s16 + $0x18] sm:$0xff] %vm890_vm2, %v1226_v44  ;;  %1253 = vpow2.f32 %v748_v35 }
 0x1d8   : > { %v1230_v52 = vpop.eup %1229  ;;  %907 = vst.msk [vmem:[%s1522_s16 + $0x80] sm:$0xff] %vm890_vm2, %v1228_v48  ;;  %1255 = vpow2.f32 %v778_v39 }
 0x1d9   : > { %v1232_v55 = vpop.eup %1231  ;;  %893 = vst.msk [vmem:[%s1522_s16 + $0x10] sm:$0xff] %vm890_vm2, %v1230_v52  ;;  %1257 = vpow2.f32 %v746_v42 }
 0x1da   : > { %v1234_v57 = vpop.eup %1233  ;;  %910 = vst.msk [vmem:[%s1522_s16 + $0x98] sm:$0xff] %vm890_vm2, %v1232_v55  ;;  %1259 = vpow2.f32 %v784_v45 }
 0x1db   : > { %v1236_v61 = vpop.eup %1235  ;;  %896 = vst.msk [vmem:[%s1522_s16 + $0x28] sm:$0xff] %vm890_vm2, %v1234_v57  ;;  %1261 = vpow2.f32 %v752_v49 }
 0x1dc   : > { %v1238_v0 = vpop.eup %1237  ;;  %909 = vst.msk [vmem:[%s1522_s16 + $0x90] sm:$0xff] %vm890_vm2, %v1236_v61  ;;  %1263 = vpow2.f32 %v782_v53 }
 0x1dd   : > { %v1240_v2 = vpop.eup %1239  ;;  %895 = vst.msk [vmem:[%s1522_s16 + $0x20] sm:$0xff] %vm890_vm2, %v1238_v0  ;;  %1265 = vpow2.f32 %v750_v56 }
 0x1de   : > { %v1242_v4 = vpop.eup %1241  ;;  %912 = vst.msk [vmem:[%s1522_s16 + $0xa8] sm:$0xff] %vm890_vm2, %v1240_v2  ;;  %1267 = vpow2.f32 %v788_v58 }
 0x1df   : > { %v1244_v6 = vpop.eup %1243  ;;  %v817_v7 = vadd.f32 1.0, %v1242_v4  ;;  %1269 = vpow2.f32 %v756_v62 }
 0x1e0   : > { %v1246_v9 = vpop.eup %1245  ;;  %911 = vst.msk [vmem:[%s1522_s16 + $0xa0] sm:$0xff] %vm890_vm2, %v1244_v6  ;;  %1271 = vpow2.f32 %v786_v1 }
 0x1e1   : > { %v1248_v10 = vpop.eup %1247  ;;  %1273 = vrcp.f32 %v817_v7  ;;  %898 = vst.msk [vmem:[%s1522_s16 + $0x38] sm:$0xff] %vm890_vm2, %v1246_v9 }
 0x1e2   : > { %v1250_v12 = vpop.eup %1249  ;;  %v816_v13 = vadd.f32 1.0, %v1248_v10  ;;  %1275 = vpow2.f32 %v754_v5 }
 0x1e3   : > { %v1252_v14 = vpop.eup %1251  ;;  %897 = vst.msk [vmem:[%s1522_s16 + $0x30] sm:$0xff] %vm890_vm2, %v1250_v12  ;;  %1277 = vpow2.f32 %v792_v8 }
 0x1e4   : > { %v1254_v15 = vpop.eup %1253  ;;  %1279 = vrcp.f32 %v816_v13  ;;  %v819_v16 = vadd.f32 1.0, %v1252_v14 }
 0x1e5   : > { %v1256_v17 = vpop.eup %1255  ;;  %v803_v18 = vadd.f32 1.0, %v1254_v15  ;;  %1281 = vpow2.f32 %v790_v11 }
 0x1e6   : > { %v1258_v19 = vpop.eup %1257  ;;  %1283 = vrcp.f32 %v819_v16  ;;  %v818_v20 = vadd.f32 1.0, %v1256_v17 }
 0x1e7   : > { %v1260_v21 = vpop.eup %1259  ;;  %1285 = vrcp.f32 %v803_v18  ;;  %v802_v22 = vadd.f32 1.0, %v1258_v19 }
 0x1e8   : > { %v1262_v23 = vpop.eup %1261  ;;  %1287 = vrcp.f32 %v818_v20  ;;  %v821_v24 = vadd.f32 1.0, %v1260_v21 }
 0x1e9   : > { %v1264_v25 = vpop.eup %1263  ;;  %1289 = vrcp.f32 %v802_v22  ;;  %v805_v26 = vadd.f32 1.0, %v1262_v23 }
 0x1ea   : > { %v1266_v27 = vpop.eup %1265  ;;  %1291 = vrcp.f32 %v821_v24  ;;  %v820_v28 = vadd.f32 1.0, %v1264_v25 }
 0x1eb   : > { %v1268_v29 = vpop.eup %1267  ;;  %1293 = vrcp.f32 %v805_v26  ;;  %v804_v30 = vadd.f32 1.0, %v1266_v27 }
 0x1ec   : > { %v1270_v31 = vpop.eup %1269  ;;  %1295 = vrcp.f32 %v820_v28  ;;  %v823_v32 = vadd.f32 1.0, %v1268_v29 }
 0x1ed   : > { %v1272_v33 = vpop.eup %1271  ;;  %1297 = vrcp.f32 %v804_v30  ;;  %v807_v34 = vadd.f32 1.0, %v1270_v31 }
 0x1ee   : > { %v1274_v35 = vpop.eup %1273  ;;  %1299 = vrcp.f32 %v823_v32  ;;  %v822_v36 = vadd.f32 1.0, %v1272_v33 }
 0x1ef   : > { %v1276_v37 = vpop.eup %1275  ;;  %914 = vst.msk [vmem:[%s1522_s16 + $0xb8] sm:$0xff] %vm890_vm2, %v1274_v35  ;;  %1301 = vrcp.f32 %v807_v34 }
 0x1f0   : > { %v1278_v38 = vpop.eup %1277  ;;  %1303 = vrcp.f32 %v822_v36  ;;  %v806_v39 = vadd.f32 1.0, %v1276_v37 }
 0x1f1   : > { %v1280_v40 = vpop.eup %1279  ;;  %v825_v41 = vadd.f32 1.0, %v1278_v38 }
 0x1f2   : > { %v1282_v42 = vpop.eup %1281  ;;  %913 = vst.msk [vmem:[%s1522_s16 + $0xb0] sm:$0xff] %vm890_vm2, %v1280_v40  ;;  %1305 = vrcp.f32 %v806_v39 }
 0x1f3   : > { %v1284_v43 = vpop.eup %1283  ;;  %1307 = vrcp.f32 %v825_v41  ;;  %v824_v44 = vadd.f32 1.0, %v1282_v42 }
 0x1f4   : > { %v1286_v45 = vpop.eup %1285  ;;  %916 = vst.msk [vmem:[%s1522_s16 + $0xc8] sm:$0xff] %vm890_vm2, %v1284_v43 }
 0x1f5   : > { %v1288_v46 = vpop.eup %1287  ;;  %900 = vst.msk [vmem:[%s1522_s16 + $0x48] sm:$0xff] %vm890_vm2, %v1286_v45  ;;  %1309 = vrcp.f32 %v824_v44 }
 0x1f6   : > { %v1290_v47 = vpop.eup %1289  ;;  %915 = vst.msk [vmem:[%s1522_s16 + $0xc0] sm:$0xff] %vm890_vm2, %v1288_v46 }
 0x1f7   : > { %v1292_v48 = vpop.eup %1291  ;;  %899 = vst.msk [vmem:[%s1522_s16 + $0x40] sm:$0xff] %vm890_vm2, %v1290_v47 }
 0x1f8   : > { %v1294_v49 = vpop.eup %1293  ;;  %918 = vst.msk [vmem:[%s1522_s16 + $0xd8] sm:$0xff] %vm890_vm2, %v1292_v48 }
 0x1f9   : > { %v1296_v50 = vpop.eup %1295  ;;  %902 = vst.msk [vmem:[%s1522_s16 + $0x58] sm:$0xff] %vm890_vm2, %v1294_v49 }
 0x1fa   : > { %v1298_v51 = vpop.eup %1297  ;;  %917 = vst.msk [vmem:[%s1522_s16 + $0xd0] sm:$0xff] %vm890_vm2, %v1296_v50 }
 0x1fb   : > { %v1300_v52 = vpop.eup %1299  ;;  %901 = vst.msk [vmem:[%s1522_s16 + $0x50] sm:$0xff] %vm890_vm2, %v1298_v51 }
 0x1fc   : > { %v1302_v53 = vpop.eup %1301  ;;  %920 = vst.msk [vmem:[%s1522_s16 + $0xe8] sm:$0xff] %vm890_vm2, %v1300_v52 }
 0x1fd   : > { %v1304_v54 = vpop.eup %1303  ;;  %904 = vst.msk [vmem:[%s1522_s16 + $0x68] sm:$0xff] %vm890_vm2, %v1302_v53 }
 0x1fe   : > { %919 = vst.msk [vmem:[%s1522_s16 + $0xe0] sm:$0xff] %vm890_vm2, %v1304_v54 }
 0x1ff   : > { %v1306_v55 = vpop.eup %1305 }
 0x200   : > { %v1308_v56 = vpop.eup %1307  ;;  %903 = vst.msk [vmem:[%s1522_s16 + $0x60] sm:$0xff] %vm890_vm2, %v1306_v55 }
 0x201   : > { %922 = vst.msk [vmem:[%s1522_s16 + $0xf8] sm:$0xff] %vm890_vm2, %v1308_v56 }
 0x202   : > { %v1310_v57 = vpop.eup %1309 }
 0x203   : > { %921 = vst.msk [vmem:[%s1522_s16 + $0xf0] sm:$0xff] %vm890_vm2, %v1310_v57 }
 0x204 PF: > { %s14_s15 = sadd.s32 1, %s1317_s15  }
 0x205   : > { %p11_p4 = scmp.ge.s32.totalorder %s14_s15, 4  }
 0x207   :  { %13 = sbr.rel (!%p11_p4) target bundleno = 1 (0x1), region = 66 }

// kernel: _lambda_.16
= control target key start
LH: loop header
LB: loop body
LE: loop exit
PB: predicated region body
PF: predicated region fallthrough
CT: control target
= control target key end

     0   :  { %s2906_s21 = smov 0   ;;  %s3714_s0 = inlined_call_operand.vmem [shape: f32[2,16,16], index: 0, kind: input, shape index: {}, may-alias: {0,1}]   ;;  %s3715_s1 = inlined_call_operand.vmem [shape: f32[2,16,16], index: 1, kind: input, shape index: {}, may-alias: {0,1}]   ;;  %s3716_s2 = inlined_call_operand.vmem [shape: f32[122,16], index: 2, kind: input, shape index: {}]   ;;  %s3717_s3 = inlined_call_operand.vmem [shape: f32[100,1], index: 3, kind: input, shape index: {}]   ;;  %s3718_s4 = inlined_call_operand.vmem [shape: bf16[9,32,8], index: 4, kind: input, shape index: {}]   ;;  %s3719_s5 = inlined_call_operand.vmem [shape: f32[2,100,8], index: 5, kind: output, shape index: {0}]   ;;  %s3720_s6 = inlined_call_operand.vmem [shape: f32[2,8,8], index: 6, kind: output, shape index: {1}]  }
   0x1 LB: > { %s2361_s22 = sadd.s32 4294967295, %s2867_s21   ;;  %p2365_p0 = scmp.ge.s32.totalorder %s2867_s21, 1  ;;  %s2867_s21 = sphi %s2906_s21, %s17_s21  }
   0x2   : > { %p225_p1 = scmp.lt.s32.totalorder %s2867_s21, 3 }
   0x4   : > { %p226_p2 = pnand %p2365_p0, %p225_p1 }
   0x5   : > { %p264_p3 = scmp.lt.s32.totalorder (!%p226_p2), %s2361_s22, 1  ;;  %s2869_s29 = smov (!%p226_p2), 16  }
   0x6   : > { %229 = sbr.rel (%p226_p2) target bundleno = 724 (0x2d4), region = 40 }
   0xb   : > { %vm296_vm0 = vcmask 130048   ;;  %v299_v0 = vld [vmem:[%s3716_s2] sm:$0xff]  ;;  %s3722_s22 = smov (!%p264_p3, %s2361_s22), 1  ;;  %v300_v9 = vld [vmem:[%s3716_s2 + $0x8] sm:$0xff]  ;;  %v301_v10 = vld [vmem:[%s3716_s2 + $0x10] sm:$0xff]  ;;  %vm532_vm1 = vcmask 261120  }
   0xc   : > { %2626 = vmatprep.mubr.msk.f32.mxu0 %vm296_vm0, %v299_v0  ;;  %s2512_s25 = sshll.u32 %s3722_s22, 4  ;;  %v302_v11 = vld [vmem:[%s3716_s2 + $0x18] sm:$0xff]  ;;  %v303_v12 = vld [vmem:[%s3716_s2 + $0x20] sm:$0xff]  ;;  %v304_v13 = vld [vmem:[%s3716_s2 + $0x28] sm:$0xff]  ;;  %v2870_v59 = vmov 0   ;;  %vm775_vm2 = vcmask 1046528  }
   0xd   : > { %s268_s28 = scalar_lea.vmem %s3714_s0, %s2512_s25  ;;  %s273_s8 = scalar_lea.vmem %s3715_s1, %s2512_s25  ;;  %v305_v14 = vld [vmem:[%s3716_s2 + $0x30] sm:$0xff]  ;;  %v306_v15 = vld [vmem:[%s3716_s2 + $0x38] sm:$0xff]  ;;  %v307_v16 = vld [vmem:[%s3716_s2 + $0x40] sm:$0xff]  ;;  %2841 = vset.pattern.permute.xlu1 %v2870_v59  ;;  %2842 = vset.pattern.permute.xlu0 %v2870_v59  ;;  %vm951_vm3 = vcmask 1045504   ;;  %vm1302_vm4 = vcmask 1044480   ;;  %vm1478_vm5 = vcmask 1043456  }
   0xe   : > { %v287_v1 = vld [vmem:[%s268_s28 + $0x8] sm:$0xff]  ;;  %v286_v2 = vld [vmem:[%s268_s28] sm:$0xff]  ;;  %v309_v18 = vld [vmem:[%s3716_s2 + $0x50] sm:$0xff]  ;;  %vm1831_vm6 = vcmask 1042432   ;;  %vm2011_vm7 = vcmask 1041408   ;;  %vm2065_vm8 = vcmask 64512  }
   0xf   : > { %292 = vrot.lane.b32.xlu0 %v287_v1, %s2869_s29  ;;  %v285_v3 = vld [vmem:[%s273_s8 + $0x8] sm:$0xff]  ;;  %v284_v6 = vld [vmem:[%s273_s8] sm:$0xff]  ;;  %v310_v19 = vld [vmem:[%s3716_s2 + $0x58] sm:$0xff]  ;;  %s2830_s13 = smul.u32 104, %s3722_s22  ;;  %vm2078_vm9 = vcmask 60416   ;;  %s2371_s17 = sshll.u32 %s3722_s22, 3 }
  0x10   : > { %v308_v17 = vld [vmem:[%s3716_s2 + $0x48] sm:$0xff]  ;;  %v311_v20 = vld [vmem:[%s3716_s2 + $0x60] sm:$0xff]  ;;  %v313_v22 = vld [vmem:[%s3716_s2 + $0x70] sm:$0xff]  ;;  %vm2259_vm10 = vcmask 1040384   ;;  %s282_s20 = scalar_lea.vmem %s3720_s6, %s2371_s17 }
  0x11   : > { %v312_v21 = vld [vmem:[%s3716_s2 + $0x68] sm:$0xff]  ;;  %v314_v23 = vld [vmem:[%s3716_s2 + $0x78] sm:$0x3]  ;;  %v2845_v26 = vld [vmem:[%s3718_s4] sm:$0xff]   ;;  %s3578_s16 = scalar_lea.vmem %s3719_s5, %s2830_s13 }
  0x12   : > { %v2843_v24 = vld [vmem:[%s3718_s4 + $0x8] sm:$0xff]   ;;  %v2844_v25 = vld [vmem:[%s3718_s4 + $0x18] sm:$0xff]   ;;  %v2846_v27 = vld [vmem:[%s3718_s4 + $0x10] sm:$0xff]  }
  0x13   : > { %290 = vrot.lane.b32.xlu0 %v286_v2, %s2869_s29  ;;  %2650 = vmatprep.subr.bf16.mxu1 %v2843_v24  ;;  %v2847_v28 = vld [vmem:[%s3718_s4 + $0x28] sm:$0xff]   ;;  %v2849_v29 = vld [vmem:[%s3718_s4 + $0x38] sm:$0xff]   ;;  %v2848_v36 = vld [vmem:[%s3718_s4 + $0x20] sm:$0xff]  }
  0x14   : > { %2651 = vmatpush3.bf16.msra.mxu1 %v2843_v24  ;;  %v2850_v37 = vld [vmem:[%s3718_s4 + $0x30] sm:$0xff]   ;;  %v2851_v41 = vld [vmem:[%s3718_s4 + $0x48] sm:$0xff]   ;;  %v2853_v42 = vld [vmem:[%s3718_s4 + $0x58] sm:$0xff]  }
  0x15   : > { %2652 = vmatprep.subr.bf16.mxu1 %v2845_v26  ;;  %v2080_v58 = vld [vmem:[%s3717_s3] sm:$0xff]  ;;  %v2081_v60 = vld [vmem:[%s3717_s3 + $0x8] sm:$0xff]  ;;  %v2854_v62 = vld [vmem:[%s3718_s4 + $0x50] sm:$0xff]  }
  0x16   : > { %2095 = vperm.xlu1 %2841, %v2080_v58   ;;  %v2852_v61 = vld [vmem:[%s3718_s4 + $0x40] sm:$0xff]   ;;  %v2083_v63 = vld [vmem:[%s3717_s3 + $0x18] sm:$0xff]  ;;  %v2855_v0 = vld [vmem:[%s3718_s4 + $0x68] sm:$0xff]  }
  0x17   : > { %v2857_v1 = vld [vmem:[%s3718_s4 + $0x78] sm:$0xff]   ;;  %v2856_v2 = vld [vmem:[%s3718_s4 + $0x60] sm:$0xff]  }
  0x18   : > { %2653 = vmatpush3.bf16.msra.mxu1 %v2845_v26 }
  0x19   : > { %2690 = vmatprep.subr.bf16.mxu1 %v2847_v28 }
  0x1a   : > { %2100 = vperm.xlu1 %2841, %v2081_v60  }
  0x1e   : > { %2110 = vperm.xlu1 %2841, %v2083_v63  }
  0x81   : > { %v293_v4 = vpop.permute.xlu0 %292 }
  0x82   : > { %v298_v5 = vsel %vm296_vm0, %v285_v3, %v293_v4  ;;  %v2858_v3 = vld [vmem:[%s3718_s4 + $0x70] sm:$0xff]   ;;  %v2084_v4 = vld [vmem:[%s3717_s3 + $0x20] sm:$0xff] }
  0x83   : > { %2622 = vmatprep.subr.mxu0 %v298_v5  ;;  %2115 = vperm.xlu1 %2841, %v2084_v4  }
  0x84   : > { %2623 = vmatpush3.msra.mxu0 %v298_v5  ;;  %v2859_v5 = vld [vmem:[%s3718_s4 + $0x88] sm:$0xff]  }
  0x85   : > { %v291_v7 = vpop.permute.xlu0 %290 }
  0x86   : > { %v297_v8 = vsel %vm296_vm0, %v284_v6, %v291_v7  ;;  %v2086_v6 = vld [vmem:[%s3717_s3 + $0x30] sm:$0xff]  ;;  %v2088_v7 = vld [vmem:[%s3717_s3 + $0x40] sm:$0xff] }
  0x87   : > { %2624 = vmatprep.subr.mxu0 %v297_v8  ;;  %2125 = vperm.xlu1 %2841, %v2086_v6  }
  0x88   : > { %2625 = vmatpush3.msra.mxu0 %v297_v8  ;;  %v2082_v8 = vld [vmem:[%s3717_s3 + $0x10] sm:$0xff] }
  0x89   : > { %2627 = vmatmul.mubr.msk.f32.vlgmr.msra.gmra.mxu0 %vm296_vm0, %v300_v9  ;;  %2670 = vmatprep.subr.bf16.mxu0 %v2844_v25  ;;  %v2090_v9 = vld [vmem:[%s3717_s3 + $0x50] sm:$0xff] }
  0x8a   : > { %2629 = vmatprep.mubr.msk.f32.mxu0 %vm296_vm0, %v301_v10  ;;  %2671 = vmatpush3.bf16.msra.mxu0 %v2844_v25  ;;  %v2085_v10 = vld [vmem:[%s3717_s3 + $0x28] sm:$0xff] }
  0x8b   : > { %2672 = vmatprep.subr.bf16.mxu0 %v2846_v27  ;;  %2135 = vperm.xlu1 %2841, %v2088_v7  }
  0x8c   : > { %2105 = vperm.xlu0 %2842, %v2082_v8  }
  0x8d   : > { %2630 = vmatmul.mubr.msk.f32.gmra.mxu0 %vm296_vm0, %v302_v11  ;;  %v2092_v11 = vld [vmem:[%s3717_s3 + $0x60] sm:$0xf] }
  0x8e   : > { %2632 = vmatprep.mubr.msk.f32.mxu0 %vm296_vm0, %v303_v12  ;;  %2673 = vmatpush3.bf16.msra.mxu0 %v2846_v27  ;;  %v2087_v12 = vld [vmem:[%s3717_s3 + $0x38] sm:$0xff] }
  0x8f   : > { %2710 = vmatprep.subr.bf16.mxu0 %v2849_v29  ;;  %2145 = vperm.xlu1 %2841, %v2090_v9  }
  0x90   : > { %2120 = vperm.xlu0 %2842, %v2085_v10  }
  0x91   : > { %2633 = vmatmul.mubr.msk.f32.gmra.mxu0 %vm296_vm0, %v304_v13  ;;  %v2089_v13 = vld [vmem:[%s3717_s3 + $0x48] sm:$0xff] }
  0x92   : > { %2635 = vmatprep.mubr.msk.f32.mxu0 %vm296_vm0, %v305_v14  ;;  %v2091_v14 = vld [vmem:[%s3717_s3 + $0x58] sm:$0xff] }
  0x93   : > { %2155 = vperm.xlu1 %2841, %v2092_v11  }
  0x94   : > { %2130 = vperm.xlu0 %2842, %v2087_v12  }
  0x95   : > { %2636 = vmatmul.mubr.msk.f32.gmra.mxu0 %vm296_vm0, %v306_v15  ;;  %v2860_v15 = vld [vmem:[%s3718_s4 + $0x80] sm:$0xff]  }
  0x96   : > { %2638 = vmatprep.mubr.msk.f32.mxu0 %vm296_vm0, %v307_v16 }
  0x98   : > { %2140 = vperm.xlu0 %2842, %v2089_v13  }
  0x99   : > { %2639 = vmatmul.mubr.msk.f32.gmra.mxu0 %vm296_vm0, %v308_v17 }
  0x9a   : > { %2641 = vmatprep.mubr.msk.f32.mxu0 %vm296_vm0, %v309_v18 }
  0x9c   : > { %2150 = vperm.xlu0 %2842, %v2091_v14  }
  0x9d   : > { %2642 = vmatmul.mubr.msk.f32.gmra.mxu0 %vm296_vm0, %v310_v19 }
  0x9e   : > { %2644 = vmatprep.mubr.msk.f32.mxu0 %vm296_vm0, %v311_v20 }
  0xa1   : > { %2645 = vmatmul.mubr.msk.f32.gmra.mxu0 %vm296_vm0, %v312_v21 }
  0xa2   : > { %2647 = vmatprep.mubr.msk.f32.mxu0 %vm296_vm0, %v313_v22 }
  0xa5   : > { %2648 = vmatmul.mubr.msk.f32.gmra.mxu0 %vm296_vm0, %v314_v23 }
 0x149   : > { %v2628_v30 = vpop.f32.mrf.mxu0 }
 0x14b   : > { %v429_v31 = vpop.f32.mrf.mxu0 }
 0x14c   : > { %v3007_v32 = vpack.c.bf16 %v2628_v30, %v429_v31 }
 0x14d   : > { %v2631_v33 = vpop.f32.mrf.mxu0 }
 0x14e   : > { %2654 = vmatprep.mubr.msk.bf16.mxu1 %vm532_vm1, %v3007_v32  ;;  %2674 = vmatprep.mubr.msk.bf16.mxu0 %vm532_vm1, %v3007_v32 }
 0x14f   : > { %v439_v34 = vpop.f32.mrf.mxu0 }
 0x150   : > { %v3013_v35 = vpack.c.bf16 %v2631_v33, %v439_v34 }
 0x151   : > { %v2634_v38 = vpop.f32.mrf.mxu0 }
 0x152   : > { %2655 = vmatmul.mubr.msk.bf16.vlgmr.msra.gmra.mxu1 %vm532_vm1, %v3013_v35  ;;  %2675 = vmatmul.mubr.msk.bf16.vlgmr.msra.gmra.mxu0 %vm532_vm1, %v3013_v35 }
 0x153   : > { %2691 = vmatpush3.bf16.msra.mxu1 %v2847_v28  ;;  %v449_v39 = vpop.f32.mrf.mxu0  ;;  %2711 = vmatpush3.bf16.msra.mxu0 %v2849_v29 }
 0x154   : > { %v3025_v40 = vpack.c.bf16 %v2634_v38, %v449_v39  ;;  %2692 = vmatprep.subr.bf16.mxu1 %v2848_v36  ;;  %2712 = vmatprep.subr.bf16.mxu0 %v2850_v37 }
 0x155   : > { %v2637_v43 = vpop.f32.mrf.mxu0 }
 0x156   : > { %2658 = vmatprep.mubr.msk.bf16.mxu1 %vm532_vm1, %v3025_v40  ;;  %2678 = vmatprep.mubr.msk.bf16.mxu0 %vm532_vm1, %v3025_v40 }
 0x157   : > { %v459_v44 = vpop.f32.mrf.mxu0  ;;  %2693 = vmatpush3.bf16.msra.mxu1 %v2848_v36  ;;  %2713 = vmatpush3.bf16.msra.mxu0 %v2850_v37 }
 0x158   : > { %v3037_v45 = vpack.c.bf16 %v2637_v43, %v459_v44  ;;  %2730 = vmatprep.subr.bf16.mxu1 %v2851_v41  ;;  %2750 = vmatprep.subr.bf16.mxu0 %v2853_v42 }
 0x159   : > { %v2640_v46 = vpop.f32.mrf.mxu0 }
 0x15a   : > { %2659 = vmatmul.mubr.msk.bf16.gmra.mxu1 %vm532_vm1, %v3037_v45  ;;  %2679 = vmatmul.mubr.msk.bf16.gmra.mxu0 %vm532_vm1, %v3037_v45 }
 0x15b   : > { %v469_v47 = vpop.f32.mrf.mxu0 }
 0x15c   : > { %v3043_v48 = vpack.c.bf16 %v2640_v46, %v469_v47 }
 0x15d   : > { %v2643_v49 = vpop.f32.mrf.mxu0 }
 0x15e   : > { %2662 = vmatprep.mubr.msk.bf16.mxu1 %vm532_vm1, %v3043_v48  ;;  %2682 = vmatprep.mubr.msk.bf16.mxu0 %vm532_vm1, %v3043_v48 }
 0x15f   : > { %v479_v50 = vpop.f32.mrf.mxu0 }
 0x160   : > { %v3049_v51 = vpack.c.bf16 %v2643_v49, %v479_v50 }
 0x161   : > { %v2646_v52 = vpop.f32.mrf.mxu0 }
 0x162   : > { %2663 = vmatmul.mubr.msk.bf16.gmra.mxu1 %vm532_vm1, %v3049_v51  ;;  %2683 = vmatmul.mubr.msk.bf16.gmra.mxu0 %vm532_vm1, %v3049_v51 }
 0x163   : > { %v489_v53 = vpop.f32.mrf.mxu0 }
 0x164   : > { %v3055_v54 = vpack.c.bf16 %v2646_v52, %v489_v53 }
 0x165   : > { %v2649_v55 = vpop.f32.mrf.mxu0 }
 0x166   : > { %2666 = vmatprep.mubr.msk.bf16.mxu1 %vm532_vm1, %v3055_v54  ;;  %2686 = vmatprep.mubr.msk.bf16.mxu0 %vm532_vm1, %v3055_v54 }
 0x167   : > { %v499_v56 = vpop.f32.mrf.mxu0 }
 0x168   : > { %v3061_v57 = vpack.c.bf16 %v2649_v55, %v499_v56 }
 0x16a   : > { %2667 = vmatmul.mubr.msk.bf16.gmra.mxu1 %vm532_vm1, %v3061_v57  ;;  %2687 = vmatmul.mubr.msk.bf16.gmra.mxu0 %vm532_vm1, %v3061_v57 }
 0x16b   : > { %2694 = vmatprep.mubr.msk.bf16.mxu1 %vm532_vm1, %v3007_v32  ;;  %2714 = vmatprep.mubr.msk.bf16.mxu0 %vm532_vm1, %v3007_v32 }
 0x172   : > { %2695 = vmatmul.mubr.msk.bf16.vlgmr.msra.gmra.mxu1 %vm532_vm1, %v3013_v35  ;;  %2715 = vmatmul.mubr.msk.bf16.vlgmr.msra.gmra.mxu0 %vm532_vm1, %v3013_v35 }
 0x173   : > { %2731 = vmatpush3.bf16.msra.mxu1 %v2851_v41  ;;  %2698 = vmatprep.mubr.msk.bf16.mxu1 %vm532_vm1, %v3025_v40 }
 0x174   : > { %2718 = vmatprep.mubr.msk.bf16.mxu0 %vm532_vm1, %v3025_v40  ;;  %2732 = vmatprep.subr.bf16.mxu1 %v2852_v61 }
 0x175   : > { %2751 = vmatpush3.bf16.msra.mxu0 %v2853_v42 }
 0x176   : > { %2752 = vmatprep.subr.bf16.mxu0 %v2854_v62 }
 0x177   : > { %2733 = vmatpush3.bf16.msra.mxu1 %v2852_v61 }
 0x178   : > { %2770 = vmatprep.subr.bf16.mxu1 %v2855_v0 }
 0x179   : > { %2753 = vmatpush3.bf16.msra.mxu0 %v2854_v62 }
 0x17a   : > { %2699 = vmatmul.mubr.msk.bf16.gmra.mxu1 %vm532_vm1, %v3037_v45  ;;  %2719 = vmatmul.mubr.msk.bf16.gmra.mxu0 %vm532_vm1, %v3037_v45 }
 0x17b   : > { %2702 = vmatprep.mubr.msk.bf16.mxu1 %vm532_vm1, %v3043_v48  ;;  %2722 = vmatprep.mubr.msk.bf16.mxu0 %vm532_vm1, %v3043_v48 }
 0x17c   : > { %2790 = vmatprep.subr.bf16.mxu0 %v2857_v1 }
 0x182   : > { %2703 = vmatmul.mubr.msk.bf16.gmra.mxu1 %vm532_vm1, %v3049_v51  ;;  %2723 = vmatmul.mubr.msk.bf16.gmra.mxu0 %vm532_vm1, %v3049_v51 }
 0x183   : > { %2706 = vmatprep.mubr.msk.bf16.mxu1 %vm532_vm1, %v3055_v54  ;;  %2726 = vmatprep.mubr.msk.bf16.mxu0 %vm532_vm1, %v3055_v54 }
 0x18a   : > { %2707 = vmatmul.mubr.msk.bf16.gmra.mxu1 %vm532_vm1, %v3061_v57  ;;  %2727 = vmatmul.mubr.msk.bf16.gmra.mxu0 %vm532_vm1, %v3061_v57 }
 0x18b   : > { %2734 = vmatprep.mubr.msk.bf16.mxu1 %vm532_vm1, %v3007_v32  ;;  %2754 = vmatprep.mubr.msk.bf16.mxu0 %vm532_vm1, %v3007_v32 }
 0x192   : > { %2735 = vmatmul.mubr.msk.bf16.vlgmr.msra.gmra.mxu1 %vm532_vm1, %v3013_v35  ;;  %2755 = vmatmul.mubr.msk.bf16.vlgmr.msra.gmra.mxu0 %vm532_vm1, %v3013_v35 }
 0x193   : > { %2771 = vmatpush3.bf16.msra.mxu1 %v2855_v0  ;;  %2738 = vmatprep.mubr.msk.bf16.mxu1 %vm532_vm1, %v3025_v40 }
 0x194   : > { %2758 = vmatprep.mubr.msk.bf16.mxu0 %vm532_vm1, %v3025_v40  ;;  %2772 = vmatprep.subr.bf16.mxu1 %v2856_v2 }
 0x195   : > { %2791 = vmatpush3.bf16.msra.mxu0 %v2857_v1 }
 0x196   : > { %2792 = vmatprep.subr.bf16.mxu0 %v2858_v3 }
 0x197   : > { %2773 = vmatpush3.bf16.msra.mxu1 %v2856_v2 }
 0x198   : > { %2810 = vmatprep.subr.bf16.mxu1 %v2859_v5 }
 0x199   : > { %2793 = vmatpush3.bf16.msra.mxu0 %v2858_v3 }
 0x19a   : > { %2739 = vmatmul.mubr.msk.bf16.gmra.mxu1 %vm532_vm1, %v3037_v45  ;;  %2759 = vmatmul.mubr.msk.bf16.gmra.mxu0 %vm532_vm1, %v3037_v45 }
 0x19b   : > { %2742 = vmatprep.mubr.msk.bf16.mxu1 %vm532_vm1, %v3043_v48  ;;  %2762 = vmatprep.mubr.msk.bf16.mxu0 %vm532_vm1, %v3043_v48 }
 0x1a2   : > { %2743 = vmatmul.mubr.msk.bf16.gmra.mxu1 %vm532_vm1, %v3049_v51  ;;  %2763 = vmatmul.mubr.msk.bf16.gmra.mxu0 %vm532_vm1, %v3049_v51 }
 0x1a3   : > { %2746 = vmatprep.mubr.msk.bf16.mxu1 %vm532_vm1, %v3055_v54  ;;  %2766 = vmatprep.mubr.msk.bf16.mxu0 %vm532_vm1, %v3055_v54 }
 0x1aa   : > { %2747 = vmatmul.mubr.msk.bf16.gmra.mxu1 %vm532_vm1, %v3061_v57  ;;  %2767 = vmatmul.mubr.msk.bf16.gmra.mxu0 %vm532_vm1, %v3061_v57 }
 0x1ab   : > { %2774 = vmatprep.mubr.msk.bf16.mxu1 %vm532_vm1, %v3007_v32  ;;  %2794 = vmatprep.mubr.msk.bf16.mxu0 %vm532_vm1, %v3007_v32 }
 0x1b2   : > { %2775 = vmatmul.mubr.msk.bf16.vlgmr.msra.gmra.mxu1 %vm532_vm1, %v3013_v35  ;;  %2795 = vmatmul.mubr.msk.bf16.vlgmr.msra.gmra.mxu0 %vm532_vm1, %v3013_v35 }
 0x1b3   : > { %2811 = vmatpush3.bf16.msra.mxu1 %v2859_v5  ;;  %2778 = vmatprep.mubr.msk.bf16.mxu1 %vm532_vm1, %v3025_v40 }
 0x1b4   : > { %2798 = vmatprep.mubr.msk.bf16.mxu0 %vm532_vm1, %v3025_v40  ;;  %2812 = vmatprep.subr.bf16.mxu1 %v2860_v15 }
 0x1b7   : > { %2813 = vmatpush3.bf16.msra.mxu1 %v2860_v15 }
 0x1ba   : > { %2779 = vmatmul.mubr.msk.bf16.gmra.mxu1 %vm532_vm1, %v3037_v45  ;;  %2799 = vmatmul.mubr.msk.bf16.gmra.mxu0 %vm532_vm1, %v3037_v45 }
 0x1bb   : > { %2782 = vmatprep.mubr.msk.bf16.mxu1 %vm532_vm1, %v3043_v48  ;;  %2802 = vmatprep.mubr.msk.bf16.mxu0 %vm532_vm1, %v3043_v48 }
 0x1c2   : > { %2783 = vmatmul.mubr.msk.bf16.gmra.mxu1 %vm532_vm1, %v3049_v51  ;;  %2803 = vmatmul.mubr.msk.bf16.gmra.mxu0 %vm532_vm1, %v3049_v51 }
 0x1c3   : > { %2786 = vmatprep.mubr.msk.bf16.mxu1 %vm532_vm1, %v3055_v54  ;;  %2806 = vmatprep.mubr.msk.bf16.mxu0 %vm532_vm1, %v3055_v54 }
 0x1ca   : > { %2787 = vmatmul.mubr.msk.bf16.gmra.mxu1 %vm532_vm1, %v3061_v57  ;;  %2807 = vmatmul.mubr.msk.bf16.gmra.mxu0 %vm532_vm1, %v3061_v57 }
 0x1cb   : > { %2814 = vmatprep.mubr.msk.bf16.mxu1 %vm532_vm1, %v3007_v32 }
 0x1d2   : > { %2815 = vmatmul.mubr.msk.bf16.vlgmr.msra.gmra.mxu1 %vm532_vm1, %v3013_v35 }
 0x1d3   : > { %2818 = vmatprep.mubr.msk.bf16.mxu1 %vm532_vm1, %v3025_v40 }
 0x1da   : > { %2819 = vmatmul.mubr.msk.bf16.gmra.mxu1 %vm532_vm1, %v3037_v45 }
 0x1db   : > { %2822 = vmatprep.mubr.msk.bf16.mxu1 %vm532_vm1, %v3043_v48 }
 0x1e2   : > { %2823 = vmatmul.mubr.msk.bf16.gmra.mxu1 %vm532_vm1, %v3049_v51 }
 0x1e3   : > { %2826 = vmatprep.mubr.msk.bf16.mxu1 %vm532_vm1, %v3055_v54 }
 0x1ea   : > { %2827 = vmatmul.mubr.msk.bf16.gmra.mxu1 %vm532_vm1, %v3061_v57 }
 0x212   : > { %v2656_v16 = vpop.f32.mrf.mxu1  ;;  %v2676_v17 = vpop.f32.mrf.mxu0 }
 0x213   : > { %v779_v22 = vrot.slane %v2676_v17, 1 }
 0x214   : > { %v591_v18 = vpop.f32.mrf.mxu1  ;;  %v702_v19 = vpop.f32.mrf.mxu0 }
 0x215   : > { %v776_v26 = vrot.slane %v702_v19, 1 }
 0x216   : > { %v2657_v20 = vpop.f32.mrf.mxu1  ;;  %v2677_v21 = vpop.f32.mrf.mxu0 }
 0x217   : > { %v781_v23 = vrot.slane %v2677_v21, 1 }
 0x218   : > { %v594_v24 = vpop.f32.mrf.mxu1  ;;  %v705_v25 = vpop.f32.mrf.mxu0 }
 0x219   : > { %v782_v27 = vsel %vm775_vm2, %v779_v22, %v781_v23  ;;  %v777_v28 = vrot.slane %v705_v25, 1 }
 0x21a   : > { %v3243_v29 = vadd.f32 %v2656_v16, %v782_v27  ;;  %v2660_v30 = vpop.f32.mrf.mxu1  ;;  %v2680_v31 = vpop.f32.mrf.mxu0 }
 0x21b   : > { %v778_v32 = vsel %vm775_vm2, %v776_v26, %v777_v28  ;;  %v780_v33 = vsel %vm775_vm2, %v777_v28, %v779_v22  ;;  %v787_v41 = vrot.slane %v2680_v31, 1 }
 0x21c   : > { %v3247_v34 = vadd.f32 %v778_v32, %v591_v18  ;;  %v3249_v35 = vadd.f32 %v780_v33, %v594_v24  ;;  %v607_v36 = vpop.f32.mrf.mxu1  ;;  %v718_v37 = vpop.f32.mrf.mxu0 }
 0x21d   : > { %v783_v38 = vrot.slane %v718_v37, 1 }
 0x21e   : > { %v2661_v39 = vpop.f32.mrf.mxu1  ;;  %v2681_v40 = vpop.f32.mrf.mxu0 }
 0x21f   : > { %v784_v42 = vsel %vm775_vm2, %v781_v23, %v783_v38  ;;  %v789_v43 = vrot.slane %v2681_v40, 1 }
 0x220   : > { %v3252_v44 = vadd.f32 %v2657_v20, %v784_v42  ;;  %v610_v45 = vpop.f32.mrf.mxu1  ;;  %v721_v46 = vpop.f32.mrf.mxu0 }
 0x221   : > { %v790_v47 = vsel %vm775_vm2, %v787_v41, %v789_v43  ;;  %v785_v48 = vrot.slane %v721_v46, 1 }
 0x222   : > { %v3255_v49 = vadd.f32 %v2660_v30, %v790_v47  ;;  %v2664_v50 = vpop.f32.mrf.mxu1  ;;  %v2684_v51 = vpop.f32.mrf.mxu0 }
 0x223   : > { %v786_v52 = vsel %vm775_vm2, %v783_v38, %v785_v48  ;;  %v788_v53 = vsel %vm775_vm2, %v785_v48, %v787_v41  ;;  %v795_v61 = vrot.slane %v2684_v51, 1 }
 0x224   : > { %v3259_v54 = vadd.f32 %v786_v52, %v607_v36  ;;  %v3261_v55 = vadd.f32 %v788_v53, %v610_v45  ;;  %v623_v56 = vpop.f32.mrf.mxu1  ;;  %v734_v57 = vpop.f32.mrf.mxu0 }
 0x225   : > { %v791_v58 = vrot.slane %v734_v57, 1 }
 0x226   : > { %v2665_v59 = vpop.f32.mrf.mxu1  ;;  %v2685_v60 = vpop.f32.mrf.mxu0 }
 0x227   : > { %v792_v62 = vsel %vm775_vm2, %v789_v43, %v791_v58  ;;  %v797_v63 = vrot.slane %v2685_v60, 1 }
 0x228   : > { %v3264_v0 = vadd.f32 %v2661_v39, %v792_v62  ;;  %v626_v1 = vpop.f32.mrf.mxu1  ;;  %v737_v2 = vpop.f32.mrf.mxu0 }
 0x229   : > { %v798_v3 = vsel %vm775_vm2, %v795_v61, %v797_v63  ;;  %v793_v4 = vrot.slane %v737_v2, 1 }
 0x22a   : > { %v3267_v5 = vadd.f32 %v2664_v50, %v798_v3  ;;  %v2668_v6 = vpop.f32.mrf.mxu1  ;;  %v2688_v7 = vpop.f32.mrf.mxu0 }
 0x22b   : > { %v794_v8 = vsel %vm775_vm2, %v791_v58, %v793_v4  ;;  %v796_v9 = vsel %vm775_vm2, %v793_v4, %v795_v61 }
 0x22c   : > { %v3271_v10 = vadd.f32 %v794_v8, %v623_v56  ;;  %v3273_v11 = vadd.f32 %v796_v9, %v626_v1  ;;  %v639_v12 = vpop.f32.mrf.mxu1  ;;  %v750_v13 = vpop.f32.mrf.mxu0 }
 0x22d   : > { %v799_v14 = vrot.slane %v750_v13, 1 }
 0x22e   : > { %v2669_v15 = vpop.f32.mrf.mxu1  ;;  %v2689_v16 = vpop.f32.mrf.mxu0 }
 0x22f   : > { %v800_v17 = vsel %vm775_vm2, %v797_v63, %v799_v14  ;;  %v3276_v18 = vadd.f32 %v799_v14, %v639_v12 }
 0x230   : > { %v3278_v19 = vadd.f32 %v2665_v59, %v800_v17  ;;  %v642_v20 = vpop.f32.mrf.mxu1  ;;  %v753_v21 = vpop.f32.mrf.mxu0 }
 0x232   : > { %v2696_v22 = vpop.f32.mrf.mxu1  ;;  %v2716_v23 = vpop.f32.mrf.mxu0 }
 0x233   : > { %v955_v28 = vrot.slane %v2696_v22, 2  ;;  %v1128_v30 = vrot.slane %v2716_v23, 2 }
 0x234   : > { %v878_v24 = vpop.f32.mrf.mxu1  ;;  %v1054_v25 = vpop.f32.mrf.mxu0 }
 0x235   : > { %v952_v33 = vrot.slane %v878_v24, 2 }
 0x236   : > { %v2697_v26 = vpop.f32.mrf.mxu1  ;;  %v2717_v27 = vpop.f32.mrf.mxu0 }
 0x237   : > { %v957_v31 = vrot.slane %v2697_v26, 2  ;;  %v1130_v32 = vrot.slane %v2717_v27, 2 }
 0x238   : > { %v881_v36 = vpop.f32.mrf.mxu1  ;;  %v1056_v37 = vpop.f32.mrf.mxu0 }
 0x239   : > { %v958_v38 = vsel %vm951_vm3, %v955_v28, %v957_v31  ;;  %v1131_v39 = vsel %vm951_vm3, %v1128_v30, %v1130_v32  ;;  %v953_v40 = vrot.slane %v881_v36, 2  ;;  %v1127_v41 = vrot.slane %v1056_v37, 2 }
 0x23a   : > { %v992_v42 = vadd.f32 %v958_v38, %v3243_v29  ;;  %v2700_v43 = vpop.f32.mrf.mxu1  ;;  %v2720_v45 = vpop.f32.mrf.mxu0 }
 0x23b   : > { %v954_v46 = vsel %vm951_vm3, %v952_v33, %v953_v40  ;;  %v956_v47 = vsel %vm951_vm3, %v953_v40, %v955_v28  ;;  %v1129_v48 = vsel %vm951_vm3, %v1127_v41, %v1128_v30  ;;  %v963_v59 = vrot.slane %v2700_v43, 2 }
 0x23c   : > { %v990_v50 = vadd.f32 %v954_v46, %v3247_v34  ;;  %v991_v51 = vadd.f32 %v956_v47, %v3249_v35  ;;  %v894_v52 = vpop.f32.mrf.mxu1  ;;  %v1069_v53 = vpop.f32.mrf.mxu0  ;;  %v1136_v29 = vrot.slane %v2720_v45, 2 }
 0x23d   : > { %v959_v56 = vrot.slane %v894_v52, 2  ;;  %v1132_v57 = vrot.slane %v1069_v53, 2 }
 0x23e   : > { %v3288_v58 = vadd.f32 %v1129_v48, %v990_v50  ;;  %v2701_v60 = vpop.f32.mrf.mxu1  ;;  %v2721_v61 = vpop.f32.mrf.mxu0  ;;  %v3290_v62 = vadd.f32 %v1131_v39, %v991_v51 }
 0x23f   : > { %v960_v63 = vsel %vm951_vm3, %v957_v31, %v959_v56  ;;  %v1133_v1 = vsel %vm951_vm3, %v1130_v32, %v1132_v57  ;;  %v965_v2 = vrot.slane %v2701_v60, 2  ;;  %v1138_v34 = vrot.slane %v2721_v61, 2 }
 0x240   : > { %v993_v35 = vadd.f32 %v960_v63, %v3252_v44  ;;  %v3295_v3 = vadd.f32 %v1133_v1, %v992_v42  ;;  %v897_v4 = vpop.f32.mrf.mxu1  ;;  %v1072_v6 = vpop.f32.mrf.mxu0 }
 0x241   : > { %v966_v7 = vsel %vm951_vm3, %v963_v59, %v965_v2  ;;  %v1139_v8 = vsel %vm951_vm3, %v1136_v29, %v1138_v34  ;;  %v961_v9 = vrot.slane %v897_v4, 2  ;;  %v1134_v12 = vrot.slane %v1072_v6, 2 }
 0x242   : > { %v996_v13 = vadd.f32 %v966_v7, %v3255_v49  ;;  %v2704_v14 = vpop.f32.mrf.mxu1  ;;  %v2724_v15 = vpop.f32.mrf.mxu0 }
 0x243   : > { %v962_v16 = vsel %vm951_vm3, %v959_v56, %v961_v9  ;;  %v964_v17 = vsel %vm951_vm3, %v961_v9, %v963_v59  ;;  %v1135_v44 = vsel %vm951_vm3, %v1132_v57, %v1134_v12  ;;  %v1137_v20 = vsel %vm951_vm3, %v1134_v12, %v1136_v29 }
 0x244   : > { %v994_v21 = vadd.f32 %v962_v16, %v3259_v54  ;;  %v995_v22 = vadd.f32 %v964_v17, %v3261_v55  ;;  %v3306_v23 = vadd.f32 %v1135_v44, %v993_v35  ;;  %v910_v24 = vpop.f32.mrf.mxu1  ;;  %v1085_v25 = vpop.f32.mrf.mxu0  ;;  %v971_v28 = vrot.slane %v2704_v14, 2 }
 0x245   : > { %v967_v26 = vrot.slane %v910_v24, 2  ;;  %v1140_v49 = vrot.slane %v1085_v25, 2  ;;  %v1144_v30 = vrot.slane %v2724_v15, 2 }
 0x246   : > { %v3308_v27 = vadd.f32 %v1137_v20, %v994_v21  ;;  %v2705_v31 = vpop.f32.mrf.mxu1  ;;  %v2725_v32 = vpop.f32.mrf.mxu0  ;;  %v3310_v33 = vadd.f32 %v1139_v8, %v995_v22 }
 0x247   : > { %v968_v36 = vsel %vm951_vm3, %v965_v2, %v967_v26  ;;  %v1141_v54 = vsel %vm951_vm3, %v1138_v34, %v1140_v49  ;;  %v973_v37 = vrot.slane %v2705_v31, 2  ;;  %v1146_v55 = vrot.slane %v2725_v32, 2 }
 0x248   : > { %v997_v38 = vadd.f32 %v968_v36, %v3264_v0  ;;  %v3315_v39 = vadd.f32 %v1141_v54, %v996_v13  ;;  %v913_v40 = vpop.f32.mrf.mxu1  ;;  %v1088_v41 = vpop.f32.mrf.mxu0 }
 0x249   : > { %v974_v42 = vsel %vm951_vm3, %v971_v28, %v973_v37  ;;  %v1147_v43 = vsel %vm951_vm3, %v1144_v30, %v1146_v55  ;;  %v969_v45 = vrot.slane %v913_v40, 2  ;;  %v1142_v46 = vrot.slane %v1088_v41, 2 }
 0x24a   : > { %v1000_v47 = vadd.f32 %v974_v42, %v3267_v5  ;;  %v2708_v48 = vpop.f32.mrf.mxu1  ;;  %v2728_v50 = vpop.f32.mrf.mxu0 }
 0x24b   : > { %v970_v51 = vsel %vm951_vm3, %v967_v26, %v969_v45  ;;  %v972_v52 = vsel %vm951_vm3, %v969_v45, %v971_v28  ;;  %v1143_v0 = vsel %vm951_vm3, %v1140_v49, %v1142_v46  ;;  %v1145_v53 = vsel %vm951_vm3, %v1142_v46, %v1144_v30 }
 0x24c   : > { %v998_v56 = vadd.f32 %v970_v51, %v3271_v10  ;;  %v999_v57 = vadd.f32 %v972_v52, %v3273_v11  ;;  %v3326_v59 = vadd.f32 %v1143_v0, %v997_v38  ;;  %v926_v29 = vpop.f32.mrf.mxu1  ;;  %v1101_v60 = vpop.f32.mrf.mxu0 }
 0x24d   : > { %v975_v61 = vrot.slane %v926_v29, 2  ;;  %v1148_v5 = vrot.slane %v1101_v60, 2 }
 0x24e   : > { %v3328_v63 = vadd.f32 %v1145_v53, %v998_v56  ;;  %v2709_v1 = vpop.f32.mrf.mxu1  ;;  %v2729_v2 = vpop.f32.mrf.mxu0  ;;  %v3330_v34 = vadd.f32 %v1147_v43, %v999_v57 }
 0x24f   : > { %v976_v35 = vsel %vm951_vm3, %v973_v37, %v975_v61  ;;  %v1002_v4 = vadd.f32 %v975_v61, %v3276_v18  ;;  %v1149_v10 = vsel %vm951_vm3, %v1146_v55, %v1148_v5 }
 0x250   : > { %v1001_v11 = vadd.f32 %v976_v35, %v3278_v19  ;;  %v3336_v6 = vadd.f32 %v1149_v10, %v1000_v47  ;;  %v929_v7 = vpop.f32.mrf.mxu1  ;;  %v1104_v8 = vpop.f32.mrf.mxu0 }
 0x251   : > { %v1150_v9 = vrot.slane %v1104_v8, 2 }
 0x252   : > { %v3338_v12 = vpop.f32.mrf.mxu1  ;;  %v3340_v13 = vpop.f32.mrf.mxu0 }
 0x253   : > { %v1151_v14 = vsel %vm951_vm3, %v1148_v5, %v1150_v9  ;;  %v3343_v15 = vadd.f32 %v1150_v9, %v1002_v4  ;;  %v1304_v20 = vrot.slane %v3338_v12, 3  ;;  %v1480_v26 = vrot.slane %v3340_v13, 4 }
 0x254   : > { %v3345_v16 = vadd.f32 %v1151_v14, %v1001_v11  ;;  %v1229_v18 = vpop.f32.mrf.mxu1  ;;  %v1405_v17 = vpop.f32.mrf.mxu0 }
 0x256   : > { %v2737_v44 = vpop.f32.mrf.mxu1  ;;  %v2757_v19 = vpop.f32.mrf.mxu0 }
 0x257   : > { %v1306_v21 = vrot.slane %v2737_v44, 3  ;;  %v1482_v22 = vrot.slane %v2757_v19, 4 }
 0x258   : > { %v3348_v24 = vpop.f32.mrf.mxu1  ;;  %v3350_v25 = vpop.f32.mrf.mxu0 }
 0x259   : > { %v1307_v49 = vsel %vm1302_vm4, %v1304_v20, %v1306_v21  ;;  %v1483_v32 = vsel %vm1478_vm5, %v1480_v26, %v1482_v22 }
 0x25a   : > { %v1342_v28 = vadd.f32 %v1307_v49, %v3290_v62  ;;  %v3357_v30 = vpop.f32.mrf.mxu1  ;;  %v3359_v31 = vpop.f32.mrf.mxu0 }
 0x25b   : > { %v1312_v41 = vrot.slane %v3357_v30, 3  ;;  %v1488_v50 = vrot.slane %v3359_v31, 4 }
 0x25c   : > { %v3364_v36 = vadd.f32 %v1483_v32, %v1342_v28  ;;  %v3366_v54 = vpop.f32.mrf.mxu1  ;;  %v3368_v37 = vpop.f32.mrf.mxu0 }
 0x25d   : > { %v1308_v55 = vrot.slane %v3366_v54, 3  ;;  %v1484_v38 = vrot.slane %v3368_v37, 4 }
 0x25e   : > { %v2741_v40 = vpop.f32.mrf.mxu1  ;;  %v2761_v62 = vpop.f32.mrf.mxu0 }
 0x25f   : > { %v1309_v42 = vsel %vm1302_vm4, %v1306_v21, %v1308_v55  ;;  %v1314_v43 = vrot.slane %v2741_v40, 3  ;;  %v1490_v45 = vrot.slane %v2761_v62, 4  ;;  %v1485_v51 = vsel %vm1478_vm5, %v1482_v22, %v1484_v38 }
 0x260   : > { %v1343_v46 = vadd.f32 %v1309_v42, %v3295_v3  ;;  %v3377_v47 = vpop.f32.mrf.mxu1  ;;  %v3379_v48 = vpop.f32.mrf.mxu0 }
 0x261   : > { %v1315_v52 = vsel %vm1302_vm4, %v1312_v41, %v1314_v43  ;;  %v1491_v57 = vsel %vm1478_vm5, %v1488_v50, %v1490_v45 }
 0x262   : > { %v3388_v0 = vadd.f32 %v1485_v51, %v1343_v46  ;;  %v1346_v53 = vadd.f32 %v1315_v52, %v3310_v33  ;;  %v3391_v56 = vpop.f32.mrf.mxu1  ;;  %v3393_v3 = vpop.f32.mrf.mxu0 }
 0x263   : > { %v1320_v2 = vrot.slane %v3391_v56, 3  ;;  %v1496_v18 = vrot.slane %v3393_v3, 4 }
 0x264   : > { %v3398_v29 = vadd.f32 %v1491_v57, %v1346_v53  ;;  %v1260_v60 = vpop.f32.mrf.mxu1  ;;  %v1436_v61 = vpop.f32.mrf.mxu0 }
 0x265   : > { %v1316_v5 = vrot.slane %v1260_v60, 3  ;;  %v1492_v1 = vrot.slane %v1436_v61, 4 }
 0x266   : > { %v2745_v35 = vpop.f32.mrf.mxu1  ;;  %v2765_v4 = vpop.f32.mrf.mxu0 }
 0x267   : > { %v1317_v33 = vsel %vm1302_vm4, %v1314_v43, %v1316_v5  ;;  %v1493_v10 = vsel %vm1478_vm5, %v1490_v45, %v1492_v1  ;;  %v1322_v11 = vrot.slane %v2745_v35, 3  ;;  %v1498_v7 = vrot.slane %v2765_v4, 4 }
 0x268   : > { %v1347_v8 = vadd.f32 %v1317_v33, %v3315_v39  ;;  %v3404_v9 = vpop.f32.mrf.mxu1  ;;  %v3406_v14 = vpop.f32.mrf.mxu0 }
 0x269   : > { %v1323_v17 = vsel %vm1302_vm4, %v1320_v2, %v1322_v11  ;;  %v1318_v44 = vrot.slane %v3404_v9, 3  ;;  %v1494_v19 = vrot.slane %v3406_v14, 4  ;;  %v1499_v28 = vsel %vm1478_vm5, %v1496_v18, %v1498_v7 }
 0x26a   : > { %v3414_v21 = vadd.f32 %v1493_v10, %v1347_v8  ;;  %v1350_v22 = vadd.f32 %v1323_v17, %v3330_v34  ;;  %v2748_v49 = vpop.f32.mrf.mxu1  ;;  %v2768_v39 = vpop.f32.mrf.mxu0 }
 0x26b   : > { %v1319_v32 = vsel %vm1302_vm4, %v1316_v5, %v1318_v44  ;;  %v1495_v45 = vsel %vm1478_vm5, %v1492_v1, %v1494_v19  ;;  %v1497_v37 = vsel %vm1478_vm5, %v1494_v19, %v1496_v18  ;;  %v3528_v19 = vpop.permute.xlu1 %2095 }
 0x26c   : > { %v3421_v40 = vadd.f32 %v1499_v28, %v1350_v22  ;;  %v1348_v62 = vadd.f32 %v1319_v32, %v3326_v59  ;;  %v1276_v42 = vpop.f32.mrf.mxu1  ;;  %v1452_v43 = vpop.f32.mrf.mxu0 }
 0x26d   : > { %v1324_v46 = vrot.slane %v1276_v42, 3  ;;  %v1500_v34 = vrot.slane %v1452_v43, 4 }
 0x26e   : > { %v3427_v51 = vadd.f32 %v1495_v45, %v1348_v62  ;;  %v2749_v52 = vpop.f32.mrf.mxu1  ;;  %v2769_v53 = vpop.f32.mrf.mxu0 }
 0x26f   : > { %v1325_v57 = vsel %vm1302_vm4, %v1322_v11, %v1324_v46  ;;  %v1501_v60 = vsel %vm1478_vm5, %v1498_v7, %v1500_v34  ;;  %v1310_v53 = vrot.slane %v3377_v47, 3 }
 0x270   : > { %v1351_v61 = vadd.f32 %v1325_v57, %v3336_v6  ;;  %v1279_v5 = vpop.f32.mrf.mxu1  ;;  %v3432_v59 = vpop.f32.mrf.mxu0 }
 0x271   : > { %v1326_v35 = vrot.slane %v1279_v5, 3  ;;  %v1502_v4 = vrot.slane %v3432_v59, 4 }
 0x272   : > { %v3435_v33 = vadd.f32 %v1501_v60, %v1351_v61  ;;  %v2776_v1 = vpop.f32.mrf.mxu1  ;;  %v3437_v10 = vpop.f32.mrf.mxu0 }
 0x273   : > { %v1327_v8 = vsel %vm1302_vm4, %v1324_v46, %v1326_v35  ;;  %v1503_v6 = vsel %vm1478_vm5, %v1500_v34, %v1502_v4  ;;  %v1303_v46 = vrot.slane %v3348_v24, 3  ;;  %v1311_v24 = vsel %vm1302_vm4, %v1308_v55, %v1310_v53 }
 0x274   : > { %v1352_v9 = vadd.f32 %v1327_v8, %v3345_v16  ;;  %v1581_v11 = vpop.f32.mrf.mxu1  ;;  %v1756_v17 = vpop.f32.mrf.mxu0  ;;  %v1344_v54 = vadd.f32 %v1311_v24, %v3306_v23  ;;  %v1832_v3 = vrot.slane %v3437_v10, 5 }
 0x275   : > { %v1305_v61 = vsel %vm1302_vm4, %v1303_v46, %v1304_v20  ;;  %v1313_v11 = vsel %vm1302_vm4, %v1310_v53, %v1312_v41  ;;  %v1486_v20 = vrot.slane %v3379_v48, 4  ;;  %v1654_v41 = vrot.slane %v2776_v1, 4 }
 0x276   : > { %v3444_v7 = vadd.f32 %v1503_v6, %v1352_v9  ;;  %v2777_v22 = vpop.f32.mrf.mxu1  ;;  %v3446_v49 = vpop.f32.mrf.mxu0  ;;  %v1479_v9 = vrot.slane %v3350_v25, 4  ;;  %v1341_v47 = vadd.f32 %v1305_v61, %v3288_v58  ;;  %v1321_v25 = vsel %vm1302_vm4, %v1318_v44, %v1320_v2 }
 0x277   : > { %v1655_v6 = vrot.slane %v2777_v22, 4  ;;  %v1345_v30 = vadd.f32 %v1313_v11, %v3308_v27  ;;  %v1349_v56 = vadd.f32 %v1321_v25, %v3328_v63  ;;  %v1487_v23 = vsel %vm1478_vm5, %v1484_v38, %v1486_v20 }
 0x278   : > { %v1583_v39 = vpop.f32.mrf.mxu1  ;;  %v1758_v28 = vpop.f32.mrf.mxu0  ;;  %v1481_v58 = vsel %vm1478_vm5, %v1479_v9, %v1480_v26  ;;  %v1489_v1 = vsel %vm1478_vm5, %v1486_v20, %v1488_v50  ;;  %v1520_v22 = vadd.f32 %v1487_v23, %v1344_v54  ;;  %v1353_v63 = vadd.f32 %v1326_v35, %v3343_v15 }
 0x279   : > { %v1517_v48 = vadd.f32 %v1481_v58, %v1341_v47  ;;  %v1656_v13 = vsel %vm1478_vm5, %v1654_v41, %v1655_v6  ;;  %v1521_v46 = vadd.f32 %v1489_v1, %v1345_v30  ;;  %v1833_v38 = vrot.slane %v3446_v49, 5 }
 0x27a   : > { %v3448_v32 = vpop.f32.mrf.mxu1  ;;  %v3450_v62 = vpop.f32.mrf.mxu0  ;;  %v3533_v61 = vadd.f32 %v1502_v4, %v1353_v63 }
 0x27b   : > { %v1661_v26 = vrot.slane %v3448_v32, 4  ;;  %v1525_v32 = vadd.f32 %v1497_v37, %v1349_v56  ;;  %v1692_v50 = vadd.f32 %v1656_v13, %v1517_v48  ;;  %v1834_v10 = vsel %vm1831_vm6, %v1832_v3, %v1833_v38 }
 0x27c   : > { %v1595_v42 = vpop.f32.mrf.mxu1  ;;  %v3452_v43 = vpop.f32.mrf.mxu0 }
 0x27d   : > { %v1657_v55 = vrot.slane %v1595_v42, 4  ;;  %v1872_v59 = vadd.f32 %v1834_v10, %v1692_v50 }
 0x27e   : > { %v3454_v16 = vpop.f32.mrf.mxu1  ;;  %v3456_v45 = vpop.f32.mrf.mxu0 }
 0x27f   : > { %v1663_v28 = vrot.slane %v3454_v16, 4  ;;  %v1658_v42 = vsel %vm1478_vm5, %v1655_v6, %v1657_v55  ;;  %v1841_v15 = vrot.slane %v3456_v45, 5 }
 0x280   : > { %v1598_v34 = vpop.f32.mrf.mxu1  ;;  %v3459_v52 = vpop.f32.mrf.mxu0  ;;  %v1693_v14 = vadd.f32 %v1658_v42, %v3364_v36 }
 0x281   : > { %v1659_v27 = vrot.slane %v1598_v34, 4  ;;  %v1664_v31 = vsel %vm1478_vm5, %v1661_v26, %v1663_v28  ;;  %v1835_v34 = vrot.slane %v3452_v43, 5  ;;  %v1839_v43 = vrot.slane %v3450_v62, 5 }
 0x282   : > { %v3462_v57 = vpop.f32.mrf.mxu1  ;;  %v3464_v60 = vpop.f32.mrf.mxu0  ;;  %v1696_v45 = vadd.f32 %v1664_v31, %v1521_v46  ;;  %v1837_v9 = vrot.slane %v3459_v52, 5 }
 0x283   : > { %v1660_v18 = vsel %vm1478_vm5, %v1657_v55, %v1659_v27  ;;  %v1662_v36 = vsel %vm1478_vm5, %v1659_v27, %v1661_v26  ;;  %v1836_v4 = vsel %vm1831_vm6, %v1833_v38, %v1835_v34  ;;  %v1842_v62 = vsel %vm1831_vm6, %v1839_v43, %v1841_v15 }
 0x284   : > { %v3469_v5 = vpop.f32.mrf.mxu1  ;;  %v3471_v8 = vpop.f32.mrf.mxu0  ;;  %v3548_v25 = vadd.f32 %v1836_v4, %v1693_v14  ;;  %v1669_v6 = vrot.slane %v3462_v57, 4  ;;  %v3553_v55 = vadd.f32 %v1842_v62, %v1696_v45  ;;  %v1838_v58 = vsel %vm1831_vm6, %v1835_v34, %v1837_v9 }
 0x285   : > { %v1665_v49 = vrot.slane %v3469_v5, 4  ;;  %v1694_v5 = vadd.f32 %v1660_v18, %v3388_v0  ;;  %v1840_v30 = vsel %vm1831_vm6, %v1837_v9, %v1839_v43  ;;  %v1847_v0 = vrot.slane %v3464_v60, 5  ;;  %v3561_v57 = vpop.permute.xlu1 %2100 }
 0x286   : > { %v3481_v17 = vpop.f32.mrf.mxu1  ;;  %v3483_v12 = vpop.f32.mrf.mxu0  ;;  %v1843_v48 = vrot.slane %v3471_v8, 5 }
 0x287   : > { %v1671_v47 = vrot.slane %v3481_v17, 4  ;;  %v1666_v17 = vsel %vm1478_vm5, %v1663_v28, %v1665_v49  ;;  %v3564_v23 = vadd.f32 %v1838_v58, %v1694_v5  ;;  %v1849_v26 = vrot.slane %v3483_v12, 5 }
 0x288   : > { %v3490_v39 = vpop.f32.mrf.mxu1  ;;  %v3498_v2 = vpop.f32.mrf.mxu0  ;;  %v1697_v13 = vadd.f32 %v1666_v17, %v3398_v29  ;;  %v1844_v12 = vsel %vm1831_vm6, %v1841_v15, %v1843_v48 }
 0x289   : > { %v1667_v11 = vrot.slane %v3490_v39, 4  ;;  %v1695_v39 = vadd.f32 %v1662_v36, %v1520_v22  ;;  %v1672_v56 = vsel %vm1478_vm5, %v1669_v6, %v1671_v47  ;;  %v1845_v27 = vrot.slane %v3498_v2, 5  ;;  %v3591_v45 = vpop.permute.xlu1 %2110 }
 0x28a   : > { %v3500_v44 = vpop.f32.mrf.mxu1  ;;  %v3523_v35 = vpop.f32.mrf.mxu0  ;;  %v1700_v46 = vadd.f32 %v1672_v56, %v1525_v32  ;;  %v3586_v18 = vadd.f32 %v1844_v12, %v1697_v13 }
 0x28b   : > { %v1668_v28 = vsel %vm1478_vm5, %v1665_v49, %v1667_v11  ;;  %v1670_v60 = vsel %vm1478_vm5, %v1667_v11, %v1669_v6  ;;  %v1850_v49 = vsel %vm1831_vm6, %v1847_v0, %v1849_v26  ;;  %v1846_v15 = vsel %vm1831_vm6, %v1843_v48, %v1845_v27  ;;  %v2106_v13 = vpop.permute.xlu0 %2105 }
 0x28c   : > { %v3512_v16 = vpop.f32.mrf.mxu1  ;;  %v3546_v52 = vpop.f32.mrf.mxu0  ;;  %v1698_v37 = vadd.f32 %v1668_v28, %v3414_v21  ;;  %v1699_v32 = vadd.f32 %v1670_v60, %v3427_v51  ;;  %v1677_v21 = vrot.slane %v3500_v44, 4  ;;  %v1855_v43 = vrot.slane %v3523_v35, 5 }
 0x28d   : > { %v1673_v54 = vrot.slane %v3512_v16, 4  ;;  %v3571_v16 = vadd.f32 %v1840_v30, %v1695_v39  ;;  %v1851_v2 = vrot.slane %v3546_v52, 5  ;;  %v3593_v9 = vadd.f32 %v1850_v49, %v1700_v46 }
 0x28e   : > { %v2789_v53 = vpop.f32.mrf.mxu1  ;;  %v2809_v1 = vpop.f32.mrf.mxu0  ;;  %v1848_v51 = vsel %vm1831_vm6, %v1845_v27, %v1847_v0  ;;  %v3596_v44 = vadd.f32 %v1846_v15, %v1698_v37 }
 0x28f   : > { %v1674_v8 = vsel %vm1478_vm5, %v1671_v47, %v1673_v54  ;;  %v1857_v31 = vrot.slane %v2809_v1, 5  ;;  %v1852_v10 = vsel %vm1831_vm6, %v1849_v26, %v1851_v2  ;;  %v3603_v35 = vadd.f32 %v1848_v51, %v1699_v32 }
 0x290   : > { %v3537_v24 = vpop.f32.mrf.mxu1  ;;  %v1701_v34 = vadd.f32 %v1674_v8, %v3421_v40  ;;  %v1805_v53 = vpop.f32.mrf.mxu0 }
 0x291   : > { %v1675_v38 = vrot.slane %v3537_v24, 4  ;;  %v1858_v36 = vsel %vm1831_vm6, %v1855_v43, %v1857_v31  ;;  %v1853_v47 = vrot.slane %v1805_v53, 5 }
 0x292   : > { %v2816_v20 = vpop.f32.mrf.mxu1  ;;  %v3606_v4 = vadd.f32 %v1852_v10, %v1701_v34 }
 0x293   : > { %v2012_v63 = vrot.slane %v2816_v20, 6  ;;  %v1676_v40 = vsel %vm1478_vm5, %v1673_v54, %v1675_v38  ;;  %v1678_v39 = vsel %vm1478_vm5, %v1675_v38, %v1677_v21  ;;  %v1854_v0 = vsel %vm1831_vm6, %v1851_v2, %v1853_v47 }
 0x294   : > { %v1936_v41 = vpop.f32.mrf.mxu1  ;;  %v1702_v52 = vadd.f32 %v1676_v40, %v3435_v33  ;;  %v1856_v48 = vsel %vm1831_vm6, %v1853_v47, %v1855_v43 }
 0x295   : > { %v2116_v41 = vpop.permute.xlu1 %2115 }
 0x296   : > { %v2817_v22 = vpop.f32.mrf.mxu1  ;;  %v3626_v60 = vadd.f32 %v1854_v0, %v1702_v52 }
 0x297   : > { %v2013_v42 = vrot.slane %v2817_v22, 6  ;;  %v1703_v22 = vadd.f32 %v1678_v39, %v3444_v7 }
 0x298   : > { %v1938_v29 = vpop.f32.mrf.mxu1 }
 0x299   : > { %v2014_v50 = vsel %vm2011_vm7, %v2012_v63, %v2013_v42  ;;  %v3658_v39 = vadd.f32 %v1856_v48, %v1703_v22 }
 0x29a   : > { %v2052_v3 = vadd.f32 %v2014_v50, %v1872_v59  ;;  %v2820_v14 = vpop.f32.mrf.mxu1  ;;  %v1704_v59 = vadd.f32 %v1677_v21, %v3533_v61 }
 0x29b   : > { %v2019_v20 = vrot.slane %v2820_v14, 6 }
 0x29c   : > { %2066 = vst.msk [vmem:[%s3578_s16] sm:$0xff] %vm2065_vm8, %v2052_v3  ;;  %v1950_v24 = vpop.f32.mrf.mxu1  ;;  %v2202_v62 = vmul.f32 %v2052_v3, %v2052_v3  ;;  %v3610_v54 = vadd.f32 %v1858_v36, %v1704_v59  ;;  %v2158_v58 = vmul.f32 %v3528_v19, %v2052_v3  ;;  %v2121_v3 = vpop.permute.xlu0 %2120 }
 0x29d   : > { %v2015_v11 = vrot.slane %v1950_v24, 6 }
 0x29e   : > { %v2821_v5 = vpop.f32.mrf.mxu1  ;;  %v2215_v28 = vmul.f32 %v2202_v62, %v3528_v19  ;;  %v2171_v19 = vsel %vm2065_vm8, %v2158_v58, 0.0 }
 0x29f   : > { %v2016_v6 = vsel %vm2011_vm7, %v2013_v42, %v2015_v11  ;;  %v2021_v17 = vrot.slane %v2821_v5, 6 }
 0x2a0   : > { %v2053_v30 = vadd.f32 %v2016_v6, %v3548_v25  ;;  %v1953_v61 = vpop.f32.mrf.mxu1  ;;  %v2228_v2 = vsel %vm2065_vm8, %v2215_v28, 0.0  ;;  %v2131_v28 = vpop.permute.xlu0 %2130 }
 0x2a1   : > { %v2022_v33 = vsel %vm2011_vm7, %v2019_v20, %v2021_v17  ;;  %v2017_v56 = vrot.slane %v1953_v61, 6 }
 0x2a2   : > { %2067 = vst.msk [vmem:[%s3578_s16 + $0x8] sm:$0xff] %vm2065_vm8, %v2053_v30  ;;  %v2159_v26 = vmul.f32 %v3561_v57, %v2053_v30  ;;  %v2203_v27 = vmul.f32 %v2053_v30, %v2053_v30  ;;  %v2056_v25 = vadd.f32 %v2022_v33, %v3553_v55  ;;  %v3623_v1 = vpop.f32.mrf.mxu1 }
 0x2a3   : > { %v2018_v8 = vsel %vm2011_vm7, %v2015_v11, %v2017_v56  ;;  %v2020_v63 = vsel %vm2011_vm7, %v2017_v56, %v2019_v20  ;;  %v2027_v32 = vrot.slane %v3623_v1, 6 }
 0x2a4   : > { %v2172_v42 = vsel %vm2065_vm8, %v2159_v26, 0.0  ;;  %v2216_v46 = vmul.f32 %v2203_v27, %v3561_v57  ;;  %2070 = vst.msk [vmem:[%s3578_s16 + $0x20] sm:$0xff] %vm2065_vm8, %v2056_v25  ;;  %v2206_v55 = vmul.f32 %v2056_v25, %v2056_v25  ;;  %v1966_v37 = vpop.f32.mrf.mxu1  ;;  %v2054_v7 = vadd.f32 %v2018_v8, %v3564_v23  ;;  %v2126_v57 = vpop.permute.xlu1 %2125 }
 0x2a5   : > { %v2173_v38 = vadd.f32 %v2172_v42, %v2171_v19  ;;  %v2055_v29 = vadd.f32 %v2020_v63, %v3571_v16  ;;  %v2023_v12 = vrot.slane %v1966_v37, 6  ;;  %v2162_v50 = vmul.f32 %v2116_v41, %v2056_v25 }
 0x2a6   : > { %v2229_v31 = vsel %vm2065_vm8, %v2216_v46, 0.0  ;;  %v3640_v21 = vpop.f32.mrf.mxu1  ;;  %2068 = vst.msk [vmem:[%s3578_s16 + $0x10] sm:$0xff] %vm2065_vm8, %v2054_v7  ;;  %v2160_v53 = vmul.f32 %v2106_v13, %v2054_v7  ;;  %v2204_v16 = vmul.f32 %v2054_v7, %v2054_v7  ;;  %v2219_v14 = vmul.f32 %v2206_v55, %v2116_v41 }
 0x2a7   : > { %v2230_v34 = vadd.f32 %v2229_v31, %v2228_v2  ;;  %2069 = vst.msk [vmem:[%s3578_s16 + $0x18] sm:$0xff] %vm2065_vm8, %v2055_v29  ;;  %v2161_v23 = vmul.f32 %v3591_v45, %v2055_v29  ;;  %v2205_v49 = vmul.f32 %v2055_v29, %v2055_v29  ;;  %v2024_v15 = vsel %vm2011_vm7, %v2021_v17, %v2023_v12 }
 0x2a8   : > { %v2029_v43 = vrot.slane %v3640_v21, 6  ;;  %v1969_v51 = vpop.f32.mrf.mxu1  ;;  %v2174_v40 = vsel %vm2065_vm8, %v2160_v53, 0.0  ;;  %v2217_v10 = vmul.f32 %v2204_v16, %v2106_v13  ;;  %v2057_v36 = vadd.f32 %v2024_v15, %v3586_v18  ;;  %v2136_v61 = vpop.permute.xlu1 %2135 }
 0x2a9   : > { %v2176_v24 = vsel %vm2065_vm8, %v2161_v23, 0.0  ;;  %v2175_v47 = vadd.f32 %v2174_v40, %v2173_v38  ;;  %v2218_v11 = vmul.f32 %v2205_v49, %v3591_v45  ;;  %v2025_v62 = vrot.slane %v1969_v51, 6 }
 0x2aa   : > { %v2030_v59 = vsel %vm2011_vm7, %v2027_v32, %v2029_v43  ;;  %v2828_v5 = vpop.f32.mrf.mxu1  ;;  %v2231_v52 = vsel %vm2065_vm8, %v2217_v10, 0.0  ;;  %2071 = vst.msk [vmem:[%s3578_s16 + $0x28] sm:$0xff] %vm2065_vm8, %v2057_v36  ;;  %v2163_v20 = vmul.f32 %v2121_v3, %v2057_v36  ;;  %v2207_v6 = vmul.f32 %v2057_v36, %v2057_v36 }
 0x2ab   : > { %v2060_v17 = vadd.f32 %v2030_v59, %v3593_v9  ;;  %v2177_v58 = vadd.f32 %v2176_v24, %v2175_v47  ;;  %v2232_v18 = vadd.f32 %v2231_v52, %v2230_v34  ;;  %v2026_v30 = vsel %vm2011_vm7, %v2023_v12, %v2025_v62  ;;  %v2141_v34 = vpop.permute.xlu0 %2140 }
 0x2ac   : > { %v1982_v45 = vpop.f32.mrf.mxu1  ;;  %v2178_v41 = vsel %vm2065_vm8, %v2162_v50, 0.0  ;;  %v2233_v0 = vsel %vm2065_vm8, %v2218_v11, 0.0  ;;  %v2220_v33 = vmul.f32 %v2207_v6, %v2121_v3  ;;  %v2028_v48 = vsel %vm2011_vm7, %v2025_v62, %v2027_v32 }
 0x2ad   : > { %2074 = vst.msk [vmem:[%s3578_s16 + $0x40] sm:$0xff] %vm2065_vm8, %v2060_v17  ;;  %v2210_v56 = vmul.f32 %v2060_v17, %v2060_v17  ;;  %v2234_v13 = vadd.f32 %v2233_v0, %v2232_v18  ;;  %v2179_v9 = vadd.f32 %v2178_v41, %v2177_v58  ;;  %v2058_v26 = vadd.f32 %v2026_v30, %v3596_v44 }
 0x2ae   : > { %v2829_v27 = vpop.f32.mrf.mxu1  ;;  %v2235_v25 = vsel %vm2065_vm8, %v2219_v14, 0.0  ;;  %v2180_v1 = vsel %vm2065_vm8, %v2163_v20, 0.0  ;;  %v2166_v22 = vmul.f32 %v2136_v61, %v2060_v17  ;;  %v2059_v8 = vadd.f32 %v2028_v48, %v3603_v35  ;;  %v2146_v14 = vpop.permute.xlu1 %2145 }
 0x2af   : > { %v2181_v63 = vadd.f32 %v2180_v1, %v2179_v9  ;;  %v2236_v19 = vadd.f32 %v2235_v25, %v2234_v13  ;;  %2072 = vst.msk [vmem:[%s3578_s16 + $0x30] sm:$0xff] %vm2065_vm8, %v2058_v26  ;;  %v2164_v42 = vmul.f32 %v2126_v57, %v2058_v26  ;;  %v2208_v46 = vmul.f32 %v2058_v26, %v2058_v26  ;;  %v2151_v58 = vpop.permute.xlu0 %2150 }
 0x2b0   : > { %v2237_v55 = vsel %vm2065_vm8, %v2220_v33, 0.0  ;;  %v2223_v37 = vmul.f32 %v2210_v56, %v2136_v61  ;;  %2073 = vst.msk [vmem:[%s3578_s16 + $0x38] sm:$0xff] %vm2065_vm8, %v2059_v8  ;;  %v2165_v44 = vmul.f32 %v2131_v28, %v2059_v8  ;;  %v2209_v38 = vmul.f32 %v2059_v8, %v2059_v8  ;;  %v1985_v7 = vpop.f32.mrf.mxu1 }
 0x2b1   : > { %v2238_v29 = vadd.f32 %v2237_v55, %v2236_v19  ;;  %v2182_v12 = vsel %vm2065_vm8, %v2164_v42, 0.0  ;;  %v2221_v2 = vmul.f32 %v2208_v46, %v2126_v57  ;;  %v2031_v35 = vrot.slane %v1982_v45, 6 }
 0x2b2   : > { %v2183_v31 = vadd.f32 %v2182_v12, %v2181_v63  ;;  %v2222_v50 = vmul.f32 %v2209_v38, %v2131_v28  ;;  %v2035_v32 = vrot.slane %v2828_v5, 6  ;;  %v2037_v21 = vrot.slane %v2829_v27, 6  ;;  %v2156_v61 = vpop.permute.xlu1 %2155 }
 0x2b3   : > { %v2184_v53 = vsel %vm2065_vm8, %v2165_v44, 0.0  ;;  %v2239_v23 = vsel %vm2065_vm8, %v2221_v2, 0.0  ;;  %v2032_v16 = vsel %vm2011_vm7, %v2029_v43, %v2031_v35  ;;  %v2033_v3 = vrot.slane %v1985_v7, 6 }
 0x2b4   : > { %v2186_v49 = vsel %vm2065_vm8, %v2166_v22, 0.0  ;;  %v2185_v15 = vadd.f32 %v2184_v53, %v2183_v31  ;;  %v2240_v51 = vadd.f32 %v2239_v23, %v2238_v29  ;;  %v2061_v57 = vadd.f32 %v2032_v16, %v3606_v4 }
 0x2b5   : > { %v2241_v40 = vsel %vm2065_vm8, %v2222_v50, 0.0  ;;  %v2038_v24 = vsel %vm2011_vm7, %v2035_v32, %v2037_v21  ;;  %v2034_v10 = vsel %vm2011_vm7, %v2031_v35, %v2033_v3  ;;  %v2036_v36 = vsel %vm2011_vm7, %v2033_v3, %v2035_v32 }
 0x2b6   : > { %v2242_v47 = vadd.f32 %v2241_v40, %v2240_v51  ;;  %2075 = vst.msk [vmem:[%s3578_s16 + $0x48] sm:$0xff] %vm2065_vm8, %v2061_v57  ;;  %v2167_v43 = vmul.f32 %v2141_v34, %v2061_v57  ;;  %v2187_v11 = vadd.f32 %v2186_v49, %v2185_v15  ;;  %v2211_v59 = vmul.f32 %v2061_v57, %v2061_v57 }
 0x2b7   : > { %v2243_v62 = vsel %vm2065_vm8, %v2223_v37, 0.0  ;;  %v2064_v4 = vadd.f32 %v2038_v24, %v3610_v54  ;;  %v2062_v5 = vadd.f32 %v2034_v10, %v3626_v60  ;;  %v2063_v52 = vadd.f32 %v2036_v36, %v3658_v39 }
 0x2b8   : > { %v2188_v20 = vsel %vm2065_vm8, %v2167_v43, 0.0  ;;  %v2224_v6 = vmul.f32 %v2211_v59, %v2141_v34  ;;  %v2244_v17 = vadd.f32 %v2243_v62, %v2242_v47 }
 0x2b9   : > { %v2189_v18 = vadd.f32 %v2188_v20, %v2187_v11  ;;  %2079 = vst.msk [vmem:[%s3578_s16 + $0x60] sm:$0xf] %vm2078_vm9, %v2064_v4  ;;  %v2214_v30 = vmul.f32 %v2064_v4, %v2064_v4  ;;  %v2168_v45 = vmul.f32 %v2146_v14, %v2062_v5  ;;  %v2169_v60 = vmul.f32 %v2151_v58, %v2063_v52 }
 0x2ba   : > { %2076 = vst.msk [vmem:[%s3578_s16 + $0x50] sm:$0xff] %vm2065_vm8, %v2062_v5  ;;  %2077 = vst.msk [vmem:[%s3578_s16 + $0x58] sm:$0xff] %vm2065_vm8, %v2063_v52  ;;  %v2245_v54 = vsel %vm2065_vm8, %v2224_v6, 0.0  ;;  %v2212_v41 = vmul.f32 %v2062_v5, %v2062_v5  ;;  %v2213_v39 = vmul.f32 %v2063_v52, %v2063_v52  ;;  %v2170_v33 = vmul.f32 %v2156_v61, %v2064_v4 }
 0x2bb   : > { %v2246_v0 = vadd.f32 %v2245_v54, %v2244_v17  ;;  %v2190_v56 = vsel %vm2065_vm8, %v2168_v45, 0.0  ;;  %v2192_v48 = vsel %vm2065_vm8, %v2169_v60, 0.0  ;;  %v2227_v26 = vmul.f32 %v2214_v30, %v2156_v61 }
 0x2bc   : > { %v2191_v28 = vadd.f32 %v2190_v56, %v2189_v18  ;;  %v2225_v13 = vmul.f32 %v2212_v41, %v2146_v14  ;;  %v2226_v9 = vmul.f32 %v2213_v39, %v2151_v58  ;;  %v2194_v1 = vsel %vm2078_vm9, %v2170_v33, 0.0 }
 0x2bd   : > { %v2251_v42 = vsel %vm2078_vm9, %v2227_v26, 0.0 }
 0x2be   : > { %v2193_v27 = vadd.f32 %v2192_v48, %v2191_v28  ;;  %v2247_v25 = vsel %vm2065_vm8, %v2225_v13, 0.0  ;;  %v2249_v63 = vsel %vm2065_vm8, %v2226_v9, 0.0 }
 0x2bf   : > { %v2248_v22 = vadd.f32 %v2247_v25, %v2246_v0 }
 0x2c0   : > { %v2195_v8 = vadd.f32 %v2194_v1, %v2193_v27 }
 0x2c1   : > { %v2250_v19 = vadd.f32 %v2249_v63, %v2248_v22 }
 0x2c2   : > { %v2196_v46 = vrot.slane %v2195_v8, 4 }
 0x2c3   : > { %v2252_v55 = vadd.f32 %v2251_v42, %v2250_v19 }
 0x2c4   : > { %v2197_v37 = vadd.f32 %v2196_v46, %v2195_v8 }
 0x2c5   : > { %v2253_v44 = vrot.slane %v2252_v55, 4 }
 0x2c6   : > { %v2198_v38 = vrot.slane %v2197_v37, 2 }
 0x2c7   : > { %v2254_v7 = vadd.f32 %v2253_v44, %v2252_v55 }
 0x2c8   : > { %v2199_v29 = vadd.f32 %v2198_v38, %v2197_v37 }
 0x2c9   : > { %v2255_v12 = vrot.slane %v2254_v7, 2 }
 0x2ca   : > { %v2200_v2 = vrot.slane %v2199_v29, 1 }
 0x2cb   : > { %v2256_v35 = vadd.f32 %v2255_v12, %v2254_v7 }
 0x2cc   : > { %v2201_v50 = vadd.f32 %v2200_v2, %v2199_v29 }
 0x2cd   : > { %v2257_v31 = vrot.slane %v2256_v35, 1 }
 0x2cf   : > { %v2258_v32 = vadd.f32 %v2257_v31, %v2256_v35 }
 0x2d1   : > { %v2260_v21 = vsel %vm2259_vm10, %v2201_v50, %v2258_v32 }
 0x2d2   : > { %v2261_v34 = vsel %vm2011_vm7, %v2260_v21, 0.0 }
 0x2d3   : > { %2262 = vst.msk [vmem:[%s282_s20] sm:$0xff] %vm2065_vm8, %v2261_v34 }
 0x2d4 PF: > { %s17_s21 = sadd.s32 1, %s2867_s21  }
 0x2d5   : > { %p14_p4 = scmp.ge.s32.totalorder %s17_s21, 4  }
 0x2d7   :  { %16 = sbr.rel (!%p14_p4) target bundleno = 1 (0x1), region = 93 }

</bundles_post_ra>
